<compile_context>
chip_gen: v7x
topology: tpu7x:2x2x1
jax: 0.10.0
libtpu: 0.0.40
codegen_flags: <defaults>
</compile_context>

<pallas_src>
import functools
import math

import jax
import jax.numpy as jnp
from jax.experimental import pallas as pl
from jax.experimental.pallas import tpu as pltpu


def _round_up(x, m):
    return (x + m - 1) // m * m


def _tile_bases():
    # 256x256 output tiles for the 256x256 MXU generations (v6e/v7x),
    # 128x128 elsewhere (v5e and older).
    try:
        kind = jax.devices()[0].device_kind.lower()
    except Exception:
        kind = ""
    if ("v6" in kind) or ("v7" in kind):
        return 256, 256
    return 128, 128


_TM_BASE, _TN_BASE = _tile_bases()
# ~10 MiB worst-case double-buffered footprint; 32 MiB limit is safe on
# v5e/v6e (128 MiB physical VMEM) and leaves headroom on v7x (64 MiB).
_VMEM_LIMIT = 32 * 1024 * 1024


def _tile_m(M, K):
    """Row tile: full M when small, otherwise grow the base tile while the
    (tm, K) bf16 x-block stays under ~2 MiB (keeps double buffering cheap)."""
    if M <= _TM_BASE:
        return M
    tm = _TM_BASE
    while tm * 2 <= min(M, 4096) and (tm * 2) * K * 2 <= (2 << 20):
        tm *= 2
    return tm


# ----------------------------------------------------------------------------
# Pallas kernel 1: matmul with fused (scale, bias, relu) epilogue
# ----------------------------------------------------------------------------
def _mm_kernel(*refs, relu, has_scale):
    if has_scale:
        x_ref, w_ref, s_ref, b_ref, o_ref = refs
    else:
        x_ref, w_ref, b_ref, o_ref = refs
    acc = jnp.dot(x_ref[...], w_ref[...], preferred_element_type=jnp.float32)
    if has_scale:
        acc = acc * s_ref[...]
    acc = acc + b_ref[...]
    if relu:
        acc = jnp.maximum(acc, 0.0)
    o_ref[...] = acc.astype(o_ref.dtype)


@functools.partial(jax.jit, static_argnames=("relu", "out_dtype"))
def matmul_fused(x, w, bias, scale=None, relu=False, out_dtype=jnp.float32):
    """act((x @ w) [* scale] + bias); scale/bias broadcast over rows.

    No padding copies: K is a full (untiled) block dim, M/N tails are handled
    by cdiv grids (garbage in out-of-bounds rows/cols never reaches HBM since
    partial output blocks are masked on write-back and rows/cols are
    independent through the matmul + epilogue)."""
    M, K = x.shape
    _, N = w.shape
    tm = _tile_m(M, K)
    tn = N if N < _TN_BASE else _TN_BASE

    xb = x.astype(jnp.bfloat16)
    wb = w.astype(jnp.bfloat16)

    args = [xb, wb]
    in_specs = [pl.BlockSpec((tm, K), lambda i, j: (i, 0)),
                pl.BlockSpec((K, tn), lambda i, j: (0, j))]
    if scale is not None:
        args.append(scale.astype(jnp.float32).reshape(1, N))
        in_specs.append(pl.BlockSpec((1, tn), lambda i, j: (0, j)))
    args.append(bias.astype(jnp.float32).reshape(1, N))
    in_specs.append(pl.BlockSpec((1, tn), lambda i, j: (0, j)))

    return pl.pallas_call(
        functools.partial(_mm_kernel, relu=relu, has_scale=scale is not None),
        out_shape=jax.ShapeDtypeStruct((M, N), out_dtype),
        grid=(pl.cdiv(M, tm), pl.cdiv(N, tn)),
        in_specs=in_specs,
        out_specs=pl.BlockSpec((tm, tn), lambda i, j: (i, j)),
        compiler_params=pltpu.CompilerParams(
            dimension_semantics=("parallel", "parallel"),
            vmem_limit_bytes=_VMEM_LIMIT),
    )(*args)


# ----------------------------------------------------------------------------
# Pallas kernel 2: multi-head scaled-dot-product attention (per batch*head)
# ----------------------------------------------------------------------------
def _attn_kernel(q_ref, k_ref, v_ref, m_ref, o_ref, *, scale):
    q = q_ref[0]                                # (Sp, Dh)
    k = k_ref[0]
    v = v_ref[0]
    s = jax.lax.dot_general(q, k, (((1,), (1,)), ((), ())),
                            preferred_element_type=jnp.float32) * scale
    s = s + m_ref[0]                            # (Sp, Sp) + (1, Sp)
    mx = jnp.max(s, axis=-1, keepdims=True)
    p = jnp.exp(s - mx)
    denom = jnp.sum(p, axis=-1, keepdims=True)
    o = jnp.dot(p, v, preferred_element_type=jnp.float32)
    o = o * pl.reciprocal(denom, approx=True)
    o_ref[0] = o.astype(o_ref.dtype)


@jax.jit
def mha_attention(q, k, v, add_mask):
    """q,k,v: (B*H, S, Dh); add_mask: (B*H, 1, S) additive (0 / -1e9).
    Head dim stays at its true size (no 16->128 padding)."""
    BH, S, Dh = q.shape
    Sp = _round_up(max(S, 8), 8)
    scale = 1.0 / math.sqrt(Dh)
    if Sp != S:
        qp = jnp.zeros((BH, Sp, Dh), jnp.float32).at[:, :S, :].set(q)
        kp = jnp.zeros((BH, Sp, Dh), jnp.float32).at[:, :S, :].set(k)
        vp = jnp.zeros((BH, Sp, Dh), jnp.float32).at[:, :S, :].set(v)
        mp = jnp.full((BH, 1, Sp), -1e9, jnp.float32).at[:, :, :S].set(add_mask)
    else:
        qp, kp, vp, mp = q, k, v, add_mask

    out = pl.pallas_call(
        functools.partial(_attn_kernel, scale=scale),
        out_shape=jax.ShapeDtypeStruct((BH, Sp, Dh), jnp.float32),
        grid=(BH,),
        in_specs=[
            pl.BlockSpec((1, Sp, Dh), lambda b: (b, 0, 0)),
            pl.BlockSpec((1, Sp, Dh), lambda b: (b, 0, 0)),
            pl.BlockSpec((1, Sp, Dh), lambda b: (b, 0, 0)),
            pl.BlockSpec((1, 1, Sp), lambda b: (b, 0, 0)),
        ],
        out_specs=pl.BlockSpec((1, Sp, Dh), lambda b: (b, 0, 0)),
        compiler_params=pltpu.CompilerParams(
            dimension_semantics=("parallel",)),
    )(qp, kp, vp, mp)
    return out[:, :S, :]


# ----------------------------------------------------------------------------
# Pallas kernel 3: fused residual-add + LayerNorm over last dim
# ----------------------------------------------------------------------------
def _add_ln_kernel(x_ref, y_ref, g_ref, b_ref, o_ref, *, eps):
    x = x_ref[...].astype(jnp.float32) + y_ref[...].astype(jnp.float32)
    mu = jnp.mean(x, axis=-1, keepdims=True)
    xc = x - mu
    var = jnp.mean(xc * xc, axis=-1, keepdims=True)
    o_ref[...] = (xc * jax.lax.rsqrt(var + eps) * g_ref[...] + b_ref[...]
                  ).astype(o_ref.dtype)


@jax.jit
def add_layernorm(x, y, g, b):
    """LayerNorm(x + y) — residual add fused into the LN kernel."""
    M, D = x.shape
    tr = M if M <= 256 else 256
    return pl.pallas_call(
        functools.partial(_add_ln_kernel, eps=1e-5),
        out_shape=jax.ShapeDtypeStruct((M, D), jnp.float32),
        grid=(pl.cdiv(M, tr),),
        in_specs=[
            pl.BlockSpec((tr, D), lambda i: (i, 0)),
            pl.BlockSpec((tr, D), lambda i: (i, 0)),
            pl.BlockSpec((1, D), lambda i: (0, 0)),
            pl.BlockSpec((1, D), lambda i: (0, 0)),
        ],
        out_specs=pl.BlockSpec((tr, D), lambda i: (i, 0)),
        compiler_params=pltpu.CompilerParams(
            dimension_semantics=("parallel",)),
    )(x, y, g.reshape(1, D), b.reshape(1, D))


# ----------------------------------------------------------------------------
# Conv / pooling (conv hot path goes through the Pallas matmul kernel)
# ----------------------------------------------------------------------------
def conv_bn_relu(x, p):
    """x: (N, H, W, Cin) NHWC bf16; p['w']: (KH, KW, Cin, Cout) bf16.
    Eval-mode BatchNorm folded into per-channel scale/bias, ReLU fused into
    the matmul epilogue."""
    W = p['w']
    KH, KW, Cin, Cout = W.shape
    pad = KH // 2
    N, H, Wd, _ = x.shape
    xp = jnp.pad(x, ((0, 0), (pad, pad), (pad, pad), (0, 0)))
    # im2col kept as XLA glue but built directly in bf16 (half the extra HBM
    # traffic); an in-kernel implicit-GEMM over taps would need 3D reshapes
    # whose Mosaic lowering is not guaranteed at these odd W/Cin sizes.
    cols = [xp[:, i:i + H, j:j + Wd, :] for i in range(KH) for j in range(KW)]
    X = jnp.concatenate(cols, axis=-1).reshape(N * H * Wd, KH * KW * Cin)
    Wm = W.reshape(KH * KW * Cin, Cout)
    eps = 1e-5
    scale = p['gamma'] * jax.lax.rsqrt(p['var'] + eps)
    bias = p['beta'] + (p['b'] - p['mean']) * scale
    y = matmul_fused(X, Wm, bias, scale=scale, relu=True,
                     out_dtype=jnp.bfloat16)
    return y.reshape(N, H, Wd, Cout)


def maxpool2x2(x):
    # 2x2 max-pool kept as plain XLA reshape+max glue (pure data reshuffle).
    N, H, W, C = x.shape
    return x.reshape(N, H // 2, 2, W // 2, 2, C).max(axis=(2, 4))


def run_vgg(x, layers):
    for lp in layers:
        if lp is None:                       # MaxPool2d(2, 2)
            x = maxpool2x2(x)
        elif 'c1' in lp:                     # VggBasicBlock: (conv-BN-ReLU) x 2
            x = conv_bn_relu(x, lp['c1'])
            x = conv_bn_relu(x, lp['c2'])
        else:                                # single conv-BN-ReLU
            x = conv_bn_relu(x, lp)
    return x


# ----------------------------------------------------------------------------
# Transformer encoder (PyTorch default post-norm layer, eval mode / no dropout)
# ----------------------------------------------------------------------------
def transformer_encoder(x, add_mask, tp, nheads):
    B, S, D = x.shape
    Dh = D // nheads
    mask_bh = jnp.repeat(add_mask[:, None, None, :], nheads,
                         axis=1).reshape(B * nheads, 1, S)

    def heads(t):
        return t.reshape(B, S, nheads, Dh).transpose(0, 2, 1, 3).reshape(
            B * nheads, S, Dh)

    for lyr in tp['layers']:
        xf = x.reshape(B * S, D)
        qkv = matmul_fused(xf, lyr['w_in'], lyr['b_in'])
        q, k, v = jnp.split(qkv, 3, axis=-1)
        o = mha_attention(heads(q), heads(k), heads(v), mask_bh)
        o = o.reshape(B, nheads, S, Dh).transpose(0, 2, 1, 3).reshape(B * S, D)
        o = matmul_fused(o, lyr['w_o'], lyr['b_o'])
        xf = add_layernorm(xf, o, lyr['ln1_g'], lyr['ln1_b'])
        ff = matmul_fused(xf, lyr['w1'], lyr['b1'], relu=True)
        ff = matmul_fused(ff, lyr['w2'], lyr['b2'])
        xf = add_layernorm(xf, ff, lyr['ln2_g'], lyr['ln2_b'])
        x = xf.reshape(B, S, D)
    return x


def wrapped_transformer_cls(feats, lens, tp, nheads):
    """WrappedTransformerEncoder(get_cls=True): split by lens, pad, prepend CLS."""
    B, max_len, D = len(lens), max(lens), feats.shape[1]
    seqs, mask_rows, off = [], [], 0
    for L in lens:
        s = feats[off:off + L]
        if max_len - L > 0:
            s = jnp.concatenate([s, jnp.zeros((max_len - L, D), jnp.float32)], 0)
        seqs.append(s)
        mask_rows.append([0.0] * (L + 1) + [-1e9] * (max_len - L))
        off += L
    x = jnp.stack(seqs, axis=0)                                     # (B, L, D)
    cls = jnp.broadcast_to(tp['cls'][None, None, :], (B, 1, D))
    x = jnp.concatenate([cls, x], axis=1)                           # (B, L+1, D)
    add_mask = jnp.asarray(mask_rows, jnp.float32)                  # (B, L+1)
    out = transformer_encoder(x, add_mask, tp, nheads)
    return out[:, 0, :]                                             # CLS token


# ----------------------------------------------------------------------------
# Deterministic parameter init (synthetic; shapes follow MME2E.__init__)
# Matmul/conv weights are stored in bf16 once at init (native MXU dtype);
# biases, BN stats and LayerNorm params stay f32.
# ----------------------------------------------------------------------------
class _KG:
    def __init__(self, seed):
        self._k = jax.random.PRNGKey(seed)

    def __call__(self):
        self._k, sub = jax.random.split(self._k)
        return sub


def _nrm(kg, shape, s=0.05, dtype=jnp.float32):
    return (s * jax.random.normal(kg(), shape, jnp.float32)).astype(dtype)


def _conv_bn(kg, cin, cout, ksz):
    return dict(w=_nrm(kg, (ksz, ksz, cin, cout), dtype=jnp.bfloat16),
                b=_nrm(kg, (cout,), 0.01),
                gamma=1.0 + _nrm(kg, (cout,), 0.01),
                beta=_nrm(kg, (cout,), 0.01),
                mean=_nrm(kg, (cout,), 0.01),
                var=1.0 + jnp.abs(_nrm(kg, (cout,), 0.01)))


def _vgg_params(kg, cin):
    layers = [_conv_bn(kg, cin, 64, 5), None]                  # None == maxpool
    for a, b in [(64, 64), (64, 64), (64, 128)]:
        layers.append(dict(c1=_conv_bn(kg, a, b, 3), c2=_conv_bn(kg, b, b, 3)))
    layers.append(None)
    layers.append(dict(c1=_conv_bn(kg, 128, 256, 3), c2=_conv_bn(kg, 256, 256, 3)))
    layers.append(None)
    layers.append(dict(c1=_conv_bn(kg, 256, 512, 3), c2=_conv_bn(kg, 512, 512, 3)))
    layers.append(None)
    return layers


def _trans_params(kg, dim, nlayers, ff_dim):
    layers = []
    for _ in range(nlayers):
        layers.append(dict(
            w_in=_nrm(kg, (dim, 3 * dim), dtype=jnp.bfloat16),
            b_in=_nrm(kg, (3 * dim,), 0.01),
            w_o=_nrm(kg, (dim, dim), dtype=jnp.bfloat16),
            b_o=_nrm(kg, (dim,), 0.01),
            ln1_g=jnp.ones((dim,), jnp.float32),
            ln1_b=jnp.zeros((dim,), jnp.float32),
            w1=_nrm(kg, (dim, ff_dim), dtype=jnp.bfloat16),
            b1=_nrm(kg, (ff_dim,), 0.01),
            w2=_nrm(kg, (ff_dim, dim), dtype=jnp.bfloat16),
            b2=_nrm(kg, (dim,), 0.01),
            ln2_g=jnp.ones((dim,), jnp.float32),
            ln2_b=jnp.zeros((dim,), jnp.float32)))
    return dict(layers=layers, cls=_nrm(kg, (dim,)))


def init_params(seed=0, num_classes=6, trans_dim=64, nlayers=2, ff_dim=2048,
                text_cls_dim=768, mod='tva'):
    kg = _KG(seed)
    return dict(
        V=_vgg_params(kg, 3),
        A=_vgg_params(kg, 1),
        v_flat=dict(w1=_nrm(kg, (512 * 3 * 3, 1024), dtype=jnp.bfloat16),
                    b1=_nrm(kg, (1024,), 0.01),
                    w2=_nrm(kg, (1024, trans_dim), dtype=jnp.bfloat16),
                    b2=_nrm(kg, (trans_dim,), 0.01)),
        a_flat=dict(w1=_nrm(kg, (512 * 8 * 2, 1024), dtype=jnp.bfloat16),
                    b1=_nrm(kg, (1024,), 0.01),
                    w2=_nrm(kg, (1024, trans_dim), dtype=jnp.bfloat16),
                    b2=_nrm(kg, (trans_dim,), 0.01)),
        v_trans=_trans_params(kg, trans_dim, nlayers, ff_dim),
        a_trans=_trans_params(kg, trans_dim, nlayers, ff_dim),
        t_out=dict(w=_nrm(kg, (text_cls_dim, num_classes)),
                   b=_nrm(kg, (num_classes,), 0.01)),
        v_out=dict(w=_nrm(kg, (trans_dim, num_classes)),
                   b=_nrm(kg, (num_classes,), 0.01)),
        a_out=dict(w=_nrm(kg, (trans_dim, num_classes)),
                   b=_nrm(kg, (num_classes,), 0.01)),
        fusion_w=_nrm(kg, (len(mod), 1)))


# ----------------------------------------------------------------------------
# MME2E forward
# ----------------------------------------------------------------------------
def mme2e_forward(params, imgs, imgs_lens, specs, spec_lens, text_cls_feats,
                  mod='tva', nheads=4):
    all_logits = []

    if 't' in mod:
        # TODO(synk): MME2E_T (pretrained ALBERT text encoder) has no clean Pallas
        # equivalent; `text_cls_feats` stands in for its [CLS] output (B, 768).
        # The 768x6 head stays in plain XLA: a 6-lane pallas_call is pure
        # launch/padding overhead.
        t_logits = text_cls_feats @ params['t_out']['w'] + params['t_out']['b']
        all_logits.append(t_logits)

    if 'v' in mod:
        # TODO(synk): MTCNN face detection has no Pallas equivalent; use the
        # forward's fallback path (crop_img_center) for every frame.
        H = imgs.shape[1]
        off = (H - 48) // 2
        faces = imgs[:, off:off + 48, off - 24:off + 24, :]        # (N, 48, 48, 3)
        mean = jnp.asarray([159.0, 111.0, 102.0], jnp.float32)
        std = jnp.asarray([37.0, 33.0, 32.0], jnp.float32)
        faces = ((faces - mean) / std).astype(jnp.bfloat16)
        feat = run_vgg(faces, params['V'])                         # (N, 3, 3, 512)
        N = feat.shape[0]
        feat = jnp.transpose(feat, (0, 3, 1, 2)).reshape(N, -1)    # NCHW flatten order
        feat = matmul_fused(feat, params['v_flat']['w1'], params['v_flat']['b1'],
                            relu=True, out_dtype=jnp.bfloat16)
        feat = matmul_fused(feat, params['v_flat']['w2'], params['v_flat']['b2'])
        cls = wrapped_transformer_cls(feat, imgs_lens, params['v_trans'], nheads)
        v_logits = cls @ params['v_out']['w'] + params['v_out']['b']
        all_logits.append(v_logits)

    if 'a' in mod:
        feat = run_vgg(specs.astype(jnp.bfloat16), params['A'])    # (N, 8, 2, 512)
        N = feat.shape[0]
        feat = jnp.transpose(feat, (0, 3, 1, 2)).reshape(N, -1)
        feat = matmul_fused(feat, params['a_flat']['w1'], params['a_flat']['b1'],
                            relu=True, out_dtype=jnp.bfloat16)
        feat = matmul_fused(feat, params['a_flat']['w2'], params['a_flat']['b2'])
        cls = wrapped_transformer_cls(feat, spec_lens, params['a_trans'], nheads)
        a_logits = cls @ params['a_out']['w'] + params['a_out']['b']
        all_logits.append(a_logits)

    if len(mod) == 1:
        return all_logits[0]

    # Tiny (B, C, n_mod) x (n_mod, 1) weighted fusion stays in plain XLA:
    # pallas_call launch + tile padding would dwarf the actual compute.
    stack = jnp.stack(all_logits, axis=-1)                         # (B, C, n_mod)
    return jnp.matmul(stack, params['fusion_w'])[..., 0]           # squeeze(-1)


# ----------------------------------------------------------------------------
if __name__ == "__main__":
    key = jax.random.PRNGKey(0)
    k_img, k_spec, k_text = jax.random.split(key, 3)

    B = 2
    imgs_lens = (3, 3)       # video frames per sample (total 6)
    spec_lens = (2, 2)       # spectrogram segments per sample (total 4)

    # imgs: (total_frames, H, W, 3), pixel-valued; specs: NHWC of (N,1,128,32) NCHW
    imgs = jax.random.uniform(k_img, (sum(imgs_lens), 128, 128, 3),
                              jnp.float32) * 255.0
    specs = jax.random.normal(k_spec, (sum(spec_lens), 128, 32, 1), jnp.float32)
    text_cls = jax.random.normal(k_text, (B, 768), jnp.float32)

    params = init_params(seed=0, num_classes=6, trans_dim=64, nlayers=2,
                         ff_dim=2048, text_cls_dim=768, mod='tva')

    # Whole forward under one jit so the XLA glue between Pallas calls is fused
    # and host dispatch overhead is removed (lens/mod/nheads are static).
    fwd = jax.jit(mme2e_forward,
                  static_argnames=("imgs_lens", "spec_lens", "mod", "nheads"))
    out = fwd(params, imgs, imgs_lens=imgs_lens, specs=specs,
              spec_lens=spec_lens, text_cls_feats=text_cls,
              mod='tva', nheads=4)
    out = jax.block_until_ready(out)
    assert out.shape == (B, 6), out.shape
    assert bool(jnp.all(jnp.isfinite(out)))
    print("KERNEL_OK")
</pallas_src>

<mosaic_0001>
module attributes {stable_mosaic.version = 11 : i64} {
  func.func @_mm_kernel(%arg0: i32, %arg1: i32, %arg2: memref<4096x75xbf16, #tpu.memory_space<vmem>>, %arg3: memref<75x64xbf16, #tpu.memory_space<vmem>>, %arg4: memref<1x64xf32, #tpu.memory_space<vmem>>, %arg5: memref<1x64xf32, #tpu.memory_space<vmem>>, %arg6: memref<4096x64xbf16, #tpu.memory_space<vmem>>) attributes {dimension_semantics = [#tpu.dimension_semantics<parallel>, #tpu.dimension_semantics<parallel>], iteration_bounds = array<i64: 4, 1>, scalar_prefetch = 0 : i64, scratch_operands = 0 : i64, tpu.core_type = #tpu.core_type<tc>, window_params = [{transform_indices = @transform_0, window_bounds = array<i64: 4096, 75>}, {transform_indices = @transform_1, window_bounds = array<i64: 75, 64>}, {transform_indices = @transform_2, window_bounds = array<i64: 1, 64>}, {transform_indices = @transform_3, window_bounds = array<i64: 1, 64>}, {transform_indices = @transform_4, window_bounds = array<i64: 4096, 64>}]} {
    %c0 = arith.constant 0 : index
    %c0_0 = arith.constant 0 : index
    %0 = vector.load %arg2[%c0, %c0_0] : memref<4096x75xbf16, #tpu.memory_space<vmem>>, vector<4096x75xbf16>
    %c0_1 = arith.constant 0 : index
    %c0_2 = arith.constant 0 : index
    %1 = vector.load %arg3[%c0_1, %c0_2] : memref<75x64xbf16, #tpu.memory_space<vmem>>, vector<75x64xbf16>
    %cst = arith.constant dense<0.000000e+00> : vector<4096x64xf32>
    %2 = tpu.matmul %0, %1, %cst {dimension_numbers = #tpu.dot_dimension_numbers<[1], [0], [0], [1], [0, 0, 1, 1], [], []>} : vector<4096x75xbf16>, vector<75x64xbf16>, vector<4096x64xf32> -> vector<4096x64xf32>
    %c0_3 = arith.constant 0 : index
    %c0_4 = arith.constant 0 : index
    %3 = vector.load %arg4[%c0_3, %c0_4] : memref<1x64xf32, #tpu.memory_space<vmem>>, vector<1x64xf32>
    %4 = vector.broadcast %3 : vector<1x64xf32> to vector<4096x64xf32>
    %5 = arith.mulf %2, %4 : vector<4096x64xf32>
    %c0_5 = arith.constant 0 : index
    %c0_6 = arith.constant 0 : index
    %6 = vector.load %arg5[%c0_5, %c0_6] : memref<1x64xf32, #tpu.memory_space<vmem>>, vector<1x64xf32>
    %7 = vector.broadcast %6 : vector<1x64xf32> to vector<4096x64xf32>
    %8 = arith.addf %5, %7 : vector<4096x64xf32>
    %cst_7 = arith.constant 0.000000e+00 : f32
    %9 = vector.broadcast %cst_7 : f32 to vector<4096x64xf32>
    %10 = arith.maximumf %8, %9 : vector<4096x64xf32>
    %11 = arith.truncf %10 : vector<4096x64xf32> to vector<4096x64xbf16>
    %c0_8 = arith.constant 0 : index
    %c0_9 = arith.constant 0 : index
    %12 = vector.load %arg6[%c0_8, %c0_9] : memref<4096x64xbf16, #tpu.memory_space<vmem>>, vector<4096x64xbf16>
    tpu.vector_store %arg6[%c0_8, %c0_9], %11 {strides = array<i32>} : memref<4096x64xbf16, #tpu.memory_space<vmem>>, vector<4096x64xbf16>,
    return
  }
  func.func @transform_0(%arg0: i32, %arg1: i32) -> (i32, i32) {
    %c0_i32 = arith.constant 0 : i32
    %c0_i32_0 = arith.constant 0 : i32
    return %arg0, %c0_i32 : i32, i32
  }
  func.func @transform_1(%arg0: i32, %arg1: i32) -> (i32, i32) {
    %c0_i32 = arith.constant 0 : i32
    %c0_i32_0 = arith.constant 0 : i32
    return %c0_i32, %arg1 : i32, i32
  }
  func.func @transform_2(%arg0: i32, %arg1: i32) -> (i32, i32) {
    %c0_i32 = arith.constant 0 : i32
    %c0_i32_0 = arith.constant 0 : i32
    return %c0_i32, %arg1 : i32, i32
  }
  func.func @transform_3(%arg0: i32, %arg1: i32) -> (i32, i32) {
    %c0_i32 = arith.constant 0 : i32
    %c0_i32_0 = arith.constant 0 : i32
    return %c0_i32, %arg1 : i32, i32
  }
  func.func @transform_4(%arg0: i32, %arg1: i32) -> (i32, i32) {
    %c0_i32 = arith.constant 0 : i32
    return %arg0, %arg1 : i32, i32
  }
}

</mosaic_0001>

<bundles_post_ra>
// kernel: matmul_fused.1
= control target key start
LH: loop header
LB: loop body
LE: loop exit
PB: predicated region body
PF: predicated region fallthrough
CT: control target
= control target key end

     0   :  { %s12469_s15 = smov 0   ;;  %s12471_s16 = smov 0   ;;  %s15377_s0 = inlined_call_operand.vmem [shape: bf16[13824,75], index: 0, kind: input, shape index: {}]   ;;  %s15378_s1 = inlined_call_operand.vmem [shape: bf16[75,64], index: 1, kind: input, shape index: {}]   ;;  %s15379_s2 = inlined_call_operand.vmem [shape: f32[1,64], index: 2, kind: input, shape index: {}]   ;;  %s15380_s3 = inlined_call_operand.vmem [shape: f32[1,64], index: 3, kind: input, shape index: {}]   ;;  %s15381_s4 = inlined_call_operand.vmem [shape: bf16[13824,64], index: 4, kind: output, shape index: {}]  }
   0x1   :  { %s12473_s17 = smov 0   ;;  %s12475_s18 = smov 0  }
   0x2   :  { %s12477_s19 = smov 0  }
   0x3 LB: > { %s9594_s20 = sadd.s32 4294967295, %s12409_s19   ;;  %s26_s21 = sadd.s32 1, %s12405_s18  ;;  %s12409_s19 = sphi %s12477_s19, %s14_s19   ;;  %s12405_s18 = sphi %s12475_s18, %s15389_s18   ;;  %s12401_s17 = sphi %s12473_s17, %s15388_s17   ;;  %s12397_s16 = sphi %s12471_s16, %s15387_s16   ;;  %s12393_s15 = sphi %s12469_s15, %s15386_s15  }
   0x4   : > { %p28_p0 = scmp.ge.s32.totalorder %s26_s21, 4  ;;  %s139_s22 = sadd.s32 1, %s12397_s16 }
   0x5   : > { %p149_p1 = scmp.ne.s32.totalorder %s12397_s16, %s12393_s15  ;;  %p150_p2 = scmp.eq.s32.totalorder %s9594_s20, 3 }
   0x6   : > { %s15391_s21 = smov (%p28_p0, %s26_s21), 0  ;;  %p9601_p4 = scmp.ge.s32.totalorder %s12409_s19, 1 }
   0x7   : > { %p12501_p3 = por %p150_p2, %p149_p1  ;;  %s134_s24 = ssub.s32 %s12405_s18, %s15391_s21 }
   0x8   : > { %p210_p5 = scmp.lt.s32.totalorder %s12409_s19, 5  ;;  %p137_p6 = scmp.eq.s32.totalorder %s134_s24, 0 }
   0xa   : > { %p211_p7 = pnand %p9601_p4, %p210_p5 }
   0xb   : > { %s12510_s25 = scalar_select %p137_p6, %s12397_s16, %s139_s22  }
   0xc   : > { %214 = sbr.rel (%p211_p7) target bundleno = 915 (0x393), region = 36  ;;  %v12066_v0 = vld [vmem:[%s15378_s1] sm:$0xff] (!%p211_p7)   ;;  %v12067_v1 = vld [vmem:[%s15378_s1 + $0x8] sm:$0xff] (!%p211_p7)   ;;  %vm2879_vm0 = vcmask (!%p211_p7), 1044480   ;;  %v12068_v2 = vld [vmem:[%s15378_s1 + $0x10] sm:$0xff] (!%p211_p7)   ;;  %s12522_s6 = sshll.u32 (!%p211_p7), %s12401_s17, 9 }
   0xd   : > { %11429 = vmatprep.subr.bf16.mxu0 (!%p211_p7), %v12066_v0  ;;  %11951 = vmatprep.subr.bf16.mxu1 (!%p211_p7), %v12066_v0  ;;  %vm2880_vm1 = vcmask (!%p211_p7), 1045504   ;;  %v12443_v3 = vmov (!%p211_p7), 65535   ;;  %p254_p8 = scmp.lt.s32.totalorder (!%p211_p7), %s12522_s6, 1727  ;;  %v12069_v5 = vld [vmem:[%s15378_s1 + $0x18] sm:$0xff] (!%p211_p7)   ;;  %v12070_v6 = vld [vmem:[%s15378_s1 + $0x20] sm:$0x3f] (!%p211_p7)  }
   0xe   : > { %11430 = vmatpush3.bf16.msra.mxu0 (!%p211_p7), %v12066_v0  ;;  %11956 = vmatpush3.bf16.msra.mxu1 (!%p211_p7), %v12066_v0  ;;  %v2881_v4 = vsel (!%p211_p7), %vm2879_vm0, 4294967295, %v12443_v3  ;;  %vm2110_vm2 = vcmask (!%p211_p7), 613376   ;;  %s246_s22 = sand.u32 (!%p211_p7), 1, %s12393_s15   ;;  %vm8565_vm3 = vcmask (!%p211_p7), 519168  }
   0xf   : > { %11431 = vmatprep.subr.bf16.mxu0 (!%p211_p7), %v12067_v1  ;;  %11952 = vmatprep.subr.bf16.mxu1 (!%p211_p7), %v12067_v1  ;;  %v2882_v7 = vsel (!%p211_p7), %vm2880_vm1, %v2881_v4, 0  ;;  %s12754_s24 = sshll.u32 (!%p211_p7), %s246_s22, 11 }
  0x10   : > { %v2884_v8 = vand.u32 (!%p211_p7), %v12070_v6, %v2882_v7  ;;  %s12797_s29 = scalar_lea.vmem (!%p211_p7), [#allocation2], %s12754_s24  }
  0x12   : > { %11432 = vmatpush3.bf16.msra.mxu0 (!%p211_p7), %v12067_v1  ;;  %11957 = vmatpush3.bf16.msra.mxu1 (!%p211_p7), %v12067_v1 }
  0x13   : > { %11433 = vmatprep.subr.bf16.mxu0 %v12068_v2  ;;  %11953 = vmatprep.subr.bf16.mxu1 %v12068_v2  ;;  %s255_s11 = scalar_select %p254_p8, %s12522_s6, 1727 }
  0x14   : > { %s11165_s13 = sshll.u32 (%p12501_p3), %s12401_s17, 11 }
  0x15   : > { %s9604_s12 = sshll.u32 %s255_s11, 2  ;;  %s15180_s24 = scalar_lea.vmem (%p12501_p3), %s15381_s4, %s11165_s13  }
  0x16   : > { %11434 = vmatpush3.bf16.msra.mxu0 %v12068_v2  ;;  %11958 = vmatpush3.bf16.msra.mxu1 %v12068_v2  ;;  %s12535_s20 = scalar_lea.vmem %s15377_s0, %s9604_s12  ;;  %s9086_s12 = ssub.s32 (%p12501_p3), 1728, %s12522_s6 }
  0x17   : > { %11435 = vmatprep.subr.bf16.mxu0 %v12069_v5  ;;  %11954 = vmatprep.subr.bf16.mxu1 %v12069_v5  ;;  %v12071_v9 = vld [vmem:[%s12535_s20] sm:$0xff]   ;;  %v12073_v11 = vld [vmem:[%s12535_s20 + $0x8] sm:$0xff]   ;;  %v12075_v13 = vld [vmem:[%s12535_s20 + $0x10] sm:$0xff]   ;;  %p9087_p9 = scmp.lt.s32.totalorder (%p12501_p3), %s9086_s12, 512 }
  0x18   : > { %v12072_v10 = vld [vmem:[%s12535_s20 + $0x400] sm:$0xff]   ;;  %11439 = vmatprep.mubr.msk.bf16.mxu0 %vm2110_vm2, %v12071_v9  ;;  %v12074_v12 = vld [vmem:[%s12535_s20 + $0x408] sm:$0xff]   ;;  %v12076_v14 = vld [vmem:[%s12535_s20 + $0x410] sm:$0xff]  }
  0x19   : > { %11695 = vmatprep.mubr.msk.bf16.mxu1 %vm2110_vm2, %v12072_v10  ;;  %v12077_v15 = vld [vmem:[%s12535_s20 + $0x18] sm:$0xff]   ;;  %v12079_v17 = vld [vmem:[%s12535_s20 + $0x20] sm:$0xff]   ;;  %v12081_v19 = vld [vmem:[%s12535_s20 + $0x28] sm:$0xff]  }
  0x1a   : > { %11436 = vmatpush3.bf16.msra.mxu0 %v12069_v5  ;;  %11959 = vmatpush3.bf16.msra.mxu1 %v12069_v5  ;;  %v12078_v16 = vld [vmem:[%s12535_s20 + $0x418] sm:$0xff]   ;;  %v12080_v18 = vld [vmem:[%s12535_s20 + $0x420] sm:$0xff]   ;;  %v12082_v20 = vld [vmem:[%s12535_s20 + $0x428] sm:$0xff]  }
  0x1b   : > { %11437 = vmatprep.subr.bf16.mxu0 %v2884_v8  ;;  %11955 = vmatprep.subr.bf16.mxu1 %v2884_v8  ;;  %v12083_v21 = vld [vmem:[%s12535_s20 + $0x30] sm:$0xff]   ;;  %v12085_v23 = vld [vmem:[%s12535_s20 + $0x38] sm:$0xff]   ;;  %v12087_v25 = vld [vmem:[%s12535_s20 + $0x40] sm:$0xff]  }
  0x1c   : > { %v12084_v22 = vld [vmem:[%s12535_s20 + $0x430] sm:$0xff]   ;;  %v12086_v24 = vld [vmem:[%s12535_s20 + $0x438] sm:$0xff]   ;;  %v12088_v26 = vld [vmem:[%s12535_s20 + $0x440] sm:$0xff]  }
  0x1d   : > { %v12089_v27 = vld [vmem:[%s12535_s20 + $0x48] sm:$0xff]   ;;  %v12091_v29 = vld [vmem:[%s12535_s20 + $0x50] sm:$0xff]   ;;  %v12093_v31 = vld [vmem:[%s12535_s20 + $0x58] sm:$0xff]  }
  0x1e   : > { %11438 = vmatpush3.bf16.msra.mxu0 %v2884_v8  ;;  %11960 = vmatpush3.bf16.msra.mxu1 %v2884_v8  ;;  %v12090_v28 = vld [vmem:[%s12535_s20 + $0x448] sm:$0xff]   ;;  %v12092_v30 = vld [vmem:[%s12535_s20 + $0x450] sm:$0xff]   ;;  %v12094_v32 = vld [vmem:[%s12535_s20 + $0x458] sm:$0xff]  }
  0x1f   : > { %v12095_v33 = vld [vmem:[%s12535_s20 + $0x60] sm:$0xff]   ;;  %v12097_v35 = vld [vmem:[%s12535_s20 + $0x68] sm:$0xff]   ;;  %v12099_v37 = vld [vmem:[%s12535_s20 + $0x70] sm:$0xff]  }
  0x20   : > { %v12096_v34 = vld [vmem:[%s12535_s20 + $0x460] sm:$0xff]   ;;  %v12098_v36 = vld [vmem:[%s12535_s20 + $0x468] sm:$0xff]   ;;  %v12100_v38 = vld [vmem:[%s12535_s20 + $0x470] sm:$0xff]  }
  0x21   : > { %11440 = vmatmul.mubr.msk.bf16.vlgmr.msra.gmra.mrb[0].mxu0 %vm2110_vm2, %v12073_v11  ;;  %11696 = vmatmul.mubr.msk.bf16.vlgmr.msra.gmra.mrb[0].mxu1 %vm2110_vm2, %v12074_v12  ;;  %v12101_v39 = vld [vmem:[%s12535_s20 + $0x78] sm:$0xff]   ;;  %v12103_v41 = vld [vmem:[%s12535_s20 + $0x80] sm:$0xff]   ;;  %v12105_v43 = vld [vmem:[%s12535_s20 + $0x88] sm:$0xff]  }
  0x22   : > { %11443 = vmatprep.mubr.msk.bf16.mxu0 %vm2110_vm2, %v12075_v13  ;;  %11699 = vmatprep.mubr.msk.bf16.mxu1 %vm2110_vm2, %v12076_v14  ;;  %v12102_v40 = vld [vmem:[%s12535_s20 + $0x478] sm:$0xff]   ;;  %v12104_v42 = vld [vmem:[%s12535_s20 + $0x480] sm:$0xff]   ;;  %v12106_v44 = vld [vmem:[%s12535_s20 + $0x488] sm:$0xff]  }
  0x23   : > { %v12107_v45 = vld [vmem:[%s12535_s20 + $0x90] sm:$0xff]   ;;  %v12109_v47 = vld [vmem:[%s12535_s20 + $0x98] sm:$0xff]   ;;  %v12111_v49 = vld [vmem:[%s12535_s20 + $0xa0] sm:$0xff]  }
  0x24   : > { %v12108_v46 = vld [vmem:[%s12535_s20 + $0x490] sm:$0xff]   ;;  %v12110_v48 = vld [vmem:[%s12535_s20 + $0x498] sm:$0xff]   ;;  %v12112_v50 = vld [vmem:[%s12535_s20 + $0x4a0] sm:$0xff]  }
  0x25   : > { %v12113_v51 = vld [vmem:[%s12535_s20 + $0xa8] sm:$0xff]   ;;  %v12115_v53 = vld [vmem:[%s12535_s20 + $0xb0] sm:$0xff]   ;;  %v12117_v55 = vld [vmem:[%s12535_s20 + $0xb8] sm:$0xff]  }
  0x26   : > { %v12114_v52 = vld [vmem:[%s12535_s20 + $0x4a8] sm:$0xff]   ;;  %v12116_v54 = vld [vmem:[%s12535_s20 + $0x4b0] sm:$0xff]   ;;  %v12118_v56 = vld [vmem:[%s12535_s20 + $0x4b8] sm:$0xff]  }
  0x27   : > { %v12119_v57 = vld [vmem:[%s12535_s20 + $0xc0] sm:$0xff]   ;;  %v12121_v59 = vld [vmem:[%s12535_s20 + $0xc8] sm:$0xff]   ;;  %v12123_v61 = vld [vmem:[%s12535_s20 + $0xd0] sm:$0xff]  }
  0x28   : > { %v12120_v58 = vld [vmem:[%s12535_s20 + $0x4c0] sm:$0xff]   ;;  %v12122_v60 = vld [vmem:[%s12535_s20 + $0x4c8] sm:$0xff]   ;;  %v12124_v62 = vld [vmem:[%s12535_s20 + $0x4d0] sm:$0xff]  }
  0x29   : > { %11444 = vmatmul.mubr.msk.bf16.gmra.mrb[4].mxu0 %vm2110_vm2, %v12077_v15  ;;  %11700 = vmatmul.mubr.msk.bf16.gmra.mrb[4].mxu1 %vm2110_vm2, %v12078_v16  ;;  %v12125_v63 = vld [vmem:[%s12535_s20 + $0xd8] sm:$0xff]   ;;  %v12127_v1 = vld [vmem:[%s12535_s20 + $0xe0] sm:$0xff]   ;;  %v12129_v3 = vld [vmem:[%s12535_s20 + $0xe8] sm:$0xff]  }
  0x2a   : > { %11447 = vmatprep.mubr.msk.bf16.mxu0 %vm2110_vm2, %v12079_v17  ;;  %11703 = vmatprep.mubr.msk.bf16.mxu1 %vm2110_vm2, %v12080_v18  ;;  %v12126_v0 = vld [vmem:[%s12535_s20 + $0x4d8] sm:$0xff]   ;;  %v12128_v2 = vld [vmem:[%s12535_s20 + $0x4e0] sm:$0xff]   ;;  %v12130_v4 = vld [vmem:[%s12535_s20 + $0x4e8] sm:$0xff]  }
  0x2b   : > { %v12131_v5 = vld [vmem:[%s12535_s20 + $0xf0] sm:$0xff]   ;;  %v12133_v7 = vld [vmem:[%s12535_s20 + $0xf8] sm:$0xff]   ;;  %v12135_v9 = vld [vmem:[%s12535_s20 + $0x100] sm:$0xff]  }
  0x2c   : > { %v12132_v6 = vld [vmem:[%s12535_s20 + $0x4f0] sm:$0xff]   ;;  %v12134_v8 = vld [vmem:[%s12535_s20 + $0x4f8] sm:$0xff]   ;;  %v12136_v10 = vld [vmem:[%s12535_s20 + $0x500] sm:$0xff]  }
  0x2d   : > { %v12137_v11 = vld [vmem:[%s12535_s20 + $0x108] sm:$0xff]   ;;  %v12139_v13 = vld [vmem:[%s12535_s20 + $0x110] sm:$0xff]   ;;  %v12141_v15 = vld [vmem:[%s12535_s20 + $0x118] sm:$0xff]  }
  0x2e   : > { %v12138_v12 = vld [vmem:[%s12535_s20 + $0x508] sm:$0xff]   ;;  %v12140_v14 = vld [vmem:[%s12535_s20 + $0x510] sm:$0xff]   ;;  %v12142_v16 = vld [vmem:[%s12535_s20 + $0x518] sm:$0xff]  }
  0x2f   : > { %v12143_v17 = vld [vmem:[%s12535_s20 + $0x120] sm:$0xff]  }
  0x30   : > { %v12144_v18 = vld [vmem:[%s12535_s20 + $0x520] sm:$0xff]  }
  0x31   : > { %11448 = vmatmul.mubr.msk.bf16.gmra.mrb[8].mxu0 %vm2110_vm2, %v12081_v19  ;;  %11704 = vmatmul.mubr.msk.bf16.gmra.mrb[8].mxu1 %vm2110_vm2, %v12082_v20  ;;  %v12145_v19 = vld [vmem:[%s12535_s20 + $0x128] sm:$0xff]  }
  0x32   : > { %11451 = vmatprep.mubr.msk.bf16.mxu0 %vm2110_vm2, %v12083_v21  ;;  %11707 = vmatprep.mubr.msk.bf16.mxu1 %vm2110_vm2, %v12084_v22  ;;  %v12146_v20 = vld [vmem:[%s12535_s20 + $0x528] sm:$0xff]   ;;  %v12147_v21 = vld [vmem:[%s12535_s20 + $0x130] sm:$0xff]  }
  0x33   : > { %v12148_v22 = vld [vmem:[%s12535_s20 + $0x530] sm:$0xff]  }
  0x39   : > { %11452 = vmatmul.mubr.msk.bf16.gmra.mrb[12].mxu0 %vm2110_vm2, %v12085_v23  ;;  %11708 = vmatmul.mubr.msk.bf16.gmra.mrb[12].mxu1 %vm2110_vm2, %v12086_v24  ;;  %v12149_v23 = vld [vmem:[%s12535_s20 + $0x138] sm:$0xff]  }
  0x3a   : > { %11455 = vmatprep.mubr.msk.bf16.mxu0 %vm2110_vm2, %v12087_v25  ;;  %11711 = vmatprep.mubr.msk.bf16.mxu1 %vm2110_vm2, %v12088_v26  ;;  %v12150_v24 = vld [vmem:[%s12535_s20 + $0x538] sm:$0xff]   ;;  %v12151_v25 = vld [vmem:[%s12535_s20 + $0x140] sm:$0xff]  }
  0x3b   : > { %v12152_v26 = vld [vmem:[%s12535_s20 + $0x540] sm:$0xff]  }
  0x41   : > { %11456 = vmatmul.mubr.msk.bf16.gmra.mrb[16].mxu0 %vm2110_vm2, %v12089_v27  ;;  %11712 = vmatmul.mubr.msk.bf16.gmra.mrb[16].mxu1 %vm2110_vm2, %v12090_v28  ;;  %v12153_v27 = vld [vmem:[%s12535_s20 + $0x148] sm:$0xff]  }
  0x42   : > { %11459 = vmatprep.mubr.msk.bf16.mxu0 %vm2110_vm2, %v12091_v29  ;;  %11715 = vmatprep.mubr.msk.bf16.mxu1 %vm2110_vm2, %v12092_v30  ;;  %v12154_v28 = vld [vmem:[%s12535_s20 + $0x548] sm:$0xff]   ;;  %v12155_v29 = vld [vmem:[%s12535_s20 + $0x150] sm:$0xff]  }
  0x43   : > { %v12156_v30 = vld [vmem:[%s12535_s20 + $0x550] sm:$0xff]  }
  0x49   : > { %11460 = vmatmul.mubr.msk.bf16.gmra.mrb[20].mxu0 %vm2110_vm2, %v12093_v31  ;;  %11716 = vmatmul.mubr.msk.bf16.gmra.mrb[20].mxu1 %vm2110_vm2, %v12094_v32  ;;  %v12157_v31 = vld [vmem:[%s12535_s20 + $0x158] sm:$0xff]  }
  0x4a   : > { %11463 = vmatprep.mubr.msk.bf16.mxu0 %vm2110_vm2, %v12095_v33  ;;  %11719 = vmatprep.mubr.msk.bf16.mxu1 %vm2110_vm2, %v12096_v34  ;;  %v12158_v32 = vld [vmem:[%s12535_s20 + $0x558] sm:$0xff]   ;;  %v12159_v33 = vld [vmem:[%s12535_s20 + $0x160] sm:$0xff]  }
  0x4b   : > { %v12160_v34 = vld [vmem:[%s12535_s20 + $0x560] sm:$0xff]  }
  0x51   : > { %11464 = vmatmul.mubr.msk.bf16.gmra.mrb[24].mxu0 %vm2110_vm2, %v12097_v35  ;;  %11720 = vmatmul.mubr.msk.bf16.gmra.mrb[24].mxu1 %vm2110_vm2, %v12098_v36  ;;  %v12161_v35 = vld [vmem:[%s12535_s20 + $0x168] sm:$0xff]  }
  0x52   : > { %11467 = vmatprep.mubr.msk.bf16.mxu0 %vm2110_vm2, %v12099_v37  ;;  %11723 = vmatprep.mubr.msk.bf16.mxu1 %vm2110_vm2, %v12100_v38  ;;  %v12162_v36 = vld [vmem:[%s12535_s20 + $0x568] sm:$0xff]   ;;  %v12163_v37 = vld [vmem:[%s12535_s20 + $0x170] sm:$0xff]  }
  0x53   : > { %v12164_v38 = vld [vmem:[%s12535_s20 + $0x570] sm:$0xff]  }
  0x59   : > { %11468 = vmatmul.mubr.msk.bf16.gmra.mrb[28].mxu0 %vm2110_vm2, %v12101_v39  ;;  %11724 = vmatmul.mubr.msk.bf16.gmra.mrb[28].mxu1 %vm2110_vm2, %v12102_v40  ;;  %v12165_v39 = vld [vmem:[%s12535_s20 + $0x178] sm:$0xff]  }
  0x5a   : > { %11471 = vmatprep.mubr.msk.bf16.mxu0 %vm2110_vm2, %v12103_v41  ;;  %11727 = vmatprep.mubr.msk.bf16.mxu1 %vm2110_vm2, %v12104_v42  ;;  %v12166_v40 = vld [vmem:[%s12535_s20 + $0x578] sm:$0xff]   ;;  %v12167_v41 = vld [vmem:[%s12535_s20 + $0x180] sm:$0xff]  }
  0x5b   : > { %v12168_v42 = vld [vmem:[%s12535_s20 + $0x580] sm:$0xff]  }
  0x61   : > { %11472 = vmatmul.mubr.msk.bf16.gmra.mrb[32].mxu0 %vm2110_vm2, %v12105_v43  ;;  %11728 = vmatmul.mubr.msk.bf16.gmra.mrb[32].mxu1 %vm2110_vm2, %v12106_v44  ;;  %v12169_v43 = vld [vmem:[%s12535_s20 + $0x188] sm:$0xff]  }
  0x62   : > { %11475 = vmatprep.mubr.msk.bf16.mxu0 %vm2110_vm2, %v12107_v45  ;;  %11731 = vmatprep.mubr.msk.bf16.mxu1 %vm2110_vm2, %v12108_v46  ;;  %v12170_v44 = vld [vmem:[%s12535_s20 + $0x588] sm:$0xff]   ;;  %v12171_v45 = vld [vmem:[%s12535_s20 + $0x190] sm:$0xff]  }
  0x63   : > { %v12172_v46 = vld [vmem:[%s12535_s20 + $0x590] sm:$0xff]  }
  0x69   : > { %11476 = vmatmul.mubr.msk.bf16.gmra.mrb[36].mxu0 %vm2110_vm2, %v12109_v47  ;;  %11732 = vmatmul.mubr.msk.bf16.gmra.mrb[36].mxu1 %vm2110_vm2, %v12110_v48  ;;  %v12173_v47 = vld [vmem:[%s12535_s20 + $0x198] sm:$0xff]  }
  0x6a   : > { %11479 = vmatprep.mubr.msk.bf16.mxu0 %vm2110_vm2, %v12111_v49  ;;  %11735 = vmatprep.mubr.msk.bf16.mxu1 %vm2110_vm2, %v12112_v50  ;;  %v12174_v48 = vld [vmem:[%s12535_s20 + $0x598] sm:$0xff]   ;;  %v12175_v49 = vld [vmem:[%s12535_s20 + $0x1a0] sm:$0xff]  }
  0x6b   : > { %v12176_v50 = vld [vmem:[%s12535_s20 + $0x5a0] sm:$0xff]  }
  0x71   : > { %11480 = vmatmul.mubr.msk.bf16.gmra.mrb[40].mxu0 %vm2110_vm2, %v12113_v51  ;;  %11736 = vmatmul.mubr.msk.bf16.gmra.mrb[40].mxu1 %vm2110_vm2, %v12114_v52  ;;  %v12177_v51 = vld [vmem:[%s12535_s20 + $0x1a8] sm:$0xff]  }
  0x72   : > { %11483 = vmatprep.mubr.msk.bf16.mxu0 %vm2110_vm2, %v12115_v53  ;;  %11739 = vmatprep.mubr.msk.bf16.mxu1 %vm2110_vm2, %v12116_v54  ;;  %v12178_v52 = vld [vmem:[%s12535_s20 + $0x5a8] sm:$0xff]   ;;  %v12179_v53 = vld [vmem:[%s12535_s20 + $0x1b0] sm:$0xff]  }
  0x73   : > { %v12180_v54 = vld [vmem:[%s12535_s20 + $0x5b0] sm:$0xff]  }
  0x79   : > { %11484 = vmatmul.mubr.msk.bf16.gmra.mrb[44].mxu0 %vm2110_vm2, %v12117_v55  ;;  %11740 = vmatmul.mubr.msk.bf16.gmra.mrb[44].mxu1 %vm2110_vm2, %v12118_v56  ;;  %v12759_v55 = vld [vmem:[%s15379_s2] ss:$0 sm:$0xff] }
  0x7a   : > { %11487 = vmatprep.mubr.msk.bf16.mxu0 %vm2110_vm2, %v12119_v57  ;;  %11743 = vmatprep.mubr.msk.bf16.mxu1 %vm2110_vm2, %v12120_v58  ;;  %v12766_v56 = vld [vmem:[%s15380_s3] ss:$0 sm:$0xff]  ;;  %v12181_v57 = vld [vmem:[%s12535_s20 + $0x1b8] sm:$0xff]  }
  0x7b   : > { %v12182_v58 = vld [vmem:[%s12535_s20 + $0x5b8] sm:$0xff]  }
  0x81   : > { %11488 = vmatmul.mubr.msk.bf16.gmra.mrb[48].mxu0 %vm2110_vm2, %v12121_v59  ;;  %11744 = vmatmul.mubr.msk.bf16.gmra.mrb[48].mxu1 %vm2110_vm2, %v12122_v60 }
  0x82   : > { %11491 = vmatprep.mubr.msk.bf16.mxu0 %vm2110_vm2, %v12123_v61  ;;  %11747 = vmatprep.mubr.msk.bf16.mxu1 %vm2110_vm2, %v12124_v62 }
  0x89   : > { %11492 = vmatmul.mubr.msk.bf16.gmra.mrb[52].mxu0 %vm2110_vm2, %v12125_v63  ;;  %11748 = vmatmul.mubr.msk.bf16.gmra.mrb[52].mxu1 %vm2110_vm2, %v12126_v0 }
  0x8a   : > { %11495 = vmatprep.mubr.msk.bf16.mxu0 %vm2110_vm2, %v12127_v1  ;;  %11751 = vmatprep.mubr.msk.bf16.mxu1 %vm2110_vm2, %v12128_v2 }
  0x91   : > { %11496 = vmatmul.mubr.msk.bf16.gmra.mrb[56].mxu0 %vm2110_vm2, %v12129_v3  ;;  %11752 = vmatmul.mubr.msk.bf16.gmra.mrb[56].mxu1 %vm2110_vm2, %v12130_v4 }
  0x92   : > { %11499 = vmatprep.mubr.msk.bf16.mxu0 %vm2110_vm2, %v12131_v5  ;;  %11755 = vmatprep.mubr.msk.bf16.mxu1 %vm2110_vm2, %v12132_v6  ;;  %v12183_v5 = vld [vmem:[%s12535_s20 + $0x1c0] sm:$0xff]  }
  0x93   : > { %v12184_v6 = vld [vmem:[%s12535_s20 + $0x5c0] sm:$0xff]  }
  0x99   : > { %11500 = vmatmul.mubr.msk.bf16.gmra.mrb[60].mxu0 %vm2110_vm2, %v12133_v7  ;;  %11756 = vmatmul.mubr.msk.bf16.gmra.mrb[60].mxu1 %vm2110_vm2, %v12134_v8 }
  0x9a   : > { %11503 = vmatprep.mubr.msk.bf16.mxu0 %vm2110_vm2, %v12135_v9  ;;  %11759 = vmatprep.mubr.msk.bf16.mxu1 %vm2110_vm2, %v12136_v10 }
  0xa1   : > { %11504 = vmatmul.mubr.msk.bf16.gmra.mrb[64].mxu0 %vm2110_vm2, %v12137_v11  ;;  %11760 = vmatmul.mubr.msk.bf16.gmra.mrb[64].mxu1 %vm2110_vm2, %v12138_v12 }
  0xa2   : > { %11507 = vmatprep.mubr.msk.bf16.mxu0 %vm2110_vm2, %v12139_v13  ;;  %11763 = vmatprep.mubr.msk.bf16.mxu1 %vm2110_vm2, %v12140_v14 }
  0xa9   : > { %11508 = vmatmul.mubr.msk.bf16.gmra.mrb[68].mxu0 %vm2110_vm2, %v12141_v15  ;;  %11764 = vmatmul.mubr.msk.bf16.gmra.mrb[68].mxu1 %vm2110_vm2, %v12142_v16 }
  0xaa   : > { %11511 = vmatprep.mubr.msk.bf16.mxu0 %vm2110_vm2, %v12143_v17  ;;  %11767 = vmatprep.mubr.msk.bf16.mxu1 %vm2110_vm2, %v12144_v18 }
  0xb1   : > { %11512 = vmatmul.mubr.msk.bf16.gmra.mrb[72].mxu0 %vm2110_vm2, %v12145_v19  ;;  %11768 = vmatmul.mubr.msk.bf16.gmra.mrb[72].mxu1 %vm2110_vm2, %v12146_v20 }
  0xb2   : > { %11515 = vmatprep.mubr.msk.bf16.mxu0 %vm2110_vm2, %v12147_v21  ;;  %11771 = vmatprep.mubr.msk.bf16.mxu1 %vm2110_vm2, %v12148_v22 }
  0xb9   : > { %11516 = vmatmul.mubr.msk.bf16.gmra.mrb[76].mxu0 %vm2110_vm2, %v12149_v23  ;;  %11772 = vmatmul.mubr.msk.bf16.gmra.mrb[76].mxu1 %vm2110_vm2, %v12150_v24 }
  0xba   : > { %11519 = vmatprep.mubr.msk.bf16.mxu0 %vm2110_vm2, %v12151_v25  ;;  %11775 = vmatprep.mubr.msk.bf16.mxu1 %vm2110_vm2, %v12152_v26 }
  0xc1   : > { %11520 = vmatmul.mubr.msk.bf16.gmra.mrb[80].mxu0 %vm2110_vm2, %v12153_v27  ;;  %11776 = vmatmul.mubr.msk.bf16.gmra.mrb[80].mxu1 %vm2110_vm2, %v12154_v28 }
  0xc2   : > { %11523 = vmatprep.mubr.msk.bf16.mxu0 %vm2110_vm2, %v12155_v29  ;;  %11779 = vmatprep.mubr.msk.bf16.mxu1 %vm2110_vm2, %v12156_v30  ;;  %v12185_v29 = vld [vmem:[%s12535_s20 + $0x1c8] sm:$0xff]  }
  0xc3   : > { %v12186_v30 = vld [vmem:[%s12535_s20 + $0x5c8] sm:$0xff]  }
  0xc9   : > { %11524 = vmatmul.mubr.msk.bf16.gmra.mrb[84].mxu0 %vm2110_vm2, %v12157_v31  ;;  %11780 = vmatmul.mubr.msk.bf16.gmra.mrb[84].mxu1 %vm2110_vm2, %v12158_v32 }
  0xca   : > { %11527 = vmatprep.mubr.msk.bf16.mxu0 %vm2110_vm2, %v12159_v33  ;;  %11783 = vmatprep.mubr.msk.bf16.mxu1 %vm2110_vm2, %v12160_v34 }
  0xd1   : > { %11528 = vmatmul.mubr.msk.bf16.gmra.mrb[88].mxu0 %vm2110_vm2, %v12161_v35  ;;  %11784 = vmatmul.mubr.msk.bf16.gmra.mrb[88].mxu1 %vm2110_vm2, %v12162_v36 }
  0xd2   : > { %11531 = vmatprep.mubr.msk.bf16.mxu0 %vm2110_vm2, %v12163_v37  ;;  %11787 = vmatprep.mubr.msk.bf16.mxu1 %vm2110_vm2, %v12164_v38 }
  0xd9   : > { %11532 = vmatmul.mubr.msk.bf16.gmra.mrb[92].mxu0 %vm2110_vm2, %v12165_v39  ;;  %11788 = vmatmul.mubr.msk.bf16.gmra.mrb[92].mxu1 %vm2110_vm2, %v12166_v40 }
  0xda   : > { %11535 = vmatprep.mubr.msk.bf16.mxu0 %vm2110_vm2, %v12167_v41  ;;  %11791 = vmatprep.mubr.msk.bf16.mxu1 %vm2110_vm2, %v12168_v42 }
  0xe1   : > { %11536 = vmatmul.mubr.msk.bf16.gmra.mrb[96].mxu0 %vm2110_vm2, %v12169_v43  ;;  %11792 = vmatmul.mubr.msk.bf16.gmra.mrb[96].mxu1 %vm2110_vm2, %v12170_v44 }
  0xe2   : > { %11539 = vmatprep.mubr.msk.bf16.mxu0 %vm2110_vm2, %v12171_v45  ;;  %11795 = vmatprep.mubr.msk.bf16.mxu1 %vm2110_vm2, %v12172_v46 }
  0xe9   : > { %11540 = vmatmul.mubr.msk.bf16.gmra.mrb[100].mxu0 %vm2110_vm2, %v12173_v47  ;;  %11796 = vmatmul.mubr.msk.bf16.gmra.mrb[100].mxu1 %vm2110_vm2, %v12174_v48 }
  0xea   : > { %11543 = vmatprep.mubr.msk.bf16.mxu0 %vm2110_vm2, %v12175_v49  ;;  %11799 = vmatprep.mubr.msk.bf16.mxu1 %vm2110_vm2, %v12176_v50  ;;  %v12187_v49 = vld [vmem:[%s12535_s20 + $0x1d0] sm:$0xff]  }
  0xeb   : > { %v12188_v50 = vld [vmem:[%s12535_s20 + $0x5d0] sm:$0xff]  }
  0xf1   : > { %11544 = vmatmul.mubr.msk.bf16.gmra.mrb[104].mxu0 %vm2110_vm2, %v12177_v51  ;;  %11800 = vmatmul.mubr.msk.bf16.gmra.mrb[104].mxu1 %vm2110_vm2, %v12178_v52 }
  0xf2   : > { %11547 = vmatprep.mubr.msk.bf16.mxu0 %vm2110_vm2, %v12179_v53  ;;  %11803 = vmatprep.mubr.msk.bf16.mxu1 %vm2110_vm2, %v12180_v54 }
  0xf4   : > { %v11441_v59 = vpop.f32.mrb[0].mxu0  ;;  %v11697_v60 = vpop.f32.mrb[0].mxu1 }
  0xf5   : > { %v4976_v61 = vmul.f32 %v11441_v59, %v12759_v55  ;;  %v5232_v62 = vmul.f32 %v11697_v60, %v12759_v55  ;;  %v2920_v63 = vpop.f32.mrb[1].mxu0  ;;  %v3944_v0 = vpop.f32.mrb[1].mxu1 }
  0xf6   : > { %v4974_v1 = vmul.f32 %v12759_v55, %v2920_v63  ;;  %v5230_v2 = vmul.f32 %v12759_v55, %v3944_v0  ;;  %v11442_v3 = vpop.f32.mrb[2].mxu0  ;;  %v11698_v4 = vpop.f32.mrb[2].mxu1 }
  0xf7   : > { %v5495_v7 = vadd.f32 %v12766_v56, %v4976_v61  ;;  %v5751_v8 = vadd.f32 %v12766_v56, %v5232_v62  ;;  %v4977_v9 = vmul.f32 %v11442_v3, %v12759_v55  ;;  %v5233_v10 = vmul.f32 %v11698_v4, %v12759_v55  ;;  %v2923_v11 = vpop.f32.mrb[3].mxu0  ;;  %v3947_v12 = vpop.f32.mrb[3].mxu1 }
  0xf8   : > { %v5493_v13 = vadd.f32 %v12766_v56, %v4974_v1  ;;  %v5749_v14 = vadd.f32 %v12766_v56, %v5230_v2  ;;  %v4975_v15 = vmul.f32 %v12759_v55, %v2923_v11  ;;  %v5231_v16 = vmul.f32 %v12759_v55, %v3947_v12 }
  0xf9   : > { %v6007_v17 = vmax.f32 %v5495_v7, 0.0  ;;  %v6263_v18 = vmax.f32 %v5751_v8, 0.0  ;;  %v5496_v19 = vadd.f32 %v12766_v56, %v4977_v9  ;;  %v5752_v20 = vadd.f32 %v12766_v56, %v5233_v10  ;;  %11548 = vmatmul.mubr.msk.bf16.gmra.mrb[108].mxu0 %vm2110_vm2, %v12181_v57  ;;  %11804 = vmatmul.mubr.msk.bf16.gmra.mrb[108].mxu1 %vm2110_vm2, %v12182_v58 }
  0xfa   : > { %v6005_v21 = vmax.f32 %v5493_v13, 0.0  ;;  %v6261_v22 = vmax.f32 %v5749_v14, 0.0  ;;  %v5494_v23 = vadd.f32 %v12766_v56, %v4975_v15  ;;  %v5750_v24 = vadd.f32 %v12766_v56, %v5231_v16  ;;  %11551 = vmatprep.mubr.msk.bf16.mxu0 %vm2110_vm2, %v12183_v5  ;;  %11807 = vmatprep.mubr.msk.bf16.mxu1 %vm2110_vm2, %v12184_v6 }
  0xfb   : > { %v10655_v25 = vpack.c.bf16 %v6007_v17, %v6007_v17  ;;  %v10911_v26 = vpack.c.bf16 %v6263_v18, %v6263_v18  ;;  %v6008_v27 = vmax.f32 %v5496_v19, 0.0  ;;  %v6264_v28 = vmax.f32 %v5752_v20, 0.0 }
  0xfc   : > { %v10653_v31 = vpack.c.bf16 %v6005_v21, %v6005_v21  ;;  %v10909_v32 = vpack.c.bf16 %v6261_v22, %v6261_v22  ;;  %v6006_v33 = vmax.f32 %v5494_v23, 0.0  ;;  %v6262_v34 = vmax.f32 %v5750_v24, 0.0  ;;  %v11445_v35 = vpop.f32.mrb[4].mxu0  ;;  %v11701_v36 = vpop.f32.mrb[4].mxu1  ;;  %v12189_v23 = vld [vmem:[%s12535_s20 + $0x1d8] sm:$0xff]  }
  0xfd   : > { %8568 = vst.msk [vmem:[%s12797_s29 + $0x8] sm:$0xf] %vm8565_vm3, %v10655_v25  ;;  %8824 = vst.msk [vmem:[%s12797_s29 + $0x408] sm:$0xf] %vm8565_vm3, %v10911_v26  ;;  %v10656_v37 = vpack.c.bf16 %v6008_v27, %v6008_v27  ;;  %v10912_v38 = vpack.c.bf16 %v6264_v28, %v6264_v28  ;;  %v4980_v39 = vmul.f32 %v11445_v35, %v12759_v55  ;;  %v2936_v41 = vpop.f32.mrb[5].mxu0  ;;  %v3960_v42 = vpop.f32.mrb[5].mxu1 }
  0xfe   : > { %v5236_v40 = vmul.f32 %v11701_v36, %v12759_v55  ;;  %8566 = vst.msk [vmem:[%s12797_s29] sm:$0xf] %vm8565_vm3, %v10653_v31  ;;  %8822 = vst.msk [vmem:[%s12797_s29 + $0x400] sm:$0xf] %vm8565_vm3, %v10909_v32  ;;  %v10654_v43 = vpack.c.bf16 %v6006_v33, %v6006_v33  ;;  %v10910_v44 = vpack.c.bf16 %v6262_v34, %v6262_v34  ;;  %v11446_v47 = vpop.f32.mrb[6].mxu0  ;;  %v11702_v48 = vpop.f32.mrb[6].mxu1 }
  0xff   : > { %v4978_v45 = vmul.f32 %v12759_v55, %v2936_v41  ;;  %v5234_v46 = vmul.f32 %v12759_v55, %v3960_v42  ;;  %8569 = vst.msk [vmem:[%s12797_s29 + $0xc] sm:$0xf] %vm8565_vm3, %v10656_v37  ;;  %8825 = vst.msk [vmem:[%s12797_s29 + $0x40c] sm:$0xf] %vm8565_vm3, %v10912_v38  ;;  %v5499_v51 = vadd.f32 %v12766_v56, %v4980_v39  ;;  %v2939_v57 = vpop.f32.mrb[7].mxu0  ;;  %v3963_v58 = vpop.f32.mrb[7].mxu1 }
 0x100   : > { %v5755_v52 = vadd.f32 %v12766_v56, %v5236_v40  ;;  %v4981_v53 = vmul.f32 %v11446_v47, %v12759_v55  ;;  %v5237_v54 = vmul.f32 %v11702_v48, %v12759_v55  ;;  %8567 = vst.msk [vmem:[%s12797_s29 + $0x4] sm:$0xf] %vm8565_vm3, %v10654_v43  ;;  %8823 = vst.msk [vmem:[%s12797_s29 + $0x404] sm:$0xf] %vm8565_vm3, %v10910_v44  ;;  %v12190_v24 = vld [vmem:[%s12535_s20 + $0x5d8] sm:$0xff]   ;;  %v12191_v31 = vld [vmem:[%s12535_s20 + $0x1e0] sm:$0xff]  }
 0x101   : > { %v5497_v59 = vadd.f32 %v12766_v56, %v4978_v45  ;;  %v5753_v60 = vadd.f32 %v12766_v56, %v5234_v46  ;;  %v4979_v61 = vmul.f32 %v12759_v55, %v2939_v57  ;;  %v5235_v62 = vmul.f32 %v12759_v55, %v3963_v58  ;;  %11552 = vmatmul.mubr.msk.bf16.gmra.mrb[112].mxu0 %vm2110_vm2, %v12185_v29  ;;  %v12192_v32 = vld [vmem:[%s12535_s20 + $0x5e0] sm:$0xff]  }
 0x102   : > { %v6011_v63 = vmax.f32 %v5499_v51, 0.0  ;;  %v6267_v0 = vmax.f32 %v5755_v52, 0.0  ;;  %v5500_v1 = vadd.f32 %v12766_v56, %v4981_v53  ;;  %v5756_v2 = vadd.f32 %v12766_v56, %v5237_v54  ;;  %11808 = vmatmul.mubr.msk.bf16.gmra.mrb[112].mxu1 %vm2110_vm2, %v12186_v30  ;;  %11555 = vmatprep.mubr.msk.bf16.mxu0 %vm2110_vm2, %v12187_v49 }
 0x103   : > { %v6009_v3 = vmax.f32 %v5497_v59, 0.0  ;;  %v6265_v4 = vmax.f32 %v5753_v60, 0.0  ;;  %v5498_v5 = vadd.f32 %v12766_v56, %v4979_v61  ;;  %v5754_v6 = vadd.f32 %v12766_v56, %v5235_v62  ;;  %11811 = vmatprep.mubr.msk.bf16.mxu1 %vm2110_vm2, %v12188_v50 }
 0x104   : > { %v10659_v7 = vpack.c.bf16 %v6011_v63, %v6011_v63  ;;  %v10915_v8 = vpack.c.bf16 %v6267_v0, %v6267_v0  ;;  %v6012_v9 = vmax.f32 %v5500_v1, 0.0  ;;  %v6268_v10 = vmax.f32 %v5756_v2, 0.0  ;;  %v11449_v15 = vpop.f32.mrb[8].mxu0  ;;  %v11705_v16 = vpop.f32.mrb[8].mxu1 }
 0x105   : > { %v10657_v11 = vpack.c.bf16 %v6009_v3, %v6009_v3  ;;  %v10913_v12 = vpack.c.bf16 %v6265_v4, %v6265_v4  ;;  %v6010_v13 = vmax.f32 %v5498_v5, 0.0  ;;  %v6266_v14 = vmax.f32 %v5754_v6, 0.0  ;;  %v2952_v21 = vpop.f32.mrb[9].mxu0  ;;  %v3976_v22 = vpop.f32.mrb[9].mxu1  ;;  %v12193_v5 = vld [vmem:[%s12535_s20 + $0x1e8] sm:$0xff]  }
 0x106   : > { %8572 = vst.msk [vmem:[%s12797_s29 + $0x18] sm:$0xf] %vm8565_vm3, %v10659_v7  ;;  %8828 = vst.msk [vmem:[%s12797_s29 + $0x418] sm:$0xf] %vm8565_vm3, %v10915_v8  ;;  %v10660_v17 = vpack.c.bf16 %v6012_v9, %v6012_v9  ;;  %v10916_v18 = vpack.c.bf16 %v6268_v10, %v6268_v10  ;;  %v4984_v19 = vmul.f32 %v11449_v15, %v12759_v55  ;;  %v11450_v29 = vpop.f32.mrb[10].mxu0  ;;  %v11706_v30 = vpop.f32.mrb[10].mxu1 }
 0x107   : > { %v5240_v20 = vmul.f32 %v11705_v16, %v12759_v55  ;;  %8570 = vst.msk [vmem:[%s12797_s29 + $0x10] sm:$0xf] %vm8565_vm3, %v10657_v11  ;;  %8826 = vst.msk [vmem:[%s12797_s29 + $0x410] sm:$0xf] %vm8565_vm3, %v10913_v12  ;;  %v10658_v25 = vpack.c.bf16 %v6010_v13, %v6010_v13  ;;  %v10914_v26 = vpack.c.bf16 %v6266_v14, %v6266_v14  ;;  %v2955_v37 = vpop.f32.mrb[11].mxu0  ;;  %v3979_v38 = vpop.f32.mrb[11].mxu1 }
 0x108   : > { %v4982_v27 = vmul.f32 %v12759_v55, %v2952_v21  ;;  %v5238_v28 = vmul.f32 %v12759_v55, %v3976_v22  ;;  %8573 = vst.msk [vmem:[%s12797_s29 + $0x1c] sm:$0xf] %vm8565_vm3, %v10660_v17  ;;  %8829 = vst.msk [vmem:[%s12797_s29 + $0x41c] sm:$0xf] %vm8565_vm3, %v10916_v18  ;;  %v5503_v33 = vadd.f32 %v12766_v56, %v4984_v19  ;;  %v12194_v6 = vld [vmem:[%s12535_s20 + $0x5e8] sm:$0xff]   ;;  %v12195_v13 = vld [vmem:[%s12535_s20 + $0x1f0] sm:$0xff]  }
 0x109   : > { %v5759_v34 = vadd.f32 %v12766_v56, %v5240_v20  ;;  %v4985_v35 = vmul.f32 %v11450_v29, %v12759_v55  ;;  %v5241_v36 = vmul.f32 %v11706_v30, %v12759_v55  ;;  %8571 = vst.msk [vmem:[%s12797_s29 + $0x14] sm:$0xf] %vm8565_vm3, %v10658_v25  ;;  %8827 = vst.msk [vmem:[%s12797_s29 + $0x414] sm:$0xf] %vm8565_vm3, %v10914_v26  ;;  %11556 = vmatmul.mubr.msk.bf16.gmra.mrb[116].mxu0 %vm2110_vm2, %v12189_v23  ;;  %v12196_v14 = vld [vmem:[%s12535_s20 + $0x5f0] sm:$0xff]  }
 0x10a   : > { %v5501_v39 = vadd.f32 %v12766_v56, %v4982_v27  ;;  %v5757_v40 = vadd.f32 %v12766_v56, %v5238_v28  ;;  %v4983_v41 = vmul.f32 %v12759_v55, %v2955_v37  ;;  %v5239_v42 = vmul.f32 %v12759_v55, %v3979_v38  ;;  %11812 = vmatmul.mubr.msk.bf16.gmra.mrb[116].mxu1 %vm2110_vm2, %v12190_v24 }
 0x10b   : > { %v6015_v43 = vmax.f32 %v5503_v33, 0.0  ;;  %v6271_v44 = vmax.f32 %v5759_v34, 0.0  ;;  %v5504_v45 = vadd.f32 %v12766_v56, %v4985_v35  ;;  %v5760_v46 = vadd.f32 %v12766_v56, %v5241_v36  ;;  %11559 = vmatprep.mubr.msk.bf16.mxu0 %vm2110_vm2, %v12191_v31  ;;  %11815 = vmatprep.mubr.msk.bf16.mxu1 %vm2110_vm2, %v12192_v32 }
 0x10c   : > { %v6013_v47 = vmax.f32 %v5501_v39, 0.0  ;;  %v6269_v48 = vmax.f32 %v5757_v40, 0.0  ;;  %v5502_v49 = vadd.f32 %v12766_v56, %v4983_v41  ;;  %v5758_v50 = vadd.f32 %v12766_v56, %v5239_v42  ;;  %v11453_v61 = vpop.f32.mrb[12].mxu0  ;;  %v11709_v62 = vpop.f32.mrb[12].mxu1 }
 0x10d   : > { %v10663_v51 = vpack.c.bf16 %v6015_v43, %v6015_v43  ;;  %v10919_v52 = vpack.c.bf16 %v6271_v44, %v6271_v44  ;;  %v6016_v53 = vmax.f32 %v5504_v45, 0.0  ;;  %v6272_v54 = vmax.f32 %v5760_v46, 0.0  ;;  %v2968_v3 = vpop.f32.mrb[13].mxu0  ;;  %v3992_v4 = vpop.f32.mrb[13].mxu1 }
 0x10e   : > { %v10661_v57 = vpack.c.bf16 %v6013_v47, %v6013_v47  ;;  %v10917_v58 = vpack.c.bf16 %v6269_v48, %v6269_v48  ;;  %v6014_v59 = vmax.f32 %v5502_v49, 0.0  ;;  %v6270_v60 = vmax.f32 %v5758_v50, 0.0  ;;  %v11454_v11 = vpop.f32.mrb[14].mxu0  ;;  %v11710_v12 = vpop.f32.mrb[14].mxu1  ;;  %v12197_v49 = vld [vmem:[%s12535_s20 + $0x1f8] sm:$0xff]  }
 0x10f   : > { %8576 = vst.msk [vmem:[%s12797_s29 + $0x28] sm:$0xf] %vm8565_vm3, %v10663_v51  ;;  %8832 = vst.msk [vmem:[%s12797_s29 + $0x428] sm:$0xf] %vm8565_vm3, %v10919_v52  ;;  %v10664_v63 = vpack.c.bf16 %v6016_v53, %v6016_v53  ;;  %v10920_v0 = vpack.c.bf16 %v6272_v54, %v6272_v54  ;;  %v4988_v1 = vmul.f32 %v11453_v61, %v12759_v55  ;;  %v2971_v19 = vpop.f32.mrb[15].mxu0  ;;  %v3995_v20 = vpop.f32.mrb[15].mxu1 }
 0x110   : > { %v5244_v2 = vmul.f32 %v11709_v62, %v12759_v55  ;;  %8574 = vst.msk [vmem:[%s12797_s29 + $0x20] sm:$0xf] %vm8565_vm3, %v10661_v57  ;;  %8830 = vst.msk [vmem:[%s12797_s29 + $0x420] sm:$0xf] %vm8565_vm3, %v10917_v58  ;;  %v10662_v7 = vpack.c.bf16 %v6014_v59, %v6014_v59  ;;  %v10918_v8 = vpack.c.bf16 %v6270_v60, %v6270_v60  ;;  %v12198_v50 = vld [vmem:[%s12535_s20 + $0x5f8] sm:$0xff]   ;;  %v12199_v59 = vld [vmem:[%s12535_s20 + $0x200] sm:$0xff]  }
 0x111   : > { %v4986_v9 = vmul.f32 %v12759_v55, %v2968_v3  ;;  %v5242_v10 = vmul.f32 %v12759_v55, %v3992_v4  ;;  %8577 = vst.msk [vmem:[%s12797_s29 + $0x2c] sm:$0xf] %vm8565_vm3, %v10664_v63  ;;  %8833 = vst.msk [vmem:[%s12797_s29 + $0x42c] sm:$0xf] %vm8565_vm3, %v10920_v0  ;;  %v5507_v15 = vadd.f32 %v12766_v56, %v4988_v1  ;;  %11560 = vmatmul.mubr.msk.bf16.gmra.mrb[120].mxu0 %vm2110_vm2, %v12193_v5  ;;  %v12200_v60 = vld [vmem:[%s12535_s20 + $0x600] sm:$0xff]  }
 0x112   : > { %v5763_v16 = vadd.f32 %v12766_v56, %v5244_v2  ;;  %v4989_v17 = vmul.f32 %v11454_v11, %v12759_v55  ;;  %v5245_v18 = vmul.f32 %v11710_v12, %v12759_v55  ;;  %8575 = vst.msk [vmem:[%s12797_s29 + $0x24] sm:$0xf] %vm8565_vm3, %v10662_v7  ;;  %8831 = vst.msk [vmem:[%s12797_s29 + $0x424] sm:$0xf] %vm8565_vm3, %v10918_v8  ;;  %11816 = vmatmul.mubr.msk.bf16.gmra.mrb[120].mxu1 %vm2110_vm2, %v12194_v6 }
 0x113   : > { %v5505_v21 = vadd.f32 %v12766_v56, %v4986_v9  ;;  %v5761_v22 = vadd.f32 %v12766_v56, %v5242_v10  ;;  %v4987_v23 = vmul.f32 %v12759_v55, %v2971_v19  ;;  %v5243_v24 = vmul.f32 %v12759_v55, %v3995_v20  ;;  %11563 = vmatprep.mubr.msk.bf16.mxu0 %vm2110_vm2, %v12195_v13 }
 0x114   : > { %v6019_v25 = vmax.f32 %v5507_v15, 0.0  ;;  %v6275_v26 = vmax.f32 %v5763_v16, 0.0  ;;  %v5508_v27 = vadd.f32 %v12766_v56, %v4989_v17  ;;  %v5764_v28 = vadd.f32 %v12766_v56, %v5245_v18  ;;  %11819 = vmatprep.mubr.msk.bf16.mxu1 %vm2110_vm2, %v12196_v14  ;;  %v11457_v41 = vpop.f32.mrb[16].mxu0  ;;  %v11713_v42 = vpop.f32.mrb[16].mxu1 }
 0x115   : > { %v6017_v29 = vmax.f32 %v5505_v21, 0.0  ;;  %v6273_v30 = vmax.f32 %v5761_v22, 0.0  ;;  %v5506_v31 = vadd.f32 %v12766_v56, %v4987_v23  ;;  %v5762_v32 = vadd.f32 %v12766_v56, %v5243_v24  ;;  %v2984_v47 = vpop.f32.mrb[17].mxu0  ;;  %v4008_v48 = vpop.f32.mrb[17].mxu1 }
 0x116   : > { %v10667_v33 = vpack.c.bf16 %v6019_v25, %v6019_v25  ;;  %v10923_v34 = vpack.c.bf16 %v6275_v26, %v6275_v26  ;;  %v6020_v35 = vmax.f32 %v5508_v27, 0.0  ;;  %v6276_v36 = vmax.f32 %v5764_v28, 0.0  ;;  %v11458_v57 = vpop.f32.mrb[18].mxu0  ;;  %v11714_v58 = vpop.f32.mrb[18].mxu1 }
 0x117   : > { %v10665_v37 = vpack.c.bf16 %v6017_v29, %v6017_v29  ;;  %v10921_v38 = vpack.c.bf16 %v6273_v30, %v6273_v30  ;;  %v6018_v39 = vmax.f32 %v5506_v31, 0.0  ;;  %v6274_v40 = vmax.f32 %v5762_v32, 0.0  ;;  %v2987_v1 = vpop.f32.mrb[19].mxu0  ;;  %v4011_v2 = vpop.f32.mrb[19].mxu1  ;;  %v12201_v31 = vld [vmem:[%s12535_s20 + $0x208] sm:$0xff]  }
 0x118   : > { %8580 = vst.msk [vmem:[%s12797_s29 + $0x38] sm:$0xf] %vm8565_vm3, %v10667_v33  ;;  %8836 = vst.msk [vmem:[%s12797_s29 + $0x438] sm:$0xf] %vm8565_vm3, %v10923_v34  ;;  %v10668_v43 = vpack.c.bf16 %v6020_v35, %v6020_v35  ;;  %v10924_v44 = vpack.c.bf16 %v6276_v36, %v6276_v36  ;;  %v4992_v45 = vmul.f32 %v11457_v41, %v12759_v55  ;;  %v12202_v32 = vld [vmem:[%s12535_s20 + $0x608] sm:$0xff]  }
 0x119   : > { %v5248_v46 = vmul.f32 %v11713_v42, %v12759_v55  ;;  %8578 = vst.msk [vmem:[%s12797_s29 + $0x30] sm:$0xf] %vm8565_vm3, %v10665_v37  ;;  %8834 = vst.msk [vmem:[%s12797_s29 + $0x430] sm:$0xf] %vm8565_vm3, %v10921_v38  ;;  %v10666_v51 = vpack.c.bf16 %v6018_v39, %v6018_v39  ;;  %v10922_v52 = vpack.c.bf16 %v6274_v40, %v6274_v40  ;;  %11564 = vmatmul.mubr.msk.bf16.gmra.mrb[124].mxu0 %vm2110_vm2, %v12197_v49  ;;  %v12203_v39 = vld [vmem:[%s12535_s20 + $0x210] sm:$0xff]  }
 0x11a   : > { %v4990_v53 = vmul.f32 %v12759_v55, %v2984_v47  ;;  %v5246_v54 = vmul.f32 %v12759_v55, %v4008_v48  ;;  %8581 = vst.msk [vmem:[%s12797_s29 + $0x3c] sm:$0xf] %vm8565_vm3, %v10668_v43  ;;  %8837 = vst.msk [vmem:[%s12797_s29 + $0x43c] sm:$0xf] %vm8565_vm3, %v10924_v44  ;;  %v5511_v61 = vadd.f32 %v12766_v56, %v4992_v45  ;;  %11820 = vmatmul.mubr.msk.bf16.gmra.mrb[124].mxu1 %vm2110_vm2, %v12198_v50  ;;  %v12204_v40 = vld [vmem:[%s12535_s20 + $0x610] sm:$0xff]  }
 0x11b   : > { %v5767_v62 = vadd.f32 %v12766_v56, %v5248_v46  ;;  %v4993_v63 = vmul.f32 %v11458_v57, %v12759_v55  ;;  %v5249_v0 = vmul.f32 %v11714_v58, %v12759_v55  ;;  %8579 = vst.msk [vmem:[%s12797_s29 + $0x34] sm:$0xf] %vm8565_vm3, %v10666_v51  ;;  %8835 = vst.msk [vmem:[%s12797_s29 + $0x434] sm:$0xf] %vm8565_vm3, %v10922_v52  ;;  %11567 = vmatprep.mubr.msk.bf16.mxu0 %vm2110_vm2, %v12199_v59 }
 0x11c   : > { %v5509_v3 = vadd.f32 %v12766_v56, %v4990_v53  ;;  %v5765_v4 = vadd.f32 %v12766_v56, %v5246_v54  ;;  %v4991_v5 = vmul.f32 %v12759_v55, %v2987_v1  ;;  %v5247_v6 = vmul.f32 %v12759_v55, %v4011_v2  ;;  %11823 = vmatprep.mubr.msk.bf16.mxu1 %vm2110_vm2, %v12200_v60  ;;  %v11461_v23 = vpop.f32.mrb[20].mxu0  ;;  %v11717_v24 = vpop.f32.mrb[20].mxu1 }
 0x11d   : > { %v6023_v7 = vmax.f32 %v5511_v61, 0.0  ;;  %v6279_v8 = vmax.f32 %v5767_v62, 0.0  ;;  %v5512_v9 = vadd.f32 %v12766_v56, %v4993_v63  ;;  %v5768_v10 = vadd.f32 %v12766_v56, %v5249_v0  ;;  %v3000_v29 = vpop.f32.mrb[21].mxu0  ;;  %v4024_v30 = vpop.f32.mrb[21].mxu1 }
 0x11e   : > { %v6021_v11 = vmax.f32 %v5509_v3, 0.0  ;;  %v6277_v12 = vmax.f32 %v5765_v4, 0.0  ;;  %v5510_v13 = vadd.f32 %v12766_v56, %v4991_v5  ;;  %v5766_v14 = vadd.f32 %v12766_v56, %v5247_v6  ;;  %v11462_v37 = vpop.f32.mrb[22].mxu0  ;;  %v11718_v38 = vpop.f32.mrb[22].mxu1 }
 0x11f   : > { %v10671_v15 = vpack.c.bf16 %v6023_v7, %v6023_v7  ;;  %v10927_v16 = vpack.c.bf16 %v6279_v8, %v6279_v8  ;;  %v6024_v17 = vmax.f32 %v5512_v9, 0.0  ;;  %v6280_v18 = vmax.f32 %v5768_v10, 0.0  ;;  %v3003_v45 = vpop.f32.mrb[23].mxu0  ;;  %v4027_v46 = vpop.f32.mrb[23].mxu1 }
 0x120   : > { %v10669_v19 = vpack.c.bf16 %v6021_v11, %v6021_v11  ;;  %v10925_v20 = vpack.c.bf16 %v6277_v12, %v6277_v12  ;;  %v6022_v21 = vmax.f32 %v5510_v13, 0.0  ;;  %v6278_v22 = vmax.f32 %v5766_v14, 0.0  ;;  %v12205_v13 = vld [vmem:[%s12535_s20 + $0x218] sm:$0xff]  }
 0x121   : > { %8584 = vst.msk [vmem:[%s12797_s29 + $0x48] sm:$0xf] %vm8565_vm3, %v10671_v15  ;;  %8840 = vst.msk [vmem:[%s12797_s29 + $0x448] sm:$0xf] %vm8565_vm3, %v10927_v16  ;;  %v10672_v25 = vpack.c.bf16 %v6024_v17, %v6024_v17  ;;  %v10928_v26 = vpack.c.bf16 %v6280_v18, %v6280_v18  ;;  %v4996_v27 = vmul.f32 %v11461_v23, %v12759_v55  ;;  %11568 = vmatmul.mubr.msk.bf16.gmra.mrb[128].mxu0 %vm2110_vm2, %v12201_v31  ;;  %v12206_v14 = vld [vmem:[%s12535_s20 + $0x618] sm:$0xff]  }
 0x122   : > { %v5252_v28 = vmul.f32 %v11717_v24, %v12759_v55  ;;  %8582 = vst.msk [vmem:[%s12797_s29 + $0x40] sm:$0xf] %vm8565_vm3, %v10669_v19  ;;  %8838 = vst.msk [vmem:[%s12797_s29 + $0x440] sm:$0xf] %vm8565_vm3, %v10925_v20  ;;  %v10670_v33 = vpack.c.bf16 %v6022_v21, %v6022_v21  ;;  %v10926_v34 = vpack.c.bf16 %v6278_v22, %v6278_v22  ;;  %11824 = vmatmul.mubr.msk.bf16.gmra.mrb[128].mxu1 %vm2110_vm2, %v12202_v32  ;;  %v12207_v21 = vld [vmem:[%s12535_s20 + $0x220] sm:$0xff]  }
 0x123   : > { %v4994_v35 = vmul.f32 %v12759_v55, %v3000_v29  ;;  %v5250_v36 = vmul.f32 %v12759_v55, %v4024_v30  ;;  %8585 = vst.msk [vmem:[%s12797_s29 + $0x4c] sm:$0xf] %vm8565_vm3, %v10672_v25  ;;  %8841 = vst.msk [vmem:[%s12797_s29 + $0x44c] sm:$0xf] %vm8565_vm3, %v10928_v26  ;;  %v5515_v41 = vadd.f32 %v12766_v56, %v4996_v27  ;;  %11571 = vmatprep.mubr.msk.bf16.mxu0 %vm2110_vm2, %v12203_v39  ;;  %v12208_v22 = vld [vmem:[%s12535_s20 + $0x620] sm:$0xff]  }
 0x124   : > { %v5771_v42 = vadd.f32 %v12766_v56, %v5252_v28  ;;  %v4997_v43 = vmul.f32 %v11462_v37, %v12759_v55  ;;  %v5253_v44 = vmul.f32 %v11718_v38, %v12759_v55  ;;  %8583 = vst.msk [vmem:[%s12797_s29 + $0x44] sm:$0xf] %vm8565_vm3, %v10670_v33  ;;  %8839 = vst.msk [vmem:[%s12797_s29 + $0x444] sm:$0xf] %vm8565_vm3, %v10926_v34  ;;  %11827 = vmatprep.mubr.msk.bf16.mxu1 %vm2110_vm2, %v12204_v40  ;;  %v11465_v5 = vpop.f32.mrb[24].mxu0  ;;  %v11721_v6 = vpop.f32.mrb[24].mxu1 }
 0x125   : > { %v5513_v47 = vadd.f32 %v12766_v56, %v4994_v35  ;;  %v5769_v48 = vadd.f32 %v12766_v56, %v5250_v36  ;;  %v4995_v49 = vmul.f32 %v12759_v55, %v3003_v45  ;;  %v5251_v50 = vmul.f32 %v12759_v55, %v4027_v46  ;;  %v3016_v11 = vpop.f32.mrb[25].mxu0  ;;  %v4040_v12 = vpop.f32.mrb[25].mxu1 }
 0x126   : > { %v6027_v51 = vmax.f32 %v5515_v41, 0.0  ;;  %v6283_v52 = vmax.f32 %v5771_v42, 0.0  ;;  %v5516_v53 = vadd.f32 %v12766_v56, %v4997_v43  ;;  %v5772_v54 = vadd.f32 %v12766_v56, %v5253_v44  ;;  %v11466_v19 = vpop.f32.mrb[26].mxu0  ;;  %v11722_v20 = vpop.f32.mrb[26].mxu1 }
 0x127   : > { %v6025_v57 = vmax.f32 %v5513_v47, 0.0  ;;  %v6281_v58 = vmax.f32 %v5769_v48, 0.0  ;;  %v5514_v59 = vadd.f32 %v12766_v56, %v4995_v49  ;;  %v5770_v60 = vadd.f32 %v12766_v56, %v5251_v50  ;;  %v3019_v27 = vpop.f32.mrb[27].mxu0  ;;  %v4043_v28 = vpop.f32.mrb[27].mxu1 }
 0x128   : > { %v10675_v61 = vpack.c.bf16 %v6027_v51, %v6027_v51  ;;  %v10931_v62 = vpack.c.bf16 %v6283_v52, %v6283_v52  ;;  %v6028_v63 = vmax.f32 %v5516_v53, 0.0  ;;  %v6284_v0 = vmax.f32 %v5772_v54, 0.0 }
 0x129   : > { %v10673_v1 = vpack.c.bf16 %v6025_v57, %v6025_v57  ;;  %v10929_v2 = vpack.c.bf16 %v6281_v58, %v6281_v58  ;;  %v6026_v3 = vmax.f32 %v5514_v59, 0.0  ;;  %v6282_v4 = vmax.f32 %v5770_v60, 0.0  ;;  %11572 = vmatmul.mubr.msk.bf16.gmra.mrb[132].mxu0 %vm2110_vm2, %v12205_v13  ;;  %v12209_v59 = vld [vmem:[%s12535_s20 + $0x228] sm:$0xff]  }
 0x12a   : > { %8588 = vst.msk [vmem:[%s12797_s29 + $0x58] sm:$0xf] %vm8565_vm3, %v10675_v61  ;;  %8844 = vst.msk [vmem:[%s12797_s29 + $0x458] sm:$0xf] %vm8565_vm3, %v10931_v62  ;;  %v10676_v7 = vpack.c.bf16 %v6028_v63, %v6028_v63  ;;  %v10932_v8 = vpack.c.bf16 %v6284_v0, %v6284_v0  ;;  %v5000_v9 = vmul.f32 %v11465_v5, %v12759_v55  ;;  %11828 = vmatmul.mubr.msk.bf16.gmra.mrb[132].mxu1 %vm2110_vm2, %v12206_v14  ;;  %v12210_v60 = vld [vmem:[%s12535_s20 + $0x628] sm:$0xff]  }
 0x12b   : > { %v5256_v10 = vmul.f32 %v11721_v6, %v12759_v55  ;;  %8586 = vst.msk [vmem:[%s12797_s29 + $0x50] sm:$0xf] %vm8565_vm3, %v10673_v1  ;;  %8842 = vst.msk [vmem:[%s12797_s29 + $0x450] sm:$0xf] %vm8565_vm3, %v10929_v2  ;;  %v10674_v15 = vpack.c.bf16 %v6026_v3, %v6026_v3  ;;  %v10930_v16 = vpack.c.bf16 %v6282_v4, %v6282_v4  ;;  %11575 = vmatprep.mubr.msk.bf16.mxu0 %vm2110_vm2, %v12207_v21  ;;  %v12211_v3 = vld [vmem:[%s12535_s20 + $0x230] sm:$0xff]  }
 0x12c   : > { %v4998_v17 = vmul.f32 %v12759_v55, %v3016_v11  ;;  %v5254_v18 = vmul.f32 %v12759_v55, %v4040_v12  ;;  %8589 = vst.msk [vmem:[%s12797_s29 + $0x5c] sm:$0xf] %vm8565_vm3, %v10676_v7  ;;  %8845 = vst.msk [vmem:[%s12797_s29 + $0x45c] sm:$0xf] %vm8565_vm3, %v10932_v8  ;;  %v5519_v23 = vadd.f32 %v12766_v56, %v5000_v9  ;;  %11831 = vmatprep.mubr.msk.bf16.mxu1 %vm2110_vm2, %v12208_v22  ;;  %v11469_v49 = vpop.f32.mrb[28].mxu0  ;;  %v11725_v50 = vpop.f32.mrb[28].mxu1 }
 0x12d   : > { %v5775_v24 = vadd.f32 %v12766_v56, %v5256_v10  ;;  %v5001_v25 = vmul.f32 %v11466_v19, %v12759_v55  ;;  %v5257_v26 = vmul.f32 %v11722_v20, %v12759_v55  ;;  %8587 = vst.msk [vmem:[%s12797_s29 + $0x54] sm:$0xf] %vm8565_vm3, %v10674_v15  ;;  %8843 = vst.msk [vmem:[%s12797_s29 + $0x454] sm:$0xf] %vm8565_vm3, %v10930_v16  ;;  %v3032_v57 = vpop.f32.mrb[29].mxu0  ;;  %v4056_v58 = vpop.f32.mrb[29].mxu1 }
 0x12e   : > { %v5517_v29 = vadd.f32 %v12766_v56, %v4998_v17  ;;  %v5773_v30 = vadd.f32 %v12766_v56, %v5254_v18  ;;  %v4999_v31 = vmul.f32 %v12759_v55, %v3019_v27  ;;  %v5255_v32 = vmul.f32 %v12759_v55, %v4043_v28  ;;  %v11470_v1 = vpop.f32.mrb[30].mxu0  ;;  %v11726_v2 = vpop.f32.mrb[30].mxu1  ;;  %v12212_v4 = vld [vmem:[%s12535_s20 + $0x630] sm:$0xff]  }
 0x12f   : > { %v6031_v33 = vmax.f32 %v5519_v23, 0.0  ;;  %v6287_v34 = vmax.f32 %v5775_v24, 0.0  ;;  %v5520_v35 = vadd.f32 %v12766_v56, %v5001_v25  ;;  %v5776_v36 = vadd.f32 %v12766_v56, %v5257_v26  ;;  %v3035_v9 = vpop.f32.mrb[31].mxu0  ;;  %v4059_v10 = vpop.f32.mrb[31].mxu1 }
 0x130   : > { %v6029_v37 = vmax.f32 %v5517_v29, 0.0  ;;  %v6285_v38 = vmax.f32 %v5773_v30, 0.0  ;;  %v5518_v39 = vadd.f32 %v12766_v56, %v4999_v31  ;;  %v5774_v40 = vadd.f32 %v12766_v56, %v5255_v32 }
 0x131   : > { %v10679_v41 = vpack.c.bf16 %v6031_v33, %v6031_v33  ;;  %v10935_v42 = vpack.c.bf16 %v6287_v34, %v6287_v34  ;;  %v6032_v43 = vmax.f32 %v5520_v35, 0.0  ;;  %v6288_v44 = vmax.f32 %v5776_v36, 0.0  ;;  %11576 = vmatmul.mubr.msk.bf16.gmra.mrb[136].mxu0 %vm2110_vm2, %v12209_v59  ;;  %v13110_v59 = vld [vmem:[%s15379_s2] ss:$0 sm:$0xff] }
 0x132   : > { %v10677_v45 = vpack.c.bf16 %v6029_v37, %v6029_v37  ;;  %v10933_v46 = vpack.c.bf16 %v6285_v38, %v6285_v38  ;;  %v6030_v47 = vmax.f32 %v5518_v39, 0.0  ;;  %v6286_v48 = vmax.f32 %v5774_v40, 0.0  ;;  %11832 = vmatmul.mubr.msk.bf16.gmra.mrb[136].mxu1 %vm2110_vm2, %v12210_v60  ;;  %11579 = vmatprep.mubr.msk.bf16.mxu0 %vm2110_vm2, %v12211_v3  ;;  %v12213_v39 = vld [vmem:[%s12535_s20 + $0x238] sm:$0xff]   ;;  %v13121_v3 = vld [vmem:[%s15380_s3] ss:$0 sm:$0xff] }
 0x133   : > { %8592 = vst.msk [vmem:[%s12797_s29 + $0x68] sm:$0xf] %vm8565_vm3, %v10679_v41  ;;  %8848 = vst.msk [vmem:[%s12797_s29 + $0x468] sm:$0xf] %vm8565_vm3, %v10935_v42  ;;  %v10680_v51 = vpack.c.bf16 %v6032_v43, %v6032_v43  ;;  %v10936_v52 = vpack.c.bf16 %v6288_v44, %v6288_v44  ;;  %v5004_v53 = vmul.f32 %v11469_v49, %v12759_v55  ;;  %11835 = vmatprep.mubr.msk.bf16.mxu1 %vm2110_vm2, %v12212_v4  ;;  %v12214_v40 = vld [vmem:[%s12535_s20 + $0x638] sm:$0xff]  }
 0x134   : > { %v5260_v54 = vmul.f32 %v11725_v50, %v12759_v55  ;;  %8590 = vst.msk [vmem:[%s12797_s29 + $0x60] sm:$0xf] %vm8565_vm3, %v10677_v45  ;;  %8846 = vst.msk [vmem:[%s12797_s29 + $0x460] sm:$0xf] %vm8565_vm3, %v10933_v46  ;;  %v10678_v61 = vpack.c.bf16 %v6030_v47, %v6030_v47  ;;  %v10934_v62 = vpack.c.bf16 %v6286_v48, %v6286_v48  ;;  %v11473_v31 = vpop.f32.mrb[32].mxu0  ;;  %v11729_v32 = vpop.f32.mrb[32].mxu1 }
 0x135   : > { %v5002_v63 = vmul.f32 %v12759_v55, %v3032_v57  ;;  %v5258_v0 = vmul.f32 %v12759_v55, %v4056_v58  ;;  %8593 = vst.msk [vmem:[%s12797_s29 + $0x6c] sm:$0xf] %vm8565_vm3, %v10680_v51  ;;  %8849 = vst.msk [vmem:[%s12797_s29 + $0x46c] sm:$0xf] %vm8565_vm3, %v10936_v52  ;;  %v5523_v5 = vadd.f32 %v12766_v56, %v5004_v53  ;;  %v3048_v37 = vpop.f32.mrb[33].mxu0  ;;  %v4072_v38 = vpop.f32.mrb[33].mxu1 }
 0x136   : > { %v5779_v6 = vadd.f32 %v12766_v56, %v5260_v54  ;;  %v5005_v7 = vmul.f32 %v11470_v1, %v12759_v55  ;;  %v5261_v8 = vmul.f32 %v11726_v2, %v12759_v55  ;;  %8591 = vst.msk [vmem:[%s12797_s29 + $0x64] sm:$0xf] %vm8565_vm3, %v10678_v61  ;;  %8847 = vst.msk [vmem:[%s12797_s29 + $0x464] sm:$0xf] %vm8565_vm3, %v10934_v62  ;;  %v11474_v45 = vpop.f32.mrb[34].mxu0  ;;  %v11730_v46 = vpop.f32.mrb[34].mxu1 }
 0x137   : > { %v5521_v11 = vadd.f32 %v12766_v56, %v5002_v63  ;;  %v5777_v12 = vadd.f32 %v12766_v56, %v5258_v0  ;;  %v5003_v13 = vmul.f32 %v12759_v55, %v3035_v9  ;;  %v5259_v14 = vmul.f32 %v12759_v55, %v4059_v10  ;;  %v12215_v47 = vld [vmem:[%s12535_s20 + $0x240] sm:$0xff]   ;;  %v3051_v53 = vpop.f32.mrb[35].mxu0  ;;  %v4075_v54 = vpop.f32.mrb[35].mxu1 }
 0x138   : > { %v6035_v15 = vmax.f32 %v5523_v5, 0.0  ;;  %v6291_v16 = vmax.f32 %v5779_v6, 0.0  ;;  %v5524_v17 = vadd.f32 %v12766_v56, %v5005_v7  ;;  %v5780_v18 = vadd.f32 %v12766_v56, %v5261_v8  ;;  %v12216_v48 = vld [vmem:[%s12535_s20 + $0x640] sm:$0xff]  }
 0x139   : > { %v6033_v19 = vmax.f32 %v5521_v11, 0.0  ;;  %v6289_v20 = vmax.f32 %v5777_v12, 0.0  ;;  %v5522_v21 = vadd.f32 %v12766_v56, %v5003_v13  ;;  %v5778_v22 = vadd.f32 %v12766_v56, %v5259_v14  ;;  %11580 = vmatmul.mubr.msk.bf16.gmra.mrb[140].mxu0 %vm2110_vm2, %v12213_v39 }
 0x13a   : > { %v10683_v23 = vpack.c.bf16 %v6035_v15, %v6035_v15  ;;  %v10939_v24 = vpack.c.bf16 %v6291_v16, %v6291_v16  ;;  %v6036_v25 = vmax.f32 %v5524_v17, 0.0  ;;  %v6292_v26 = vmax.f32 %v5780_v18, 0.0  ;;  %11836 = vmatmul.mubr.msk.bf16.gmra.mrb[140].mxu1 %vm2110_vm2, %v12214_v40  ;;  %11583 = vmatprep.mubr.msk.bf16.mxu0 %vm2110_vm2, %v12215_v47 }
 0x13b   : > { %v10681_v27 = vpack.c.bf16 %v6033_v19, %v6033_v19  ;;  %v10937_v28 = vpack.c.bf16 %v6289_v20, %v6289_v20  ;;  %v6034_v29 = vmax.f32 %v5522_v21, 0.0  ;;  %v6290_v30 = vmax.f32 %v5778_v22, 0.0  ;;  %11839 = vmatprep.mubr.msk.bf16.mxu1 %vm2110_vm2, %v12216_v48  ;;  %v12217_v21 = vld [vmem:[%s12535_s20 + $0x248] sm:$0xff]  }
 0x13c   : > { %8596 = vst.msk [vmem:[%s12797_s29 + $0x78] sm:$0xf] %vm8565_vm3, %v10683_v23  ;;  %8852 = vst.msk [vmem:[%s12797_s29 + $0x478] sm:$0xf] %vm8565_vm3, %v10939_v24  ;;  %v10684_v33 = vpack.c.bf16 %v6036_v25, %v6036_v25  ;;  %v10940_v34 = vpack.c.bf16 %v6292_v26, %v6292_v26  ;;  %v5008_v35 = vmul.f32 %v11473_v31, %v12759_v55  ;;  %v11477_v13 = vpop.f32.mrb[36].mxu0  ;;  %v11733_v14 = vpop.f32.mrb[36].mxu1 }
 0x13d   : > { %v5264_v36 = vmul.f32 %v11729_v32, %v12759_v55  ;;  %8594 = vst.msk [vmem:[%s12797_s29 + $0x70] sm:$0xf] %vm8565_vm3, %v10681_v27  ;;  %8850 = vst.msk [vmem:[%s12797_s29 + $0x470] sm:$0xf] %vm8565_vm3, %v10937_v28  ;;  %v10682_v41 = vpack.c.bf16 %v6034_v29, %v6034_v29  ;;  %v10938_v42 = vpack.c.bf16 %v6290_v30, %v6290_v30  ;;  %v3064_v19 = vpop.f32.mrb[37].mxu0  ;;  %v4088_v20 = vpop.f32.mrb[37].mxu1 }
 0x13e   : > { %v5006_v43 = vmul.f32 %v12759_v55, %v3048_v37  ;;  %v5262_v44 = vmul.f32 %v12759_v55, %v4072_v38  ;;  %8597 = vst.msk [vmem:[%s12797_s29 + $0x7c] sm:$0xf] %vm8565_vm3, %v10684_v33  ;;  %8853 = vst.msk [vmem:[%s12797_s29 + $0x47c] sm:$0xf] %vm8565_vm3, %v10940_v34  ;;  %v5527_v49 = vadd.f32 %v12766_v56, %v5008_v35  ;;  %v12218_v22 = vld [vmem:[%s12535_s20 + $0x648] sm:$0xff]   ;;  %v11478_v27 = vpop.f32.mrb[38].mxu0 }
 0x13f   : > { %v5783_v50 = vadd.f32 %v12766_v56, %v5264_v36  ;;  %v5009_v51 = vmul.f32 %v11474_v45, %v12759_v55  ;;  %v5265_v52 = vmul.f32 %v11730_v46, %v12759_v55  ;;  %8595 = vst.msk [vmem:[%s12797_s29 + $0x74] sm:$0xf] %vm8565_vm3, %v10682_v41  ;;  %8851 = vst.msk [vmem:[%s12797_s29 + $0x474] sm:$0xf] %vm8565_vm3, %v10938_v42  ;;  %v11734_v28 = vpop.f32.mrb[38].mxu1  ;;  %v12219_v29 = vld [vmem:[%s12535_s20 + $0x250] sm:$0xff]  }
 0x140   : > { %v5525_v57 = vadd.f32 %v12766_v56, %v5006_v43  ;;  %v5781_v58 = vadd.f32 %v12766_v56, %v5262_v44  ;;  %v5007_v60 = vmul.f32 %v13110_v59, %v3051_v53  ;;  %v5263_v61 = vmul.f32 %v13110_v59, %v4075_v54  ;;  %v12220_v30 = vld [vmem:[%s12535_s20 + $0x650] sm:$0xff]   ;;  %v3067_v35 = vpop.f32.mrb[39].mxu0  ;;  %v4091_v36 = vpop.f32.mrb[39].mxu1 }
 0x141   : > { %v6039_v55 = vmax.f32 %v5527_v49, 0.0  ;;  %v6295_v62 = vmax.f32 %v5783_v50, 0.0  ;;  %v5528_v63 = vadd.f32 %v12766_v56, %v5009_v51  ;;  %v5784_v0 = vadd.f32 %v12766_v56, %v5265_v52  ;;  %11584 = vmatmul.mubr.msk.bf16.gmra.mrb[144].mxu0 %vm2110_vm2, %v12217_v21 }
 0x142   : > { %v6037_v1 = vmax.f32 %v5525_v57, 0.0  ;;  %v6293_v2 = vmax.f32 %v5781_v58, 0.0  ;;  %v5526_v4 = vadd.f32 %v13121_v3, %v5007_v60  ;;  %v5782_v5 = vadd.f32 %v13121_v3, %v5263_v61  ;;  %11840 = vmatmul.mubr.msk.bf16.gmra.mrb[144].mxu1 %vm2110_vm2, %v12218_v22  ;;  %11587 = vmatprep.mubr.msk.bf16.mxu0 %vm2110_vm2, %v12219_v29 }
 0x143   : > { %v10687_v56 = vpack.c.bf16 %v6039_v55, %v6039_v55  ;;  %v10943_v6 = vpack.c.bf16 %v6295_v62, %v6295_v62  ;;  %v6040_v7 = vmax.f32 %v5528_v63, 0.0  ;;  %v6296_v8 = vmax.f32 %v5784_v0, 0.0  ;;  %11843 = vmatprep.mubr.msk.bf16.mxu1 %vm2110_vm2, %v12220_v30 }
 0x144   : > { %v10685_v9 = vpack.c.bf16 %v6037_v1, %v6037_v1  ;;  %v10941_v10 = vpack.c.bf16 %v6293_v2, %v6293_v2  ;;  %v6038_v11 = vmax.f32 %v5526_v4, 0.0  ;;  %v6294_v12 = vmax.f32 %v5782_v5, 0.0  ;;  %v11481_v60 = vpop.f32.mrb[40].mxu0  ;;  %v11737_v61 = vpop.f32.mrb[40].mxu1  ;;  %v12221_v4 = vld [vmem:[%s12535_s20 + $0x258] sm:$0xff]  }
 0x145   : > { %8600 = vst.msk [vmem:[%s12797_s29 + $0x88] sm:$0xf] %vm8565_vm3, %v10687_v56  ;;  %8856 = vst.msk [vmem:[%s12797_s29 + $0x488] sm:$0xf] %vm8565_vm3, %v10943_v6  ;;  %v10688_v15 = vpack.c.bf16 %v6040_v7, %v6040_v7  ;;  %v10944_v16 = vpack.c.bf16 %v6296_v8, %v6296_v8  ;;  %v5012_v17 = vmul.f32 %v13110_v59, %v11477_v13  ;;  %v3080_v1 = vpop.f32.mrb[41].mxu0  ;;  %v4104_v2 = vpop.f32.mrb[41].mxu1 }
 0x146   : > { %v5268_v18 = vmul.f32 %v13110_v59, %v11733_v14  ;;  %8598 = vst.msk [vmem:[%s12797_s29 + $0x80] sm:$0xf] %vm8565_vm3, %v10685_v9  ;;  %8854 = vst.msk [vmem:[%s12797_s29 + $0x480] sm:$0xf] %vm8565_vm3, %v10941_v10  ;;  %v10686_v23 = vpack.c.bf16 %v6038_v11, %v6038_v11  ;;  %v10942_v24 = vpack.c.bf16 %v6294_v12, %v6294_v12  ;;  %v12222_v5 = vld [vmem:[%s12535_s20 + $0x658] sm:$0xff]   ;;  %v11482_v9 = vpop.f32.mrb[42].mxu0 }
 0x147   : > { %v5010_v25 = vmul.f32 %v13110_v59, %v3064_v19  ;;  %v5266_v26 = vmul.f32 %v13110_v59, %v4088_v20  ;;  %8601 = vst.msk [vmem:[%s12797_s29 + $0x8c] sm:$0xf] %vm8565_vm3, %v10688_v15  ;;  %8857 = vst.msk [vmem:[%s12797_s29 + $0x48c] sm:$0xf] %vm8565_vm3, %v10944_v16  ;;  %v5531_v31 = vadd.f32 %v13121_v3, %v5012_v17  ;;  %v11738_v10 = vpop.f32.mrb[42].mxu1  ;;  %v12223_v11 = vld [vmem:[%s12535_s20 + $0x260] sm:$0xff]  }
 0x148   : > { %v5787_v32 = vadd.f32 %v13121_v3, %v5268_v18  ;;  %v5013_v33 = vmul.f32 %v13110_v59, %v11478_v27  ;;  %v5269_v34 = vmul.f32 %v13110_v59, %v11734_v28  ;;  %8599 = vst.msk [vmem:[%s12797_s29 + $0x84] sm:$0xf] %vm8565_vm3, %v10686_v23  ;;  %8855 = vst.msk [vmem:[%s12797_s29 + $0x484] sm:$0xf] %vm8565_vm3, %v10942_v24  ;;  %v12224_v12 = vld [vmem:[%s12535_s20 + $0x660] sm:$0xff]   ;;  %v3083_v17 = vpop.f32.mrb[43].mxu0 }
 0x149   : > { %v5529_v37 = vadd.f32 %v13121_v3, %v5010_v25  ;;  %v5785_v38 = vadd.f32 %v13121_v3, %v5266_v26  ;;  %v5011_v39 = vmul.f32 %v13110_v59, %v3067_v35  ;;  %v5267_v40 = vmul.f32 %v13110_v59, %v4091_v36  ;;  %v4107_v18 = vpop.f32.mrb[43].mxu1  ;;  %11588 = vmatmul.mubr.msk.bf16.gmra.mrb[148].mxu0 %vm2110_vm2, %v12221_v4 }
 0x14a   : > { %v6043_v41 = vmax.f32 %v5531_v31, 0.0  ;;  %v6299_v42 = vmax.f32 %v5787_v32, 0.0  ;;  %v5532_v43 = vadd.f32 %v13121_v3, %v5013_v33  ;;  %v5788_v44 = vadd.f32 %v13121_v3, %v5269_v34  ;;  %11844 = vmatmul.mubr.msk.bf16.gmra.mrb[148].mxu1 %vm2110_vm2, %v12222_v5  ;;  %11591 = vmatprep.mubr.msk.bf16.mxu0 %vm2110_vm2, %v12223_v11 }
 0x14b   : > { %v6041_v45 = vmax.f32 %v5529_v37, 0.0  ;;  %v6297_v46 = vmax.f32 %v5785_v38, 0.0  ;;  %v5530_v47 = vadd.f32 %v13121_v3, %v5011_v39  ;;  %v5786_v48 = vadd.f32 %v13121_v3, %v5267_v40  ;;  %11847 = vmatprep.mubr.msk.bf16.mxu1 %vm2110_vm2, %v12224_v12 }
 0x14c   : > { %v10691_v49 = vpack.c.bf16 %v6043_v41, %v6043_v41  ;;  %v10947_v50 = vpack.c.bf16 %v6299_v42, %v6299_v42  ;;  %v6044_v51 = vmax.f32 %v5532_v43, 0.0  ;;  %v6300_v52 = vmax.f32 %v5788_v44, 0.0  ;;  %v11485_v39 = vpop.f32.mrb[44].mxu0  ;;  %v11741_v40 = vpop.f32.mrb[44].mxu1 }
 0x14d   : > { %v10689_v53 = vpack.c.bf16 %v6041_v45, %v6041_v45  ;;  %v10945_v54 = vpack.c.bf16 %v6297_v46, %v6297_v46  ;;  %v6042_v57 = vmax.f32 %v5530_v47, 0.0  ;;  %v6298_v58 = vmax.f32 %v5786_v48, 0.0  ;;  %v3096_v45 = vpop.f32.mrb[45].mxu0  ;;  %v4120_v46 = vpop.f32.mrb[45].mxu1  ;;  %v12225_v47 = vld [vmem:[%s12535_s20 + $0x268] sm:$0xff]  }
 0x14e   : > { %8604 = vst.msk [vmem:[%s12797_s29 + $0x98] sm:$0xf] %vm8565_vm3, %v10691_v49  ;;  %8860 = vst.msk [vmem:[%s12797_s29 + $0x498] sm:$0xf] %vm8565_vm3, %v10947_v50  ;;  %v10692_v55 = vpack.c.bf16 %v6044_v51, %v6044_v51  ;;  %v10948_v62 = vpack.c.bf16 %v6300_v52, %v6300_v52  ;;  %v5016_v63 = vmul.f32 %v13110_v59, %v11481_v60  ;;  %v12226_v48 = vld [vmem:[%s12535_s20 + $0x668] sm:$0xff]  }
 0x14f   : > { %v5272_v0 = vmul.f32 %v13110_v59, %v11737_v61  ;;  %8602 = vst.msk [vmem:[%s12797_s29 + $0x90] sm:$0xf] %vm8565_vm3, %v10689_v53  ;;  %8858 = vst.msk [vmem:[%s12797_s29 + $0x490] sm:$0xf] %vm8565_vm3, %v10945_v54  ;;  %v10690_v56 = vpack.c.bf16 %v6042_v57, %v6042_v57  ;;  %v10946_v6 = vpack.c.bf16 %v6298_v58, %v6298_v58  ;;  %v11486_v53 = vpop.f32.mrb[46].mxu0  ;;  %v11742_v54 = vpop.f32.mrb[46].mxu1 }
 0x150   : > { %v5014_v7 = vmul.f32 %v13110_v59, %v3080_v1  ;;  %v5270_v8 = vmul.f32 %v13110_v59, %v4104_v2  ;;  %8605 = vst.msk [vmem:[%s12797_s29 + $0x9c] sm:$0xf] %vm8565_vm3, %v10692_v55  ;;  %8861 = vst.msk [vmem:[%s12797_s29 + $0x49c] sm:$0xf] %vm8565_vm3, %v10948_v62  ;;  %v5535_v13 = vadd.f32 %v13121_v3, %v5016_v63  ;;  %v12227_v57 = vld [vmem:[%s12535_s20 + $0x270] sm:$0xff]   ;;  %v3099_v63 = vpop.f32.mrb[47].mxu0 }
 0x151   : > { %v5791_v14 = vadd.f32 %v13121_v3, %v5272_v0  ;;  %v5017_v15 = vmul.f32 %v13110_v59, %v11482_v9  ;;  %v5273_v16 = vmul.f32 %v13110_v59, %v11738_v10  ;;  %8603 = vst.msk [vmem:[%s12797_s29 + $0x94] sm:$0xf] %vm8565_vm3, %v10690_v56  ;;  %8859 = vst.msk [vmem:[%s12797_s29 + $0x494] sm:$0xf] %vm8565_vm3, %v10946_v6  ;;  %v12228_v58 = vld [vmem:[%s12535_s20 + $0x670] sm:$0xff]   ;;  %v4123_v0 = vpop.f32.mrb[47].mxu1  ;;  %11592 = vmatmul.mubr.msk.bf16.gmra.mrb[152].mxu0 %vm2110_vm2, %v12225_v47 }
 0x152   : > { %v5533_v19 = vadd.f32 %v13121_v3, %v5014_v7  ;;  %v5789_v20 = vadd.f32 %v13121_v3, %v5270_v8  ;;  %v5015_v21 = vmul.f32 %v13110_v59, %v3083_v17  ;;  %v5271_v22 = vmul.f32 %v13110_v59, %v4107_v18  ;;  %11848 = vmatmul.mubr.msk.bf16.gmra.mrb[152].mxu1 %vm2110_vm2, %v12226_v48 }
 0x153   : > { %v6047_v23 = vmax.f32 %v5535_v13, 0.0  ;;  %v6303_v24 = vmax.f32 %v5791_v14, 0.0  ;;  %v5536_v25 = vadd.f32 %v13121_v3, %v5017_v15  ;;  %v5792_v26 = vadd.f32 %v13121_v3, %v5273_v16  ;;  %11595 = vmatprep.mubr.msk.bf16.mxu0 %vm2110_vm2, %v12227_v57  ;;  %11851 = vmatprep.mubr.msk.bf16.mxu1 %vm2110_vm2, %v12228_v58 }
 0x154   : > { %v6045_v27 = vmax.f32 %v5533_v19, 0.0  ;;  %v6301_v28 = vmax.f32 %v5789_v20, 0.0  ;;  %v5534_v29 = vadd.f32 %v13121_v3, %v5015_v21  ;;  %v5790_v30 = vadd.f32 %v13121_v3, %v5271_v22  ;;  %v11489_v21 = vpop.f32.mrb[48].mxu0  ;;  %v11745_v22 = vpop.f32.mrb[48].mxu1 }
 0x155   : > { %v10695_v31 = vpack.c.bf16 %v6047_v23, %v6047_v23  ;;  %v10951_v32 = vpack.c.bf16 %v6303_v24, %v6303_v24  ;;  %v6048_v33 = vmax.f32 %v5536_v25, 0.0  ;;  %v6304_v34 = vmax.f32 %v5792_v26, 0.0 }
 0x156   : > { %v10693_v35 = vpack.c.bf16 %v6045_v27, %v6045_v27  ;;  %v10949_v36 = vpack.c.bf16 %v6301_v28, %v6301_v28  ;;  %v6046_v37 = vmax.f32 %v5534_v29, 0.0  ;;  %v6302_v38 = vmax.f32 %v5790_v30, 0.0  ;;  %v3112_v27 = vpop.f32.mrb[49].mxu0  ;;  %v4136_v28 = vpop.f32.mrb[49].mxu1  ;;  %v12229_v29 = vld [vmem:[%s12535_s20 + $0x278] sm:$0xff]  }
 0x157   : > { %8608 = vst.msk [vmem:[%s12797_s29 + $0xa8] sm:$0xf] %vm8565_vm3, %v10695_v31  ;;  %8864 = vst.msk [vmem:[%s12797_s29 + $0x4a8] sm:$0xf] %vm8565_vm3, %v10951_v32  ;;  %v10696_v41 = vpack.c.bf16 %v6048_v33, %v6048_v33  ;;  %v10952_v42 = vpack.c.bf16 %v6304_v34, %v6304_v34  ;;  %v5020_v43 = vmul.f32 %v13110_v59, %v11485_v39  ;;  %v12230_v30 = vld [vmem:[%s12535_s20 + $0x678] sm:$0xff]  }
 0x158   : > { %v5276_v44 = vmul.f32 %v13110_v59, %v11741_v40  ;;  %8606 = vst.msk [vmem:[%s12797_s29 + $0xa0] sm:$0xf] %vm8565_vm3, %v10693_v35  ;;  %8862 = vst.msk [vmem:[%s12797_s29 + $0x4a0] sm:$0xf] %vm8565_vm3, %v10949_v36  ;;  %v10694_v49 = vpack.c.bf16 %v6046_v37, %v6046_v37  ;;  %v10950_v50 = vpack.c.bf16 %v6302_v38, %v6302_v38  ;;  %v11490_v35 = vpop.f32.mrb[50].mxu0  ;;  %v11746_v36 = vpop.f32.mrb[50].mxu1 }
 0x159   : > { %v5018_v51 = vmul.f32 %v13110_v59, %v3096_v45  ;;  %v5274_v52 = vmul.f32 %v13110_v59, %v4120_v46  ;;  %8609 = vst.msk [vmem:[%s12797_s29 + $0xac] sm:$0xf] %vm8565_vm3, %v10696_v41  ;;  %8865 = vst.msk [vmem:[%s12797_s29 + $0x4ac] sm:$0xf] %vm8565_vm3, %v10952_v42  ;;  %v5539_v60 = vadd.f32 %v13121_v3, %v5020_v43  ;;  %v12231_v37 = vld [vmem:[%s12535_s20 + $0x280] sm:$0xff]   ;;  %v3115_v43 = vpop.f32.mrb[51].mxu0  ;;  %11596 = vmatmul.mubr.msk.bf16.gmra.mrb[156].mxu0 %vm2110_vm2, %v12229_v29 }
 0x15a   : > { %v5795_v61 = vadd.f32 %v13121_v3, %v5276_v44  ;;  %v5021_v55 = vmul.f32 %v13110_v59, %v11486_v53  ;;  %v5277_v62 = vmul.f32 %v13110_v59, %v11742_v54  ;;  %8607 = vst.msk [vmem:[%s12797_s29 + $0xa4] sm:$0xf] %vm8565_vm3, %v10694_v49  ;;  %8863 = vst.msk [vmem:[%s12797_s29 + $0x4a4] sm:$0xf] %vm8565_vm3, %v10950_v50  ;;  %v12232_v38 = vld [vmem:[%s12535_s20 + $0x680] sm:$0xff]   ;;  %v4139_v44 = vpop.f32.mrb[51].mxu1  ;;  %11852 = vmatmul.mubr.msk.bf16.gmra.mrb[156].mxu1 %vm2110_vm2, %v12230_v30 }
 0x15b   : > { %v5537_v1 = vadd.f32 %v13121_v3, %v5018_v51  ;;  %v5793_v2 = vadd.f32 %v13121_v3, %v5274_v52  ;;  %v5019_v4 = vmul.f32 %v13110_v59, %v3099_v63  ;;  %v5275_v5 = vmul.f32 %v13110_v59, %v4123_v0  ;;  %11599 = vmatprep.mubr.msk.bf16.mxu0 %vm2110_vm2, %v12231_v37 }
 0x15c   : > { %v6051_v56 = vmax.f32 %v5539_v60, 0.0  ;;  %v6307_v6 = vmax.f32 %v5795_v61, 0.0  ;;  %v5540_v7 = vadd.f32 %v13121_v3, %v5021_v55  ;;  %v5796_v8 = vadd.f32 %v13121_v3, %v5277_v62  ;;  %11855 = vmatprep.mubr.msk.bf16.mxu1 %vm2110_vm2, %v12232_v38 }
 0x15d   : > { %v6049_v9 = vmax.f32 %v5537_v1, 0.0  ;;  %v6305_v10 = vmax.f32 %v5793_v2, 0.0  ;;  %v5538_v11 = vadd.f32 %v13121_v3, %v5019_v4  ;;  %v5794_v12 = vadd.f32 %v13121_v3, %v5275_v5  ;;  %v11493_v4 = vpop.f32.mrb[52].mxu0  ;;  %v11749_v5 = vpop.f32.mrb[52].mxu1 }
 0x15e   : > { %v10699_v13 = vpack.c.bf16 %v6051_v56, %v6051_v56  ;;  %v10955_v14 = vpack.c.bf16 %v6307_v6, %v6307_v6  ;;  %v6052_v15 = vmax.f32 %v5540_v7, 0.0  ;;  %v6308_v16 = vmax.f32 %v5796_v8, 0.0 }
 0x15f   : > { %v10697_v17 = vpack.c.bf16 %v6049_v9, %v6049_v9  ;;  %v10953_v18 = vpack.c.bf16 %v6305_v10, %v6305_v10  ;;  %v6050_v19 = vmax.f32 %v5538_v11, 0.0  ;;  %v6306_v20 = vmax.f32 %v5794_v12, 0.0  ;;  %v3128_v9 = vpop.f32.mrb[53].mxu0  ;;  %v4152_v10 = vpop.f32.mrb[53].mxu1  ;;  %v12233_v11 = vld [vmem:[%s12535_s20 + $0x288] sm:$0xff]  }
 0x160   : > { %8612 = vst.msk [vmem:[%s12797_s29 + $0xb8] sm:$0xf] %vm8565_vm3, %v10699_v13  ;;  %8868 = vst.msk [vmem:[%s12797_s29 + $0x4b8] sm:$0xf] %vm8565_vm3, %v10955_v14  ;;  %v10700_v23 = vpack.c.bf16 %v6052_v15, %v6052_v15  ;;  %v10956_v24 = vpack.c.bf16 %v6308_v16, %v6308_v16  ;;  %v5024_v25 = vmul.f32 %v13110_v59, %v11489_v21  ;;  %v12234_v12 = vld [vmem:[%s12535_s20 + $0x688] sm:$0xff]  }
 0x161   : > { %v5280_v26 = vmul.f32 %v13110_v59, %v11745_v22  ;;  %8610 = vst.msk [vmem:[%s12797_s29 + $0xb0] sm:$0xf] %vm8565_vm3, %v10697_v17  ;;  %8866 = vst.msk [vmem:[%s12797_s29 + $0x4b0] sm:$0xf] %vm8565_vm3, %v10953_v18  ;;  %v10698_v31 = vpack.c.bf16 %v6050_v19, %v6050_v19  ;;  %v10954_v32 = vpack.c.bf16 %v6306_v20, %v6306_v20  ;;  %v11494_v17 = vpop.f32.mrb[54].mxu0  ;;  %v11750_v18 = vpop.f32.mrb[54].mxu1  ;;  %11600 = vmatmul.mubr.msk.bf16.gmra.mrb[160].mxu0 %vm2110_vm2, %v12233_v11 }
 0x162   : > { %v5022_v33 = vmul.f32 %v13110_v59, %v3112_v27  ;;  %v5278_v34 = vmul.f32 %v13110_v59, %v4136_v28  ;;  %8613 = vst.msk [vmem:[%s12797_s29 + $0xbc] sm:$0xf] %vm8565_vm3, %v10700_v23  ;;  %8869 = vst.msk [vmem:[%s12797_s29 + $0x4bc] sm:$0xf] %vm8565_vm3, %v10956_v24  ;;  %v5543_v39 = vadd.f32 %v13121_v3, %v5024_v25  ;;  %v12235_v19 = vld [vmem:[%s12535_s20 + $0x290] sm:$0xff]   ;;  %v3131_v25 = vpop.f32.mrb[55].mxu0  ;;  %11856 = vmatmul.mubr.msk.bf16.gmra.mrb[160].mxu1 %vm2110_vm2, %v12234_v12 }
 0x163   : > { %v5799_v40 = vadd.f32 %v13121_v3, %v5280_v26  ;;  %v5025_v41 = vmul.f32 %v13110_v59, %v11490_v35  ;;  %v5281_v42 = vmul.f32 %v13110_v59, %v11746_v36  ;;  %8611 = vst.msk [vmem:[%s12797_s29 + $0xb4] sm:$0xf] %vm8565_vm3, %v10698_v31  ;;  %8867 = vst.msk [vmem:[%s12797_s29 + $0x4b4] sm:$0xf] %vm8565_vm3, %v10954_v32  ;;  %v12236_v20 = vld [vmem:[%s12535_s20 + $0x690] sm:$0xff]   ;;  %v4155_v26 = vpop.f32.mrb[55].mxu1  ;;  %11603 = vmatprep.mubr.msk.bf16.mxu0 %vm2110_vm2, %v12235_v19 }
 0x164   : > { %v5541_v45 = vadd.f32 %v13121_v3, %v5022_v33  ;;  %v5797_v46 = vadd.f32 %v13121_v3, %v5278_v34  ;;  %v5023_v47 = vmul.f32 %v13110_v59, %v3115_v43  ;;  %v5279_v48 = vmul.f32 %v13110_v59, %v4139_v44  ;;  %11859 = vmatprep.mubr.msk.bf16.mxu1 %vm2110_vm2, %v12236_v20 }
 0x165   : > { %v6055_v49 = vmax.f32 %v5543_v39, 0.0  ;;  %v6311_v50 = vmax.f32 %v5799_v40, 0.0  ;;  %v5544_v51 = vadd.f32 %v13121_v3, %v5025_v41  ;;  %v5800_v52 = vadd.f32 %v13121_v3, %v5281_v42 }
 0x166   : > { %v6053_v53 = vmax.f32 %v5541_v45, 0.0  ;;  %v6309_v54 = vmax.f32 %v5797_v46, 0.0  ;;  %v5542_v57 = vadd.f32 %v13121_v3, %v5023_v47  ;;  %v5798_v58 = vadd.f32 %v13121_v3, %v5279_v48  ;;  %v11497_v47 = vpop.f32.mrb[56].mxu0  ;;  %v11753_v48 = vpop.f32.mrb[56].mxu1 }
 0x167   : > { %v10703_v60 = vpack.c.bf16 %v6055_v49, %v6055_v49  ;;  %v10959_v61 = vpack.c.bf16 %v6311_v50, %v6311_v50  ;;  %v6056_v55 = vmax.f32 %v5544_v51, 0.0  ;;  %v6312_v62 = vmax.f32 %v5800_v52, 0.0 }
 0x168   : > { %v10701_v63 = vpack.c.bf16 %v6053_v53, %v6053_v53  ;;  %v10957_v0 = vpack.c.bf16 %v6309_v54, %v6309_v54  ;;  %v6054_v1 = vmax.f32 %v5542_v57, 0.0  ;;  %v6310_v2 = vmax.f32 %v5798_v58, 0.0  ;;  %v3144_v53 = vpop.f32.mrb[57].mxu0  ;;  %v4168_v54 = vpop.f32.mrb[57].mxu1  ;;  %v12237_v57 = vld [vmem:[%s12535_s20 + $0x298] sm:$0xff]  }
 0x169   : > { %8616 = vst.msk [vmem:[%s12797_s29 + $0xc8] sm:$0xf] %vm8565_vm3, %v10703_v60  ;;  %8872 = vst.msk [vmem:[%s12797_s29 + $0x4c8] sm:$0xf] %vm8565_vm3, %v10959_v61  ;;  %v10704_v56 = vpack.c.bf16 %v6056_v55, %v6056_v55  ;;  %v10960_v6 = vpack.c.bf16 %v6312_v62, %v6312_v62  ;;  %v5028_v7 = vmul.f32 %v13110_v59, %v11493_v4  ;;  %v12238_v58 = vld [vmem:[%s12535_s20 + $0x698] sm:$0xff]   ;;  %11604 = vmatmul.mubr.msk.bf16.gmra.mrb[164].mxu0 %vm2110_vm2, %v12237_v57 }
 0x16a   : > { %v5284_v8 = vmul.f32 %v13110_v59, %v11749_v5  ;;  %8614 = vst.msk [vmem:[%s12797_s29 + $0xc0] sm:$0xf] %vm8565_vm3, %v10701_v63  ;;  %8870 = vst.msk [vmem:[%s12797_s29 + $0x4c0] sm:$0xf] %vm8565_vm3, %v10957_v0  ;;  %v10702_v13 = vpack.c.bf16 %v6054_v1, %v6054_v1  ;;  %v10958_v14 = vpack.c.bf16 %v6310_v2, %v6310_v2  ;;  %v11498_v63 = vpop.f32.mrb[58].mxu0  ;;  %v11754_v0 = vpop.f32.mrb[58].mxu1  ;;  %11860 = vmatmul.mubr.msk.bf16.gmra.mrb[164].mxu1 %vm2110_vm2, %v12238_v58 }
 0x16b   : > { %v5026_v15 = vmul.f32 %v13110_v59, %v3128_v9  ;;  %v5282_v16 = vmul.f32 %v13110_v59, %v4152_v10  ;;  %8617 = vst.msk [vmem:[%s12797_s29 + $0xcc] sm:$0xf] %vm8565_vm3, %v10704_v56  ;;  %8873 = vst.msk [vmem:[%s12797_s29 + $0x4cc] sm:$0xf] %vm8565_vm3, %v10960_v6  ;;  %v5547_v21 = vadd.f32 %v13121_v3, %v5028_v7  ;;  %v12239_v1 = vld [vmem:[%s12535_s20 + $0x2a0] sm:$0xff]   ;;  %v3147_v7 = vpop.f32.mrb[59].mxu0 }
 0x16c   : > { %v5803_v22 = vadd.f32 %v13121_v3, %v5284_v8  ;;  %v5029_v23 = vmul.f32 %v13110_v59, %v11494_v17  ;;  %v5285_v24 = vmul.f32 %v13110_v59, %v11750_v18  ;;  %8615 = vst.msk [vmem:[%s12797_s29 + $0xc4] sm:$0xf] %vm8565_vm3, %v10702_v13  ;;  %8871 = vst.msk [vmem:[%s12797_s29 + $0x4c4] sm:$0xf] %vm8565_vm3, %v10958_v14  ;;  %v12240_v2 = vld [vmem:[%s12535_s20 + $0x6a0] sm:$0xff]   ;;  %v4171_v8 = vpop.f32.mrb[59].mxu1  ;;  %11607 = vmatprep.mubr.msk.bf16.mxu0 %vm2110_vm2, %v12239_v1 }
 0x16d   : > { %v5545_v27 = vadd.f32 %v13121_v3, %v5026_v15  ;;  %v5801_v28 = vadd.f32 %v13121_v3, %v5282_v16  ;;  %v5027_v29 = vmul.f32 %v13110_v59, %v3131_v25  ;;  %v5283_v30 = vmul.f32 %v13110_v59, %v4155_v26  ;;  %11863 = vmatprep.mubr.msk.bf16.mxu1 %vm2110_vm2, %v12240_v2 }
 0x16e   : > { %v6059_v31 = vmax.f32 %v5547_v21, 0.0  ;;  %v6315_v32 = vmax.f32 %v5803_v22, 0.0  ;;  %v5548_v33 = vadd.f32 %v13121_v3, %v5029_v23  ;;  %v5804_v34 = vadd.f32 %v13121_v3, %v5285_v24 }
 0x16f   : > { %v6057_v35 = vmax.f32 %v5545_v27, 0.0  ;;  %v6313_v36 = vmax.f32 %v5801_v28, 0.0  ;;  %v5546_v37 = vadd.f32 %v13121_v3, %v5027_v29  ;;  %v5802_v38 = vadd.f32 %v13121_v3, %v5283_v30  ;;  %v11501_v29 = vpop.f32.mrb[60].mxu0  ;;  %v11757_v30 = vpop.f32.mrb[60].mxu1 }
 0x170   : > { %v10707_v39 = vpack.c.bf16 %v6059_v31, %v6059_v31  ;;  %v10963_v40 = vpack.c.bf16 %v6315_v32, %v6315_v32  ;;  %v6060_v41 = vmax.f32 %v5548_v33, 0.0  ;;  %v6316_v42 = vmax.f32 %v5804_v34, 0.0 }
 0x171   : > { %v10705_v43 = vpack.c.bf16 %v6057_v35, %v6057_v35  ;;  %v10961_v44 = vpack.c.bf16 %v6313_v36, %v6313_v36  ;;  %v6058_v45 = vmax.f32 %v5546_v37, 0.0  ;;  %v6314_v46 = vmax.f32 %v5802_v38, 0.0  ;;  %v3160_v35 = vpop.f32.mrb[61].mxu0  ;;  %v4184_v36 = vpop.f32.mrb[61].mxu1  ;;  %v12241_v37 = vld [vmem:[%s12535_s20 + $0x2a8] sm:$0xff]  }
 0x172   : > { %8620 = vst.msk [vmem:[%s12797_s29 + $0xd8] sm:$0xf] %vm8565_vm3, %v10707_v39  ;;  %8876 = vst.msk [vmem:[%s12797_s29 + $0x4d8] sm:$0xf] %vm8565_vm3, %v10963_v40  ;;  %v10708_v49 = vpack.c.bf16 %v6060_v41, %v6060_v41  ;;  %v10964_v50 = vpack.c.bf16 %v6316_v42, %v6316_v42  ;;  %v5032_v51 = vmul.f32 %v13110_v59, %v11497_v47  ;;  %v12242_v38 = vld [vmem:[%s12535_s20 + $0x6a8] sm:$0xff]   ;;  %11608 = vmatmul.mubr.msk.bf16.gmra.mrb[168].mxu0 %vm2110_vm2, %v12241_v37 }
 0x173   : > { %v5288_v52 = vmul.f32 %v13110_v59, %v11753_v48  ;;  %8618 = vst.msk [vmem:[%s12797_s29 + $0xd0] sm:$0xf] %vm8565_vm3, %v10705_v43  ;;  %8874 = vst.msk [vmem:[%s12797_s29 + $0x4d0] sm:$0xf] %vm8565_vm3, %v10961_v44  ;;  %v10706_v60 = vpack.c.bf16 %v6058_v45, %v6058_v45  ;;  %v10962_v61 = vpack.c.bf16 %v6314_v46, %v6314_v46  ;;  %v11502_v43 = vpop.f32.mrb[62].mxu0  ;;  %v11758_v44 = vpop.f32.mrb[62].mxu1  ;;  %11864 = vmatmul.mubr.msk.bf16.gmra.mrb[168].mxu1 %vm2110_vm2, %v12242_v38 }
 0x174   : > { %v5030_v55 = vmul.f32 %v13110_v59, %v3144_v53  ;;  %v5286_v62 = vmul.f32 %v13110_v59, %v4168_v54  ;;  %8621 = vst.msk [vmem:[%s12797_s29 + $0xdc] sm:$0xf] %vm8565_vm3, %v10708_v49  ;;  %8877 = vst.msk [vmem:[%s12797_s29 + $0x4dc] sm:$0xf] %vm8565_vm3, %v10964_v50  ;;  %v5551_v4 = vadd.f32 %v13121_v3, %v5032_v51  ;;  %v12243_v45 = vld [vmem:[%s12535_s20 + $0x2b0] sm:$0xff]   ;;  %v3163_v51 = vpop.f32.mrb[63].mxu0 }
 0x175   : > { %v5807_v5 = vadd.f32 %v13121_v3, %v5288_v52  ;;  %v5033_v56 = vmul.f32 %v13110_v59, %v11498_v63  ;;  %v5289_v6 = vmul.f32 %v13110_v59, %v11754_v0  ;;  %8619 = vst.msk [vmem:[%s12797_s29 + $0xd4] sm:$0xf] %vm8565_vm3, %v10706_v60  ;;  %8875 = vst.msk [vmem:[%s12797_s29 + $0x4d4] sm:$0xf] %vm8565_vm3, %v10962_v61  ;;  %v12244_v46 = vld [vmem:[%s12535_s20 + $0x6b0] sm:$0xff]   ;;  %v4187_v52 = vpop.f32.mrb[63].mxu1  ;;  %11611 = vmatprep.mubr.msk.bf16.mxu0 %vm2110_vm2, %v12243_v45 }
 0x176   : > { %v5549_v9 = vadd.f32 %v13121_v3, %v5030_v55  ;;  %v5805_v10 = vadd.f32 %v13121_v3, %v5286_v62  ;;  %v5031_v11 = vmul.f32 %v13110_v59, %v3147_v7  ;;  %v5287_v12 = vmul.f32 %v13110_v59, %v4171_v8  ;;  %11867 = vmatprep.mubr.msk.bf16.mxu1 %vm2110_vm2, %v12244_v46 }
 0x177   : > { %v6063_v13 = vmax.f32 %v5551_v4, 0.0  ;;  %v6319_v14 = vmax.f32 %v5807_v5, 0.0  ;;  %v5552_v15 = vadd.f32 %v13121_v3, %v5033_v56  ;;  %v5808_v16 = vadd.f32 %v13121_v3, %v5289_v6 }
 0x178   : > { %v6061_v17 = vmax.f32 %v5549_v9, 0.0  ;;  %v6317_v18 = vmax.f32 %v5805_v10, 0.0  ;;  %v5550_v19 = vadd.f32 %v13121_v3, %v5031_v11  ;;  %v5806_v20 = vadd.f32 %v13121_v3, %v5287_v12  ;;  %v11505_v11 = vpop.f32.mrb[64].mxu0  ;;  %v11761_v12 = vpop.f32.mrb[64].mxu1 }
 0x179   : > { %v10711_v21 = vpack.c.bf16 %v6063_v13, %v6063_v13  ;;  %v10967_v22 = vpack.c.bf16 %v6319_v14, %v6319_v14  ;;  %v6064_v23 = vmax.f32 %v5552_v15, 0.0  ;;  %v6320_v24 = vmax.f32 %v5808_v16, 0.0 }
 0x17a   : > { %v10709_v25 = vpack.c.bf16 %v6061_v17, %v6061_v17  ;;  %v10965_v26 = vpack.c.bf16 %v6317_v18, %v6317_v18  ;;  %v6062_v27 = vmax.f32 %v5550_v19, 0.0  ;;  %v6318_v28 = vmax.f32 %v5806_v20, 0.0  ;;  %v3176_v17 = vpop.f32.mrb[65].mxu0  ;;  %v4200_v18 = vpop.f32.mrb[65].mxu1  ;;  %v12245_v19 = vld [vmem:[%s12535_s20 + $0x2b8] sm:$0xff]  }
 0x17b   : > { %8624 = vst.msk [vmem:[%s12797_s29 + $0xe8] sm:$0xf] %vm8565_vm3, %v10711_v21  ;;  %8880 = vst.msk [vmem:[%s12797_s29 + $0x4e8] sm:$0xf] %vm8565_vm3, %v10967_v22  ;;  %v10712_v31 = vpack.c.bf16 %v6064_v23, %v6064_v23  ;;  %v10968_v32 = vpack.c.bf16 %v6320_v24, %v6320_v24  ;;  %v5036_v33 = vmul.f32 %v13110_v59, %v11501_v29  ;;  %v12246_v20 = vld [vmem:[%s12535_s20 + $0x6b8] sm:$0xff]   ;;  %11612 = vmatmul.mubr.msk.bf16.gmra.mrb[172].mxu0 %vm2110_vm2, %v12245_v19 }
 0x17c   : > { %v5292_v34 = vmul.f32 %v13110_v59, %v11757_v30  ;;  %8622 = vst.msk [vmem:[%s12797_s29 + $0xe0] sm:$0xf] %vm8565_vm3, %v10709_v25  ;;  %8878 = vst.msk [vmem:[%s12797_s29 + $0x4e0] sm:$0xf] %vm8565_vm3, %v10965_v26  ;;  %v10710_v39 = vpack.c.bf16 %v6062_v27, %v6062_v27  ;;  %v10966_v40 = vpack.c.bf16 %v6318_v28, %v6318_v28  ;;  %v11506_v25 = vpop.f32.mrb[66].mxu0  ;;  %v11762_v26 = vpop.f32.mrb[66].mxu1  ;;  %11868 = vmatmul.mubr.msk.bf16.gmra.mrb[172].mxu1 %vm2110_vm2, %v12246_v20 }
 0x17d   : > { %v5034_v41 = vmul.f32 %v13110_v59, %v3160_v35  ;;  %v5290_v42 = vmul.f32 %v13110_v59, %v4184_v36  ;;  %8625 = vst.msk [vmem:[%s12797_s29 + $0xec] sm:$0xf] %vm8565_vm3, %v10712_v31  ;;  %8881 = vst.msk [vmem:[%s12797_s29 + $0x4ec] sm:$0xf] %vm8565_vm3, %v10968_v32  ;;  %v5555_v47 = vadd.f32 %v13121_v3, %v5036_v33  ;;  %v12247_v27 = vld [vmem:[%s12535_s20 + $0x2c0] sm:$0xff]   ;;  %v3179_v33 = vpop.f32.mrb[67].mxu0 }
 0x17e   : > { %v5811_v48 = vadd.f32 %v13121_v3, %v5292_v34  ;;  %v5037_v49 = vmul.f32 %v13110_v59, %v11502_v43  ;;  %v5293_v50 = vmul.f32 %v13110_v59, %v11758_v44  ;;  %8623 = vst.msk [vmem:[%s12797_s29 + $0xe4] sm:$0xf] %vm8565_vm3, %v10710_v39  ;;  %8879 = vst.msk [vmem:[%s12797_s29 + $0x4e4] sm:$0xf] %vm8565_vm3, %v10966_v40  ;;  %v12248_v28 = vld [vmem:[%s12535_s20 + $0x6c0] sm:$0xff]   ;;  %v4203_v34 = vpop.f32.mrb[67].mxu1  ;;  %11615 = vmatprep.mubr.msk.bf16.mxu0 %vm2110_vm2, %v12247_v27 }
 0x17f   : > { %v5553_v53 = vadd.f32 %v13121_v3, %v5034_v41  ;;  %v5809_v54 = vadd.f32 %v13121_v3, %v5290_v42  ;;  %v5035_v57 = vmul.f32 %v13110_v59, %v3163_v51  ;;  %v5291_v58 = vmul.f32 %v13110_v59, %v4187_v52  ;;  %11871 = vmatprep.mubr.msk.bf16.mxu1 %vm2110_vm2, %v12248_v28 }
 0x180   : > { %v6067_v60 = vmax.f32 %v5555_v47, 0.0  ;;  %v6323_v61 = vmax.f32 %v5811_v48, 0.0  ;;  %v5556_v55 = vadd.f32 %v13121_v3, %v5037_v49  ;;  %v5812_v62 = vadd.f32 %v13121_v3, %v5293_v50 }
 0x181   : > { %v6065_v63 = vmax.f32 %v5553_v53, 0.0  ;;  %v6321_v0 = vmax.f32 %v5809_v54, 0.0  ;;  %v5554_v1 = vadd.f32 %v13121_v3, %v5035_v57  ;;  %v5810_v2 = vadd.f32 %v13121_v3, %v5291_v58  ;;  %v11509_v57 = vpop.f32.mrb[68].mxu0  ;;  %v11765_v58 = vpop.f32.mrb[68].mxu1 }
 0x182   : > { %v10715_v4 = vpack.c.bf16 %v6067_v60, %v6067_v60  ;;  %v10971_v5 = vpack.c.bf16 %v6323_v61, %v6323_v61  ;;  %v6068_v56 = vmax.f32 %v5556_v55, 0.0  ;;  %v6324_v6 = vmax.f32 %v5812_v62, 0.0 }
 0x183   : > { %v10713_v7 = vpack.c.bf16 %v6065_v63, %v6065_v63  ;;  %v10969_v8 = vpack.c.bf16 %v6321_v0, %v6321_v0  ;;  %v6066_v9 = vmax.f32 %v5554_v1, 0.0  ;;  %v6322_v10 = vmax.f32 %v5810_v2, 0.0  ;;  %v3192_v63 = vpop.f32.mrb[69].mxu0  ;;  %v4216_v0 = vpop.f32.mrb[69].mxu1  ;;  %v12249_v1 = vld [vmem:[%s12535_s20 + $0x2c8] sm:$0xff]  }
 0x184   : > { %8628 = vst.msk [vmem:[%s12797_s29 + $0xf8] sm:$0xf] %vm8565_vm3, %v10715_v4  ;;  %8884 = vst.msk [vmem:[%s12797_s29 + $0x4f8] sm:$0xf] %vm8565_vm3, %v10971_v5  ;;  %v10716_v13 = vpack.c.bf16 %v6068_v56, %v6068_v56  ;;  %v10972_v14 = vpack.c.bf16 %v6324_v6, %v6324_v6  ;;  %v5040_v15 = vmul.f32 %v13110_v59, %v11505_v11  ;;  %v12250_v2 = vld [vmem:[%s12535_s20 + $0x6c8] sm:$0xff]   ;;  %11616 = vmatmul.mubr.msk.bf16.gmra.mrb[176].mxu0 %vm2110_vm2, %v12249_v1 }
 0x185   : > { %v5296_v16 = vmul.f32 %v13110_v59, %v11761_v12  ;;  %8626 = vst.msk [vmem:[%s12797_s29 + $0xf0] sm:$0xf] %vm8565_vm3, %v10713_v7  ;;  %8882 = vst.msk [vmem:[%s12797_s29 + $0x4f0] sm:$0xf] %vm8565_vm3, %v10969_v8  ;;  %v10714_v21 = vpack.c.bf16 %v6066_v9, %v6066_v9  ;;  %v10970_v22 = vpack.c.bf16 %v6322_v10, %v6322_v10  ;;  %v11510_v7 = vpop.f32.mrb[70].mxu0  ;;  %v11766_v8 = vpop.f32.mrb[70].mxu1  ;;  %11872 = vmatmul.mubr.msk.bf16.gmra.mrb[176].mxu1 %vm2110_vm2, %v12250_v2 }
 0x186   : > { %v5038_v23 = vmul.f32 %v13110_v59, %v3176_v17  ;;  %v5294_v24 = vmul.f32 %v13110_v59, %v4200_v18  ;;  %8629 = vst.msk [vmem:[%s12797_s29 + $0xfc] sm:$0xf] %vm8565_vm3, %v10716_v13  ;;  %8885 = vst.msk [vmem:[%s12797_s29 + $0x4fc] sm:$0xf] %vm8565_vm3, %v10972_v14  ;;  %v5559_v29 = vadd.f32 %v13121_v3, %v5040_v15  ;;  %v12251_v9 = vld [vmem:[%s12535_s20 + $0x2d0] sm:$0xff]   ;;  %v3195_v15 = vpop.f32.mrb[71].mxu0 }
 0x187   : > { %v5815_v30 = vadd.f32 %v13121_v3, %v5296_v16  ;;  %v5041_v31 = vmul.f32 %v13110_v59, %v11506_v25  ;;  %v5297_v32 = vmul.f32 %v13110_v59, %v11762_v26  ;;  %8627 = vst.msk [vmem:[%s12797_s29 + $0xf4] sm:$0xf] %vm8565_vm3, %v10714_v21  ;;  %8883 = vst.msk [vmem:[%s12797_s29 + $0x4f4] sm:$0xf] %vm8565_vm3, %v10970_v22  ;;  %v12252_v10 = vld [vmem:[%s12535_s20 + $0x6d0] sm:$0xff]   ;;  %v4219_v16 = vpop.f32.mrb[71].mxu1  ;;  %11619 = vmatprep.mubr.msk.bf16.mxu0 %vm2110_vm2, %v12251_v9 }
 0x188   : > { %v5557_v35 = vadd.f32 %v13121_v3, %v5038_v23  ;;  %v5813_v36 = vadd.f32 %v13121_v3, %v5294_v24  ;;  %v5039_v37 = vmul.f32 %v13110_v59, %v3179_v33  ;;  %v5295_v38 = vmul.f32 %v13110_v59, %v4203_v34  ;;  %11875 = vmatprep.mubr.msk.bf16.mxu1 %vm2110_vm2, %v12252_v10 }
 0x189   : > { %v6071_v39 = vmax.f32 %v5559_v29, 0.0  ;;  %v6327_v40 = vmax.f32 %v5815_v30, 0.0  ;;  %v5560_v41 = vadd.f32 %v13121_v3, %v5041_v31  ;;  %v5816_v42 = vadd.f32 %v13121_v3, %v5297_v32 }
 0x18a   : > { %v6069_v43 = vmax.f32 %v5557_v35, 0.0  ;;  %v6325_v44 = vmax.f32 %v5813_v36, 0.0  ;;  %v5558_v45 = vadd.f32 %v13121_v3, %v5039_v37  ;;  %v5814_v46 = vadd.f32 %v13121_v3, %v5295_v38  ;;  %v11513_v36 = vpop.f32.mrb[72].mxu0  ;;  %v11769_v37 = vpop.f32.mrb[72].mxu1 }
 0x18b   : > { %v10719_v47 = vpack.c.bf16 %v6071_v39, %v6071_v39  ;;  %v10975_v48 = vpack.c.bf16 %v6327_v40, %v6327_v40  ;;  %v6072_v49 = vmax.f32 %v5560_v41, 0.0  ;;  %v6328_v50 = vmax.f32 %v5816_v42, 0.0  ;;  %v13494_v39 = vld [vmem:[%s15379_s2] ss:$0 sm:$0xff]  ;;  %v3208_v42 = vpop.f32.mrb[73].mxu0 }
 0x18c   : > { %v10717_v51 = vpack.c.bf16 %v6069_v43, %v6069_v43  ;;  %v10973_v52 = vpack.c.bf16 %v6325_v44, %v6325_v44  ;;  %v6070_v53 = vmax.f32 %v5558_v45, 0.0  ;;  %v6326_v54 = vmax.f32 %v5814_v46, 0.0  ;;  %v4232_v43 = vpop.f32.mrb[73].mxu1  ;;  %v12253_v44 = vld [vmem:[%s12535_s20 + $0x2d8] sm:$0xff]  }
 0x18d   : > { %8632 = vst.msk [vmem:[%s12797_s29 + $0x108] sm:$0xf] %vm8565_vm3, %v10719_v47  ;;  %8888 = vst.msk [vmem:[%s12797_s29 + $0x508] sm:$0xf] %vm8565_vm3, %v10975_v48  ;;  %v10720_v60 = vpack.c.bf16 %v6072_v49, %v6072_v49  ;;  %v10976_v61 = vpack.c.bf16 %v6328_v50, %v6328_v50  ;;  %v5044_v55 = vmul.f32 %v13110_v59, %v11509_v57  ;;  %v12254_v45 = vld [vmem:[%s12535_s20 + $0x6d8] sm:$0xff]   ;;  %v11514_v50 = vpop.f32.mrb[74].mxu0  ;;  %11620 = vmatmul.mubr.msk.bf16.gmra.mrb[180].mxu0 %vm2110_vm2, %v12253_v44 }
 0x18e   : > { %v5300_v62 = vmul.f32 %v13110_v59, %v11765_v58  ;;  %8630 = vst.msk [vmem:[%s12797_s29 + $0x100] sm:$0xf] %vm8565_vm3, %v10717_v51  ;;  %8886 = vst.msk [vmem:[%s12797_s29 + $0x500] sm:$0xf] %vm8565_vm3, %v10973_v52  ;;  %v10718_v4 = vpack.c.bf16 %v6070_v53, %v6070_v53  ;;  %v10974_v5 = vpack.c.bf16 %v6326_v54, %v6326_v54  ;;  %v11770_v51 = vpop.f32.mrb[74].mxu1  ;;  %v12255_v52 = vld [vmem:[%s12535_s20 + $0x2e0] sm:$0xff]   ;;  %11876 = vmatmul.mubr.msk.bf16.gmra.mrb[180].mxu1 %vm2110_vm2, %v12254_v45 }
 0x18f   : > { %v5042_v56 = vmul.f32 %v13110_v59, %v3192_v63  ;;  %v5298_v6 = vmul.f32 %v13110_v59, %v4216_v0  ;;  %8633 = vst.msk [vmem:[%s12797_s29 + $0x10c] sm:$0xf] %vm8565_vm3, %v10720_v60  ;;  %8889 = vst.msk [vmem:[%s12797_s29 + $0x50c] sm:$0xf] %vm8565_vm3, %v10976_v61  ;;  %v5563_v11 = vadd.f32 %v13121_v3, %v5044_v55  ;;  %v12256_v53 = vld [vmem:[%s12535_s20 + $0x6e0] sm:$0xff]   ;;  %v3211_v55 = vpop.f32.mrb[75].mxu0  ;;  %11623 = vmatprep.mubr.msk.bf16.mxu0 %vm2110_vm2, %v12255_v52 }
 0x190   : > { %v5819_v12 = vadd.f32 %v13121_v3, %v5300_v62  ;;  %v5045_v13 = vmul.f32 %v13110_v59, %v11510_v7  ;;  %v5301_v14 = vmul.f32 %v13110_v59, %v11766_v8  ;;  %8631 = vst.msk [vmem:[%s12797_s29 + $0x104] sm:$0xf] %vm8565_vm3, %v10718_v4  ;;  %8887 = vst.msk [vmem:[%s12797_s29 + $0x504] sm:$0xf] %vm8565_vm3, %v10974_v5  ;;  %v13515_v54 = vld [vmem:[%s15380_s3] ss:$0 sm:$0xff]  ;;  %11879 = vmatprep.mubr.msk.bf16.mxu1 %vm2110_vm2, %v12256_v53 }
 0x191   : > { %v5561_v17 = vadd.f32 %v13121_v3, %v5042_v56  ;;  %v5817_v18 = vadd.f32 %v13121_v3, %v5298_v6  ;;  %v5043_v19 = vmul.f32 %v13110_v59, %v3195_v15  ;;  %v5299_v20 = vmul.f32 %v13110_v59, %v4219_v16  ;;  %v4235_v62 = vpop.f32.mrb[75].mxu1 }
 0x192   : > { %v6075_v21 = vmax.f32 %v5563_v11, 0.0  ;;  %v6331_v22 = vmax.f32 %v5819_v12, 0.0  ;;  %v5564_v23 = vadd.f32 %v13121_v3, %v5045_v13  ;;  %v5820_v24 = vadd.f32 %v13121_v3, %v5301_v14 }
 0x193   : > { %v6073_v25 = vmax.f32 %v5561_v17, 0.0  ;;  %v6329_v26 = vmax.f32 %v5817_v18, 0.0  ;;  %v5562_v27 = vadd.f32 %v13121_v3, %v5043_v19  ;;  %v5818_v28 = vadd.f32 %v13121_v3, %v5299_v20  ;;  %v11517_v19 = vpop.f32.mrb[76].mxu0  ;;  %v11773_v20 = vpop.f32.mrb[76].mxu1 }
 0x194   : > { %v10723_v59 = vpack.c.bf16 %v6075_v21, %v6075_v21  ;;  %v10979_v29 = vpack.c.bf16 %v6331_v22, %v6331_v22  ;;  %v6076_v30 = vmax.f32 %v5564_v23, 0.0  ;;  %v6332_v31 = vmax.f32 %v5820_v24, 0.0 }
 0x195   : > { %v10721_v32 = vpack.c.bf16 %v6073_v25, %v6073_v25  ;;  %v10977_v33 = vpack.c.bf16 %v6329_v26, %v6329_v26  ;;  %v6074_v34 = vmax.f32 %v5562_v27, 0.0  ;;  %v6330_v35 = vmax.f32 %v5818_v28, 0.0  ;;  %v3224_v25 = vpop.f32.mrb[77].mxu0  ;;  %v4248_v26 = vpop.f32.mrb[77].mxu1  ;;  %v12257_v27 = vld [vmem:[%s12535_s20 + $0x2e8] sm:$0xff]  }
 0x196   : > { %8636 = vst.msk [vmem:[%s12797_s29 + $0x118] sm:$0xf] %vm8565_vm3, %v10723_v59  ;;  %8892 = vst.msk [vmem:[%s12797_s29 + $0x518] sm:$0xf] %vm8565_vm3, %v10979_v29  ;;  %v10724_v3 = vpack.c.bf16 %v6076_v30, %v6076_v30  ;;  %v10980_v38 = vpack.c.bf16 %v6332_v31, %v6332_v31  ;;  %v5048_v40 = vmul.f32 %v13494_v39, %v11513_v36  ;;  %v12258_v28 = vld [vmem:[%s12535_s20 + $0x6e8] sm:$0xff]   ;;  %11624 = vmatmul.mubr.msk.bf16.gmra.mrb[184].mxu0 %vm2110_vm2, %v12257_v27 }
 0x197   : > { %v5304_v41 = vmul.f32 %v13494_v39, %v11769_v37  ;;  %8634 = vst.msk [vmem:[%s12797_s29 + $0x110] sm:$0xf] %vm8565_vm3, %v10721_v32  ;;  %8890 = vst.msk [vmem:[%s12797_s29 + $0x510] sm:$0xf] %vm8565_vm3, %v10977_v33  ;;  %v10722_v46 = vpack.c.bf16 %v6074_v34, %v6074_v34  ;;  %v10978_v47 = vpack.c.bf16 %v6330_v35, %v6330_v35  ;;  %v11518_v32 = vpop.f32.mrb[78].mxu0  ;;  %v11774_v33 = vpop.f32.mrb[78].mxu1  ;;  %11880 = vmatmul.mubr.msk.bf16.gmra.mrb[184].mxu1 %vm2110_vm2, %v12258_v28 }
 0x198   : > { %v5046_v48 = vmul.f32 %v13494_v39, %v3208_v42  ;;  %v5302_v49 = vmul.f32 %v13494_v39, %v4232_v43  ;;  %8637 = vst.msk [vmem:[%s12797_s29 + $0x11c] sm:$0xf] %vm8565_vm3, %v10724_v3  ;;  %8893 = vst.msk [vmem:[%s12797_s29 + $0x51c] sm:$0xf] %vm8565_vm3, %v10980_v38  ;;  %v5567_v57 = vadd.f32 %v13515_v54, %v5048_v40  ;;  %v12259_v34 = vld [vmem:[%s12535_s20 + $0x2f0] sm:$0xff]   ;;  %v3227_v40 = vpop.f32.mrb[79].mxu0 }
 0x199   : > { %v5823_v58 = vadd.f32 %v13515_v54, %v5304_v41  ;;  %v5049_v60 = vmul.f32 %v13494_v39, %v11514_v50  ;;  %v5305_v61 = vmul.f32 %v13494_v39, %v11770_v51  ;;  %8635 = vst.msk [vmem:[%s12797_s29 + $0x114] sm:$0xf] %vm8565_vm3, %v10722_v46  ;;  %8891 = vst.msk [vmem:[%s12797_s29 + $0x514] sm:$0xf] %vm8565_vm3, %v10978_v47  ;;  %v12260_v35 = vld [vmem:[%s12535_s20 + $0x6f0] sm:$0xff]   ;;  %v4251_v41 = vpop.f32.mrb[79].mxu1  ;;  %11627 = vmatprep.mubr.msk.bf16.mxu0 %vm2110_vm2, %v12259_v34 }
 0x19a   : > { %v5565_v63 = vadd.f32 %v13515_v54, %v5046_v48  ;;  %v5821_v0 = vadd.f32 %v13515_v54, %v5302_v49  ;;  %v5047_v1 = vmul.f32 %v13494_v39, %v3211_v55  ;;  %v5303_v2 = vmul.f32 %v13494_v39, %v4235_v62  ;;  %11883 = vmatprep.mubr.msk.bf16.mxu1 %vm2110_vm2, %v12260_v35 }
 0x19b   : > { %v6079_v4 = vmax.f32 %v5567_v57, 0.0  ;;  %v6335_v5 = vmax.f32 %v5823_v58, 0.0  ;;  %v5568_v56 = vadd.f32 %v13515_v54, %v5049_v60  ;;  %v5824_v6 = vadd.f32 %v13515_v54, %v5305_v61 }
 0x19c   : > { %v6077_v7 = vmax.f32 %v5565_v63, 0.0  ;;  %v6333_v8 = vmax.f32 %v5821_v0, 0.0  ;;  %v5566_v9 = vadd.f32 %v13515_v54, %v5047_v1  ;;  %v5822_v10 = vadd.f32 %v13515_v54, %v5303_v2  ;;  %v11521_v1 = vpop.f32.mrb[80].mxu0  ;;  %v11777_v2 = vpop.f32.mrb[80].mxu1 }
 0x19d   : > { %v10727_v11 = vpack.c.bf16 %v6079_v4, %v6079_v4  ;;  %v10983_v12 = vpack.c.bf16 %v6335_v5, %v6335_v5  ;;  %v6080_v13 = vmax.f32 %v5568_v56, 0.0  ;;  %v6336_v14 = vmax.f32 %v5824_v6, 0.0 }
 0x19e   : > { %v10725_v15 = vpack.c.bf16 %v6077_v7, %v6077_v7  ;;  %v10981_v16 = vpack.c.bf16 %v6333_v8, %v6333_v8  ;;  %v6078_v17 = vmax.f32 %v5566_v9, 0.0  ;;  %v6334_v18 = vmax.f32 %v5822_v10, 0.0  ;;  %v3240_v7 = vpop.f32.mrb[81].mxu0  ;;  %v4264_v8 = vpop.f32.mrb[81].mxu1  ;;  %v12261_v9 = vld [vmem:[%s12535_s20 + $0x2f8] sm:$0xff]  }
 0x19f   : > { %8640 = vst.msk [vmem:[%s12797_s29 + $0x128] sm:$0xf] %vm8565_vm3, %v10727_v11  ;;  %8896 = vst.msk [vmem:[%s12797_s29 + $0x528] sm:$0xf] %vm8565_vm3, %v10983_v12  ;;  %v10728_v21 = vpack.c.bf16 %v6080_v13, %v6080_v13  ;;  %v10984_v22 = vpack.c.bf16 %v6336_v14, %v6336_v14  ;;  %v5052_v23 = vmul.f32 %v13494_v39, %v11517_v19  ;;  %v12262_v10 = vld [vmem:[%s12535_s20 + $0x6f8] sm:$0xff]   ;;  %11628 = vmatmul.mubr.msk.bf16.gmra.mrb[188].mxu0 %vm2110_vm2, %v12261_v9 }
 0x1a0   : > { %v5308_v24 = vmul.f32 %v13494_v39, %v11773_v20  ;;  %8638 = vst.msk [vmem:[%s12797_s29 + $0x120] sm:$0xf] %vm8565_vm3, %v10725_v15  ;;  %8894 = vst.msk [vmem:[%s12797_s29 + $0x520] sm:$0xf] %vm8565_vm3, %v10981_v16  ;;  %v10726_v59 = vpack.c.bf16 %v6078_v17, %v6078_v17  ;;  %v10982_v29 = vpack.c.bf16 %v6334_v18, %v6334_v18  ;;  %v11522_v15 = vpop.f32.mrb[82].mxu0  ;;  %v11778_v16 = vpop.f32.mrb[82].mxu1  ;;  %11884 = vmatmul.mubr.msk.bf16.gmra.mrb[188].mxu1 %vm2110_vm2, %v12262_v10 }
 0x1a1   : > { %v5050_v30 = vmul.f32 %v13494_v39, %v3224_v25  ;;  %v5306_v31 = vmul.f32 %v13494_v39, %v4248_v26  ;;  %8641 = vst.msk [vmem:[%s12797_s29 + $0x12c] sm:$0xf] %vm8565_vm3, %v10728_v21  ;;  %8897 = vst.msk [vmem:[%s12797_s29 + $0x52c] sm:$0xf] %vm8565_vm3, %v10984_v22  ;;  %v5571_v36 = vadd.f32 %v13515_v54, %v5052_v23  ;;  %v12263_v17 = vld [vmem:[%s12535_s20 + $0x300] sm:$0xff]   ;;  %v3243_v23 = vpop.f32.mrb[83].mxu0 }
 0x1a2   : > { %v5827_v37 = vadd.f32 %v13515_v54, %v5308_v24  ;;  %v5053_v3 = vmul.f32 %v13494_v39, %v11518_v32  ;;  %v5309_v38 = vmul.f32 %v13494_v39, %v11774_v33  ;;  %8639 = vst.msk [vmem:[%s12797_s29 + $0x124] sm:$0xf] %vm8565_vm3, %v10726_v59  ;;  %8895 = vst.msk [vmem:[%s12797_s29 + $0x524] sm:$0xf] %vm8565_vm3, %v10982_v29  ;;  %v12264_v18 = vld [vmem:[%s12535_s20 + $0x700] sm:$0xff]   ;;  %v4267_v24 = vpop.f32.mrb[83].mxu1  ;;  %11631 = vmatprep.mubr.msk.bf16.mxu0 %vm2110_vm2, %v12263_v17 }
 0x1a3   : > { %v5569_v42 = vadd.f32 %v13515_v54, %v5050_v30  ;;  %v5825_v43 = vadd.f32 %v13515_v54, %v5306_v31  ;;  %v5051_v44 = vmul.f32 %v13494_v39, %v3227_v40  ;;  %v5307_v45 = vmul.f32 %v13494_v39, %v4251_v41  ;;  %11887 = vmatprep.mubr.msk.bf16.mxu1 %vm2110_vm2, %v12264_v18 }
 0x1a4   : > { %v6083_v46 = vmax.f32 %v5571_v36, 0.0  ;;  %v6339_v47 = vmax.f32 %v5827_v37, 0.0  ;;  %v5572_v48 = vadd.f32 %v13515_v54, %v5053_v3  ;;  %v5828_v49 = vadd.f32 %v13515_v54, %v5309_v38 }
 0x1a5   : > { %v6081_v50 = vmax.f32 %v5569_v42, 0.0  ;;  %v6337_v51 = vmax.f32 %v5825_v43, 0.0  ;;  %v5570_v52 = vadd.f32 %v13515_v54, %v5051_v44  ;;  %v5826_v53 = vadd.f32 %v13515_v54, %v5307_v45  ;;  %v11525_v44 = vpop.f32.mrb[84].mxu0  ;;  %v11781_v45 = vpop.f32.mrb[84].mxu1 }
 0x1a6   : > { %v10731_v57 = vpack.c.bf16 %v6083_v46, %v6083_v46  ;;  %v10987_v58 = vpack.c.bf16 %v6339_v47, %v6339_v47  ;;  %v6084_v60 = vmax.f32 %v5572_v48, 0.0  ;;  %v6340_v61 = vmax.f32 %v5828_v49, 0.0 }
 0x1a7   : > { %v10729_v55 = vpack.c.bf16 %v6081_v50, %v6081_v50  ;;  %v10985_v62 = vpack.c.bf16 %v6337_v51, %v6337_v51  ;;  %v6082_v63 = vmax.f32 %v5570_v52, 0.0  ;;  %v6338_v0 = vmax.f32 %v5826_v53, 0.0  ;;  %v3256_v50 = vpop.f32.mrb[85].mxu0  ;;  %v4280_v51 = vpop.f32.mrb[85].mxu1  ;;  %v12265_v52 = vld [vmem:[%s12535_s20 + $0x308] sm:$0xff]  }
 0x1a8   : > { %8644 = vst.msk [vmem:[%s12797_s29 + $0x138] sm:$0xf] %vm8565_vm3, %v10731_v57  ;;  %8900 = vst.msk [vmem:[%s12797_s29 + $0x538] sm:$0xf] %vm8565_vm3, %v10987_v58  ;;  %v10732_v4 = vpack.c.bf16 %v6084_v60, %v6084_v60  ;;  %v10988_v5 = vpack.c.bf16 %v6340_v61, %v6340_v61  ;;  %v5056_v56 = vmul.f32 %v13494_v39, %v11521_v1  ;;  %v12266_v53 = vld [vmem:[%s12535_s20 + $0x708] sm:$0xff]   ;;  %11632 = vmatmul.mubr.msk.bf16.gmra.mrb[192].mxu0 %vm2110_vm2, %v12265_v52 }
 0x1a9   : > { %v5312_v6 = vmul.f32 %v13494_v39, %v11777_v2  ;;  %8642 = vst.msk [vmem:[%s12797_s29 + $0x130] sm:$0xf] %vm8565_vm3, %v10729_v55  ;;  %8898 = vst.msk [vmem:[%s12797_s29 + $0x530] sm:$0xf] %vm8565_vm3, %v10985_v62  ;;  %v10730_v11 = vpack.c.bf16 %v6082_v63, %v6082_v63  ;;  %v10986_v12 = vpack.c.bf16 %v6338_v0, %v6338_v0  ;;  %v11526_v55 = vpop.f32.mrb[86].mxu0  ;;  %v11782_v62 = vpop.f32.mrb[86].mxu1  ;;  %11888 = vmatmul.mubr.msk.bf16.gmra.mrb[192].mxu1 %vm2110_vm2, %v12266_v53 }
 0x1aa   : > { %v5054_v13 = vmul.f32 %v13494_v39, %v3240_v7  ;;  %v5310_v14 = vmul.f32 %v13494_v39, %v4264_v8  ;;  %8645 = vst.msk [vmem:[%s12797_s29 + $0x13c] sm:$0xf] %vm8565_vm3, %v10732_v4  ;;  %8901 = vst.msk [vmem:[%s12797_s29 + $0x53c] sm:$0xf] %vm8565_vm3, %v10988_v5  ;;  %v5575_v19 = vadd.f32 %v13515_v54, %v5056_v56  ;;  %v12267_v63 = vld [vmem:[%s12535_s20 + $0x310] sm:$0xff]   ;;  %v3259_v56 = vpop.f32.mrb[87].mxu0 }
 0x1ab   : > { %v5831_v20 = vadd.f32 %v13515_v54, %v5312_v6  ;;  %v5057_v21 = vmul.f32 %v13494_v39, %v11522_v15  ;;  %v5313_v22 = vmul.f32 %v13494_v39, %v11778_v16  ;;  %8643 = vst.msk [vmem:[%s12797_s29 + $0x134] sm:$0xf] %vm8565_vm3, %v10730_v11  ;;  %8899 = vst.msk [vmem:[%s12797_s29 + $0x534] sm:$0xf] %vm8565_vm3, %v10986_v12  ;;  %v12268_v0 = vld [vmem:[%s12535_s20 + $0x710] sm:$0xff]   ;;  %v4283_v6 = vpop.f32.mrb[87].mxu1  ;;  %11635 = vmatprep.mubr.msk.bf16.mxu0 %vm2110_vm2, %v12267_v63 }
 0x1ac   : > { %v5573_v25 = vadd.f32 %v13515_v54, %v5054_v13  ;;  %v5829_v26 = vadd.f32 %v13515_v54, %v5310_v14  ;;  %v5055_v27 = vmul.f32 %v13494_v39, %v3243_v23  ;;  %v5311_v28 = vmul.f32 %v13494_v39, %v4267_v24  ;;  %11891 = vmatprep.mubr.msk.bf16.mxu1 %vm2110_vm2, %v12268_v0 }
 0x1ad   : > { %v6087_v59 = vmax.f32 %v5575_v19, 0.0  ;;  %v6343_v29 = vmax.f32 %v5831_v20, 0.0  ;;  %v5576_v30 = vadd.f32 %v13515_v54, %v5057_v21  ;;  %v5832_v31 = vadd.f32 %v13515_v54, %v5313_v22 }
 0x1ae   : > { %v6085_v32 = vmax.f32 %v5573_v25, 0.0  ;;  %v6341_v33 = vmax.f32 %v5829_v26, 0.0  ;;  %v5574_v34 = vadd.f32 %v13515_v54, %v5055_v27  ;;  %v5830_v35 = vadd.f32 %v13515_v54, %v5311_v28  ;;  %v11529_v27 = vpop.f32.mrb[88].mxu0  ;;  %v11785_v28 = vpop.f32.mrb[88].mxu1 }
 0x1af   : > { %v10735_v36 = vpack.c.bf16 %v6087_v59, %v6087_v59  ;;  %v10991_v37 = vpack.c.bf16 %v6343_v29, %v6343_v29  ;;  %v6088_v3 = vmax.f32 %v5576_v30, 0.0  ;;  %v6344_v38 = vmax.f32 %v5832_v31, 0.0 }
 0x1b0   : > { %v10733_v40 = vpack.c.bf16 %v6085_v32, %v6085_v32  ;;  %v10989_v41 = vpack.c.bf16 %v6341_v33, %v6341_v33  ;;  %v6086_v42 = vmax.f32 %v5574_v34, 0.0  ;;  %v6342_v43 = vmax.f32 %v5830_v35, 0.0  ;;  %v3272_v32 = vpop.f32.mrb[89].mxu0  ;;  %v4296_v33 = vpop.f32.mrb[89].mxu1  ;;  %v12269_v34 = vld [vmem:[%s12535_s20 + $0x318] sm:$0xff]  }
 0x1b1   : > { %8648 = vst.msk [vmem:[%s12797_s29 + $0x148] sm:$0xf] %vm8565_vm3, %v10735_v36  ;;  %8904 = vst.msk [vmem:[%s12797_s29 + $0x548] sm:$0xf] %vm8565_vm3, %v10991_v37  ;;  %v10736_v46 = vpack.c.bf16 %v6088_v3, %v6088_v3  ;;  %v10992_v47 = vpack.c.bf16 %v6344_v38, %v6344_v38  ;;  %v5060_v48 = vmul.f32 %v13494_v39, %v11525_v44  ;;  %v12270_v35 = vld [vmem:[%s12535_s20 + $0x718] sm:$0xff]   ;;  %11636 = vmatmul.mubr.msk.bf16.gmra.mrb[196].mxu0 %vm2110_vm2, %v12269_v34 }
 0x1b2   : > { %v5316_v49 = vmul.f32 %v13494_v39, %v11781_v45  ;;  %8646 = vst.msk [vmem:[%s12797_s29 + $0x140] sm:$0xf] %vm8565_vm3, %v10733_v40  ;;  %8902 = vst.msk [vmem:[%s12797_s29 + $0x540] sm:$0xf] %vm8565_vm3, %v10989_v41  ;;  %v10734_v57 = vpack.c.bf16 %v6086_v42, %v6086_v42  ;;  %v10990_v58 = vpack.c.bf16 %v6342_v43, %v6342_v43  ;;  %v11530_v40 = vpop.f32.mrb[90].mxu0  ;;  %v11786_v41 = vpop.f32.mrb[90].mxu1  ;;  %11892 = vmatmul.mubr.msk.bf16.gmra.mrb[196].mxu1 %vm2110_vm2, %v12270_v35 }
 0x1b3   : > { %v5058_v60 = vmul.f32 %v13494_v39, %v3256_v50  ;;  %v5314_v61 = vmul.f32 %v13494_v39, %v4280_v51  ;;  %8649 = vst.msk [vmem:[%s12797_s29 + $0x14c] sm:$0xf] %vm8565_vm3, %v10736_v46  ;;  %8905 = vst.msk [vmem:[%s12797_s29 + $0x54c] sm:$0xf] %vm8565_vm3, %v10992_v47  ;;  %v5579_v1 = vadd.f32 %v13515_v54, %v5060_v48  ;;  %v12271_v42 = vld [vmem:[%s12535_s20 + $0x320] sm:$0xff]   ;;  %v3275_v48 = vpop.f32.mrb[91].mxu0 }
 0x1b4   : > { %v5835_v2 = vadd.f32 %v13515_v54, %v5316_v49  ;;  %v5061_v4 = vmul.f32 %v13494_v39, %v11526_v55  ;;  %v5317_v5 = vmul.f32 %v13494_v39, %v11782_v62  ;;  %8647 = vst.msk [vmem:[%s12797_s29 + $0x144] sm:$0xf] %vm8565_vm3, %v10734_v57  ;;  %8903 = vst.msk [vmem:[%s12797_s29 + $0x544] sm:$0xf] %vm8565_vm3, %v10990_v58  ;;  %v12272_v43 = vld [vmem:[%s12535_s20 + $0x720] sm:$0xff]   ;;  %v4299_v49 = vpop.f32.mrb[91].mxu1  ;;  %11639 = vmatprep.mubr.msk.bf16.mxu0 %vm2110_vm2, %v12271_v42 }
 0x1b5   : > { %v5577_v7 = vadd.f32 %v13515_v54, %v5058_v60  ;;  %v5833_v8 = vadd.f32 %v13515_v54, %v5314_v61  ;;  %v5059_v9 = vmul.f32 %v13494_v39, %v3259_v56  ;;  %v5315_v10 = vmul.f32 %v13494_v39, %v4283_v6  ;;  %11895 = vmatprep.mubr.msk.bf16.mxu1 %vm2110_vm2, %v12272_v43 }
 0x1b6   : > { %v6091_v11 = vmax.f32 %v5579_v1, 0.0  ;;  %v6347_v12 = vmax.f32 %v5835_v2, 0.0  ;;  %v5580_v13 = vadd.f32 %v13515_v54, %v5061_v4  ;;  %v5836_v14 = vadd.f32 %v13515_v54, %v5317_v5 }
 0x1b7   : > { %v6089_v15 = vmax.f32 %v5577_v7, 0.0  ;;  %v6345_v16 = vmax.f32 %v5833_v8, 0.0  ;;  %v5578_v17 = vadd.f32 %v13515_v54, %v5059_v9  ;;  %v5834_v18 = vadd.f32 %v13515_v54, %v5315_v10  ;;  %v11533_v9 = vpop.f32.mrb[92].mxu0  ;;  %v11789_v10 = vpop.f32.mrb[92].mxu1 }
 0x1b8   : > { %v10739_v19 = vpack.c.bf16 %v6091_v11, %v6091_v11  ;;  %v10995_v20 = vpack.c.bf16 %v6347_v12, %v6347_v12  ;;  %v6092_v21 = vmax.f32 %v5580_v13, 0.0  ;;  %v6348_v22 = vmax.f32 %v5836_v14, 0.0 }
 0x1b9   : > { %v10737_v23 = vpack.c.bf16 %v6089_v15, %v6089_v15  ;;  %v10993_v24 = vpack.c.bf16 %v6345_v16, %v6345_v16  ;;  %v6090_v25 = vmax.f32 %v5578_v17, 0.0  ;;  %v6346_v26 = vmax.f32 %v5834_v18, 0.0  ;;  %v3288_v15 = vpop.f32.mrb[93].mxu0  ;;  %v4312_v16 = vpop.f32.mrb[93].mxu1  ;;  %v12273_v17 = vld [vmem:[%s12535_s20 + $0x328] sm:$0xff]  }
 0x1ba   : > { %8652 = vst.msk [vmem:[%s12797_s29 + $0x158] sm:$0xf] %vm8565_vm3, %v10739_v19  ;;  %8908 = vst.msk [vmem:[%s12797_s29 + $0x558] sm:$0xf] %vm8565_vm3, %v10995_v20  ;;  %v10740_v59 = vpack.c.bf16 %v6092_v21, %v6092_v21  ;;  %v10996_v29 = vpack.c.bf16 %v6348_v22, %v6348_v22  ;;  %v5064_v30 = vmul.f32 %v13494_v39, %v11529_v27  ;;  %v12274_v18 = vld [vmem:[%s12535_s20 + $0x728] sm:$0xff]   ;;  %11640 = vmatmul.mubr.msk.bf16.gmra.mrb[200].mxu0 %vm2110_vm2, %v12273_v17 }
 0x1bb   : > { %v5320_v31 = vmul.f32 %v13494_v39, %v11785_v28  ;;  %8650 = vst.msk [vmem:[%s12797_s29 + $0x150] sm:$0xf] %vm8565_vm3, %v10737_v23  ;;  %8906 = vst.msk [vmem:[%s12797_s29 + $0x550] sm:$0xf] %vm8565_vm3, %v10993_v24  ;;  %v10738_v36 = vpack.c.bf16 %v6090_v25, %v6090_v25  ;;  %v10994_v37 = vpack.c.bf16 %v6346_v26, %v6346_v26  ;;  %v11534_v23 = vpop.f32.mrb[94].mxu0  ;;  %v11790_v24 = vpop.f32.mrb[94].mxu1  ;;  %11896 = vmatmul.mubr.msk.bf16.gmra.mrb[200].mxu1 %vm2110_vm2, %v12274_v18 }
 0x1bc   : > { %v5062_v3 = vmul.f32 %v13494_v39, %v3272_v32  ;;  %v5318_v38 = vmul.f32 %v13494_v39, %v4296_v33  ;;  %8653 = vst.msk [vmem:[%s12797_s29 + $0x15c] sm:$0xf] %vm8565_vm3, %v10740_v59  ;;  %8909 = vst.msk [vmem:[%s12797_s29 + $0x55c] sm:$0xf] %vm8565_vm3, %v10996_v29  ;;  %v5583_v44 = vadd.f32 %v13515_v54, %v5064_v30  ;;  %v12275_v25 = vld [vmem:[%s12535_s20 + $0x330] sm:$0xff]   ;;  %v3291_v30 = vpop.f32.mrb[95].mxu0 }
 0x1bd   : > { %v5839_v45 = vadd.f32 %v13515_v54, %v5320_v31  ;;  %v5065_v46 = vmul.f32 %v13494_v39, %v11530_v40  ;;  %v5321_v47 = vmul.f32 %v13494_v39, %v11786_v41  ;;  %8651 = vst.msk [vmem:[%s12797_s29 + $0x154] sm:$0xf] %vm8565_vm3, %v10738_v36  ;;  %8907 = vst.msk [vmem:[%s12797_s29 + $0x554] sm:$0xf] %vm8565_vm3, %v10994_v37  ;;  %v12276_v26 = vld [vmem:[%s12535_s20 + $0x730] sm:$0xff]   ;;  %v4315_v31 = vpop.f32.mrb[95].mxu1  ;;  %11643 = vmatprep.mubr.msk.bf16.mxu0 %vm2110_vm2, %v12275_v25 }
 0x1be   : > { %v5581_v50 = vadd.f32 %v13515_v54, %v5062_v3  ;;  %v5837_v51 = vadd.f32 %v13515_v54, %v5318_v38  ;;  %v5063_v52 = vmul.f32 %v13494_v39, %v3275_v48  ;;  %v5319_v53 = vmul.f32 %v13494_v39, %v4299_v49  ;;  %11899 = vmatprep.mubr.msk.bf16.mxu1 %vm2110_vm2, %v12276_v26 }
 0x1bf   : > { %v6095_v57 = vmax.f32 %v5583_v44, 0.0  ;;  %v6351_v58 = vmax.f32 %v5839_v45, 0.0  ;;  %v5584_v60 = vadd.f32 %v13515_v54, %v5065_v46  ;;  %v5840_v61 = vadd.f32 %v13515_v54, %v5321_v47 }
 0x1c0   : > { %v6093_v55 = vmax.f32 %v5581_v50, 0.0  ;;  %v6349_v62 = vmax.f32 %v5837_v51, 0.0  ;;  %v5582_v63 = vadd.f32 %v13515_v54, %v5063_v52  ;;  %v5838_v0 = vadd.f32 %v13515_v54, %v5319_v53  ;;  %v11537_v52 = vpop.f32.mrb[96].mxu0  ;;  %v11793_v53 = vpop.f32.mrb[96].mxu1 }
 0x1c1   : > { %v10743_v1 = vpack.c.bf16 %v6095_v57, %v6095_v57  ;;  %v10999_v2 = vpack.c.bf16 %v6351_v58, %v6351_v58  ;;  %v6096_v4 = vmax.f32 %v5584_v60, 0.0  ;;  %v6352_v5 = vmax.f32 %v5840_v61, 0.0 }
 0x1c2   : > { %v10741_v56 = vpack.c.bf16 %v6093_v55, %v6093_v55  ;;  %v10997_v6 = vpack.c.bf16 %v6349_v62, %v6349_v62  ;;  %v6094_v7 = vmax.f32 %v5582_v63, 0.0  ;;  %v6350_v8 = vmax.f32 %v5838_v0, 0.0  ;;  %v3304_v55 = vpop.f32.mrb[97].mxu0  ;;  %v4328_v62 = vpop.f32.mrb[97].mxu1  ;;  %v12277_v63 = vld [vmem:[%s12535_s20 + $0x338] sm:$0xff]  }
 0x1c3   : > { %8656 = vst.msk [vmem:[%s12797_s29 + $0x168] sm:$0xf] %vm8565_vm3, %v10743_v1  ;;  %8912 = vst.msk [vmem:[%s12797_s29 + $0x568] sm:$0xf] %vm8565_vm3, %v10999_v2  ;;  %v10744_v11 = vpack.c.bf16 %v6096_v4, %v6096_v4  ;;  %v11000_v12 = vpack.c.bf16 %v6352_v5, %v6352_v5  ;;  %v5068_v13 = vmul.f32 %v13494_v39, %v11533_v9  ;;  %v12278_v0 = vld [vmem:[%s12535_s20 + $0x738] sm:$0xff]   ;;  %11644 = vmatmul.mubr.msk.bf16.gmra.mrb[204].mxu0 %vm2110_vm2, %v12277_v63 }
 0x1c4   : > { %v5324_v14 = vmul.f32 %v13494_v39, %v11789_v10  ;;  %8654 = vst.msk [vmem:[%s12797_s29 + $0x160] sm:$0xf] %vm8565_vm3, %v10741_v56  ;;  %8910 = vst.msk [vmem:[%s12797_s29 + $0x560] sm:$0xf] %vm8565_vm3, %v10997_v6  ;;  %v10742_v19 = vpack.c.bf16 %v6094_v7, %v6094_v7  ;;  %v10998_v20 = vpack.c.bf16 %v6350_v8, %v6350_v8  ;;  %v11538_v56 = vpop.f32.mrb[98].mxu0  ;;  %v11794_v6 = vpop.f32.mrb[98].mxu1  ;;  %11900 = vmatmul.mubr.msk.bf16.gmra.mrb[204].mxu1 %vm2110_vm2, %v12278_v0 }
 0x1c5   : > { %v5066_v21 = vmul.f32 %v13494_v39, %v3288_v15  ;;  %v5322_v22 = vmul.f32 %v13494_v39, %v4312_v16  ;;  %8657 = vst.msk [vmem:[%s12797_s29 + $0x16c] sm:$0xf] %vm8565_vm3, %v10744_v11  ;;  %8913 = vst.msk [vmem:[%s12797_s29 + $0x56c] sm:$0xf] %vm8565_vm3, %v11000_v12  ;;  %v5587_v27 = vadd.f32 %v13515_v54, %v5068_v13  ;;  %v12279_v7 = vld [vmem:[%s12535_s20 + $0x340] sm:$0xff]   ;;  %v3307_v13 = vpop.f32.mrb[99].mxu0 }
 0x1c6   : > { %v5843_v28 = vadd.f32 %v13515_v54, %v5324_v14  ;;  %v5069_v59 = vmul.f32 %v13494_v39, %v11534_v23  ;;  %v5325_v29 = vmul.f32 %v13494_v39, %v11790_v24  ;;  %8655 = vst.msk [vmem:[%s12797_s29 + $0x164] sm:$0xf] %vm8565_vm3, %v10742_v19  ;;  %8911 = vst.msk [vmem:[%s12797_s29 + $0x564] sm:$0xf] %vm8565_vm3, %v10998_v20  ;;  %v12280_v8 = vld [vmem:[%s12535_s20 + $0x740] sm:$0xff]   ;;  %v4331_v14 = vpop.f32.mrb[99].mxu1  ;;  %11647 = vmatprep.mubr.msk.bf16.mxu0 %vm2110_vm2, %v12279_v7 }
 0x1c7   : > { %v5585_v32 = vadd.f32 %v13515_v54, %v5066_v21  ;;  %v5841_v33 = vadd.f32 %v13515_v54, %v5322_v22  ;;  %v5067_v34 = vmul.f32 %v13494_v39, %v3291_v30  ;;  %v5323_v35 = vmul.f32 %v13494_v39, %v4315_v31  ;;  %11903 = vmatprep.mubr.msk.bf16.mxu1 %vm2110_vm2, %v12280_v8 }
 0x1c8   : > { %v6099_v36 = vmax.f32 %v5587_v27, 0.0  ;;  %v6355_v37 = vmax.f32 %v5843_v28, 0.0  ;;  %v5588_v3 = vadd.f32 %v13515_v54, %v5069_v59  ;;  %v5844_v38 = vadd.f32 %v13515_v54, %v5325_v29 }
 0x1c9   : > { %v6097_v40 = vmax.f32 %v5585_v32, 0.0  ;;  %v6353_v41 = vmax.f32 %v5841_v33, 0.0  ;;  %v5586_v42 = vadd.f32 %v13515_v54, %v5067_v34  ;;  %v5842_v43 = vadd.f32 %v13515_v54, %v5323_v35  ;;  %v11541_v34 = vpop.f32.mrb[100].mxu0  ;;  %v11797_v35 = vpop.f32.mrb[100].mxu1 }
 0x1ca   : > { %v10747_v44 = vpack.c.bf16 %v6099_v36, %v6099_v36  ;;  %v11003_v45 = vpack.c.bf16 %v6355_v37, %v6355_v37  ;;  %v6100_v46 = vmax.f32 %v5588_v3, 0.0  ;;  %v6356_v47 = vmax.f32 %v5844_v38, 0.0 }
 0x1cb   : > { %v10745_v48 = vpack.c.bf16 %v6097_v40, %v6097_v40  ;;  %v11001_v49 = vpack.c.bf16 %v6353_v41, %v6353_v41  ;;  %v6098_v50 = vmax.f32 %v5586_v42, 0.0  ;;  %v6354_v51 = vmax.f32 %v5842_v43, 0.0  ;;  %v3320_v40 = vpop.f32.mrb[101].mxu0  ;;  %v4344_v41 = vpop.f32.mrb[101].mxu1  ;;  %v12281_v42 = vld [vmem:[%s12535_s20 + $0x348] sm:$0xff]  }
 0x1cc   : > { %8660 = vst.msk [vmem:[%s12797_s29 + $0x178] sm:$0xf] %vm8565_vm3, %v10747_v44  ;;  %8916 = vst.msk [vmem:[%s12797_s29 + $0x578] sm:$0xf] %vm8565_vm3, %v11003_v45  ;;  %v10748_v57 = vpack.c.bf16 %v6100_v46, %v6100_v46  ;;  %v11004_v58 = vpack.c.bf16 %v6356_v47, %v6356_v47  ;;  %v5072_v60 = vmul.f32 %v13494_v39, %v11537_v52  ;;  %v12282_v43 = vld [vmem:[%s12535_s20 + $0x748] sm:$0xff]   ;;  %11648 = vmatmul.mubr.msk.bf16.gmra.mrb[208].mxu0 %vm2110_vm2, %v12281_v42 }
 0x1cd   : > { %v5328_v61 = vmul.f32 %v13494_v39, %v11793_v53  ;;  %8658 = vst.msk [vmem:[%s12797_s29 + $0x170] sm:$0xf] %vm8565_vm3, %v10745_v48  ;;  %8914 = vst.msk [vmem:[%s12797_s29 + $0x570] sm:$0xf] %vm8565_vm3, %v11001_v49  ;;  %v10746_v1 = vpack.c.bf16 %v6098_v50, %v6098_v50  ;;  %v11002_v2 = vpack.c.bf16 %v6354_v51, %v6354_v51  ;;  %v11542_v48 = vpop.f32.mrb[102].mxu0  ;;  %v11798_v49 = vpop.f32.mrb[102].mxu1  ;;  %11904 = vmatmul.mubr.msk.bf16.gmra.mrb[208].mxu1 %vm2110_vm2, %v12282_v43 }
 0x1ce   : > { %v5070_v4 = vmul.f32 %v13494_v39, %v3304_v55  ;;  %v5326_v5 = vmul.f32 %v13494_v39, %v4328_v62  ;;  %8661 = vst.msk [vmem:[%s12797_s29 + $0x17c] sm:$0xf] %vm8565_vm3, %v10748_v57  ;;  %8917 = vst.msk [vmem:[%s12797_s29 + $0x57c] sm:$0xf] %vm8565_vm3, %v11004_v58  ;;  %v5591_v9 = vadd.f32 %v13515_v54, %v5072_v60  ;;  %v12283_v50 = vld [vmem:[%s12535_s20 + $0x350] sm:$0xff]   ;;  %v3323_v60 = vpop.f32.mrb[103].mxu0 }
 0x1cf   : > { %v5847_v10 = vadd.f32 %v13515_v54, %v5328_v61  ;;  %v5073_v11 = vmul.f32 %v13494_v39, %v11538_v56  ;;  %v5329_v12 = vmul.f32 %v13494_v39, %v11794_v6  ;;  %8659 = vst.msk [vmem:[%s12797_s29 + $0x174] sm:$0xf] %vm8565_vm3, %v10746_v1  ;;  %8915 = vst.msk [vmem:[%s12797_s29 + $0x574] sm:$0xf] %vm8565_vm3, %v11002_v2  ;;  %v12284_v51 = vld [vmem:[%s12535_s20 + $0x750] sm:$0xff]   ;;  %v4347_v61 = vpop.f32.mrb[103].mxu1  ;;  %11651 = vmatprep.mubr.msk.bf16.mxu0 %vm2110_vm2, %v12283_v50 }
 0x1d0   : > { %v5589_v15 = vadd.f32 %v13515_v54, %v5070_v4  ;;  %v5845_v16 = vadd.f32 %v13515_v54, %v5326_v5  ;;  %v5071_v17 = vmul.f32 %v13494_v39, %v3307_v13  ;;  %v5327_v18 = vmul.f32 %v13494_v39, %v4331_v14  ;;  %11907 = vmatprep.mubr.msk.bf16.mxu1 %vm2110_vm2, %v12284_v51 }
 0x1d1   : > { %v6103_v19 = vmax.f32 %v5591_v9, 0.0  ;;  %v6359_v20 = vmax.f32 %v5847_v10, 0.0  ;;  %v5592_v21 = vadd.f32 %v13515_v54, %v5073_v11  ;;  %v5848_v22 = vadd.f32 %v13515_v54, %v5329_v12 }
 0x1d2   : > { %v6101_v23 = vmax.f32 %v5589_v15, 0.0  ;;  %v6357_v24 = vmax.f32 %v5845_v16, 0.0  ;;  %v5590_v25 = vadd.f32 %v13515_v54, %v5071_v17  ;;  %v5846_v26 = vadd.f32 %v13515_v54, %v5327_v18  ;;  %v11545_v17 = vpop.f32.mrb[104].mxu0  ;;  %v11801_v18 = vpop.f32.mrb[104].mxu1 }
 0x1d3   : > { %v10751_v27 = vpack.c.bf16 %v6103_v19, %v6103_v19  ;;  %v11007_v28 = vpack.c.bf16 %v6359_v20, %v6359_v20  ;;  %v6104_v59 = vmax.f32 %v5592_v21, 0.0  ;;  %v6360_v29 = vmax.f32 %v5848_v22, 0.0 }
 0x1d4   : > { %v10749_v30 = vpack.c.bf16 %v6101_v23, %v6101_v23  ;;  %v11005_v31 = vpack.c.bf16 %v6357_v24, %v6357_v24  ;;  %v6102_v32 = vmax.f32 %v5590_v25, 0.0  ;;  %v6358_v33 = vmax.f32 %v5846_v26, 0.0  ;;  %v3336_v23 = vpop.f32.mrb[105].mxu0  ;;  %v4360_v24 = vpop.f32.mrb[105].mxu1  ;;  %v12285_v25 = vld [vmem:[%s12535_s20 + $0x358] sm:$0xff]  }
 0x1d5   : > { %8664 = vst.msk [vmem:[%s12797_s29 + $0x188] sm:$0xf] %vm8565_vm3, %v10751_v27  ;;  %8920 = vst.msk [vmem:[%s12797_s29 + $0x588] sm:$0xf] %vm8565_vm3, %v11007_v28  ;;  %v10752_v36 = vpack.c.bf16 %v6104_v59, %v6104_v59  ;;  %v11008_v37 = vpack.c.bf16 %v6360_v29, %v6360_v29  ;;  %v5076_v3 = vmul.f32 %v13494_v39, %v11541_v34  ;;  %v12286_v26 = vld [vmem:[%s12535_s20 + $0x758] sm:$0xff]   ;;  %11652 = vmatmul.mubr.msk.bf16.gmra.mrb[212].mxu0 %vm2110_vm2, %v12285_v25 }
 0x1d6   : > { %v5332_v38 = vmul.f32 %v13494_v39, %v11797_v35  ;;  %8662 = vst.msk [vmem:[%s12797_s29 + $0x180] sm:$0xf] %vm8565_vm3, %v10749_v30  ;;  %8918 = vst.msk [vmem:[%s12797_s29 + $0x580] sm:$0xf] %vm8565_vm3, %v11005_v31  ;;  %v10750_v44 = vpack.c.bf16 %v6102_v32, %v6102_v32  ;;  %v11006_v45 = vpack.c.bf16 %v6358_v33, %v6358_v33  ;;  %v11546_v30 = vpop.f32.mrb[106].mxu0  ;;  %v11802_v31 = vpop.f32.mrb[106].mxu1  ;;  %11908 = vmatmul.mubr.msk.bf16.gmra.mrb[212].mxu1 %vm2110_vm2, %v12286_v26 }
 0x1d7   : > { %v5074_v46 = vmul.f32 %v13494_v39, %v3320_v40  ;;  %v5330_v47 = vmul.f32 %v13494_v39, %v4344_v41  ;;  %8665 = vst.msk [vmem:[%s12797_s29 + $0x18c] sm:$0xf] %vm8565_vm3, %v10752_v36  ;;  %8921 = vst.msk [vmem:[%s12797_s29 + $0x58c] sm:$0xf] %vm8565_vm3, %v11008_v37  ;;  %v5595_v52 = vadd.f32 %v13515_v54, %v5076_v3  ;;  %v12287_v32 = vld [vmem:[%s12535_s20 + $0x360] sm:$0xff]   ;;  %v3339_v3 = vpop.f32.mrb[107].mxu0 }
 0x1d8   : > { %v5851_v53 = vadd.f32 %v13515_v54, %v5332_v38  ;;  %v5077_v57 = vmul.f32 %v13494_v39, %v11542_v48  ;;  %v5333_v58 = vmul.f32 %v13494_v39, %v11798_v49  ;;  %8663 = vst.msk [vmem:[%s12797_s29 + $0x184] sm:$0xf] %vm8565_vm3, %v10750_v44  ;;  %8919 = vst.msk [vmem:[%s12797_s29 + $0x584] sm:$0xf] %vm8565_vm3, %v11006_v45  ;;  %v12288_v33 = vld [vmem:[%s12535_s20 + $0x760] sm:$0xff]   ;;  %v4363_v38 = vpop.f32.mrb[107].mxu1  ;;  %11655 = vmatprep.mubr.msk.bf16.mxu0 %vm2110_vm2, %v12287_v32 }
 0x1d9   : > { %v5593_v55 = vadd.f32 %v13515_v54, %v5074_v46  ;;  %v5849_v62 = vadd.f32 %v13515_v54, %v5330_v47  ;;  %v5075_v63 = vmul.f32 %v13494_v39, %v3323_v60  ;;  %v5331_v0 = vmul.f32 %v13494_v39, %v4347_v61  ;;  %11911 = vmatprep.mubr.msk.bf16.mxu1 %vm2110_vm2, %v12288_v33 }
 0x1da   : > { %v6107_v1 = vmax.f32 %v5595_v52, 0.0  ;;  %v6363_v2 = vmax.f32 %v5851_v53, 0.0  ;;  %v5596_v4 = vadd.f32 %v13515_v54, %v5077_v57  ;;  %v5852_v5 = vadd.f32 %v13515_v54, %v5333_v58 }
 0x1db   : > { %v6105_v56 = vmax.f32 %v5593_v55, 0.0  ;;  %v6361_v6 = vmax.f32 %v5849_v62, 0.0  ;;  %v5594_v7 = vadd.f32 %v13515_v54, %v5075_v63  ;;  %v5850_v8 = vadd.f32 %v13515_v54, %v5331_v0  ;;  %v11549_v63 = vpop.f32.mrb[108].mxu0  ;;  %v11805_v0 = vpop.f32.mrb[108].mxu1 }
 0x1dc   : > { %v10755_v9 = vpack.c.bf16 %v6107_v1, %v6107_v1  ;;  %v11011_v10 = vpack.c.bf16 %v6363_v2, %v6363_v2  ;;  %v6108_v11 = vmax.f32 %v5596_v4, 0.0  ;;  %v6364_v12 = vmax.f32 %v5852_v5, 0.0 }
 0x1dd   : > { %v10753_v13 = vpack.c.bf16 %v6105_v56, %v6105_v56  ;;  %v11009_v14 = vpack.c.bf16 %v6361_v6, %v6361_v6  ;;  %v6106_v15 = vmax.f32 %v5594_v7, 0.0  ;;  %v6362_v16 = vmax.f32 %v5850_v8, 0.0  ;;  %v3352_v56 = vpop.f32.mrb[109].mxu0  ;;  %v4376_v6 = vpop.f32.mrb[109].mxu1  ;;  %v12289_v7 = vld [vmem:[%s12535_s20 + $0x368] sm:$0xff]  }
 0x1de   : > { %8668 = vst.msk [vmem:[%s12797_s29 + $0x198] sm:$0xf] %vm8565_vm3, %v10755_v9  ;;  %8924 = vst.msk [vmem:[%s12797_s29 + $0x598] sm:$0xf] %vm8565_vm3, %v11011_v10  ;;  %v10756_v19 = vpack.c.bf16 %v6108_v11, %v6108_v11  ;;  %v11012_v20 = vpack.c.bf16 %v6364_v12, %v6364_v12  ;;  %v5080_v21 = vmul.f32 %v13494_v39, %v11545_v17  ;;  %v12290_v8 = vld [vmem:[%s12535_s20 + $0x768] sm:$0xff]   ;;  %11656 = vmatmul.mubr.msk.bf16.gmra.mrb[216].mxu0 %vm2110_vm2, %v12289_v7 }
 0x1df   : > { %v5336_v22 = vmul.f32 %v13494_v39, %v11801_v18  ;;  %8666 = vst.msk [vmem:[%s12797_s29 + $0x190] sm:$0xf] %vm8565_vm3, %v10753_v13  ;;  %8922 = vst.msk [vmem:[%s12797_s29 + $0x590] sm:$0xf] %vm8565_vm3, %v11009_v14  ;;  %v10754_v27 = vpack.c.bf16 %v6106_v15, %v6106_v15  ;;  %v11010_v28 = vpack.c.bf16 %v6362_v16, %v6362_v16  ;;  %v13872_v11 = vld [vmem:[%s15379_s2] ss:$0 sm:$0xff]  ;;  %11912 = vmatmul.mubr.msk.bf16.gmra.mrb[216].mxu1 %vm2110_vm2, %v12290_v8 }
 0x1e0   : > { %v5078_v59 = vmul.f32 %v13494_v39, %v3336_v23  ;;  %v5334_v29 = vmul.f32 %v13494_v39, %v4360_v24  ;;  %8669 = vst.msk [vmem:[%s12797_s29 + $0x19c] sm:$0xf] %vm8565_vm3, %v10756_v19  ;;  %8925 = vst.msk [vmem:[%s12797_s29 + $0x59c] sm:$0xf] %vm8565_vm3, %v11012_v20  ;;  %v5599_v34 = vadd.f32 %v13515_v54, %v5080_v21  ;;  %v11550_v13 = vpop.f32.mrb[110].mxu0  ;;  %v11806_v14 = vpop.f32.mrb[110].mxu1 }
 0x1e1   : > { %v5855_v35 = vadd.f32 %v13515_v54, %v5336_v22  ;;  %v5081_v36 = vmul.f32 %v13494_v39, %v11546_v30  ;;  %v5337_v37 = vmul.f32 %v13494_v39, %v11802_v31  ;;  %8667 = vst.msk [vmem:[%s12797_s29 + $0x194] sm:$0xf] %vm8565_vm3, %v10754_v27  ;;  %8923 = vst.msk [vmem:[%s12797_s29 + $0x594] sm:$0xf] %vm8565_vm3, %v11010_v28  ;;  %v12291_v15 = vld [vmem:[%s12535_s20 + $0x370] sm:$0xff]   ;;  %v3355_v21 = vpop.f32.mrb[111].mxu0 }
 0x1e2   : > { %v5597_v40 = vadd.f32 %v13515_v54, %v5078_v59  ;;  %v5853_v41 = vadd.f32 %v13515_v54, %v5334_v29  ;;  %v5079_v42 = vmul.f32 %v13494_v39, %v3339_v3  ;;  %v5335_v43 = vmul.f32 %v13494_v39, %v4363_v38  ;;  %v12292_v16 = vld [vmem:[%s12535_s20 + $0x770] sm:$0xff]   ;;  %v4379_v22 = vpop.f32.mrb[111].mxu1  ;;  %v13893_v23 = vld [vmem:[%s15380_s3] ss:$0 sm:$0xff]  ;;  %11659 = vmatprep.mubr.msk.bf16.mxu0 %vm2110_vm2, %v12291_v15 }
 0x1e3   : > { %v6111_v44 = vmax.f32 %v5599_v34, 0.0  ;;  %v6367_v45 = vmax.f32 %v5855_v35, 0.0  ;;  %v5600_v46 = vadd.f32 %v13515_v54, %v5081_v36  ;;  %v5856_v47 = vadd.f32 %v13515_v54, %v5337_v37  ;;  %11915 = vmatprep.mubr.msk.bf16.mxu1 %vm2110_vm2, %v12292_v16 }
 0x1e4   : > { %v6109_v48 = vmax.f32 %v5597_v40, 0.0  ;;  %v6365_v49 = vmax.f32 %v5853_v41, 0.0  ;;  %v5598_v50 = vadd.f32 %v13515_v54, %v5079_v42  ;;  %v5854_v51 = vadd.f32 %v13515_v54, %v5335_v43  ;;  %v11553_v42 = vpop.f32.mrb[112].mxu0  ;;  %v11809_v43 = vpop.f32.mrb[112].mxu1 }
 0x1e5   : > { %v10759_v52 = vpack.c.bf16 %v6111_v44, %v6111_v44  ;;  %v11015_v53 = vpack.c.bf16 %v6367_v45, %v6367_v45  ;;  %v6112_v57 = vmax.f32 %v5600_v46, 0.0  ;;  %v6368_v58 = vmax.f32 %v5856_v47, 0.0 }
 0x1e6   : > { %v10757_v60 = vpack.c.bf16 %v6109_v48, %v6109_v48  ;;  %v11013_v61 = vpack.c.bf16 %v6365_v49, %v6365_v49  ;;  %v6110_v55 = vmax.f32 %v5598_v50, 0.0  ;;  %v6366_v62 = vmax.f32 %v5854_v51, 0.0  ;;  %v3368_v48 = vpop.f32.mrb[113].mxu0  ;;  %v4392_v49 = vpop.f32.mrb[113].mxu1  ;;  %v12293_v50 = vld [vmem:[%s12535_s20 + $0x378] sm:$0xff]  }
 0x1e7   : > { %8672 = vst.msk [vmem:[%s12797_s29 + $0x1a8] sm:$0xf] %vm8565_vm3, %v10759_v52  ;;  %8928 = vst.msk [vmem:[%s12797_s29 + $0x5a8] sm:$0xf] %vm8565_vm3, %v11015_v53  ;;  %v10760_v1 = vpack.c.bf16 %v6112_v57, %v6112_v57  ;;  %v11016_v2 = vpack.c.bf16 %v6368_v58, %v6368_v58  ;;  %v5084_v4 = vmul.f32 %v13494_v39, %v11549_v63  ;;  %v12294_v51 = vld [vmem:[%s12535_s20 + $0x778] sm:$0xff]   ;;  %11660 = vmatmul.mubr.msk.bf16.gmra.mrb[220].mxu0 %vm2110_vm2, %v12293_v50 }
 0x1e8   : > { %v5340_v5 = vmul.f32 %v13494_v39, %v11805_v0  ;;  %8670 = vst.msk [vmem:[%s12797_s29 + $0x1a0] sm:$0xf] %vm8565_vm3, %v10757_v60  ;;  %8926 = vst.msk [vmem:[%s12797_s29 + $0x5a0] sm:$0xf] %vm8565_vm3, %v11013_v61  ;;  %v10758_v9 = vpack.c.bf16 %v6110_v55, %v6110_v55  ;;  %v11014_v10 = vpack.c.bf16 %v6366_v62, %v6366_v62  ;;  %v11554_v60 = vpop.f32.mrb[114].mxu0  ;;  %v11810_v61 = vpop.f32.mrb[114].mxu1  ;;  %11916 = vmatmul.mubr.msk.bf16.gmra.mrb[220].mxu1 %vm2110_vm2, %v12294_v51 }
 0x1e9   : > { %v5082_v39 = vmul.f32 %v13872_v11, %v3352_v56  ;;  %v5338_v12 = vmul.f32 %v13872_v11, %v4376_v6  ;;  %8673 = vst.msk [vmem:[%s12797_s29 + $0x1ac] sm:$0xf] %vm8565_vm3, %v10760_v1  ;;  %8929 = vst.msk [vmem:[%s12797_s29 + $0x5ac] sm:$0xf] %vm8565_vm3, %v11016_v2  ;;  %v5603_v17 = vadd.f32 %v13515_v54, %v5084_v4  ;;  %v12295_v55 = vld [vmem:[%s12535_s20 + $0x380] sm:$0xff]   ;;  %v3371_v4 = vpop.f32.mrb[115].mxu0 }
 0x1ea   : > { %v5859_v18 = vadd.f32 %v13515_v54, %v5340_v5  ;;  %v5085_v19 = vmul.f32 %v13872_v11, %v11550_v13  ;;  %v5341_v20 = vmul.f32 %v13872_v11, %v11806_v14  ;;  %8671 = vst.msk [vmem:[%s12797_s29 + $0x1a4] sm:$0xf] %vm8565_vm3, %v10758_v9  ;;  %8927 = vst.msk [vmem:[%s12797_s29 + $0x5a4] sm:$0xf] %vm8565_vm3, %v11014_v10  ;;  %v12296_v62 = vld [vmem:[%s12535_s20 + $0x780] sm:$0xff]   ;;  %v4395_v5 = vpop.f32.mrb[115].mxu1  ;;  %11663 = vmatprep.mubr.msk.bf16.mxu0 %vm2110_vm2, %v12295_v55 }
 0x1eb   : > { %v5601_v24 = vadd.f32 %v13893_v23, %v5082_v39  ;;  %v5857_v25 = vadd.f32 %v13893_v23, %v5338_v12  ;;  %v5083_v54 = vmul.f32 %v13872_v11, %v3355_v21  ;;  %v5339_v26 = vmul.f32 %v13872_v11, %v4379_v22  ;;  %11919 = vmatprep.mubr.msk.bf16.mxu1 %vm2110_vm2, %v12296_v62 }
 0x1ec   : > { %v6115_v27 = vmax.f32 %v5603_v17, 0.0  ;;  %v6371_v28 = vmax.f32 %v5859_v18, 0.0  ;;  %v5604_v59 = vadd.f32 %v13893_v23, %v5085_v19  ;;  %v5860_v29 = vadd.f32 %v13893_v23, %v5341_v20 }
 0x1ed   : > { %v6113_v30 = vmax.f32 %v5601_v24, 0.0  ;;  %v6369_v31 = vmax.f32 %v5857_v25, 0.0  ;;  %v5602_v32 = vadd.f32 %v13893_v23, %v5083_v54  ;;  %v5858_v33 = vadd.f32 %v13893_v23, %v5339_v26  ;;  %v11557_v54 = vpop.f32.mrb[116].mxu0  ;;  %v11813_v26 = vpop.f32.mrb[116].mxu1 }
 0x1ee   : > { %v10763_v34 = vpack.c.bf16 %v6115_v27, %v6115_v27  ;;  %v11019_v35 = vpack.c.bf16 %v6371_v28, %v6371_v28  ;;  %v6116_v36 = vmax.f32 %v5604_v59, 0.0  ;;  %v6372_v37 = vmax.f32 %v5860_v29, 0.0 }
 0x1ef   : > { %v10761_v3 = vpack.c.bf16 %v6113_v30, %v6113_v30  ;;  %v11017_v38 = vpack.c.bf16 %v6369_v31, %v6369_v31  ;;  %v6114_v40 = vmax.f32 %v5602_v32, 0.0  ;;  %v6370_v41 = vmax.f32 %v5858_v33, 0.0  ;;  %v3384_v30 = vpop.f32.mrb[117].mxu0  ;;  %v4408_v31 = vpop.f32.mrb[117].mxu1  ;;  %v12297_v32 = vld [vmem:[%s12535_s20 + $0x388] sm:$0xff]  }
 0x1f0   : > { %8676 = vst.msk [vmem:[%s12797_s29 + $0x1b8] sm:$0xf] %vm8565_vm3, %v10763_v34  ;;  %8932 = vst.msk [vmem:[%s12797_s29 + $0x5b8] sm:$0xf] %vm8565_vm3, %v11019_v35  ;;  %v10764_v44 = vpack.c.bf16 %v6116_v36, %v6116_v36  ;;  %v11020_v45 = vpack.c.bf16 %v6372_v37, %v6372_v37  ;;  %v5088_v46 = vmul.f32 %v13872_v11, %v11553_v42  ;;  %v12298_v33 = vld [vmem:[%s12535_s20 + $0x788] sm:$0xff]   ;;  %11664 = vmatmul.mubr.msk.bf16.gmra.mrb[224].mxu0 %vm2110_vm2, %v12297_v32 }
 0x1f1   : > { %v5344_v47 = vmul.f32 %v13872_v11, %v11809_v43  ;;  %8674 = vst.msk [vmem:[%s12797_s29 + $0x1b0] sm:$0xf] %vm8565_vm3, %v10761_v3  ;;  %8930 = vst.msk [vmem:[%s12797_s29 + $0x5b0] sm:$0xf] %vm8565_vm3, %v11017_v38  ;;  %v10762_v52 = vpack.c.bf16 %v6114_v40, %v6114_v40  ;;  %v11018_v53 = vpack.c.bf16 %v6370_v41, %v6370_v41  ;;  %v11558_v3 = vpop.f32.mrb[118].mxu0  ;;  %v11814_v38 = vpop.f32.mrb[118].mxu1  ;;  %11920 = vmatmul.mubr.msk.bf16.gmra.mrb[224].mxu1 %vm2110_vm2, %v12298_v33 }
 0x1f2   : > { %v5086_v57 = vmul.f32 %v13872_v11, %v3368_v48  ;;  %v5342_v58 = vmul.f32 %v13872_v11, %v4392_v49  ;;  %8677 = vst.msk [vmem:[%s12797_s29 + $0x1bc] sm:$0xf] %vm8565_vm3, %v10764_v44  ;;  %8933 = vst.msk [vmem:[%s12797_s29 + $0x5bc] sm:$0xf] %vm8565_vm3, %v11020_v45  ;;  %v5607_v63 = vadd.f32 %v13893_v23, %v5088_v46  ;;  %v12299_v40 = vld [vmem:[%s12535_s20 + $0x390] sm:$0xff]   ;;  %v3387_v46 = vpop.f32.mrb[119].mxu0 }
 0x1f3   : > { %v5863_v0 = vadd.f32 %v13893_v23, %v5344_v47  ;;  %v5089_v1 = vmul.f32 %v13872_v11, %v11554_v60  ;;  %v5345_v2 = vmul.f32 %v13872_v11, %v11810_v61  ;;  %8675 = vst.msk [vmem:[%s12797_s29 + $0x1b4] sm:$0xf] %vm8565_vm3, %v10762_v52  ;;  %8931 = vst.msk [vmem:[%s12797_s29 + $0x5b4] sm:$0xf] %vm8565_vm3, %v11018_v53  ;;  %v12300_v41 = vld [vmem:[%s12535_s20 + $0x790] sm:$0xff]   ;;  %v4411_v47 = vpop.f32.mrb[119].mxu1  ;;  %11667 = vmatprep.mubr.msk.bf16.mxu0 %vm2110_vm2, %v12299_v40 }
 0x1f4   : > { %v5605_v56 = vadd.f32 %v13893_v23, %v5086_v57  ;;  %v5861_v6 = vadd.f32 %v13893_v23, %v5342_v58  ;;  %v5087_v7 = vmul.f32 %v13872_v11, %v3371_v4  ;;  %v5343_v8 = vmul.f32 %v13872_v11, %v4395_v5  ;;  %11923 = vmatprep.mubr.msk.bf16.mxu1 %vm2110_vm2, %v12300_v41 }
 0x1f5   : > { %v6119_v9 = vmax.f32 %v5607_v63, 0.0  ;;  %v6375_v10 = vmax.f32 %v5863_v0, 0.0  ;;  %v5608_v39 = vadd.f32 %v13893_v23, %v5089_v1  ;;  %v5864_v12 = vadd.f32 %v13893_v23, %v5345_v2 }
 0x1f6   : > { %v6117_v13 = vmax.f32 %v5605_v56, 0.0  ;;  %v6373_v14 = vmax.f32 %v5861_v6, 0.0  ;;  %v5606_v15 = vadd.f32 %v13893_v23, %v5087_v7  ;;  %v5862_v16 = vadd.f32 %v13893_v23, %v5343_v8  ;;  %v11561_v7 = vpop.f32.mrb[120].mxu0  ;;  %v11817_v8 = vpop.f32.mrb[120].mxu1 }
 0x1f7   : > { %v10767_v17 = vpack.c.bf16 %v6119_v9, %v6119_v9  ;;  %v11023_v18 = vpack.c.bf16 %v6375_v10, %v6375_v10  ;;  %v6120_v19 = vmax.f32 %v5608_v39, 0.0  ;;  %v6376_v20 = vmax.f32 %v5864_v12, 0.0 }
 0x1f8   : > { %v10765_v21 = vpack.c.bf16 %v6117_v13, %v6117_v13  ;;  %v11021_v22 = vpack.c.bf16 %v6373_v14, %v6373_v14  ;;  %v6118_v24 = vmax.f32 %v5606_v15, 0.0  ;;  %v6374_v25 = vmax.f32 %v5862_v16, 0.0  ;;  %v3400_v13 = vpop.f32.mrb[121].mxu0  ;;  %v4424_v14 = vpop.f32.mrb[121].mxu1  ;;  %v12301_v15 = vld [vmem:[%s12535_s20 + $0x398] sm:$0xff]  }
 0x1f9   : > { %8680 = vst.msk [vmem:[%s12797_s29 + $0x1c8] sm:$0xf] %vm8565_vm3, %v10767_v17  ;;  %8936 = vst.msk [vmem:[%s12797_s29 + $0x5c8] sm:$0xf] %vm8565_vm3, %v11023_v18  ;;  %v10768_v27 = vpack.c.bf16 %v6120_v19, %v6120_v19  ;;  %v11024_v28 = vpack.c.bf16 %v6376_v20, %v6376_v20  ;;  %v5092_v59 = vmul.f32 %v13872_v11, %v11557_v54  ;;  %v12302_v16 = vld [vmem:[%s12535_s20 + $0x798] sm:$0xff]   ;;  %11668 = vmatmul.mubr.msk.bf16.gmra.mrb[228].mxu0 %vm2110_vm2, %v12301_v15 }
 0x1fa   : > { %v5348_v29 = vmul.f32 %v13872_v11, %v11813_v26  ;;  %8678 = vst.msk [vmem:[%s12797_s29 + $0x1c0] sm:$0xf] %vm8565_vm3, %v10765_v21  ;;  %8934 = vst.msk [vmem:[%s12797_s29 + $0x5c0] sm:$0xf] %vm8565_vm3, %v11021_v22  ;;  %v10766_v34 = vpack.c.bf16 %v6118_v24, %v6118_v24  ;;  %v11022_v35 = vpack.c.bf16 %v6374_v25, %v6374_v25  ;;  %v11562_v21 = vpop.f32.mrb[122].mxu0  ;;  %v11818_v22 = vpop.f32.mrb[122].mxu1  ;;  %11924 = vmatmul.mubr.msk.bf16.gmra.mrb[228].mxu1 %vm2110_vm2, %v12302_v16 }
 0x1fb   : > { %v5090_v36 = vmul.f32 %v13872_v11, %v3384_v30  ;;  %v5346_v37 = vmul.f32 %v13872_v11, %v4408_v31  ;;  %8681 = vst.msk [vmem:[%s12797_s29 + $0x1cc] sm:$0xf] %vm8565_vm3, %v10768_v27  ;;  %8937 = vst.msk [vmem:[%s12797_s29 + $0x5cc] sm:$0xf] %vm8565_vm3, %v11024_v28  ;;  %v5611_v42 = vadd.f32 %v13893_v23, %v5092_v59  ;;  %v12303_v24 = vld [vmem:[%s12535_s20 + $0x3a0] sm:$0xff]   ;;  %v3403_v59 = vpop.f32.mrb[123].mxu0 }
 0x1fc   : > { %v5867_v43 = vadd.f32 %v13893_v23, %v5348_v29  ;;  %v5093_v44 = vmul.f32 %v13872_v11, %v11558_v3  ;;  %v5349_v45 = vmul.f32 %v13872_v11, %v11814_v38  ;;  %8679 = vst.msk [vmem:[%s12797_s29 + $0x1c4] sm:$0xf] %vm8565_vm3, %v10766_v34  ;;  %8935 = vst.msk [vmem:[%s12797_s29 + $0x5c4] sm:$0xf] %vm8565_vm3, %v11022_v35  ;;  %v12304_v25 = vld [vmem:[%s12535_s20 + $0x7a0] sm:$0xff]   ;;  %v4427_v29 = vpop.f32.mrb[123].mxu1  ;;  %11671 = vmatprep.mubr.msk.bf16.mxu0 %vm2110_vm2, %v12303_v24 }
 0x1fd   : > { %v5609_v48 = vadd.f32 %v13893_v23, %v5090_v36  ;;  %v5865_v49 = vadd.f32 %v13893_v23, %v5346_v37  ;;  %v5091_v50 = vmul.f32 %v13872_v11, %v3387_v46  ;;  %v5347_v51 = vmul.f32 %v13872_v11, %v4411_v47  ;;  %11927 = vmatprep.mubr.msk.bf16.mxu1 %vm2110_vm2, %v12304_v25 }
 0x1fe   : > { %v6123_v52 = vmax.f32 %v5611_v42, 0.0  ;;  %v6379_v53 = vmax.f32 %v5867_v43, 0.0  ;;  %v5612_v57 = vadd.f32 %v13893_v23, %v5093_v44  ;;  %v5868_v58 = vadd.f32 %v13893_v23, %v5349_v45 }
 0x1ff   : > { %v6121_v60 = vmax.f32 %v5609_v48, 0.0  ;;  %v6377_v61 = vmax.f32 %v5865_v49, 0.0  ;;  %v5610_v55 = vadd.f32 %v13893_v23, %v5091_v50  ;;  %v5866_v62 = vadd.f32 %v13893_v23, %v5347_v51  ;;  %v11565_v50 = vpop.f32.mrb[124].mxu0  ;;  %v11821_v51 = vpop.f32.mrb[124].mxu1 }
 0x200   : > { %v10771_v63 = vpack.c.bf16 %v6123_v52, %v6123_v52  ;;  %v11027_v0 = vpack.c.bf16 %v6379_v53, %v6379_v53  ;;  %v6124_v1 = vmax.f32 %v5612_v57, 0.0  ;;  %v6380_v2 = vmax.f32 %v5868_v58, 0.0 }
 0x201   : > { %v10769_v4 = vpack.c.bf16 %v6121_v60, %v6121_v60  ;;  %v11025_v5 = vpack.c.bf16 %v6377_v61, %v6377_v61  ;;  %v6122_v56 = vmax.f32 %v5610_v55, 0.0  ;;  %v6378_v6 = vmax.f32 %v5866_v62, 0.0  ;;  %v3416_v60 = vpop.f32.mrb[125].mxu0  ;;  %v4440_v61 = vpop.f32.mrb[125].mxu1  ;;  %v12305_v55 = vld [vmem:[%s12535_s20 + $0x3a8] sm:$0xff]  }
 0x202   : > { %8684 = vst.msk [vmem:[%s12797_s29 + $0x1d8] sm:$0xf] %vm8565_vm3, %v10771_v63  ;;  %8940 = vst.msk [vmem:[%s12797_s29 + $0x5d8] sm:$0xf] %vm8565_vm3, %v11027_v0  ;;  %v10772_v9 = vpack.c.bf16 %v6124_v1, %v6124_v1  ;;  %v11028_v10 = vpack.c.bf16 %v6380_v2, %v6380_v2  ;;  %v5096_v39 = vmul.f32 %v13872_v11, %v11561_v7  ;;  %v12306_v62 = vld [vmem:[%s12535_s20 + $0x7a8] sm:$0xff]   ;;  %11672 = vmatmul.mubr.msk.bf16.gmra.mrb[232].mxu0 %vm2110_vm2, %v12305_v55 }
 0x203   : > { %v5352_v12 = vmul.f32 %v13872_v11, %v11817_v8  ;;  %8682 = vst.msk [vmem:[%s12797_s29 + $0x1d0] sm:$0xf] %vm8565_vm3, %v10769_v4  ;;  %8938 = vst.msk [vmem:[%s12797_s29 + $0x5d0] sm:$0xf] %vm8565_vm3, %v11025_v5  ;;  %v10770_v17 = vpack.c.bf16 %v6122_v56, %v6122_v56  ;;  %v11026_v18 = vpack.c.bf16 %v6378_v6, %v6378_v6  ;;  %v11566_v4 = vpop.f32.mrb[126].mxu0  ;;  %v11822_v5 = vpop.f32.mrb[126].mxu1  ;;  %11928 = vmatmul.mubr.msk.bf16.gmra.mrb[232].mxu1 %vm2110_vm2, %v12306_v62 }
 0x204   : > { %v5094_v19 = vmul.f32 %v13872_v11, %v3400_v13  ;;  %v5350_v20 = vmul.f32 %v13872_v11, %v4424_v14  ;;  %8685 = vst.msk [vmem:[%s12797_s29 + $0x1dc] sm:$0xf] %vm8565_vm3, %v10772_v9  ;;  %8941 = vst.msk [vmem:[%s12797_s29 + $0x5dc] sm:$0xf] %vm8565_vm3, %v11028_v10  ;;  %v5615_v54 = vadd.f32 %v13893_v23, %v5096_v39  ;;  %v12307_v56 = vld [vmem:[%s12535_s20 + $0x3b0] sm:$0xff]   ;;  %v3419_v39 = vpop.f32.mrb[127].mxu0 }
 0x205   : > { %v5871_v26 = vadd.f32 %v13893_v23, %v5352_v12  ;;  %v5097_v27 = vmul.f32 %v13872_v11, %v11562_v21  ;;  %v5353_v28 = vmul.f32 %v13872_v11, %v11818_v22  ;;  %8683 = vst.msk [vmem:[%s12797_s29 + $0x1d4] sm:$0xf] %vm8565_vm3, %v10770_v17  ;;  %8939 = vst.msk [vmem:[%s12797_s29 + $0x5d4] sm:$0xf] %vm8565_vm3, %v11026_v18  ;;  %v12308_v6 = vld [vmem:[%s12535_s20 + $0x7b0] sm:$0xff]   ;;  %v4443_v12 = vpop.f32.mrb[127].mxu1  ;;  %11675 = vmatprep.mubr.msk.bf16.mxu0 %vm2110_vm2, %v12307_v56 }
 0x206   : > { %v5613_v30 = vadd.f32 %v13893_v23, %v5094_v19  ;;  %v5869_v31 = vadd.f32 %v13893_v23, %v5350_v20  ;;  %v5095_v32 = vmul.f32 %v13872_v11, %v3403_v59  ;;  %v5351_v33 = vmul.f32 %v13872_v11, %v4427_v29  ;;  %11931 = vmatprep.mubr.msk.bf16.mxu1 %vm2110_vm2, %v12308_v6 }
 0x207   : > { %v6127_v34 = vmax.f32 %v5615_v54, 0.0  ;;  %v6383_v35 = vmax.f32 %v5871_v26, 0.0  ;;  %v5616_v36 = vadd.f32 %v13893_v23, %v5097_v27  ;;  %v5872_v37 = vadd.f32 %v13893_v23, %v5353_v28 }
 0x208   : > { %v6125_v3 = vmax.f32 %v5613_v30, 0.0  ;;  %v6381_v38 = vmax.f32 %v5869_v31, 0.0  ;;  %v5614_v40 = vadd.f32 %v13893_v23, %v5095_v32  ;;  %v5870_v41 = vadd.f32 %v13893_v23, %v5351_v33  ;;  %v11569_v32 = vpop.f32.mrb[128].mxu0  ;;  %v11825_v33 = vpop.f32.mrb[128].mxu1 }
 0x209   : > { %v10775_v42 = vpack.c.bf16 %v6127_v34, %v6127_v34  ;;  %v11031_v43 = vpack.c.bf16 %v6383_v35, %v6383_v35  ;;  %v6128_v44 = vmax.f32 %v5616_v36, 0.0  ;;  %v6384_v45 = vmax.f32 %v5872_v37, 0.0 }
 0x20a   : > { %v10773_v46 = vpack.c.bf16 %v6125_v3, %v6125_v3  ;;  %v11029_v47 = vpack.c.bf16 %v6381_v38, %v6381_v38  ;;  %v6126_v48 = vmax.f32 %v5614_v40, 0.0  ;;  %v6382_v49 = vmax.f32 %v5870_v41, 0.0  ;;  %v3432_v3 = vpop.f32.mrb[129].mxu0  ;;  %v4456_v38 = vpop.f32.mrb[129].mxu1  ;;  %v12309_v40 = vld [vmem:[%s12535_s20 + $0x3b8] sm:$0xff]  }
 0x20b   : > { %8688 = vst.msk [vmem:[%s12797_s29 + $0x1e8] sm:$0xf] %vm8565_vm3, %v10775_v42  ;;  %8944 = vst.msk [vmem:[%s12797_s29 + $0x5e8] sm:$0xf] %vm8565_vm3, %v11031_v43  ;;  %v10776_v52 = vpack.c.bf16 %v6128_v44, %v6128_v44  ;;  %v11032_v53 = vpack.c.bf16 %v6384_v45, %v6384_v45  ;;  %v5100_v57 = vmul.f32 %v13872_v11, %v11565_v50  ;;  %v12310_v41 = vld [vmem:[%s12535_s20 + $0x7b8] sm:$0xff]   ;;  %11676 = vmatmul.mubr.msk.bf16.gmra.mrb[236].mxu0 %vm2110_vm2, %v12309_v40 }
 0x20c   : > { %v5356_v58 = vmul.f32 %v13872_v11, %v11821_v51  ;;  %8686 = vst.msk [vmem:[%s12797_s29 + $0x1e0] sm:$0xf] %vm8565_vm3, %v10773_v46  ;;  %8942 = vst.msk [vmem:[%s12797_s29 + $0x5e0] sm:$0xf] %vm8565_vm3, %v11029_v47  ;;  %v10774_v63 = vpack.c.bf16 %v6126_v48, %v6126_v48  ;;  %v11030_v0 = vpack.c.bf16 %v6382_v49, %v6382_v49  ;;  %v11570_v46 = vpop.f32.mrb[130].mxu0  ;;  %v11826_v47 = vpop.f32.mrb[130].mxu1  ;;  %11932 = vmatmul.mubr.msk.bf16.gmra.mrb[236].mxu1 %vm2110_vm2, %v12310_v41 }
 0x20d   : > { %v5098_v1 = vmul.f32 %v13872_v11, %v3416_v60  ;;  %v5354_v2 = vmul.f32 %v13872_v11, %v4440_v61  ;;  %8689 = vst.msk [vmem:[%s12797_s29 + $0x1ec] sm:$0xf] %vm8565_vm3, %v10776_v52  ;;  %8945 = vst.msk [vmem:[%s12797_s29 + $0x5ec] sm:$0xf] %vm8565_vm3, %v11032_v53  ;;  %v5619_v7 = vadd.f32 %v13893_v23, %v5100_v57  ;;  %v12311_v48 = vld [vmem:[%s12535_s20 + $0x3c0] sm:$0xff]   ;;  %v3435_v57 = vpop.f32.mrb[131].mxu0 }
 0x20e   : > { %v5875_v8 = vadd.f32 %v13893_v23, %v5356_v58  ;;  %v5101_v9 = vmul.f32 %v13872_v11, %v11566_v4  ;;  %v5357_v10 = vmul.f32 %v13872_v11, %v11822_v5  ;;  %8687 = vst.msk [vmem:[%s12797_s29 + $0x1e4] sm:$0xf] %vm8565_vm3, %v10774_v63  ;;  %8943 = vst.msk [vmem:[%s12797_s29 + $0x5e4] sm:$0xf] %vm8565_vm3, %v11030_v0  ;;  %v12312_v49 = vld [vmem:[%s12535_s20 + $0x7c0] sm:$0xff]   ;;  %v4459_v58 = vpop.f32.mrb[131].mxu1  ;;  %11679 = vmatprep.mubr.msk.bf16.mxu0 %vm2110_vm2, %v12311_v48 }
 0x20f   : > { %v5617_v13 = vadd.f32 %v13893_v23, %v5098_v1  ;;  %v5873_v14 = vadd.f32 %v13893_v23, %v5354_v2  ;;  %v5099_v15 = vmul.f32 %v13872_v11, %v3419_v39  ;;  %v5355_v16 = vmul.f32 %v13872_v11, %v4443_v12  ;;  %11935 = vmatprep.mubr.msk.bf16.mxu1 %vm2110_vm2, %v12312_v49 }
 0x210   : > { %v6131_v17 = vmax.f32 %v5619_v7, 0.0  ;;  %v6387_v18 = vmax.f32 %v5875_v8, 0.0  ;;  %v5620_v19 = vadd.f32 %v13893_v23, %v5101_v9  ;;  %v5876_v20 = vadd.f32 %v13893_v23, %v5357_v10 }
 0x211   : > { %v6129_v21 = vmax.f32 %v5617_v13, 0.0  ;;  %v6385_v22 = vmax.f32 %v5873_v14, 0.0  ;;  %v5618_v24 = vadd.f32 %v13893_v23, %v5099_v15  ;;  %v5874_v25 = vadd.f32 %v13893_v23, %v5355_v16  ;;  %v11573_v15 = vpop.f32.mrb[132].mxu0  ;;  %v11829_v16 = vpop.f32.mrb[132].mxu1 }
 0x212   : > { %v10779_v54 = vpack.c.bf16 %v6131_v17, %v6131_v17  ;;  %v11035_v26 = vpack.c.bf16 %v6387_v18, %v6387_v18  ;;  %v6132_v27 = vmax.f32 %v5620_v19, 0.0  ;;  %v6388_v28 = vmax.f32 %v5876_v20, 0.0 }
 0x213   : > { %v10777_v59 = vpack.c.bf16 %v6129_v21, %v6129_v21  ;;  %v11033_v29 = vpack.c.bf16 %v6385_v22, %v6385_v22  ;;  %v6130_v30 = vmax.f32 %v5618_v24, 0.0  ;;  %v6386_v31 = vmax.f32 %v5874_v25, 0.0  ;;  %v3448_v21 = vpop.f32.mrb[133].mxu0  ;;  %v4472_v22 = vpop.f32.mrb[133].mxu1  ;;  %v12313_v24 = vld [vmem:[%s12535_s20 + $0x3c8] sm:$0xff]  }
 0x214   : > { %8692 = vst.msk [vmem:[%s12797_s29 + $0x1f8] sm:$0xf] %vm8565_vm3, %v10779_v54  ;;  %8948 = vst.msk [vmem:[%s12797_s29 + $0x5f8] sm:$0xf] %vm8565_vm3, %v11035_v26  ;;  %v10780_v34 = vpack.c.bf16 %v6132_v27, %v6132_v27  ;;  %v11036_v35 = vpack.c.bf16 %v6388_v28, %v6388_v28  ;;  %v5104_v36 = vmul.f32 %v13872_v11, %v11569_v32  ;;  %v12314_v25 = vld [vmem:[%s12535_s20 + $0x7c8] sm:$0xff]   ;;  %11680 = vmatmul.mubr.msk.bf16.gmra.mrb[240].mxu0 %vm2110_vm2, %v12313_v24 }
 0x215   : > { %v5360_v37 = vmul.f32 %v13872_v11, %v11825_v33  ;;  %8690 = vst.msk [vmem:[%s12797_s29 + $0x1f0] sm:$0xf] %vm8565_vm3, %v10777_v59  ;;  %8946 = vst.msk [vmem:[%s12797_s29 + $0x5f0] sm:$0xf] %vm8565_vm3, %v11033_v29  ;;  %v10778_v42 = vpack.c.bf16 %v6130_v30, %v6130_v30  ;;  %v11034_v43 = vpack.c.bf16 %v6386_v31, %v6386_v31  ;;  %v11574_v59 = vpop.f32.mrb[134].mxu0  ;;  %v11830_v29 = vpop.f32.mrb[134].mxu1  ;;  %11936 = vmatmul.mubr.msk.bf16.gmra.mrb[240].mxu1 %vm2110_vm2, %v12314_v25 }
 0x216   : > { %v5102_v44 = vmul.f32 %v13872_v11, %v3432_v3  ;;  %v5358_v45 = vmul.f32 %v13872_v11, %v4456_v38  ;;  %8693 = vst.msk [vmem:[%s12797_s29 + $0x1fc] sm:$0xf] %vm8565_vm3, %v10780_v34  ;;  %8949 = vst.msk [vmem:[%s12797_s29 + $0x5fc] sm:$0xf] %vm8565_vm3, %v11036_v35  ;;  %v5623_v50 = vadd.f32 %v13893_v23, %v5104_v36  ;;  %v12315_v30 = vld [vmem:[%s12535_s20 + $0x3d0] sm:$0xff]   ;;  %v3451_v36 = vpop.f32.mrb[135].mxu0 }
 0x217   : > { %v5879_v51 = vadd.f32 %v13893_v23, %v5360_v37  ;;  %v5105_v52 = vmul.f32 %v13872_v11, %v11570_v46  ;;  %v5361_v53 = vmul.f32 %v13872_v11, %v11826_v47  ;;  %8691 = vst.msk [vmem:[%s12797_s29 + $0x1f4] sm:$0xf] %vm8565_vm3, %v10778_v42  ;;  %8947 = vst.msk [vmem:[%s12797_s29 + $0x5f4] sm:$0xf] %vm8565_vm3, %v11034_v43  ;;  %v12316_v31 = vld [vmem:[%s12535_s20 + $0x7d0] sm:$0xff]   ;;  %v4475_v37 = vpop.f32.mrb[135].mxu1  ;;  %11683 = vmatprep.mubr.msk.bf16.mxu0 %vm2110_vm2, %v12315_v30 }
 0x218   : > { %v5621_v60 = vadd.f32 %v13893_v23, %v5102_v44  ;;  %v5877_v61 = vadd.f32 %v13893_v23, %v5358_v45  ;;  %v5103_v55 = vmul.f32 %v13872_v11, %v3435_v57  ;;  %v5359_v62 = vmul.f32 %v13872_v11, %v4459_v58  ;;  %11939 = vmatprep.mubr.msk.bf16.mxu1 %vm2110_vm2, %v12316_v31 }
 0x219   : > { %v6135_v63 = vmax.f32 %v5623_v50, 0.0  ;;  %v6391_v0 = vmax.f32 %v5879_v51, 0.0  ;;  %v5624_v1 = vadd.f32 %v13893_v23, %v5105_v52  ;;  %v5880_v2 = vadd.f32 %v13893_v23, %v5361_v53 }
 0x21a   : > { %v6133_v4 = vmax.f32 %v5621_v60, 0.0  ;;  %v6389_v5 = vmax.f32 %v5877_v61, 0.0  ;;  %v5622_v56 = vadd.f32 %v13893_v23, %v5103_v55  ;;  %v5878_v6 = vadd.f32 %v13893_v23, %v5359_v62  ;;  %v11577_v55 = vpop.f32.mrb[136].mxu0  ;;  %v11833_v62 = vpop.f32.mrb[136].mxu1 }
 0x21b   : > { %v10783_v7 = vpack.c.bf16 %v6135_v63, %v6135_v63  ;;  %v11039_v8 = vpack.c.bf16 %v6391_v0, %v6391_v0  ;;  %v6136_v9 = vmax.f32 %v5624_v1, 0.0  ;;  %v6392_v10 = vmax.f32 %v5880_v2, 0.0 }
 0x21c   : > { %v10781_v39 = vpack.c.bf16 %v6133_v4, %v6133_v4  ;;  %v11037_v12 = vpack.c.bf16 %v6389_v5, %v6389_v5  ;;  %v6134_v13 = vmax.f32 %v5622_v56, 0.0  ;;  %v6390_v14 = vmax.f32 %v5878_v6, 0.0  ;;  %v3464_v4 = vpop.f32.mrb[137].mxu0  ;;  %v4488_v5 = vpop.f32.mrb[137].mxu1  ;;  %v12317_v56 = vld [vmem:[%s12535_s20 + $0x3d8] sm:$0xff]  }
 0x21d   : > { %8696 = vst.msk [vmem:[%s12797_s29 + $0x208] sm:$0xf] %vm8565_vm3, %v10783_v7  ;;  %8952 = vst.msk [vmem:[%s12797_s29 + $0x608] sm:$0xf] %vm8565_vm3, %v11039_v8  ;;  %v10784_v17 = vpack.c.bf16 %v6136_v9, %v6136_v9  ;;  %v11040_v18 = vpack.c.bf16 %v6392_v10, %v6392_v10  ;;  %v5108_v19 = vmul.f32 %v13872_v11, %v11573_v15  ;;  %v12318_v6 = vld [vmem:[%s12535_s20 + $0x7d8] sm:$0xff]   ;;  %11684 = vmatmul.mubr.msk.bf16.gmra.mrb[244].mxu0 %vm2110_vm2, %v12317_v56 }
 0x21e   : > { %v5364_v20 = vmul.f32 %v13872_v11, %v11829_v16  ;;  %8694 = vst.msk [vmem:[%s12797_s29 + $0x200] sm:$0xf] %vm8565_vm3, %v10781_v39  ;;  %8950 = vst.msk [vmem:[%s12797_s29 + $0x600] sm:$0xf] %vm8565_vm3, %v11037_v12  ;;  %v10782_v54 = vpack.c.bf16 %v6134_v13, %v6134_v13  ;;  %v11038_v26 = vpack.c.bf16 %v6390_v14, %v6390_v14  ;;  %v11578_v39 = vpop.f32.mrb[138].mxu0  ;;  %v11834_v12 = vpop.f32.mrb[138].mxu1  ;;  %11940 = vmatmul.mubr.msk.bf16.gmra.mrb[244].mxu1 %vm2110_vm2, %v12318_v6 }
 0x21f   : > { %v5106_v27 = vmul.f32 %v13872_v11, %v3448_v21  ;;  %v5362_v28 = vmul.f32 %v13872_v11, %v4472_v22  ;;  %8697 = vst.msk [vmem:[%s12797_s29 + $0x20c] sm:$0xf] %vm8565_vm3, %v10784_v17  ;;  %8953 = vst.msk [vmem:[%s12797_s29 + $0x60c] sm:$0xf] %vm8565_vm3, %v11040_v18  ;;  %v5627_v32 = vadd.f32 %v13893_v23, %v5108_v19  ;;  %v12319_v13 = vld [vmem:[%s12535_s20 + $0x3e0] sm:$0xff]   ;;  %v3467_v19 = vpop.f32.mrb[139].mxu0 }
 0x220   : > { %v5883_v33 = vadd.f32 %v13893_v23, %v5364_v20  ;;  %v5109_v34 = vmul.f32 %v13872_v11, %v11574_v59  ;;  %v5365_v35 = vmul.f32 %v13872_v11, %v11830_v29  ;;  %8695 = vst.msk [vmem:[%s12797_s29 + $0x204] sm:$0xf] %vm8565_vm3, %v10782_v54  ;;  %8951 = vst.msk [vmem:[%s12797_s29 + $0x604] sm:$0xf] %vm8565_vm3, %v11038_v26  ;;  %v12320_v14 = vld [vmem:[%s12535_s20 + $0x7e0] sm:$0xff]   ;;  %v4491_v20 = vpop.f32.mrb[139].mxu1  ;;  %11687 = vmatprep.mubr.msk.bf16.mxu0 %vm2110_vm2, %v12319_v13 }
 0x221   : > { %v5625_v3 = vadd.f32 %v13893_v23, %v5106_v27  ;;  %v5881_v38 = vadd.f32 %v13893_v23, %v5362_v28  ;;  %v5107_v40 = vmul.f32 %v13872_v11, %v3451_v36  ;;  %v5363_v41 = vmul.f32 %v13872_v11, %v4475_v37  ;;  %11943 = vmatprep.mubr.msk.bf16.mxu1 %vm2110_vm2, %v12320_v14 }
 0x222   : > { %v6139_v42 = vmax.f32 %v5627_v32, 0.0  ;;  %v6395_v43 = vmax.f32 %v5883_v33, 0.0  ;;  %v5628_v44 = vadd.f32 %v13893_v23, %v5109_v34  ;;  %v5884_v45 = vadd.f32 %v13893_v23, %v5365_v35 }
 0x223   : > { %v6137_v46 = vmax.f32 %v5625_v3, 0.0  ;;  %v6393_v47 = vmax.f32 %v5881_v38, 0.0  ;;  %v5626_v48 = vadd.f32 %v13893_v23, %v5107_v40  ;;  %v5882_v49 = vadd.f32 %v13893_v23, %v5363_v41  ;;  %v11581_v40 = vpop.f32.mrb[140].mxu0  ;;  %v11837_v41 = vpop.f32.mrb[140].mxu1 }
 0x224   : > { %v10787_v50 = vpack.c.bf16 %v6139_v42, %v6139_v42  ;;  %v11043_v51 = vpack.c.bf16 %v6395_v43, %v6395_v43  ;;  %v6140_v52 = vmax.f32 %v5628_v44, 0.0  ;;  %v6396_v53 = vmax.f32 %v5884_v45, 0.0 }
 0x225   : > { %v10785_v57 = vpack.c.bf16 %v6137_v46, %v6137_v46  ;;  %v11041_v58 = vpack.c.bf16 %v6393_v47, %v6393_v47  ;;  %v6138_v60 = vmax.f32 %v5626_v48, 0.0  ;;  %v6394_v61 = vmax.f32 %v5882_v49, 0.0  ;;  %v3480_v46 = vpop.f32.mrb[141].mxu0  ;;  %v4504_v47 = vpop.f32.mrb[141].mxu1  ;;  %v12321_v48 = vld [vmem:[%s12535_s20 + $0x3e8] sm:$0xff]  }
 0x226   : > { %8700 = vst.msk [vmem:[%s12797_s29 + $0x218] sm:$0xf] %vm8565_vm3, %v10787_v50  ;;  %8956 = vst.msk [vmem:[%s12797_s29 + $0x618] sm:$0xf] %vm8565_vm3, %v11043_v51  ;;  %v10788_v63 = vpack.c.bf16 %v6140_v52, %v6140_v52  ;;  %v11044_v0 = vpack.c.bf16 %v6396_v53, %v6396_v53  ;;  %v5112_v1 = vmul.f32 %v13872_v11, %v11577_v55  ;;  %v12322_v49 = vld [vmem:[%s12535_s20 + $0x7e8] sm:$0xff]   ;;  %11688 = vmatmul.mubr.msk.bf16.gmra.mrb[248].mxu0 %vm2110_vm2, %v12321_v48 }
 0x227   : > { %v5368_v2 = vmul.f32 %v13872_v11, %v11833_v62  ;;  %8698 = vst.msk [vmem:[%s12797_s29 + $0x210] sm:$0xf] %vm8565_vm3, %v10785_v57  ;;  %8954 = vst.msk [vmem:[%s12797_s29 + $0x610] sm:$0xf] %vm8565_vm3, %v11041_v58  ;;  %v10786_v7 = vpack.c.bf16 %v6138_v60, %v6138_v60  ;;  %v11042_v8 = vpack.c.bf16 %v6394_v61, %v6394_v61  ;;  %v11582_v57 = vpop.f32.mrb[142].mxu0  ;;  %v11838_v58 = vpop.f32.mrb[142].mxu1  ;;  %11944 = vmatmul.mubr.msk.bf16.gmra.mrb[248].mxu1 %vm2110_vm2, %v12322_v49 }
 0x228   : > { %v5110_v9 = vmul.f32 %v13872_v11, %v3464_v4  ;;  %v5366_v10 = vmul.f32 %v13872_v11, %v4488_v5  ;;  %8701 = vst.msk [vmem:[%s12797_s29 + $0x21c] sm:$0xf] %vm8565_vm3, %v10788_v63  ;;  %8957 = vst.msk [vmem:[%s12797_s29 + $0x61c] sm:$0xf] %vm8565_vm3, %v11044_v0  ;;  %v5631_v15 = vadd.f32 %v13893_v23, %v5112_v1  ;;  %v12323_v60 = vld [vmem:[%s12535_s20 + $0x3f0] sm:$0xff]   ;;  %v3483_v1 = vpop.f32.mrb[143].mxu0 }
 0x229   : > { %v5887_v16 = vadd.f32 %v13893_v23, %v5368_v2  ;;  %v5113_v17 = vmul.f32 %v13872_v11, %v11578_v39  ;;  %v5369_v18 = vmul.f32 %v13872_v11, %v11834_v12  ;;  %8699 = vst.msk [vmem:[%s12797_s29 + $0x214] sm:$0xf] %vm8565_vm3, %v10786_v7  ;;  %8955 = vst.msk [vmem:[%s12797_s29 + $0x614] sm:$0xf] %vm8565_vm3, %v11042_v8  ;;  %v12324_v61 = vld [vmem:[%s12535_s20 + $0x7f0] sm:$0xff]   ;;  %v4507_v2 = vpop.f32.mrb[143].mxu1  ;;  %11691 = vmatprep.mubr.msk.bf16.mxu0 %vm2110_vm2, %v12323_v60 }
 0x22a   : > { %v5629_v21 = vadd.f32 %v13893_v23, %v5110_v9  ;;  %v5885_v22 = vadd.f32 %v13893_v23, %v5366_v10  ;;  %v5111_v24 = vmul.f32 %v13872_v11, %v3467_v19  ;;  %v5367_v25 = vmul.f32 %v13872_v11, %v4491_v20  ;;  %11947 = vmatprep.mubr.msk.bf16.mxu1 %vm2110_vm2, %v12324_v61 }
 0x22b   : > { %v6143_v54 = vmax.f32 %v5631_v15, 0.0  ;;  %v6399_v26 = vmax.f32 %v5887_v16, 0.0  ;;  %v5632_v27 = vadd.f32 %v13893_v23, %v5113_v17  ;;  %v5888_v28 = vadd.f32 %v13893_v23, %v5369_v18 }
 0x22c   : > { %v6141_v59 = vmax.f32 %v5629_v21, 0.0  ;;  %v6397_v29 = vmax.f32 %v5885_v22, 0.0  ;;  %v5630_v30 = vadd.f32 %v13893_v23, %v5111_v24  ;;  %v5886_v31 = vadd.f32 %v13893_v23, %v5367_v25  ;;  %v11585_v24 = vpop.f32.mrb[144].mxu0  ;;  %v11841_v25 = vpop.f32.mrb[144].mxu1 }
 0x22d   : > { %v10791_v32 = vpack.c.bf16 %v6143_v54, %v6143_v54  ;;  %v11047_v33 = vpack.c.bf16 %v6399_v26, %v6399_v26  ;;  %v6144_v34 = vmax.f32 %v5632_v27, 0.0  ;;  %v6400_v35 = vmax.f32 %v5888_v28, 0.0 }
 0x22e   : > { %v10789_v36 = vpack.c.bf16 %v6141_v59, %v6141_v59  ;;  %v11045_v37 = vpack.c.bf16 %v6397_v29, %v6397_v29  ;;  %v6142_v3 = vmax.f32 %v5630_v30, 0.0  ;;  %v6398_v38 = vmax.f32 %v5886_v31, 0.0  ;;  %v3496_v59 = vpop.f32.mrb[145].mxu0  ;;  %v4520_v29 = vpop.f32.mrb[145].mxu1  ;;  %v12325_v30 = vld [vmem:[%s12535_s20 + $0x3f8] sm:$0xff]  }
 0x22f   : > { %8704 = vst.msk [vmem:[%s12797_s29 + $0x228] sm:$0xf] %vm8565_vm3, %v10791_v32  ;;  %8960 = vst.msk [vmem:[%s12797_s29 + $0x628] sm:$0xf] %vm8565_vm3, %v11047_v33  ;;  %v10792_v42 = vpack.c.bf16 %v6144_v34, %v6144_v34  ;;  %v11048_v43 = vpack.c.bf16 %v6400_v35, %v6400_v35  ;;  %v5116_v44 = vmul.f32 %v13872_v11, %v11581_v40  ;;  %v12326_v31 = vld [vmem:[%s12535_s20 + $0x7f8] sm:$0xff]   ;;  %11692 = vmatmul.mubr.msk.bf16.gmra.mrb[252].mxu0 %vm2110_vm2, %v12325_v30 }
 0x230   : > { %v5372_v45 = vmul.f32 %v13872_v11, %v11837_v41  ;;  %8702 = vst.msk [vmem:[%s12797_s29 + $0x220] sm:$0xf] %vm8565_vm3, %v10789_v36  ;;  %8958 = vst.msk [vmem:[%s12797_s29 + $0x620] sm:$0xf] %vm8565_vm3, %v11045_v37  ;;  %v10790_v50 = vpack.c.bf16 %v6142_v3, %v6142_v3  ;;  %v11046_v51 = vpack.c.bf16 %v6398_v38, %v6398_v38  ;;  %v11586_v36 = vpop.f32.mrb[146].mxu0  ;;  %v11842_v37 = vpop.f32.mrb[146].mxu1  ;;  %11948 = vmatmul.mubr.msk.bf16.gmra.mrb[252].mxu1 %vm2110_vm2, %v12326_v31 }
 0x231   : > { %v5114_v52 = vmul.f32 %v13872_v11, %v3480_v46  ;;  %v5370_v53 = vmul.f32 %v13872_v11, %v4504_v47  ;;  %8705 = vst.msk [vmem:[%s12797_s29 + $0x22c] sm:$0xf] %vm8565_vm3, %v10792_v42  ;;  %8961 = vst.msk [vmem:[%s12797_s29 + $0x62c] sm:$0xf] %vm8565_vm3, %v11048_v43  ;;  %v5635_v55 = vadd.f32 %v13893_v23, %v5116_v44  ;;  %v14250_v40 = vld [vmem:[%s15379_s2] ss:$0 sm:$0xff] }
 0x232   : > { %v5891_v62 = vadd.f32 %v13893_v23, %v5372_v45  ;;  %v5117_v63 = vmul.f32 %v13872_v11, %v11582_v57  ;;  %v5373_v0 = vmul.f32 %v13872_v11, %v11838_v58  ;;  %8703 = vst.msk [vmem:[%s12797_s29 + $0x224] sm:$0xf] %vm8565_vm3, %v10790_v50  ;;  %8959 = vst.msk [vmem:[%s12797_s29 + $0x624] sm:$0xf] %vm8565_vm3, %v11046_v51  ;;  %v4523_v43 = vpop.f32.mrb[147].mxu1 }
 0x233   : > { %v5633_v4 = vadd.f32 %v13893_v23, %v5114_v52  ;;  %v5889_v5 = vadd.f32 %v13893_v23, %v5370_v53  ;;  %v5115_v56 = vmul.f32 %v13872_v11, %v3483_v1  ;;  %v5371_v6 = vmul.f32 %v13872_v11, %v4507_v2  ;;  %v14269_v57 = vld [vmem:[%s15380_s3] ss:$0 sm:$0xff] }
 0x234   : > { %v6147_v7 = vmax.f32 %v5635_v55, 0.0  ;;  %v6403_v8 = vmax.f32 %v5891_v62, 0.0  ;;  %v5636_v9 = vadd.f32 %v13893_v23, %v5117_v63  ;;  %v5892_v10 = vadd.f32 %v13893_v23, %v5373_v0 }
 0x235   : > { %v6145_v39 = vmax.f32 %v5633_v4, 0.0  ;;  %v6401_v12 = vmax.f32 %v5889_v5, 0.0  ;;  %v5634_v13 = vadd.f32 %v13893_v23, %v5115_v56  ;;  %v5890_v14 = vadd.f32 %v13893_v23, %v5371_v6  ;;  %v11845_v5 = vpop.f32.mrb[148].mxu1 }
 0x236   : > { %v10795_v15 = vpack.c.bf16 %v6147_v7, %v6147_v7  ;;  %v11051_v16 = vpack.c.bf16 %v6403_v8, %v6403_v8  ;;  %v6148_v17 = vmax.f32 %v5636_v9, 0.0  ;;  %v6404_v18 = vmax.f32 %v5892_v10, 0.0  ;;  %v4536_v10 = vpop.f32.mrb[149].mxu1 }
 0x237   : > { %v10793_v19 = vpack.c.bf16 %v6145_v39, %v6145_v39  ;;  %v11049_v20 = vpack.c.bf16 %v6401_v12, %v6401_v12  ;;  %v6146_v21 = vmax.f32 %v5634_v13, 0.0  ;;  %v6402_v22 = vmax.f32 %v5890_v14, 0.0 }
 0x238   : > { %8708 = vst.msk [vmem:[%s12797_s29 + $0x238] sm:$0xf] %vm8565_vm3, %v10795_v15  ;;  %8964 = vst.msk [vmem:[%s12797_s29 + $0x638] sm:$0xf] %vm8565_vm3, %v11051_v16  ;;  %v10796_v54 = vpack.c.bf16 %v6148_v17, %v6148_v17  ;;  %v11052_v26 = vpack.c.bf16 %v6404_v18, %v6404_v18  ;;  %v5120_v27 = vmul.f32 %v13872_v11, %v11585_v24  ;;  %v11846_v16 = vpop.f32.mrb[150].mxu1 }
 0x239   : > { %v5376_v28 = vmul.f32 %v13872_v11, %v11841_v25  ;;  %8706 = vst.msk [vmem:[%s12797_s29 + $0x230] sm:$0xf] %vm8565_vm3, %v10793_v19  ;;  %8962 = vst.msk [vmem:[%s12797_s29 + $0x630] sm:$0xf] %vm8565_vm3, %v11049_v20  ;;  %v10794_v32 = vpack.c.bf16 %v6146_v21, %v6146_v21  ;;  %v11050_v33 = vpack.c.bf16 %v6402_v22, %v6402_v22  ;;  %v4539_v22 = vpop.f32.mrb[151].mxu1 }
 0x23a   : > { %v5118_v34 = vmul.f32 %v13872_v11, %v3496_v59  ;;  %v5374_v35 = vmul.f32 %v13872_v11, %v4520_v29  ;;  %8709 = vst.msk [vmem:[%s12797_s29 + $0x23c] sm:$0xf] %vm8565_vm3, %v10796_v54  ;;  %8965 = vst.msk [vmem:[%s12797_s29 + $0x63c] sm:$0xf] %vm8565_vm3, %v11052_v26  ;;  %v5639_v3 = vadd.f32 %v13893_v23, %v5120_v27  ;;  %v3499_v11 = vpop.f32.mrb[147].mxu0 }
 0x23b   : > { %v5895_v38 = vadd.f32 %v13893_v23, %v5376_v28  ;;  %v5121_v41 = vmul.f32 %v14250_v40, %v11586_v36  ;;  %v5377_v42 = vmul.f32 %v14250_v40, %v11842_v37  ;;  %8707 = vst.msk [vmem:[%s12797_s29 + $0x234] sm:$0xf] %vm8565_vm3, %v10794_v32  ;;  %8963 = vst.msk [vmem:[%s12797_s29 + $0x634] sm:$0xf] %vm8565_vm3, %v11050_v33  ;;  %v11589_v4 = vpop.f32.mrb[148].mxu0 }
 0x23c   : > { %v5637_v44 = vadd.f32 %v13893_v23, %v5118_v34  ;;  %v5893_v45 = vadd.f32 %v13893_v23, %v5374_v35  ;;  %v5119_v46 = vmul.f32 %v14250_v40, %v3499_v11  ;;  %v5375_v47 = vmul.f32 %v14250_v40, %v4523_v43  ;;  %v3512_v9 = vpop.f32.mrb[149].mxu0  ;;  %v11849_v43 = vpop.f32.mrb[152].mxu1 }
 0x23d   : > { %v6151_v48 = vmax.f32 %v5639_v3, 0.0  ;;  %v6407_v49 = vmax.f32 %v5895_v38, 0.0  ;;  %v5640_v50 = vadd.f32 %v13893_v23, %v5121_v41  ;;  %v5896_v51 = vadd.f32 %v13893_v23, %v5377_v42  ;;  %v11590_v15 = vpop.f32.mrb[150].mxu0 }
 0x23e   : > { %v6149_v52 = vmax.f32 %v5637_v44, 0.0  ;;  %v6405_v53 = vmax.f32 %v5893_v45, 0.0  ;;  %v5638_v58 = vadd.f32 %v14269_v57, %v5119_v46  ;;  %v5894_v60 = vadd.f32 %v14269_v57, %v5375_v47  ;;  %v3515_v21 = vpop.f32.mrb[151].mxu0 }
 0x23f   : > { %v10799_v61 = vpack.c.bf16 %v6151_v48, %v6151_v48  ;;  %v11055_v55 = vpack.c.bf16 %v6407_v49, %v6407_v49  ;;  %v6152_v23 = vmax.f32 %v5640_v50, 0.0  ;;  %v6408_v62 = vmax.f32 %v5896_v51, 0.0  ;;  %v11593_v11 = vpop.f32.mrb[152].mxu0  ;;  %v4552_v49 = vpop.f32.mrb[153].mxu1 }
 0x240   : > { %v10797_v63 = vpack.c.bf16 %v6149_v52, %v6149_v52  ;;  %v11053_v0 = vpack.c.bf16 %v6405_v53, %v6405_v53  ;;  %v6150_v1 = vmax.f32 %v5638_v58, 0.0  ;;  %v6406_v2 = vmax.f32 %v5894_v60, 0.0  ;;  %v3528_v48 = vpop.f32.mrb[153].mxu0  ;;  %v11850_v60 = vpop.f32.mrb[154].mxu1 }
 0x241   : > { %8712 = vst.msk [vmem:[%s12797_s29 + $0x248] sm:$0xf] %vm8565_vm3, %v10799_v61  ;;  %8968 = vst.msk [vmem:[%s12797_s29 + $0x648] sm:$0xf] %vm8565_vm3, %v11055_v55  ;;  %v10800_v56 = vpack.c.bf16 %v6152_v23, %v6152_v23  ;;  %v11056_v6 = vpack.c.bf16 %v6408_v62, %v6408_v62  ;;  %v5124_v7 = vmul.f32 %v14250_v40, %v11589_v4  ;;  %v11594_v58 = vpop.f32.mrb[154].mxu0 }
 0x242   : > { %v5380_v8 = vmul.f32 %v14250_v40, %v11845_v5  ;;  %8710 = vst.msk [vmem:[%s12797_s29 + $0x240] sm:$0xf] %vm8565_vm3, %v10797_v63  ;;  %8966 = vst.msk [vmem:[%s12797_s29 + $0x640] sm:$0xf] %vm8565_vm3, %v11053_v0  ;;  %v10798_v39 = vpack.c.bf16 %v6150_v1, %v6150_v1  ;;  %v11054_v12 = vpack.c.bf16 %v6406_v2, %v6406_v2  ;;  %v3531_v63 = vpop.f32.mrb[155].mxu0  ;;  %v4555_v0 = vpop.f32.mrb[155].mxu1 }
 0x243   : > { %v5122_v13 = vmul.f32 %v14250_v40, %v3512_v9  ;;  %v5378_v14 = vmul.f32 %v14250_v40, %v4536_v10  ;;  %8713 = vst.msk [vmem:[%s12797_s29 + $0x24c] sm:$0xf] %vm8565_vm3, %v10800_v56  ;;  %8969 = vst.msk [vmem:[%s12797_s29 + $0x64c] sm:$0xf] %vm8565_vm3, %v11056_v6  ;;  %v5643_v17 = vadd.f32 %v14269_v57, %v5124_v7 }
 0x244   : > { %v5899_v18 = vadd.f32 %v14269_v57, %v5380_v8  ;;  %v5125_v19 = vmul.f32 %v14250_v40, %v11590_v15  ;;  %v5381_v20 = vmul.f32 %v14250_v40, %v11846_v16  ;;  %8711 = vst.msk [vmem:[%s12797_s29 + $0x244] sm:$0xf] %vm8565_vm3, %v10798_v39  ;;  %8967 = vst.msk [vmem:[%s12797_s29 + $0x644] sm:$0xf] %vm8565_vm3, %v11054_v12 }
 0x245   : > { %v5641_v24 = vadd.f32 %v14269_v57, %v5122_v13  ;;  %v5897_v25 = vadd.f32 %v14269_v57, %v5378_v14  ;;  %v5123_v54 = vmul.f32 %v14250_v40, %v3515_v21  ;;  %v5379_v26 = vmul.f32 %v14250_v40, %v4539_v22  ;;  %v11597_v21 = vpop.f32.mrb[156].mxu0  ;;  %v11853_v22 = vpop.f32.mrb[156].mxu1 }
 0x246   : > { %v6155_v27 = vmax.f32 %v5643_v17, 0.0  ;;  %v6411_v28 = vmax.f32 %v5899_v18, 0.0  ;;  %v5644_v59 = vadd.f32 %v14269_v57, %v5125_v19  ;;  %v5900_v29 = vadd.f32 %v14269_v57, %v5381_v20 }
 0x247   : > { %v6153_v30 = vmax.f32 %v5641_v24, 0.0  ;;  %v6409_v31 = vmax.f32 %v5897_v25, 0.0  ;;  %v5642_v32 = vadd.f32 %v14269_v57, %v5123_v54  ;;  %v5898_v33 = vadd.f32 %v14269_v57, %v5379_v26 }
 0x248   : > { %v10803_v34 = vpack.c.bf16 %v6155_v27, %v6155_v27  ;;  %v11059_v35 = vpack.c.bf16 %v6411_v28, %v6411_v28  ;;  %v6156_v36 = vmax.f32 %v5644_v59, 0.0  ;;  %v6412_v37 = vmax.f32 %v5900_v29, 0.0  ;;  %v3544_v27 = vpop.f32.mrb[157].mxu0  ;;  %v4568_v28 = vpop.f32.mrb[157].mxu1 }
 0x249   : > { %v10801_v3 = vpack.c.bf16 %v6153_v30, %v6153_v30  ;;  %v11057_v38 = vpack.c.bf16 %v6409_v31, %v6409_v31  ;;  %v6154_v41 = vmax.f32 %v5642_v32, 0.0  ;;  %v6410_v42 = vmax.f32 %v5898_v33, 0.0  ;;  %v11598_v32 = vpop.f32.mrb[158].mxu0  ;;  %v11854_v33 = vpop.f32.mrb[158].mxu1 }
 0x24a   : > { %8716 = vst.msk [vmem:[%s12797_s29 + $0x258] sm:$0xf] %vm8565_vm3, %v10803_v34  ;;  %8972 = vst.msk [vmem:[%s12797_s29 + $0x658] sm:$0xf] %vm8565_vm3, %v11059_v35  ;;  %v10804_v44 = vpack.c.bf16 %v6156_v36, %v6156_v36  ;;  %v11060_v45 = vpack.c.bf16 %v6412_v37, %v6412_v37  ;;  %v5128_v46 = vmul.f32 %v14250_v40, %v11593_v11 }
 0x24b   : > { %v5384_v47 = vmul.f32 %v14250_v40, %v11849_v43  ;;  %8714 = vst.msk [vmem:[%s12797_s29 + $0x250] sm:$0xf] %vm8565_vm3, %v10801_v3  ;;  %8970 = vst.msk [vmem:[%s12797_s29 + $0x650] sm:$0xf] %vm8565_vm3, %v11057_v38  ;;  %v10802_v50 = vpack.c.bf16 %v6154_v41, %v6154_v41  ;;  %v11058_v51 = vpack.c.bf16 %v6410_v42, %v6410_v42  ;;  %v3547_v3 = vpop.f32.mrb[159].mxu0  ;;  %v4571_v38 = vpop.f32.mrb[159].mxu1 }
 0x24c   : > { %v5126_v52 = vmul.f32 %v14250_v40, %v3528_v48  ;;  %v5382_v53 = vmul.f32 %v14250_v40, %v4552_v49  ;;  %8717 = vst.msk [vmem:[%s12797_s29 + $0x25c] sm:$0xf] %vm8565_vm3, %v10804_v44  ;;  %8973 = vst.msk [vmem:[%s12797_s29 + $0x65c] sm:$0xf] %vm8565_vm3, %v11060_v45  ;;  %v5647_v61 = vadd.f32 %v14269_v57, %v5128_v46 }
 0x24d   : > { %v5903_v55 = vadd.f32 %v14269_v57, %v5384_v47  ;;  %v5129_v23 = vmul.f32 %v14250_v40, %v11594_v58  ;;  %v5385_v62 = vmul.f32 %v14250_v40, %v11850_v60  ;;  %8715 = vst.msk [vmem:[%s12797_s29 + $0x254] sm:$0xf] %vm8565_vm3, %v10802_v50  ;;  %8971 = vst.msk [vmem:[%s12797_s29 + $0x654] sm:$0xf] %vm8565_vm3, %v11058_v51 }
 0x24e   : > { %v5645_v1 = vadd.f32 %v14269_v57, %v5126_v52  ;;  %v5901_v2 = vadd.f32 %v14269_v57, %v5382_v53  ;;  %v5127_v4 = vmul.f32 %v14250_v40, %v3531_v63  ;;  %v5383_v5 = vmul.f32 %v14250_v40, %v4555_v0  ;;  %v11601_v63 = vpop.f32.mrb[160].mxu0  ;;  %v11857_v0 = vpop.f32.mrb[160].mxu1 }
 0x24f   : > { %v6159_v56 = vmax.f32 %v5647_v61, 0.0  ;;  %v6415_v6 = vmax.f32 %v5903_v55, 0.0  ;;  %v5648_v7 = vadd.f32 %v14269_v57, %v5129_v23  ;;  %v5904_v8 = vadd.f32 %v14269_v57, %v5385_v62 }
 0x250   : > { %v6157_v9 = vmax.f32 %v5645_v1, 0.0  ;;  %v6413_v10 = vmax.f32 %v5901_v2, 0.0  ;;  %v5646_v39 = vadd.f32 %v14269_v57, %v5127_v4  ;;  %v5902_v12 = vadd.f32 %v14269_v57, %v5383_v5 }
 0x251   : > { %v10807_v13 = vpack.c.bf16 %v6159_v56, %v6159_v56  ;;  %v11063_v14 = vpack.c.bf16 %v6415_v6, %v6415_v6  ;;  %v6160_v15 = vmax.f32 %v5648_v7, 0.0  ;;  %v6416_v16 = vmax.f32 %v5904_v8, 0.0  ;;  %v3560_v56 = vpop.f32.mrb[161].mxu0  ;;  %v4584_v6 = vpop.f32.mrb[161].mxu1 }
 0x252   : > { %v10805_v17 = vpack.c.bf16 %v6157_v9, %v6157_v9  ;;  %v11061_v18 = vpack.c.bf16 %v6413_v10, %v6413_v10  ;;  %v6158_v19 = vmax.f32 %v5646_v39, 0.0  ;;  %v6414_v20 = vmax.f32 %v5902_v12, 0.0  ;;  %v11602_v39 = vpop.f32.mrb[162].mxu0  ;;  %v11858_v12 = vpop.f32.mrb[162].mxu1 }
 0x253   : > { %8720 = vst.msk [vmem:[%s12797_s29 + $0x268] sm:$0xf] %vm8565_vm3, %v10807_v13  ;;  %8976 = vst.msk [vmem:[%s12797_s29 + $0x668] sm:$0xf] %vm8565_vm3, %v11063_v14  ;;  %v10808_v24 = vpack.c.bf16 %v6160_v15, %v6160_v15  ;;  %v11064_v25 = vpack.c.bf16 %v6416_v16, %v6416_v16  ;;  %v5132_v54 = vmul.f32 %v14250_v40, %v11597_v21 }
 0x254   : > { %v5388_v26 = vmul.f32 %v14250_v40, %v11853_v22  ;;  %8718 = vst.msk [vmem:[%s12797_s29 + $0x260] sm:$0xf] %vm8565_vm3, %v10805_v17  ;;  %8974 = vst.msk [vmem:[%s12797_s29 + $0x660] sm:$0xf] %vm8565_vm3, %v11061_v18  ;;  %v10806_v59 = vpack.c.bf16 %v6158_v19, %v6158_v19  ;;  %v11062_v29 = vpack.c.bf16 %v6414_v20, %v6414_v20  ;;  %v3563_v17 = vpop.f32.mrb[163].mxu0  ;;  %v4587_v18 = vpop.f32.mrb[163].mxu1 }
 0x255   : > { %v5130_v30 = vmul.f32 %v14250_v40, %v3544_v27  ;;  %v5386_v31 = vmul.f32 %v14250_v40, %v4568_v28  ;;  %8721 = vst.msk [vmem:[%s12797_s29 + $0x26c] sm:$0xf] %vm8565_vm3, %v10808_v24  ;;  %8977 = vst.msk [vmem:[%s12797_s29 + $0x66c] sm:$0xf] %vm8565_vm3, %v11064_v25  ;;  %v5651_v34 = vadd.f32 %v14269_v57, %v5132_v54 }
 0x256   : > { %v5907_v35 = vadd.f32 %v14269_v57, %v5388_v26  ;;  %v5133_v36 = vmul.f32 %v14250_v40, %v11598_v32  ;;  %v5389_v37 = vmul.f32 %v14250_v40, %v11854_v33  ;;  %8719 = vst.msk [vmem:[%s12797_s29 + $0x264] sm:$0xf] %vm8565_vm3, %v10806_v59  ;;  %8975 = vst.msk [vmem:[%s12797_s29 + $0x664] sm:$0xf] %vm8565_vm3, %v11062_v29 }
 0x257   : > { %v5649_v41 = vadd.f32 %v14269_v57, %v5130_v30  ;;  %v5905_v42 = vadd.f32 %v14269_v57, %v5386_v31  ;;  %v5131_v11 = vmul.f32 %v14250_v40, %v3547_v3  ;;  %v5387_v43 = vmul.f32 %v14250_v40, %v4571_v38  ;;  %v11605_v3 = vpop.f32.mrb[164].mxu0  ;;  %v11861_v38 = vpop.f32.mrb[164].mxu1 }
 0x258   : > { %v6163_v44 = vmax.f32 %v5651_v34, 0.0  ;;  %v6419_v45 = vmax.f32 %v5907_v35, 0.0  ;;  %v5652_v46 = vadd.f32 %v14269_v57, %v5133_v36  ;;  %v5908_v47 = vadd.f32 %v14269_v57, %v5389_v37 }
 0x259   : > { %v6161_v48 = vmax.f32 %v5649_v41, 0.0  ;;  %v6417_v49 = vmax.f32 %v5905_v42, 0.0  ;;  %v5650_v50 = vadd.f32 %v14269_v57, %v5131_v11  ;;  %v5906_v51 = vadd.f32 %v14269_v57, %v5387_v43 }
 0x25a   : > { %v10811_v52 = vpack.c.bf16 %v6163_v44, %v6163_v44  ;;  %v11067_v53 = vpack.c.bf16 %v6419_v45, %v6419_v45  ;;  %v6164_v58 = vmax.f32 %v5652_v46, 0.0  ;;  %v6420_v60 = vmax.f32 %v5908_v47, 0.0  ;;  %v3576_v44 = vpop.f32.mrb[165].mxu0  ;;  %v4600_v45 = vpop.f32.mrb[165].mxu1 }
 0x25b   : > { %v10809_v61 = vpack.c.bf16 %v6161_v48, %v6161_v48  ;;  %v11065_v55 = vpack.c.bf16 %v6417_v49, %v6417_v49  ;;  %v6162_v23 = vmax.f32 %v5650_v50, 0.0  ;;  %v6418_v62 = vmax.f32 %v5906_v51, 0.0  ;;  %v11606_v50 = vpop.f32.mrb[166].mxu0  ;;  %v11862_v51 = vpop.f32.mrb[166].mxu1 }
 0x25c   : > { %8724 = vst.msk [vmem:[%s12797_s29 + $0x278] sm:$0xf] %vm8565_vm3, %v10811_v52  ;;  %8980 = vst.msk [vmem:[%s12797_s29 + $0x678] sm:$0xf] %vm8565_vm3, %v11067_v53  ;;  %v10812_v1 = vpack.c.bf16 %v6164_v58, %v6164_v58  ;;  %v11068_v2 = vpack.c.bf16 %v6420_v60, %v6420_v60  ;;  %v5136_v4 = vmul.f32 %v14250_v40, %v11601_v63 }
 0x25d   : > { %v5392_v5 = vmul.f32 %v14250_v40, %v11857_v0  ;;  %8722 = vst.msk [vmem:[%s12797_s29 + $0x270] sm:$0xf] %vm8565_vm3, %v10809_v61  ;;  %8978 = vst.msk [vmem:[%s12797_s29 + $0x670] sm:$0xf] %vm8565_vm3, %v11065_v55  ;;  %v10810_v7 = vpack.c.bf16 %v6162_v23, %v6162_v23  ;;  %v11066_v8 = vpack.c.bf16 %v6418_v62, %v6418_v62  ;;  %v3579_v61 = vpop.f32.mrb[167].mxu0  ;;  %v4603_v55 = vpop.f32.mrb[167].mxu1 }
 0x25e   : > { %v5134_v9 = vmul.f32 %v14250_v40, %v3560_v56  ;;  %v5390_v10 = vmul.f32 %v14250_v40, %v4584_v6  ;;  %8725 = vst.msk [vmem:[%s12797_s29 + $0x27c] sm:$0xf] %vm8565_vm3, %v10812_v1  ;;  %8981 = vst.msk [vmem:[%s12797_s29 + $0x67c] sm:$0xf] %vm8565_vm3, %v11068_v2  ;;  %v5655_v13 = vadd.f32 %v14269_v57, %v5136_v4 }
 0x25f   : > { %v5911_v14 = vadd.f32 %v14269_v57, %v5392_v5  ;;  %v5137_v15 = vmul.f32 %v14250_v40, %v11602_v39  ;;  %v5393_v16 = vmul.f32 %v14250_v40, %v11858_v12  ;;  %8723 = vst.msk [vmem:[%s12797_s29 + $0x274] sm:$0xf] %vm8565_vm3, %v10810_v7  ;;  %8979 = vst.msk [vmem:[%s12797_s29 + $0x674] sm:$0xf] %vm8565_vm3, %v11066_v8 }
 0x260   : > { %v5653_v19 = vadd.f32 %v14269_v57, %v5134_v9  ;;  %v5909_v20 = vadd.f32 %v14269_v57, %v5390_v10  ;;  %v5135_v21 = vmul.f32 %v14250_v40, %v3563_v17  ;;  %v5391_v22 = vmul.f32 %v14250_v40, %v4587_v18  ;;  %v11609_v17 = vpop.f32.mrb[168].mxu0  ;;  %v11865_v18 = vpop.f32.mrb[168].mxu1 }
 0x261   : > { %v6167_v24 = vmax.f32 %v5655_v13, 0.0  ;;  %v6423_v25 = vmax.f32 %v5911_v14, 0.0  ;;  %v5656_v54 = vadd.f32 %v14269_v57, %v5137_v15  ;;  %v5912_v26 = vadd.f32 %v14269_v57, %v5393_v16 }
 0x262   : > { %v6165_v27 = vmax.f32 %v5653_v19, 0.0  ;;  %v6421_v28 = vmax.f32 %v5909_v20, 0.0  ;;  %v5654_v59 = vadd.f32 %v14269_v57, %v5135_v21  ;;  %v5910_v29 = vadd.f32 %v14269_v57, %v5391_v22 }
 0x263   : > { %v10815_v30 = vpack.c.bf16 %v6167_v24, %v6167_v24  ;;  %v11071_v31 = vpack.c.bf16 %v6423_v25, %v6423_v25  ;;  %v6168_v32 = vmax.f32 %v5656_v54, 0.0  ;;  %v6424_v33 = vmax.f32 %v5912_v26, 0.0  ;;  %v3592_v24 = vpop.f32.mrb[169].mxu0  ;;  %v4616_v25 = vpop.f32.mrb[169].mxu1 }
 0x264   : > { %v10813_v34 = vpack.c.bf16 %v6165_v27, %v6165_v27  ;;  %v11069_v35 = vpack.c.bf16 %v6421_v28, %v6421_v28  ;;  %v6166_v36 = vmax.f32 %v5654_v59, 0.0  ;;  %v6422_v37 = vmax.f32 %v5910_v29, 0.0  ;;  %v11610_v59 = vpop.f32.mrb[170].mxu0  ;;  %v11866_v29 = vpop.f32.mrb[170].mxu1 }
 0x265   : > { %8728 = vst.msk [vmem:[%s12797_s29 + $0x288] sm:$0xf] %vm8565_vm3, %v10815_v30  ;;  %8984 = vst.msk [vmem:[%s12797_s29 + $0x688] sm:$0xf] %vm8565_vm3, %v11071_v31  ;;  %v10816_v41 = vpack.c.bf16 %v6168_v32, %v6168_v32  ;;  %v11072_v42 = vpack.c.bf16 %v6424_v33, %v6424_v33  ;;  %v5140_v11 = vmul.f32 %v14250_v40, %v11605_v3 }
 0x266   : > { %v5396_v43 = vmul.f32 %v14250_v40, %v11861_v38  ;;  %8726 = vst.msk [vmem:[%s12797_s29 + $0x280] sm:$0xf] %vm8565_vm3, %v10813_v34  ;;  %8982 = vst.msk [vmem:[%s12797_s29 + $0x680] sm:$0xf] %vm8565_vm3, %v11069_v35  ;;  %v10814_v46 = vpack.c.bf16 %v6166_v36, %v6166_v36  ;;  %v11070_v47 = vpack.c.bf16 %v6422_v37, %v6422_v37  ;;  %v3595_v34 = vpop.f32.mrb[171].mxu0  ;;  %v4619_v35 = vpop.f32.mrb[171].mxu1 }
 0x267   : > { %v5138_v48 = vmul.f32 %v14250_v40, %v3576_v44  ;;  %v5394_v49 = vmul.f32 %v14250_v40, %v4600_v45  ;;  %8729 = vst.msk [vmem:[%s12797_s29 + $0x28c] sm:$0xf] %vm8565_vm3, %v10816_v41  ;;  %8985 = vst.msk [vmem:[%s12797_s29 + $0x68c] sm:$0xf] %vm8565_vm3, %v11072_v42  ;;  %v5659_v52 = vadd.f32 %v14269_v57, %v5140_v11 }
 0x268   : > { %v5915_v53 = vadd.f32 %v14269_v57, %v5396_v43  ;;  %v5141_v58 = vmul.f32 %v14250_v40, %v11606_v50  ;;  %v5397_v60 = vmul.f32 %v14250_v40, %v11862_v51  ;;  %8727 = vst.msk [vmem:[%s12797_s29 + $0x284] sm:$0xf] %vm8565_vm3, %v10814_v46  ;;  %8983 = vst.msk [vmem:[%s12797_s29 + $0x684] sm:$0xf] %vm8565_vm3, %v11070_v47 }
 0x269   : > { %v5657_v23 = vadd.f32 %v14269_v57, %v5138_v48  ;;  %v5913_v62 = vadd.f32 %v14269_v57, %v5394_v49  ;;  %v5139_v63 = vmul.f32 %v14250_v40, %v3579_v61  ;;  %v5395_v0 = vmul.f32 %v14250_v40, %v4603_v55  ;;  %v11613_v61 = vpop.f32.mrb[172].mxu0  ;;  %v11869_v55 = vpop.f32.mrb[172].mxu1 }
 0x26a   : > { %v6171_v1 = vmax.f32 %v5659_v52, 0.0  ;;  %v6427_v2 = vmax.f32 %v5915_v53, 0.0  ;;  %v5660_v4 = vadd.f32 %v14269_v57, %v5141_v58  ;;  %v5916_v5 = vadd.f32 %v14269_v57, %v5397_v60 }
 0x26b   : > { %v6169_v56 = vmax.f32 %v5657_v23, 0.0  ;;  %v6425_v6 = vmax.f32 %v5913_v62, 0.0  ;;  %v5658_v7 = vadd.f32 %v14269_v57, %v5139_v63  ;;  %v5914_v8 = vadd.f32 %v14269_v57, %v5395_v0 }
 0x26c   : > { %v10819_v9 = vpack.c.bf16 %v6171_v1, %v6171_v1  ;;  %v11075_v10 = vpack.c.bf16 %v6427_v2, %v6427_v2  ;;  %v6172_v39 = vmax.f32 %v5660_v4, 0.0  ;;  %v6428_v12 = vmax.f32 %v5916_v5, 0.0  ;;  %v3608_v1 = vpop.f32.mrb[173].mxu0  ;;  %v4632_v2 = vpop.f32.mrb[173].mxu1 }
 0x26d   : > { %v10817_v13 = vpack.c.bf16 %v6169_v56, %v6169_v56  ;;  %v11073_v14 = vpack.c.bf16 %v6425_v6, %v6425_v6  ;;  %v6170_v15 = vmax.f32 %v5658_v7, 0.0  ;;  %v6426_v16 = vmax.f32 %v5914_v8, 0.0  ;;  %v11614_v7 = vpop.f32.mrb[174].mxu0  ;;  %v11870_v8 = vpop.f32.mrb[174].mxu1 }
 0x26e   : > { %8732 = vst.msk [vmem:[%s12797_s29 + $0x298] sm:$0xf] %vm8565_vm3, %v10819_v9  ;;  %8988 = vst.msk [vmem:[%s12797_s29 + $0x698] sm:$0xf] %vm8565_vm3, %v11075_v10  ;;  %v10820_v19 = vpack.c.bf16 %v6172_v39, %v6172_v39  ;;  %v11076_v20 = vpack.c.bf16 %v6428_v12, %v6428_v12  ;;  %v5144_v21 = vmul.f32 %v14250_v40, %v11609_v17 }
 0x26f   : > { %v5400_v22 = vmul.f32 %v14250_v40, %v11865_v18  ;;  %8730 = vst.msk [vmem:[%s12797_s29 + $0x290] sm:$0xf] %vm8565_vm3, %v10817_v13  ;;  %8986 = vst.msk [vmem:[%s12797_s29 + $0x690] sm:$0xf] %vm8565_vm3, %v11073_v14  ;;  %v10818_v54 = vpack.c.bf16 %v6170_v15, %v6170_v15  ;;  %v11074_v26 = vpack.c.bf16 %v6426_v16, %v6426_v16  ;;  %v3611_v13 = vpop.f32.mrb[175].mxu0  ;;  %v4635_v14 = vpop.f32.mrb[175].mxu1 }
 0x270   : > { %v5142_v27 = vmul.f32 %v14250_v40, %v3592_v24  ;;  %v5398_v28 = vmul.f32 %v14250_v40, %v4616_v25  ;;  %8733 = vst.msk [vmem:[%s12797_s29 + $0x29c] sm:$0xf] %vm8565_vm3, %v10820_v19  ;;  %8989 = vst.msk [vmem:[%s12797_s29 + $0x69c] sm:$0xf] %vm8565_vm3, %v11076_v20  ;;  %v5663_v30 = vadd.f32 %v14269_v57, %v5144_v21 }
 0x271   : > { %v5919_v31 = vadd.f32 %v14269_v57, %v5400_v22  ;;  %v5145_v32 = vmul.f32 %v14250_v40, %v11610_v59  ;;  %v5401_v33 = vmul.f32 %v14250_v40, %v11866_v29  ;;  %8731 = vst.msk [vmem:[%s12797_s29 + $0x294] sm:$0xf] %vm8565_vm3, %v10818_v54  ;;  %8987 = vst.msk [vmem:[%s12797_s29 + $0x694] sm:$0xf] %vm8565_vm3, %v11074_v26 }
 0x272   : > { %v5661_v36 = vadd.f32 %v14269_v57, %v5142_v27  ;;  %v5917_v37 = vadd.f32 %v14269_v57, %v5398_v28  ;;  %v5143_v3 = vmul.f32 %v14250_v40, %v3595_v34  ;;  %v5399_v38 = vmul.f32 %v14250_v40, %v4619_v35  ;;  %v11617_v34 = vpop.f32.mrb[176].mxu0  ;;  %v11873_v35 = vpop.f32.mrb[176].mxu1 }
 0x273   : > { %v6175_v41 = vmax.f32 %v5663_v30, 0.0  ;;  %v6431_v42 = vmax.f32 %v5919_v31, 0.0  ;;  %v5664_v11 = vadd.f32 %v14269_v57, %v5145_v32  ;;  %v5920_v43 = vadd.f32 %v14269_v57, %v5401_v33 }
 0x274   : > { %v6173_v44 = vmax.f32 %v5661_v36, 0.0  ;;  %v6429_v45 = vmax.f32 %v5917_v37, 0.0  ;;  %v5662_v46 = vadd.f32 %v14269_v57, %v5143_v3  ;;  %v5918_v47 = vadd.f32 %v14269_v57, %v5399_v38 }
 0x275   : > { %v10823_v48 = vpack.c.bf16 %v6175_v41, %v6175_v41  ;;  %v11079_v49 = vpack.c.bf16 %v6431_v42, %v6431_v42  ;;  %v6176_v50 = vmax.f32 %v5664_v11, 0.0  ;;  %v6432_v51 = vmax.f32 %v5920_v43, 0.0  ;;  %v3624_v41 = vpop.f32.mrb[177].mxu0  ;;  %v4648_v42 = vpop.f32.mrb[177].mxu1 }
 0x276   : > { %v10821_v52 = vpack.c.bf16 %v6173_v44, %v6173_v44  ;;  %v11077_v53 = vpack.c.bf16 %v6429_v45, %v6429_v45  ;;  %v6174_v58 = vmax.f32 %v5662_v46, 0.0  ;;  %v6430_v60 = vmax.f32 %v5918_v47, 0.0  ;;  %v11618_v46 = vpop.f32.mrb[178].mxu0  ;;  %v11874_v47 = vpop.f32.mrb[178].mxu1 }
 0x277   : > { %8736 = vst.msk [vmem:[%s12797_s29 + $0x2a8] sm:$0xf] %vm8565_vm3, %v10823_v48  ;;  %8992 = vst.msk [vmem:[%s12797_s29 + $0x6a8] sm:$0xf] %vm8565_vm3, %v11079_v49  ;;  %v10824_v23 = vpack.c.bf16 %v6176_v50, %v6176_v50  ;;  %v11080_v62 = vpack.c.bf16 %v6432_v51, %v6432_v51  ;;  %v5148_v63 = vmul.f32 %v14250_v40, %v11613_v61 }
 0x278   : > { %v5404_v0 = vmul.f32 %v14250_v40, %v11869_v55  ;;  %8734 = vst.msk [vmem:[%s12797_s29 + $0x2a0] sm:$0xf] %vm8565_vm3, %v10821_v52  ;;  %8990 = vst.msk [vmem:[%s12797_s29 + $0x6a0] sm:$0xf] %vm8565_vm3, %v11077_v53  ;;  %v10822_v4 = vpack.c.bf16 %v6174_v58, %v6174_v58  ;;  %v11078_v5 = vpack.c.bf16 %v6430_v60, %v6430_v60  ;;  %v3627_v52 = vpop.f32.mrb[179].mxu0  ;;  %v4651_v53 = vpop.f32.mrb[179].mxu1 }
 0x279   : > { %v5146_v56 = vmul.f32 %v14250_v40, %v3608_v1  ;;  %v5402_v6 = vmul.f32 %v14250_v40, %v4632_v2  ;;  %8737 = vst.msk [vmem:[%s12797_s29 + $0x2ac] sm:$0xf] %vm8565_vm3, %v10824_v23  ;;  %8993 = vst.msk [vmem:[%s12797_s29 + $0x6ac] sm:$0xf] %vm8565_vm3, %v11080_v62  ;;  %v5667_v9 = vadd.f32 %v14269_v57, %v5148_v63 }
 0x27a   : > { %v5923_v10 = vadd.f32 %v14269_v57, %v5404_v0  ;;  %v5149_v39 = vmul.f32 %v14250_v40, %v11614_v7  ;;  %v5405_v12 = vmul.f32 %v14250_v40, %v11870_v8  ;;  %8735 = vst.msk [vmem:[%s12797_s29 + $0x2a4] sm:$0xf] %vm8565_vm3, %v10822_v4  ;;  %8991 = vst.msk [vmem:[%s12797_s29 + $0x6a4] sm:$0xf] %vm8565_vm3, %v11078_v5 }
 0x27b   : > { %v5665_v15 = vadd.f32 %v14269_v57, %v5146_v56  ;;  %v5921_v16 = vadd.f32 %v14269_v57, %v5402_v6  ;;  %v5147_v17 = vmul.f32 %v14250_v40, %v3611_v13  ;;  %v5403_v18 = vmul.f32 %v14250_v40, %v4635_v14  ;;  %v11621_v13 = vpop.f32.mrb[180].mxu0  ;;  %v11877_v14 = vpop.f32.mrb[180].mxu1 }
 0x27c   : > { %v6179_v19 = vmax.f32 %v5667_v9, 0.0  ;;  %v6435_v20 = vmax.f32 %v5923_v10, 0.0  ;;  %v5668_v21 = vadd.f32 %v14269_v57, %v5149_v39  ;;  %v5924_v22 = vadd.f32 %v14269_v57, %v5405_v12 }
 0x27d   : > { %v6177_v24 = vmax.f32 %v5665_v15, 0.0  ;;  %v6433_v25 = vmax.f32 %v5921_v16, 0.0  ;;  %v5666_v54 = vadd.f32 %v14269_v57, %v5147_v17  ;;  %v5922_v26 = vadd.f32 %v14269_v57, %v5403_v18 }
 0x27e   : > { %v10827_v27 = vpack.c.bf16 %v6179_v19, %v6179_v19  ;;  %v11083_v28 = vpack.c.bf16 %v6435_v20, %v6435_v20  ;;  %v6180_v59 = vmax.f32 %v5668_v21, 0.0  ;;  %v6436_v29 = vmax.f32 %v5924_v22, 0.0  ;;  %v3640_v19 = vpop.f32.mrb[181].mxu0  ;;  %v4664_v20 = vpop.f32.mrb[181].mxu1 }
 0x27f   : > { %v10825_v30 = vpack.c.bf16 %v6177_v24, %v6177_v24  ;;  %v11081_v31 = vpack.c.bf16 %v6433_v25, %v6433_v25  ;;  %v6178_v32 = vmax.f32 %v5666_v54, 0.0  ;;  %v6434_v33 = vmax.f32 %v5922_v26, 0.0  ;;  %v11622_v54 = vpop.f32.mrb[182].mxu0  ;;  %v11878_v26 = vpop.f32.mrb[182].mxu1 }
 0x280   : > { %8740 = vst.msk [vmem:[%s12797_s29 + $0x2b8] sm:$0xf] %vm8565_vm3, %v10827_v27  ;;  %8996 = vst.msk [vmem:[%s12797_s29 + $0x6b8] sm:$0xf] %vm8565_vm3, %v11083_v28  ;;  %v10828_v36 = vpack.c.bf16 %v6180_v59, %v6180_v59  ;;  %v11084_v37 = vpack.c.bf16 %v6436_v29, %v6436_v29  ;;  %v5152_v3 = vmul.f32 %v14250_v40, %v11617_v34 }
 0x281   : > { %v5408_v38 = vmul.f32 %v14250_v40, %v11873_v35  ;;  %8738 = vst.msk [vmem:[%s12797_s29 + $0x2b0] sm:$0xf] %vm8565_vm3, %v10825_v30  ;;  %8994 = vst.msk [vmem:[%s12797_s29 + $0x6b0] sm:$0xf] %vm8565_vm3, %v11081_v31  ;;  %v10826_v11 = vpack.c.bf16 %v6178_v32, %v6178_v32  ;;  %v11082_v43 = vpack.c.bf16 %v6434_v33, %v6434_v33  ;;  %v3643_v30 = vpop.f32.mrb[183].mxu0  ;;  %v4667_v31 = vpop.f32.mrb[183].mxu1 }
 0x282   : > { %v5150_v44 = vmul.f32 %v14250_v40, %v3624_v41  ;;  %v5406_v45 = vmul.f32 %v14250_v40, %v4648_v42  ;;  %8741 = vst.msk [vmem:[%s12797_s29 + $0x2bc] sm:$0xf] %vm8565_vm3, %v10828_v36  ;;  %8997 = vst.msk [vmem:[%s12797_s29 + $0x6bc] sm:$0xf] %vm8565_vm3, %v11084_v37  ;;  %v5671_v48 = vadd.f32 %v14269_v57, %v5152_v3 }
 0x283   : > { %v5927_v49 = vadd.f32 %v14269_v57, %v5408_v38  ;;  %v5153_v50 = vmul.f32 %v14250_v40, %v11618_v46  ;;  %v5409_v51 = vmul.f32 %v14250_v40, %v11874_v47  ;;  %8739 = vst.msk [vmem:[%s12797_s29 + $0x2b4] sm:$0xf] %vm8565_vm3, %v10826_v11  ;;  %8995 = vst.msk [vmem:[%s12797_s29 + $0x6b4] sm:$0xf] %vm8565_vm3, %v11082_v43 }
 0x284   : > { %v5669_v58 = vadd.f32 %v14269_v57, %v5150_v44  ;;  %v5925_v60 = vadd.f32 %v14269_v57, %v5406_v45  ;;  %v5151_v61 = vmul.f32 %v14250_v40, %v3627_v52  ;;  %v5407_v55 = vmul.f32 %v14250_v40, %v4651_v53  ;;  %v11625_v52 = vpop.f32.mrb[184].mxu0  ;;  %v11881_v53 = vpop.f32.mrb[184].mxu1 }
 0x285   : > { %v6183_v23 = vmax.f32 %v5671_v48, 0.0  ;;  %v6439_v62 = vmax.f32 %v5927_v49, 0.0  ;;  %v5672_v63 = vadd.f32 %v14269_v57, %v5153_v50  ;;  %v5928_v0 = vadd.f32 %v14269_v57, %v5409_v51 }
 0x286   : > { %v6181_v1 = vmax.f32 %v5669_v58, 0.0  ;;  %v6437_v2 = vmax.f32 %v5925_v60, 0.0  ;;  %v5670_v4 = vadd.f32 %v14269_v57, %v5151_v61  ;;  %v5926_v5 = vadd.f32 %v14269_v57, %v5407_v55 }
 0x287   : > { %v10831_v56 = vpack.c.bf16 %v6183_v23, %v6183_v23  ;;  %v11087_v6 = vpack.c.bf16 %v6439_v62, %v6439_v62  ;;  %v6184_v7 = vmax.f32 %v5672_v63, 0.0  ;;  %v6440_v8 = vmax.f32 %v5928_v0, 0.0  ;;  %v3656_v23 = vpop.f32.mrb[185].mxu0  ;;  %v4680_v62 = vpop.f32.mrb[185].mxu1 }
 0x288   : > { %v10829_v9 = vpack.c.bf16 %v6181_v1, %v6181_v1  ;;  %v11085_v10 = vpack.c.bf16 %v6437_v2, %v6437_v2  ;;  %v6182_v39 = vmax.f32 %v5670_v4, 0.0  ;;  %v6438_v12 = vmax.f32 %v5926_v5, 0.0  ;;  %v11626_v4 = vpop.f32.mrb[186].mxu0  ;;  %v11882_v5 = vpop.f32.mrb[186].mxu1 }
 0x289   : > { %8744 = vst.msk [vmem:[%s12797_s29 + $0x2c8] sm:$0xf] %vm8565_vm3, %v10831_v56  ;;  %9000 = vst.msk [vmem:[%s12797_s29 + $0x6c8] sm:$0xf] %vm8565_vm3, %v11087_v6  ;;  %v10832_v15 = vpack.c.bf16 %v6184_v7, %v6184_v7  ;;  %v11088_v16 = vpack.c.bf16 %v6440_v8, %v6440_v8  ;;  %v5156_v17 = vmul.f32 %v14250_v40, %v11621_v13 }
 0x28a   : > { %v5412_v18 = vmul.f32 %v14250_v40, %v11877_v14  ;;  %8742 = vst.msk [vmem:[%s12797_s29 + $0x2c0] sm:$0xf] %vm8565_vm3, %v10829_v9  ;;  %8998 = vst.msk [vmem:[%s12797_s29 + $0x6c0] sm:$0xf] %vm8565_vm3, %v11085_v10  ;;  %v10830_v21 = vpack.c.bf16 %v6182_v39, %v6182_v39  ;;  %v11086_v22 = vpack.c.bf16 %v6438_v12, %v6438_v12  ;;  %v3659_v9 = vpop.f32.mrb[187].mxu0  ;;  %v4683_v10 = vpop.f32.mrb[187].mxu1 }
 0x28b   : > { %v5154_v24 = vmul.f32 %v14250_v40, %v3640_v19  ;;  %v5410_v25 = vmul.f32 %v14250_v40, %v4664_v20  ;;  %8745 = vst.msk [vmem:[%s12797_s29 + $0x2cc] sm:$0xf] %vm8565_vm3, %v10832_v15  ;;  %9001 = vst.msk [vmem:[%s12797_s29 + $0x6cc] sm:$0xf] %vm8565_vm3, %v11088_v16  ;;  %v5675_v27 = vadd.f32 %v14269_v57, %v5156_v17 }
 0x28c   : > { %v5931_v28 = vadd.f32 %v14269_v57, %v5412_v18  ;;  %v5157_v59 = vmul.f32 %v14250_v40, %v11622_v54  ;;  %v5413_v29 = vmul.f32 %v14250_v40, %v11878_v26  ;;  %8743 = vst.msk [vmem:[%s12797_s29 + $0x2c4] sm:$0xf] %vm8565_vm3, %v10830_v21  ;;  %8999 = vst.msk [vmem:[%s12797_s29 + $0x6c4] sm:$0xf] %vm8565_vm3, %v11086_v22 }
 0x28d   : > { %v5673_v32 = vadd.f32 %v14269_v57, %v5154_v24  ;;  %v5929_v33 = vadd.f32 %v14269_v57, %v5410_v25  ;;  %v5155_v34 = vmul.f32 %v14250_v40, %v3643_v30  ;;  %v5411_v35 = vmul.f32 %v14250_v40, %v4667_v31  ;;  %v11885_v30 = vpop.f32.mrb[188].mxu1 }
 0x28e   : > { %v6187_v36 = vmax.f32 %v5675_v27, 0.0  ;;  %v6443_v37 = vmax.f32 %v5931_v28, 0.0  ;;  %v5676_v3 = vadd.f32 %v14269_v57, %v5157_v59  ;;  %v5932_v38 = vadd.f32 %v14269_v57, %v5413_v29  ;;  %v11629_v29 = vpop.f32.mrb[188].mxu0 }
 0x28f   : > { %v6185_v41 = vmax.f32 %v5673_v32, 0.0  ;;  %v6441_v42 = vmax.f32 %v5929_v33, 0.0  ;;  %v5674_v11 = vadd.f32 %v14269_v57, %v5155_v34  ;;  %v5930_v43 = vadd.f32 %v14269_v57, %v5411_v35  ;;  %v14600_v33 = vld [vmem:[%s15379_s2] ss:$0 sm:$0xff] }
 0x290   : > { %v10835_v44 = vpack.c.bf16 %v6187_v36, %v6187_v36  ;;  %v11091_v45 = vpack.c.bf16 %v6443_v37, %v6443_v37  ;;  %v6188_v46 = vmax.f32 %v5676_v3, 0.0  ;;  %v6444_v47 = vmax.f32 %v5932_v38, 0.0  ;;  %v3672_v36 = vpop.f32.mrb[189].mxu0  ;;  %v4696_v37 = vpop.f32.mrb[189].mxu1 }
 0x291   : > { %v10833_v48 = vpack.c.bf16 %v6185_v41, %v6185_v41  ;;  %v11089_v49 = vpack.c.bf16 %v6441_v42, %v6441_v42  ;;  %v6186_v50 = vmax.f32 %v5674_v11, 0.0  ;;  %v6442_v51 = vmax.f32 %v5930_v43, 0.0  ;;  %v11630_v11 = vpop.f32.mrb[190].mxu0  ;;  %v11886_v43 = vpop.f32.mrb[190].mxu1 }
 0x292   : > { %8748 = vst.msk [vmem:[%s12797_s29 + $0x2d8] sm:$0xf] %vm8565_vm3, %v10835_v44  ;;  %9004 = vst.msk [vmem:[%s12797_s29 + $0x6d8] sm:$0xf] %vm8565_vm3, %v11091_v45  ;;  %v10836_v58 = vpack.c.bf16 %v6188_v46, %v6188_v46  ;;  %v11092_v60 = vpack.c.bf16 %v6444_v47, %v6444_v47  ;;  %v5160_v61 = vmul.f32 %v14250_v40, %v11625_v52 }
 0x293   : > { %v5416_v55 = vmul.f32 %v14250_v40, %v11881_v53  ;;  %8746 = vst.msk [vmem:[%s12797_s29 + $0x2d0] sm:$0xf] %vm8565_vm3, %v10833_v48  ;;  %9002 = vst.msk [vmem:[%s12797_s29 + $0x6d0] sm:$0xf] %vm8565_vm3, %v11089_v49  ;;  %v10834_v63 = vpack.c.bf16 %v6186_v50, %v6186_v50  ;;  %v11090_v0 = vpack.c.bf16 %v6442_v51, %v6442_v51  ;;  %v3675_v48 = vpop.f32.mrb[191].mxu0  ;;  %v4699_v49 = vpop.f32.mrb[191].mxu1 }
 0x294   : > { %v5158_v1 = vmul.f32 %v14250_v40, %v3656_v23  ;;  %v5414_v2 = vmul.f32 %v14250_v40, %v4680_v62  ;;  %8749 = vst.msk [vmem:[%s12797_s29 + $0x2dc] sm:$0xf] %vm8565_vm3, %v10836_v58  ;;  %9005 = vst.msk [vmem:[%s12797_s29 + $0x6dc] sm:$0xf] %vm8565_vm3, %v11092_v60  ;;  %v5679_v56 = vadd.f32 %v14269_v57, %v5160_v61  ;;  %v14625_v50 = vld [vmem:[%s15380_s3] ss:$0 sm:$0xff] }
 0x295   : > { %v5935_v6 = vadd.f32 %v14269_v57, %v5416_v55  ;;  %v5161_v7 = vmul.f32 %v14250_v40, %v11626_v4  ;;  %v5417_v8 = vmul.f32 %v14250_v40, %v11882_v5  ;;  %8747 = vst.msk [vmem:[%s12797_s29 + $0x2d4] sm:$0xf] %vm8565_vm3, %v10834_v63  ;;  %9003 = vst.msk [vmem:[%s12797_s29 + $0x6d4] sm:$0xf] %vm8565_vm3, %v11090_v0 }
 0x296   : > { %v5677_v39 = vadd.f32 %v14269_v57, %v5158_v1  ;;  %v5933_v12 = vadd.f32 %v14269_v57, %v5414_v2  ;;  %v5159_v13 = vmul.f32 %v14250_v40, %v3659_v9  ;;  %v5415_v14 = vmul.f32 %v14250_v40, %v4683_v10  ;;  %v11633_v9 = vpop.f32.mrb[192].mxu0  ;;  %v11889_v10 = vpop.f32.mrb[192].mxu1 }
 0x297   : > { %v6191_v15 = vmax.f32 %v5679_v56, 0.0  ;;  %v6447_v16 = vmax.f32 %v5935_v6, 0.0  ;;  %v5680_v17 = vadd.f32 %v14269_v57, %v5161_v7  ;;  %v5936_v18 = vadd.f32 %v14269_v57, %v5417_v8 }
 0x298   : > { %v6189_v19 = vmax.f32 %v5677_v39, 0.0  ;;  %v6445_v20 = vmax.f32 %v5933_v12, 0.0  ;;  %v5678_v21 = vadd.f32 %v14269_v57, %v5159_v13  ;;  %v5934_v22 = vadd.f32 %v14269_v57, %v5415_v14 }
 0x299   : > { %v10839_v24 = vpack.c.bf16 %v6191_v15, %v6191_v15  ;;  %v11095_v25 = vpack.c.bf16 %v6447_v16, %v6447_v16  ;;  %v6192_v54 = vmax.f32 %v5680_v17, 0.0  ;;  %v6448_v26 = vmax.f32 %v5936_v18, 0.0  ;;  %v3688_v15 = vpop.f32.mrb[193].mxu0  ;;  %v4712_v16 = vpop.f32.mrb[193].mxu1 }
 0x29a   : > { %v10837_v40 = vpack.c.bf16 %v6189_v19, %v6189_v19  ;;  %v11093_v27 = vpack.c.bf16 %v6445_v20, %v6445_v20  ;;  %v6190_v28 = vmax.f32 %v5678_v21, 0.0  ;;  %v6446_v59 = vmax.f32 %v5934_v22, 0.0  ;;  %v11634_v21 = vpop.f32.mrb[194].mxu0  ;;  %v11890_v22 = vpop.f32.mrb[194].mxu1 }
 0x29b   : > { %8752 = vst.msk [vmem:[%s12797_s29 + $0x2e8] sm:$0xf] %vm8565_vm3, %v10839_v24  ;;  %9008 = vst.msk [vmem:[%s12797_s29 + $0x6e8] sm:$0xf] %vm8565_vm3, %v11095_v25  ;;  %v10840_v31 = vpack.c.bf16 %v6192_v54, %v6192_v54  ;;  %v11096_v32 = vpack.c.bf16 %v6448_v26, %v6448_v26  ;;  %v5164_v34 = vmul.f32 %v14600_v33, %v11629_v29 }
 0x29c   : > { %v5420_v35 = vmul.f32 %v14600_v33, %v11885_v30  ;;  %8750 = vst.msk [vmem:[%s12797_s29 + $0x2e0] sm:$0xf] %vm8565_vm3, %v10837_v40  ;;  %9006 = vst.msk [vmem:[%s12797_s29 + $0x6e0] sm:$0xf] %vm8565_vm3, %v11093_v27  ;;  %v10838_v3 = vpack.c.bf16 %v6190_v28, %v6190_v28  ;;  %v11094_v38 = vpack.c.bf16 %v6446_v59, %v6446_v59  ;;  %v3691_v40 = vpop.f32.mrb[195].mxu0  ;;  %v4715_v27 = vpop.f32.mrb[195].mxu1 }
 0x29d   : > { %v5162_v41 = vmul.f32 %v14600_v33, %v3672_v36  ;;  %v5418_v42 = vmul.f32 %v14600_v33, %v4696_v37  ;;  %8753 = vst.msk [vmem:[%s12797_s29 + $0x2ec] sm:$0xf] %vm8565_vm3, %v10840_v31  ;;  %9009 = vst.msk [vmem:[%s12797_s29 + $0x6ec] sm:$0xf] %vm8565_vm3, %v11096_v32  ;;  %v5683_v44 = vadd.f32 %v14269_v57, %v5164_v34 }
 0x29e   : > { %v5939_v45 = vadd.f32 %v14269_v57, %v5420_v35  ;;  %v5165_v46 = vmul.f32 %v14600_v33, %v11630_v11  ;;  %v5421_v47 = vmul.f32 %v14600_v33, %v11886_v43  ;;  %8751 = vst.msk [vmem:[%s12797_s29 + $0x2e4] sm:$0xf] %vm8565_vm3, %v10838_v3  ;;  %9007 = vst.msk [vmem:[%s12797_s29 + $0x6e4] sm:$0xf] %vm8565_vm3, %v11094_v38 }
 0x29f   : > { %v5681_v51 = vadd.f32 %v14625_v50, %v5162_v41  ;;  %v5937_v52 = vadd.f32 %v14625_v50, %v5418_v42  ;;  %v5163_v57 = vmul.f32 %v14600_v33, %v3675_v48  ;;  %v5419_v53 = vmul.f32 %v14600_v33, %v4699_v49  ;;  %v11637_v48 = vpop.f32.mrb[196].mxu0  ;;  %v11893_v49 = vpop.f32.mrb[196].mxu1 }
 0x2a0   : > { %v6195_v58 = vmax.f32 %v5683_v44, 0.0  ;;  %v6451_v60 = vmax.f32 %v5939_v45, 0.0  ;;  %v5684_v61 = vadd.f32 %v14625_v50, %v5165_v46  ;;  %v5940_v55 = vadd.f32 %v14625_v50, %v5421_v47 }
 0x2a1   : > { %v6193_v23 = vmax.f32 %v5681_v51, 0.0  ;;  %v6449_v62 = vmax.f32 %v5937_v52, 0.0  ;;  %v5682_v63 = vadd.f32 %v14625_v50, %v5163_v57  ;;  %v5938_v0 = vadd.f32 %v14625_v50, %v5419_v53 }
 0x2a2   : > { %v10843_v1 = vpack.c.bf16 %v6195_v58, %v6195_v58  ;;  %v11099_v2 = vpack.c.bf16 %v6451_v60, %v6451_v60  ;;  %v6196_v4 = vmax.f32 %v5684_v61, 0.0  ;;  %v6452_v5 = vmax.f32 %v5940_v55, 0.0  ;;  %v3704_v58 = vpop.f32.mrb[197].mxu0  ;;  %v4728_v60 = vpop.f32.mrb[197].mxu1 }
 0x2a3   : > { %v10841_v56 = vpack.c.bf16 %v6193_v23, %v6193_v23  ;;  %v11097_v6 = vpack.c.bf16 %v6449_v62, %v6449_v62  ;;  %v6194_v7 = vmax.f32 %v5682_v63, 0.0  ;;  %v6450_v8 = vmax.f32 %v5938_v0, 0.0  ;;  %v11638_v63 = vpop.f32.mrb[198].mxu0  ;;  %v11894_v0 = vpop.f32.mrb[198].mxu1 }
 0x2a4   : > { %8756 = vst.msk [vmem:[%s12797_s29 + $0x2f8] sm:$0xf] %vm8565_vm3, %v10843_v1  ;;  %9012 = vst.msk [vmem:[%s12797_s29 + $0x6f8] sm:$0xf] %vm8565_vm3, %v11099_v2  ;;  %v10844_v39 = vpack.c.bf16 %v6196_v4, %v6196_v4  ;;  %v11100_v12 = vpack.c.bf16 %v6452_v5, %v6452_v5  ;;  %v5168_v13 = vmul.f32 %v14600_v33, %v11633_v9 }
 0x2a5   : > { %v5424_v14 = vmul.f32 %v14600_v33, %v11889_v10  ;;  %8754 = vst.msk [vmem:[%s12797_s29 + $0x2f0] sm:$0xf] %vm8565_vm3, %v10841_v56  ;;  %9010 = vst.msk [vmem:[%s12797_s29 + $0x6f0] sm:$0xf] %vm8565_vm3, %v11097_v6  ;;  %v10842_v17 = vpack.c.bf16 %v6194_v7, %v6194_v7  ;;  %v11098_v18 = vpack.c.bf16 %v6450_v8, %v6450_v8  ;;  %v3707_v56 = vpop.f32.mrb[199].mxu0  ;;  %v4731_v6 = vpop.f32.mrb[199].mxu1 }
 0x2a6   : > { %v5166_v19 = vmul.f32 %v14600_v33, %v3688_v15  ;;  %v5422_v20 = vmul.f32 %v14600_v33, %v4712_v16  ;;  %8757 = vst.msk [vmem:[%s12797_s29 + $0x2fc] sm:$0xf] %vm8565_vm3, %v10844_v39  ;;  %9013 = vst.msk [vmem:[%s12797_s29 + $0x6fc] sm:$0xf] %vm8565_vm3, %v11100_v12  ;;  %v5687_v24 = vadd.f32 %v14625_v50, %v5168_v13 }
 0x2a7   : > { %v5943_v25 = vadd.f32 %v14625_v50, %v5424_v14  ;;  %v5169_v54 = vmul.f32 %v14600_v33, %v11634_v21  ;;  %v5425_v26 = vmul.f32 %v14600_v33, %v11890_v22  ;;  %8755 = vst.msk [vmem:[%s12797_s29 + $0x2f4] sm:$0xf] %vm8565_vm3, %v10842_v17  ;;  %9011 = vst.msk [vmem:[%s12797_s29 + $0x6f4] sm:$0xf] %vm8565_vm3, %v11098_v18 }
 0x2a8   : > { %v5685_v28 = vadd.f32 %v14625_v50, %v5166_v19  ;;  %v5941_v59 = vadd.f32 %v14625_v50, %v5422_v20  ;;  %v5167_v29 = vmul.f32 %v14600_v33, %v3691_v40  ;;  %v5423_v30 = vmul.f32 %v14600_v33, %v4715_v27  ;;  %v11641_v40 = vpop.f32.mrb[200].mxu0  ;;  %v11897_v27 = vpop.f32.mrb[200].mxu1 }
 0x2a9   : > { %v6199_v31 = vmax.f32 %v5687_v24, 0.0  ;;  %v6455_v32 = vmax.f32 %v5943_v25, 0.0  ;;  %v5688_v34 = vadd.f32 %v14625_v50, %v5169_v54  ;;  %v5944_v35 = vadd.f32 %v14625_v50, %v5425_v26 }
 0x2aa   : > { %v6197_v36 = vmax.f32 %v5685_v28, 0.0  ;;  %v6453_v37 = vmax.f32 %v5941_v59, 0.0  ;;  %v5686_v3 = vadd.f32 %v14625_v50, %v5167_v29  ;;  %v5942_v38 = vadd.f32 %v14625_v50, %v5423_v30 }
 0x2ab   : > { %v10847_v41 = vpack.c.bf16 %v6199_v31, %v6199_v31  ;;  %v11103_v42 = vpack.c.bf16 %v6455_v32, %v6455_v32  ;;  %v6200_v11 = vmax.f32 %v5688_v34, 0.0  ;;  %v6456_v43 = vmax.f32 %v5944_v35, 0.0  ;;  %v3720_v31 = vpop.f32.mrb[201].mxu0  ;;  %v4744_v32 = vpop.f32.mrb[201].mxu1 }
 0x2ac   : > { %v10845_v44 = vpack.c.bf16 %v6197_v36, %v6197_v36  ;;  %v11101_v45 = vpack.c.bf16 %v6453_v37, %v6453_v37  ;;  %v6198_v46 = vmax.f32 %v5686_v3, 0.0  ;;  %v6454_v47 = vmax.f32 %v5942_v38, 0.0  ;;  %v11642_v3 = vpop.f32.mrb[202].mxu0  ;;  %v11898_v38 = vpop.f32.mrb[202].mxu1 }
 0x2ad   : > { %8760 = vst.msk [vmem:[%s12797_s29 + $0x308] sm:$0xf] %vm8565_vm3, %v10847_v41  ;;  %9016 = vst.msk [vmem:[%s12797_s29 + $0x708] sm:$0xf] %vm8565_vm3, %v11103_v42  ;;  %v10848_v51 = vpack.c.bf16 %v6200_v11, %v6200_v11  ;;  %v11104_v52 = vpack.c.bf16 %v6456_v43, %v6456_v43  ;;  %v5172_v57 = vmul.f32 %v14600_v33, %v11637_v48 }
 0x2ae   : > { %v5428_v53 = vmul.f32 %v14600_v33, %v11893_v49  ;;  %8758 = vst.msk [vmem:[%s12797_s29 + $0x300] sm:$0xf] %vm8565_vm3, %v10845_v44  ;;  %9014 = vst.msk [vmem:[%s12797_s29 + $0x700] sm:$0xf] %vm8565_vm3, %v11101_v45  ;;  %v10846_v61 = vpack.c.bf16 %v6198_v46, %v6198_v46  ;;  %v11102_v55 = vpack.c.bf16 %v6454_v47, %v6454_v47  ;;  %v3723_v44 = vpop.f32.mrb[203].mxu0  ;;  %v4747_v45 = vpop.f32.mrb[203].mxu1 }
 0x2af   : > { %v5170_v23 = vmul.f32 %v14600_v33, %v3704_v58  ;;  %v5426_v62 = vmul.f32 %v14600_v33, %v4728_v60  ;;  %8761 = vst.msk [vmem:[%s12797_s29 + $0x30c] sm:$0xf] %vm8565_vm3, %v10848_v51  ;;  %9017 = vst.msk [vmem:[%s12797_s29 + $0x70c] sm:$0xf] %vm8565_vm3, %v11104_v52  ;;  %v5691_v1 = vadd.f32 %v14625_v50, %v5172_v57 }
 0x2b0   : > { %v5947_v2 = vadd.f32 %v14625_v50, %v5428_v53  ;;  %v5173_v4 = vmul.f32 %v14600_v33, %v11638_v63  ;;  %v5429_v5 = vmul.f32 %v14600_v33, %v11894_v0  ;;  %8759 = vst.msk [vmem:[%s12797_s29 + $0x304] sm:$0xf] %vm8565_vm3, %v10846_v61  ;;  %9015 = vst.msk [vmem:[%s12797_s29 + $0x704] sm:$0xf] %vm8565_vm3, %v11102_v55 }
 0x2b1   : > { %v5689_v7 = vadd.f32 %v14625_v50, %v5170_v23  ;;  %v5945_v8 = vadd.f32 %v14625_v50, %v5426_v62  ;;  %v5171_v9 = vmul.f32 %v14600_v33, %v3707_v56  ;;  %v5427_v10 = vmul.f32 %v14600_v33, %v4731_v6  ;;  %v11645_v56 = vpop.f32.mrb[204].mxu0  ;;  %v11901_v6 = vpop.f32.mrb[204].mxu1 }
 0x2b2   : > { %v6203_v39 = vmax.f32 %v5691_v1, 0.0  ;;  %v6459_v12 = vmax.f32 %v5947_v2, 0.0  ;;  %v5692_v13 = vadd.f32 %v14625_v50, %v5173_v4  ;;  %v5948_v14 = vadd.f32 %v14625_v50, %v5429_v5 }
 0x2b3   : > { %v6201_v15 = vmax.f32 %v5689_v7, 0.0  ;;  %v6457_v16 = vmax.f32 %v5945_v8, 0.0  ;;  %v5690_v17 = vadd.f32 %v14625_v50, %v5171_v9  ;;  %v5946_v18 = vadd.f32 %v14625_v50, %v5427_v10 }
 0x2b4   : > { %v10851_v19 = vpack.c.bf16 %v6203_v39, %v6203_v39  ;;  %v11107_v20 = vpack.c.bf16 %v6459_v12, %v6459_v12  ;;  %v6204_v21 = vmax.f32 %v5692_v13, 0.0  ;;  %v6460_v22 = vmax.f32 %v5948_v14, 0.0  ;;  %v3736_v39 = vpop.f32.mrb[205].mxu0  ;;  %v4760_v12 = vpop.f32.mrb[205].mxu1 }
 0x2b5   : > { %v10849_v24 = vpack.c.bf16 %v6201_v15, %v6201_v15  ;;  %v11105_v25 = vpack.c.bf16 %v6457_v16, %v6457_v16  ;;  %v6202_v54 = vmax.f32 %v5690_v17, 0.0  ;;  %v6458_v26 = vmax.f32 %v5946_v18, 0.0  ;;  %v11646_v17 = vpop.f32.mrb[206].mxu0  ;;  %v11902_v18 = vpop.f32.mrb[206].mxu1 }
 0x2b6   : > { %8764 = vst.msk [vmem:[%s12797_s29 + $0x318] sm:$0xf] %vm8565_vm3, %v10851_v19  ;;  %9020 = vst.msk [vmem:[%s12797_s29 + $0x718] sm:$0xf] %vm8565_vm3, %v11107_v20  ;;  %v10852_v28 = vpack.c.bf16 %v6204_v21, %v6204_v21  ;;  %v11108_v59 = vpack.c.bf16 %v6460_v22, %v6460_v22  ;;  %v5176_v29 = vmul.f32 %v14600_v33, %v11641_v40 }
 0x2b7   : > { %v5432_v30 = vmul.f32 %v14600_v33, %v11897_v27  ;;  %8762 = vst.msk [vmem:[%s12797_s29 + $0x310] sm:$0xf] %vm8565_vm3, %v10849_v24  ;;  %9018 = vst.msk [vmem:[%s12797_s29 + $0x710] sm:$0xf] %vm8565_vm3, %v11105_v25  ;;  %v10850_v34 = vpack.c.bf16 %v6202_v54, %v6202_v54  ;;  %v11106_v35 = vpack.c.bf16 %v6458_v26, %v6458_v26  ;;  %v3739_v24 = vpop.f32.mrb[207].mxu0  ;;  %v4763_v25 = vpop.f32.mrb[207].mxu1 }
 0x2b8   : > { %v5174_v36 = vmul.f32 %v14600_v33, %v3720_v31  ;;  %v5430_v37 = vmul.f32 %v14600_v33, %v4744_v32  ;;  %8765 = vst.msk [vmem:[%s12797_s29 + $0x31c] sm:$0xf] %vm8565_vm3, %v10852_v28  ;;  %9021 = vst.msk [vmem:[%s12797_s29 + $0x71c] sm:$0xf] %vm8565_vm3, %v11108_v59  ;;  %v5695_v41 = vadd.f32 %v14625_v50, %v5176_v29 }
 0x2b9   : > { %v5951_v42 = vadd.f32 %v14625_v50, %v5432_v30  ;;  %v5177_v11 = vmul.f32 %v14600_v33, %v11642_v3  ;;  %v5433_v43 = vmul.f32 %v14600_v33, %v11898_v38  ;;  %8763 = vst.msk [vmem:[%s12797_s29 + $0x314] sm:$0xf] %vm8565_vm3, %v10850_v34  ;;  %9019 = vst.msk [vmem:[%s12797_s29 + $0x714] sm:$0xf] %vm8565_vm3, %v11106_v35 }
 0x2ba   : > { %v5693_v46 = vadd.f32 %v14625_v50, %v5174_v36  ;;  %v5949_v47 = vadd.f32 %v14625_v50, %v5430_v37  ;;  %v5175_v48 = vmul.f32 %v14600_v33, %v3723_v44  ;;  %v5431_v49 = vmul.f32 %v14600_v33, %v4747_v45  ;;  %v11649_v44 = vpop.f32.mrb[208].mxu0  ;;  %v11905_v45 = vpop.f32.mrb[208].mxu1 }
 0x2bb   : > { %v6207_v51 = vmax.f32 %v5695_v41, 0.0  ;;  %v6463_v52 = vmax.f32 %v5951_v42, 0.0  ;;  %v5696_v57 = vadd.f32 %v14625_v50, %v5177_v11  ;;  %v5952_v53 = vadd.f32 %v14625_v50, %v5433_v43 }
 0x2bc   : > { %v6205_v58 = vmax.f32 %v5693_v46, 0.0  ;;  %v6461_v60 = vmax.f32 %v5949_v47, 0.0  ;;  %v5694_v61 = vadd.f32 %v14625_v50, %v5175_v48  ;;  %v5950_v55 = vadd.f32 %v14625_v50, %v5431_v49 }
 0x2bd   : > { %v10855_v23 = vpack.c.bf16 %v6207_v51, %v6207_v51  ;;  %v11111_v62 = vpack.c.bf16 %v6463_v52, %v6463_v52  ;;  %v6208_v63 = vmax.f32 %v5696_v57, 0.0  ;;  %v6464_v0 = vmax.f32 %v5952_v53, 0.0  ;;  %v3752_v51 = vpop.f32.mrb[209].mxu0  ;;  %v4776_v52 = vpop.f32.mrb[209].mxu1 }
 0x2be   : > { %v10853_v1 = vpack.c.bf16 %v6205_v58, %v6205_v58  ;;  %v11109_v2 = vpack.c.bf16 %v6461_v60, %v6461_v60  ;;  %v6206_v4 = vmax.f32 %v5694_v61, 0.0  ;;  %v6462_v5 = vmax.f32 %v5950_v55, 0.0  ;;  %v11650_v61 = vpop.f32.mrb[210].mxu0  ;;  %v11906_v55 = vpop.f32.mrb[210].mxu1 }
 0x2bf   : > { %8768 = vst.msk [vmem:[%s12797_s29 + $0x328] sm:$0xf] %vm8565_vm3, %v10855_v23  ;;  %9024 = vst.msk [vmem:[%s12797_s29 + $0x728] sm:$0xf] %vm8565_vm3, %v11111_v62  ;;  %v10856_v7 = vpack.c.bf16 %v6208_v63, %v6208_v63  ;;  %v11112_v8 = vpack.c.bf16 %v6464_v0, %v6464_v0  ;;  %v5180_v9 = vmul.f32 %v14600_v33, %v11645_v56 }
 0x2c0   : > { %v5436_v10 = vmul.f32 %v14600_v33, %v11901_v6  ;;  %8766 = vst.msk [vmem:[%s12797_s29 + $0x320] sm:$0xf] %vm8565_vm3, %v10853_v1  ;;  %9022 = vst.msk [vmem:[%s12797_s29 + $0x720] sm:$0xf] %vm8565_vm3, %v11109_v2  ;;  %v10854_v13 = vpack.c.bf16 %v6206_v4, %v6206_v4  ;;  %v11110_v14 = vpack.c.bf16 %v6462_v5, %v6462_v5  ;;  %v3755_v1 = vpop.f32.mrb[211].mxu0  ;;  %v4779_v2 = vpop.f32.mrb[211].mxu1 }
 0x2c1   : > { %v5178_v15 = vmul.f32 %v14600_v33, %v3736_v39  ;;  %v5434_v16 = vmul.f32 %v14600_v33, %v4760_v12  ;;  %8769 = vst.msk [vmem:[%s12797_s29 + $0x32c] sm:$0xf] %vm8565_vm3, %v10856_v7  ;;  %9025 = vst.msk [vmem:[%s12797_s29 + $0x72c] sm:$0xf] %vm8565_vm3, %v11112_v8  ;;  %v5699_v19 = vadd.f32 %v14625_v50, %v5180_v9 }
 0x2c2   : > { %v5955_v20 = vadd.f32 %v14625_v50, %v5436_v10  ;;  %v5181_v21 = vmul.f32 %v14600_v33, %v11646_v17  ;;  %v5437_v22 = vmul.f32 %v14600_v33, %v11902_v18  ;;  %8767 = vst.msk [vmem:[%s12797_s29 + $0x324] sm:$0xf] %vm8565_vm3, %v10854_v13  ;;  %9023 = vst.msk [vmem:[%s12797_s29 + $0x724] sm:$0xf] %vm8565_vm3, %v11110_v14 }
 0x2c3   : > { %v5697_v54 = vadd.f32 %v14625_v50, %v5178_v15  ;;  %v5953_v26 = vadd.f32 %v14625_v50, %v5434_v16  ;;  %v5179_v40 = vmul.f32 %v14600_v33, %v3739_v24  ;;  %v5435_v27 = vmul.f32 %v14600_v33, %v4763_v25  ;;  %v11653_v24 = vpop.f32.mrb[212].mxu0  ;;  %v11909_v25 = vpop.f32.mrb[212].mxu1 }
 0x2c4   : > { %v6211_v28 = vmax.f32 %v5699_v19, 0.0  ;;  %v6467_v59 = vmax.f32 %v5955_v20, 0.0  ;;  %v5700_v29 = vadd.f32 %v14625_v50, %v5181_v21  ;;  %v5956_v30 = vadd.f32 %v14625_v50, %v5437_v22 }
 0x2c5   : > { %v6209_v31 = vmax.f32 %v5697_v54, 0.0  ;;  %v6465_v32 = vmax.f32 %v5953_v26, 0.0  ;;  %v5698_v34 = vadd.f32 %v14625_v50, %v5179_v40  ;;  %v5954_v35 = vadd.f32 %v14625_v50, %v5435_v27 }
 0x2c6   : > { %v10859_v36 = vpack.c.bf16 %v6211_v28, %v6211_v28  ;;  %v11115_v37 = vpack.c.bf16 %v6467_v59, %v6467_v59  ;;  %v6212_v3 = vmax.f32 %v5700_v29, 0.0  ;;  %v6468_v38 = vmax.f32 %v5956_v30, 0.0  ;;  %v3768_v28 = vpop.f32.mrb[213].mxu0  ;;  %v4792_v59 = vpop.f32.mrb[213].mxu1 }
 0x2c7   : > { %v10857_v41 = vpack.c.bf16 %v6209_v31, %v6209_v31  ;;  %v11113_v42 = vpack.c.bf16 %v6465_v32, %v6465_v32  ;;  %v6210_v11 = vmax.f32 %v5698_v34, 0.0  ;;  %v6466_v43 = vmax.f32 %v5954_v35, 0.0  ;;  %v11654_v34 = vpop.f32.mrb[214].mxu0  ;;  %v11910_v35 = vpop.f32.mrb[214].mxu1 }
 0x2c8   : > { %8772 = vst.msk [vmem:[%s12797_s29 + $0x338] sm:$0xf] %vm8565_vm3, %v10859_v36  ;;  %9028 = vst.msk [vmem:[%s12797_s29 + $0x738] sm:$0xf] %vm8565_vm3, %v11115_v37  ;;  %v10860_v46 = vpack.c.bf16 %v6212_v3, %v6212_v3  ;;  %v11116_v47 = vpack.c.bf16 %v6468_v38, %v6468_v38  ;;  %v5184_v48 = vmul.f32 %v14600_v33, %v11649_v44 }
 0x2c9   : > { %v5440_v49 = vmul.f32 %v14600_v33, %v11905_v45  ;;  %8770 = vst.msk [vmem:[%s12797_s29 + $0x330] sm:$0xf] %vm8565_vm3, %v10857_v41  ;;  %9026 = vst.msk [vmem:[%s12797_s29 + $0x730] sm:$0xf] %vm8565_vm3, %v11113_v42  ;;  %v10858_v57 = vpack.c.bf16 %v6210_v11, %v6210_v11  ;;  %v11114_v53 = vpack.c.bf16 %v6466_v43, %v6466_v43  ;;  %v3771_v41 = vpop.f32.mrb[215].mxu0  ;;  %v4795_v42 = vpop.f32.mrb[215].mxu1 }
 0x2ca   : > { %v5182_v58 = vmul.f32 %v14600_v33, %v3752_v51  ;;  %v5438_v60 = vmul.f32 %v14600_v33, %v4776_v52  ;;  %8773 = vst.msk [vmem:[%s12797_s29 + $0x33c] sm:$0xf] %vm8565_vm3, %v10860_v46  ;;  %9029 = vst.msk [vmem:[%s12797_s29 + $0x73c] sm:$0xf] %vm8565_vm3, %v11116_v47  ;;  %v5703_v23 = vadd.f32 %v14625_v50, %v5184_v48 }
 0x2cb   : > { %v5959_v62 = vadd.f32 %v14625_v50, %v5440_v49  ;;  %v5185_v63 = vmul.f32 %v14600_v33, %v11650_v61  ;;  %v5441_v0 = vmul.f32 %v14600_v33, %v11906_v55  ;;  %8771 = vst.msk [vmem:[%s12797_s29 + $0x334] sm:$0xf] %vm8565_vm3, %v10858_v57  ;;  %9027 = vst.msk [vmem:[%s12797_s29 + $0x734] sm:$0xf] %vm8565_vm3, %v11114_v53 }
 0x2cc   : > { %v5701_v4 = vadd.f32 %v14625_v50, %v5182_v58  ;;  %v5957_v5 = vadd.f32 %v14625_v50, %v5438_v60  ;;  %v5183_v56 = vmul.f32 %v14600_v33, %v3755_v1  ;;  %v5439_v6 = vmul.f32 %v14600_v33, %v4779_v2  ;;  %v11657_v1 = vpop.f32.mrb[216].mxu0  ;;  %v11913_v2 = vpop.f32.mrb[216].mxu1 }
 0x2cd   : > { %v6215_v7 = vmax.f32 %v5703_v23, 0.0  ;;  %v6471_v8 = vmax.f32 %v5959_v62, 0.0  ;;  %v5704_v9 = vadd.f32 %v14625_v50, %v5185_v63  ;;  %v5960_v10 = vadd.f32 %v14625_v50, %v5441_v0 }
 0x2ce   : > { %v6213_v39 = vmax.f32 %v5701_v4, 0.0  ;;  %v6469_v12 = vmax.f32 %v5957_v5, 0.0  ;;  %v5702_v13 = vadd.f32 %v14625_v50, %v5183_v56  ;;  %v5958_v14 = vadd.f32 %v14625_v50, %v5439_v6 }
 0x2cf   : > { %v10863_v15 = vpack.c.bf16 %v6215_v7, %v6215_v7  ;;  %v11119_v16 = vpack.c.bf16 %v6471_v8, %v6471_v8  ;;  %v6216_v17 = vmax.f32 %v5704_v9, 0.0  ;;  %v6472_v18 = vmax.f32 %v5960_v10, 0.0  ;;  %v3784_v7 = vpop.f32.mrb[217].mxu0  ;;  %v4808_v8 = vpop.f32.mrb[217].mxu1 }
 0x2d0   : > { %v10861_v19 = vpack.c.bf16 %v6213_v39, %v6213_v39  ;;  %v11117_v20 = vpack.c.bf16 %v6469_v12, %v6469_v12  ;;  %v6214_v21 = vmax.f32 %v5702_v13, 0.0  ;;  %v6470_v22 = vmax.f32 %v5958_v14, 0.0  ;;  %v11658_v13 = vpop.f32.mrb[218].mxu0  ;;  %v11914_v14 = vpop.f32.mrb[218].mxu1 }
 0x2d1   : > { %8776 = vst.msk [vmem:[%s12797_s29 + $0x348] sm:$0xf] %vm8565_vm3, %v10863_v15  ;;  %9032 = vst.msk [vmem:[%s12797_s29 + $0x748] sm:$0xf] %vm8565_vm3, %v11119_v16  ;;  %v10864_v54 = vpack.c.bf16 %v6216_v17, %v6216_v17  ;;  %v11120_v26 = vpack.c.bf16 %v6472_v18, %v6472_v18  ;;  %v5188_v40 = vmul.f32 %v14600_v33, %v11653_v24 }
 0x2d2   : > { %v5444_v27 = vmul.f32 %v14600_v33, %v11909_v25  ;;  %8774 = vst.msk [vmem:[%s12797_s29 + $0x340] sm:$0xf] %vm8565_vm3, %v10861_v19  ;;  %9030 = vst.msk [vmem:[%s12797_s29 + $0x740] sm:$0xf] %vm8565_vm3, %v11117_v20  ;;  %v10862_v29 = vpack.c.bf16 %v6214_v21, %v6214_v21  ;;  %v11118_v30 = vpack.c.bf16 %v6470_v22, %v6470_v22  ;;  %v3787_v19 = vpop.f32.mrb[219].mxu0  ;;  %v4811_v20 = vpop.f32.mrb[219].mxu1 }
 0x2d3   : > { %v5186_v31 = vmul.f32 %v14600_v33, %v3768_v28  ;;  %v5442_v32 = vmul.f32 %v14600_v33, %v4792_v59  ;;  %8777 = vst.msk [vmem:[%s12797_s29 + $0x34c] sm:$0xf] %vm8565_vm3, %v10864_v54  ;;  %9033 = vst.msk [vmem:[%s12797_s29 + $0x74c] sm:$0xf] %vm8565_vm3, %v11120_v26  ;;  %v5707_v36 = vadd.f32 %v14625_v50, %v5188_v40 }
 0x2d4   : > { %v5963_v37 = vadd.f32 %v14625_v50, %v5444_v27  ;;  %v5189_v3 = vmul.f32 %v14600_v33, %v11654_v34  ;;  %v5445_v38 = vmul.f32 %v14600_v33, %v11910_v35  ;;  %8775 = vst.msk [vmem:[%s12797_s29 + $0x344] sm:$0xf] %vm8565_vm3, %v10862_v29  ;;  %9031 = vst.msk [vmem:[%s12797_s29 + $0x744] sm:$0xf] %vm8565_vm3, %v11118_v30 }
 0x2d5   : > { %v5705_v11 = vadd.f32 %v14625_v50, %v5186_v31  ;;  %v5961_v43 = vadd.f32 %v14625_v50, %v5442_v32  ;;  %v5187_v44 = vmul.f32 %v14600_v33, %v3771_v41  ;;  %v5443_v45 = vmul.f32 %v14600_v33, %v4795_v42  ;;  %v11661_v41 = vpop.f32.mrb[220].mxu0  ;;  %v11917_v42 = vpop.f32.mrb[220].mxu1 }
 0x2d6   : > { %v6219_v46 = vmax.f32 %v5707_v36, 0.0  ;;  %v6475_v47 = vmax.f32 %v5963_v37, 0.0  ;;  %v5708_v48 = vadd.f32 %v14625_v50, %v5189_v3  ;;  %v5964_v49 = vadd.f32 %v14625_v50, %v5445_v38 }
 0x2d7   : > { %v6217_v51 = vmax.f32 %v5705_v11, 0.0  ;;  %v6473_v52 = vmax.f32 %v5961_v43, 0.0  ;;  %v5706_v57 = vadd.f32 %v14625_v50, %v5187_v44  ;;  %v5962_v53 = vadd.f32 %v14625_v50, %v5443_v45 }
 0x2d8   : > { %v10867_v58 = vpack.c.bf16 %v6219_v46, %v6219_v46  ;;  %v11123_v60 = vpack.c.bf16 %v6475_v47, %v6475_v47  ;;  %v6220_v61 = vmax.f32 %v5708_v48, 0.0  ;;  %v6476_v55 = vmax.f32 %v5964_v49, 0.0  ;;  %v3800_v46 = vpop.f32.mrb[221].mxu0  ;;  %v4824_v47 = vpop.f32.mrb[221].mxu1 }
 0x2d9   : > { %v10865_v23 = vpack.c.bf16 %v6217_v51, %v6217_v51  ;;  %v11121_v62 = vpack.c.bf16 %v6473_v52, %v6473_v52  ;;  %v6218_v63 = vmax.f32 %v5706_v57, 0.0  ;;  %v6474_v0 = vmax.f32 %v5962_v53, 0.0  ;;  %v11662_v57 = vpop.f32.mrb[222].mxu0  ;;  %v11918_v53 = vpop.f32.mrb[222].mxu1 }
 0x2da   : > { %8780 = vst.msk [vmem:[%s12797_s29 + $0x358] sm:$0xf] %vm8565_vm3, %v10867_v58  ;;  %9036 = vst.msk [vmem:[%s12797_s29 + $0x758] sm:$0xf] %vm8565_vm3, %v11123_v60  ;;  %v10868_v4 = vpack.c.bf16 %v6220_v61, %v6220_v61  ;;  %v11124_v5 = vpack.c.bf16 %v6476_v55, %v6476_v55  ;;  %v5192_v56 = vmul.f32 %v14600_v33, %v11657_v1 }
 0x2db   : > { %v5448_v6 = vmul.f32 %v14600_v33, %v11913_v2  ;;  %8778 = vst.msk [vmem:[%s12797_s29 + $0x350] sm:$0xf] %vm8565_vm3, %v10865_v23  ;;  %9034 = vst.msk [vmem:[%s12797_s29 + $0x750] sm:$0xf] %vm8565_vm3, %v11121_v62  ;;  %v10866_v9 = vpack.c.bf16 %v6218_v63, %v6218_v63  ;;  %v11122_v10 = vpack.c.bf16 %v6474_v0, %v6474_v0  ;;  %v3803_v23 = vpop.f32.mrb[223].mxu0  ;;  %v4827_v62 = vpop.f32.mrb[223].mxu1 }
 0x2dc   : > { %v5190_v39 = vmul.f32 %v14600_v33, %v3784_v7  ;;  %v5446_v12 = vmul.f32 %v14600_v33, %v4808_v8  ;;  %8781 = vst.msk [vmem:[%s12797_s29 + $0x35c] sm:$0xf] %vm8565_vm3, %v10868_v4  ;;  %9037 = vst.msk [vmem:[%s12797_s29 + $0x75c] sm:$0xf] %vm8565_vm3, %v11124_v5  ;;  %v5711_v15 = vadd.f32 %v14625_v50, %v5192_v56 }
 0x2dd   : > { %v5967_v16 = vadd.f32 %v14625_v50, %v5448_v6  ;;  %v5193_v17 = vmul.f32 %v14600_v33, %v11658_v13  ;;  %v5449_v18 = vmul.f32 %v14600_v33, %v11914_v14  ;;  %8779 = vst.msk [vmem:[%s12797_s29 + $0x354] sm:$0xf] %vm8565_vm3, %v10866_v9  ;;  %9035 = vst.msk [vmem:[%s12797_s29 + $0x754] sm:$0xf] %vm8565_vm3, %v11122_v10 }
 0x2de   : > { %v5709_v21 = vadd.f32 %v14625_v50, %v5190_v39  ;;  %v5965_v22 = vadd.f32 %v14625_v50, %v5446_v12  ;;  %v5191_v24 = vmul.f32 %v14600_v33, %v3787_v19  ;;  %v5447_v25 = vmul.f32 %v14600_v33, %v4811_v20  ;;  %v11665_v19 = vpop.f32.mrb[224].mxu0  ;;  %v11921_v20 = vpop.f32.mrb[224].mxu1 }
 0x2df   : > { %v6223_v54 = vmax.f32 %v5711_v15, 0.0  ;;  %v6479_v26 = vmax.f32 %v5967_v16, 0.0  ;;  %v5712_v40 = vadd.f32 %v14625_v50, %v5193_v17  ;;  %v5968_v27 = vadd.f32 %v14625_v50, %v5449_v18 }
 0x2e0   : > { %v6221_v28 = vmax.f32 %v5709_v21, 0.0  ;;  %v6477_v59 = vmax.f32 %v5965_v22, 0.0  ;;  %v5710_v29 = vadd.f32 %v14625_v50, %v5191_v24  ;;  %v5966_v30 = vadd.f32 %v14625_v50, %v5447_v25 }
 0x2e1   : > { %v10871_v31 = vpack.c.bf16 %v6223_v54, %v6223_v54  ;;  %v11127_v32 = vpack.c.bf16 %v6479_v26, %v6479_v26  ;;  %v6224_v34 = vmax.f32 %v5712_v40, 0.0  ;;  %v6480_v35 = vmax.f32 %v5968_v27, 0.0  ;;  %v3816_v54 = vpop.f32.mrb[225].mxu0  ;;  %v4840_v26 = vpop.f32.mrb[225].mxu1 }
 0x2e2   : > { %v10869_v36 = vpack.c.bf16 %v6221_v28, %v6221_v28  ;;  %v11125_v37 = vpack.c.bf16 %v6477_v59, %v6477_v59  ;;  %v6222_v3 = vmax.f32 %v5710_v29, 0.0  ;;  %v6478_v38 = vmax.f32 %v5966_v30, 0.0  ;;  %v11666_v29 = vpop.f32.mrb[226].mxu0  ;;  %v11922_v30 = vpop.f32.mrb[226].mxu1 }
 0x2e3   : > { %8784 = vst.msk [vmem:[%s12797_s29 + $0x368] sm:$0xf] %vm8565_vm3, %v10871_v31  ;;  %9040 = vst.msk [vmem:[%s12797_s29 + $0x768] sm:$0xf] %vm8565_vm3, %v11127_v32  ;;  %v10872_v11 = vpack.c.bf16 %v6224_v34, %v6224_v34  ;;  %v11128_v43 = vpack.c.bf16 %v6480_v35, %v6480_v35  ;;  %v5196_v44 = vmul.f32 %v14600_v33, %v11661_v41 }
 0x2e4   : > { %v5452_v45 = vmul.f32 %v14600_v33, %v11917_v42  ;;  %8782 = vst.msk [vmem:[%s12797_s29 + $0x360] sm:$0xf] %vm8565_vm3, %v10869_v36  ;;  %9038 = vst.msk [vmem:[%s12797_s29 + $0x760] sm:$0xf] %vm8565_vm3, %v11125_v37  ;;  %v10870_v48 = vpack.c.bf16 %v6222_v3, %v6222_v3  ;;  %v11126_v49 = vpack.c.bf16 %v6478_v38, %v6478_v38  ;;  %v3819_v36 = vpop.f32.mrb[227].mxu0  ;;  %v4843_v37 = vpop.f32.mrb[227].mxu1 }
 0x2e5   : > { %v5194_v51 = vmul.f32 %v14600_v33, %v3800_v46  ;;  %v5450_v52 = vmul.f32 %v14600_v33, %v4824_v47  ;;  %8785 = vst.msk [vmem:[%s12797_s29 + $0x36c] sm:$0xf] %vm8565_vm3, %v10872_v11  ;;  %9041 = vst.msk [vmem:[%s12797_s29 + $0x76c] sm:$0xf] %vm8565_vm3, %v11128_v43  ;;  %v5715_v58 = vadd.f32 %v14625_v50, %v5196_v44 }
 0x2e6   : > { %v5971_v60 = vadd.f32 %v14625_v50, %v5452_v45  ;;  %v5197_v61 = vmul.f32 %v14600_v33, %v11662_v57  ;;  %v5453_v55 = vmul.f32 %v14600_v33, %v11918_v53  ;;  %8783 = vst.msk [vmem:[%s12797_s29 + $0x364] sm:$0xf] %vm8565_vm3, %v10870_v48  ;;  %9039 = vst.msk [vmem:[%s12797_s29 + $0x764] sm:$0xf] %vm8565_vm3, %v11126_v49 }
 0x2e7   : > { %v5713_v63 = vadd.f32 %v14625_v50, %v5194_v51  ;;  %v5969_v0 = vadd.f32 %v14625_v50, %v5450_v52  ;;  %v5195_v1 = vmul.f32 %v14600_v33, %v3803_v23  ;;  %v5451_v2 = vmul.f32 %v14600_v33, %v4827_v62  ;;  %v11669_v23 = vpop.f32.mrb[228].mxu0  ;;  %v11925_v62 = vpop.f32.mrb[228].mxu1 }
 0x2e8   : > { %v6227_v4 = vmax.f32 %v5715_v58, 0.0  ;;  %v6483_v5 = vmax.f32 %v5971_v60, 0.0  ;;  %v5716_v56 = vadd.f32 %v14625_v50, %v5197_v61  ;;  %v5972_v6 = vadd.f32 %v14625_v50, %v5453_v55 }
 0x2e9   : > { %v6225_v7 = vmax.f32 %v5713_v63, 0.0  ;;  %v6481_v8 = vmax.f32 %v5969_v0, 0.0  ;;  %v5714_v9 = vadd.f32 %v14625_v50, %v5195_v1  ;;  %v5970_v10 = vadd.f32 %v14625_v50, %v5451_v2 }
 0x2ea   : > { %v10875_v39 = vpack.c.bf16 %v6227_v4, %v6227_v4  ;;  %v11131_v12 = vpack.c.bf16 %v6483_v5, %v6483_v5  ;;  %v6228_v13 = vmax.f32 %v5716_v56, 0.0  ;;  %v6484_v14 = vmax.f32 %v5972_v6, 0.0  ;;  %v3832_v4 = vpop.f32.mrb[229].mxu0  ;;  %v4856_v5 = vpop.f32.mrb[229].mxu1 }
 0x2eb   : > { %v10873_v15 = vpack.c.bf16 %v6225_v7, %v6225_v7  ;;  %v11129_v16 = vpack.c.bf16 %v6481_v8, %v6481_v8  ;;  %v6226_v17 = vmax.f32 %v5714_v9, 0.0  ;;  %v6482_v18 = vmax.f32 %v5970_v10, 0.0  ;;  %v11670_v9 = vpop.f32.mrb[230].mxu0  ;;  %v11926_v10 = vpop.f32.mrb[230].mxu1 }
 0x2ec   : > { %8788 = vst.msk [vmem:[%s12797_s29 + $0x378] sm:$0xf] %vm8565_vm3, %v10875_v39  ;;  %9044 = vst.msk [vmem:[%s12797_s29 + $0x778] sm:$0xf] %vm8565_vm3, %v11131_v12  ;;  %v10876_v21 = vpack.c.bf16 %v6228_v13, %v6228_v13  ;;  %v11132_v22 = vpack.c.bf16 %v6484_v14, %v6484_v14  ;;  %v5200_v24 = vmul.f32 %v14600_v33, %v11665_v19 }
 0x2ed   : > { %v5456_v25 = vmul.f32 %v14600_v33, %v11921_v20  ;;  %8786 = vst.msk [vmem:[%s12797_s29 + $0x370] sm:$0xf] %vm8565_vm3, %v10873_v15  ;;  %9042 = vst.msk [vmem:[%s12797_s29 + $0x770] sm:$0xf] %vm8565_vm3, %v11129_v16  ;;  %v10874_v40 = vpack.c.bf16 %v6226_v17, %v6226_v17  ;;  %v11130_v27 = vpack.c.bf16 %v6482_v18, %v6482_v18  ;;  %v3835_v15 = vpop.f32.mrb[231].mxu0  ;;  %v4859_v16 = vpop.f32.mrb[231].mxu1 }
 0x2ee   : > { %v5198_v28 = vmul.f32 %v14600_v33, %v3816_v54  ;;  %v5454_v59 = vmul.f32 %v14600_v33, %v4840_v26  ;;  %8789 = vst.msk [vmem:[%s12797_s29 + $0x37c] sm:$0xf] %vm8565_vm3, %v10876_v21  ;;  %9045 = vst.msk [vmem:[%s12797_s29 + $0x77c] sm:$0xf] %vm8565_vm3, %v11132_v22  ;;  %v5719_v31 = vadd.f32 %v14625_v50, %v5200_v24 }
 0x2ef   : > { %v5975_v32 = vadd.f32 %v14625_v50, %v5456_v25  ;;  %v5201_v34 = vmul.f32 %v14600_v33, %v11666_v29  ;;  %v5457_v35 = vmul.f32 %v14600_v33, %v11922_v30  ;;  %8787 = vst.msk [vmem:[%s12797_s29 + $0x374] sm:$0xf] %vm8565_vm3, %v10874_v40  ;;  %9043 = vst.msk [vmem:[%s12797_s29 + $0x774] sm:$0xf] %vm8565_vm3, %v11130_v27 }
 0x2f0   : > { %v5717_v3 = vadd.f32 %v14625_v50, %v5198_v28  ;;  %v5973_v38 = vadd.f32 %v14625_v50, %v5454_v59  ;;  %v5199_v41 = vmul.f32 %v14600_v33, %v3819_v36  ;;  %v5455_v42 = vmul.f32 %v14600_v33, %v4843_v37  ;;  %v11929_v36 = vpop.f32.mrb[232].mxu1 }
 0x2f1   : > { %v6231_v11 = vmax.f32 %v5719_v31, 0.0  ;;  %v6487_v43 = vmax.f32 %v5975_v32, 0.0  ;;  %v5720_v44 = vadd.f32 %v14625_v50, %v5201_v34  ;;  %v5976_v45 = vadd.f32 %v14625_v50, %v5457_v35  ;;  %v11673_v35 = vpop.f32.mrb[232].mxu0 }
 0x2f2   : > { %v6229_v46 = vmax.f32 %v5717_v3, 0.0  ;;  %v6485_v47 = vmax.f32 %v5973_v38, 0.0  ;;  %v5718_v48 = vadd.f32 %v14625_v50, %v5199_v41  ;;  %v5974_v49 = vadd.f32 %v14625_v50, %v5455_v42  ;;  %v14962_v3 = vld [vmem:[%s15379_s2] ss:$0 sm:$0xff]  ;;  %v3848_v42 = vpop.f32.mrb[233].mxu0 }
 0x2f3   : > { %v10879_v51 = vpack.c.bf16 %v6231_v11, %v6231_v11  ;;  %v11135_v52 = vpack.c.bf16 %v6487_v43, %v6487_v43  ;;  %v6232_v57 = vmax.f32 %v5720_v44, 0.0  ;;  %v6488_v53 = vmax.f32 %v5976_v45, 0.0  ;;  %v4872_v11 = vpop.f32.mrb[233].mxu1 }
 0x2f4   : > { %v10877_v58 = vpack.c.bf16 %v6229_v46, %v6229_v46  ;;  %v11133_v60 = vpack.c.bf16 %v6485_v47, %v6485_v47  ;;  %v6230_v61 = vmax.f32 %v5718_v48, 0.0  ;;  %v6486_v55 = vmax.f32 %v5974_v49, 0.0  ;;  %v11674_v47 = vpop.f32.mrb[234].mxu0  ;;  %v11930_v48 = vpop.f32.mrb[234].mxu1  ;;  %v14979_v49 = vld [vmem:[%s15380_s3] ss:$0 sm:$0xff] }
 0x2f5   : > { %8792 = vst.msk [vmem:[%s12797_s29 + $0x388] sm:$0xf] %vm8565_vm3, %v10879_v51  ;;  %9048 = vst.msk [vmem:[%s12797_s29 + $0x788] sm:$0xf] %vm8565_vm3, %v11135_v52  ;;  %v10880_v63 = vpack.c.bf16 %v6232_v57, %v6232_v57  ;;  %v11136_v0 = vpack.c.bf16 %v6488_v53, %v6488_v53  ;;  %v5204_v1 = vmul.f32 %v14600_v33, %v11669_v23 }
 0x2f6   : > { %v5460_v2 = vmul.f32 %v14600_v33, %v11925_v62  ;;  %8790 = vst.msk [vmem:[%s12797_s29 + $0x380] sm:$0xf] %vm8565_vm3, %v10877_v58  ;;  %9046 = vst.msk [vmem:[%s12797_s29 + $0x780] sm:$0xf] %vm8565_vm3, %v11133_v60  ;;  %v10878_v56 = vpack.c.bf16 %v6230_v61, %v6230_v61  ;;  %v11134_v6 = vpack.c.bf16 %v6486_v55, %v6486_v55  ;;  %v3851_v58 = vpop.f32.mrb[235].mxu0  ;;  %v4875_v60 = vpop.f32.mrb[235].mxu1 }
 0x2f7   : > { %v5202_v7 = vmul.f32 %v14600_v33, %v3832_v4  ;;  %v5458_v8 = vmul.f32 %v14600_v33, %v4856_v5  ;;  %8793 = vst.msk [vmem:[%s12797_s29 + $0x38c] sm:$0xf] %vm8565_vm3, %v10880_v63  ;;  %9049 = vst.msk [vmem:[%s12797_s29 + $0x78c] sm:$0xf] %vm8565_vm3, %v11136_v0  ;;  %v5723_v39 = vadd.f32 %v14625_v50, %v5204_v1 }
 0x2f8   : > { %v5979_v12 = vadd.f32 %v14625_v50, %v5460_v2  ;;  %v5205_v13 = vmul.f32 %v14600_v33, %v11670_v9  ;;  %v5461_v14 = vmul.f32 %v14600_v33, %v11926_v10  ;;  %8791 = vst.msk [vmem:[%s12797_s29 + $0x384] sm:$0xf] %vm8565_vm3, %v10878_v56  ;;  %9047 = vst.msk [vmem:[%s12797_s29 + $0x784] sm:$0xf] %vm8565_vm3, %v11134_v6 }
 0x2f9   : > { %v5721_v17 = vadd.f32 %v14625_v50, %v5202_v7  ;;  %v5977_v18 = vadd.f32 %v14625_v50, %v5458_v8  ;;  %v5203_v19 = vmul.f32 %v14600_v33, %v3835_v15  ;;  %v5459_v20 = vmul.f32 %v14600_v33, %v4859_v16  ;;  %v11677_v15 = vpop.f32.mrb[236].mxu0  ;;  %v11933_v16 = vpop.f32.mrb[236].mxu1 }
 0x2fa   : > { %v6235_v21 = vmax.f32 %v5723_v39, 0.0  ;;  %v6491_v22 = vmax.f32 %v5979_v12, 0.0  ;;  %v5724_v24 = vadd.f32 %v14625_v50, %v5205_v13  ;;  %v5980_v25 = vadd.f32 %v14625_v50, %v5461_v14 }
 0x2fb   : > { %v6233_v54 = vmax.f32 %v5721_v17, 0.0  ;;  %v6489_v26 = vmax.f32 %v5977_v18, 0.0  ;;  %v5722_v40 = vadd.f32 %v14625_v50, %v5203_v19  ;;  %v5978_v27 = vadd.f32 %v14625_v50, %v5459_v20 }
 0x2fc   : > { %v10883_v28 = vpack.c.bf16 %v6235_v21, %v6235_v21  ;;  %v11139_v59 = vpack.c.bf16 %v6491_v22, %v6491_v22  ;;  %v6236_v29 = vmax.f32 %v5724_v24, 0.0  ;;  %v6492_v30 = vmax.f32 %v5980_v25, 0.0  ;;  %v3864_v21 = vpop.f32.mrb[237].mxu0  ;;  %v4888_v22 = vpop.f32.mrb[237].mxu1 }
 0x2fd   : > { %v10881_v33 = vpack.c.bf16 %v6233_v54, %v6233_v54  ;;  %v11137_v31 = vpack.c.bf16 %v6489_v26, %v6489_v26  ;;  %v6234_v32 = vmax.f32 %v5722_v40, 0.0  ;;  %v6490_v34 = vmax.f32 %v5978_v27, 0.0  ;;  %v11678_v40 = vpop.f32.mrb[238].mxu0  ;;  %v11934_v27 = vpop.f32.mrb[238].mxu1 }
 0x2fe   : > { %8796 = vst.msk [vmem:[%s12797_s29 + $0x398] sm:$0xf] %vm8565_vm3, %v10883_v28  ;;  %9052 = vst.msk [vmem:[%s12797_s29 + $0x798] sm:$0xf] %vm8565_vm3, %v11139_v59  ;;  %v10884_v37 = vpack.c.bf16 %v6236_v29, %v6236_v29  ;;  %v11140_v50 = vpack.c.bf16 %v6492_v30, %v6492_v30  ;;  %v5208_v38 = vmul.f32 %v14962_v3, %v11673_v35 }
 0x2ff   : > { %v5464_v41 = vmul.f32 %v14962_v3, %v11929_v36  ;;  %8794 = vst.msk [vmem:[%s12797_s29 + $0x390] sm:$0xf] %vm8565_vm3, %v10881_v33  ;;  %9050 = vst.msk [vmem:[%s12797_s29 + $0x790] sm:$0xf] %vm8565_vm3, %v11137_v31  ;;  %v10882_v43 = vpack.c.bf16 %v6234_v32, %v6234_v32  ;;  %v11138_v44 = vpack.c.bf16 %v6490_v34, %v6490_v34  ;;  %v3867_v33 = vpop.f32.mrb[239].mxu0  ;;  %v4891_v31 = vpop.f32.mrb[239].mxu1 }
 0x300   : > { %v5206_v45 = vmul.f32 %v14962_v3, %v3848_v42  ;;  %v5462_v46 = vmul.f32 %v14962_v3, %v4872_v11  ;;  %8797 = vst.msk [vmem:[%s12797_s29 + $0x39c] sm:$0xf] %vm8565_vm3, %v10884_v37  ;;  %9053 = vst.msk [vmem:[%s12797_s29 + $0x79c] sm:$0xf] %vm8565_vm3, %v11140_v50  ;;  %v5727_v51 = vadd.f32 %v14979_v49, %v5208_v38 }
 0x301   : > { %v5983_v52 = vadd.f32 %v14979_v49, %v5464_v41  ;;  %v5209_v57 = vmul.f32 %v14962_v3, %v11674_v47  ;;  %v5465_v53 = vmul.f32 %v14962_v3, %v11930_v48  ;;  %8795 = vst.msk [vmem:[%s12797_s29 + $0x394] sm:$0xf] %vm8565_vm3, %v10882_v43  ;;  %9051 = vst.msk [vmem:[%s12797_s29 + $0x794] sm:$0xf] %vm8565_vm3, %v11138_v44 }
 0x302   : > { %v5725_v61 = vadd.f32 %v14979_v49, %v5206_v45  ;;  %v5981_v55 = vadd.f32 %v14979_v49, %v5462_v46  ;;  %v5207_v23 = vmul.f32 %v14962_v3, %v3851_v58  ;;  %v5463_v62 = vmul.f32 %v14962_v3, %v4875_v60  ;;  %v11681_v58 = vpop.f32.mrb[240].mxu0  ;;  %v11937_v60 = vpop.f32.mrb[240].mxu1 }
 0x303   : > { %v6239_v63 = vmax.f32 %v5727_v51, 0.0  ;;  %v6495_v0 = vmax.f32 %v5983_v52, 0.0  ;;  %v5728_v1 = vadd.f32 %v14979_v49, %v5209_v57  ;;  %v5984_v2 = vadd.f32 %v14979_v49, %v5465_v53 }
 0x304   : > { %v6237_v4 = vmax.f32 %v5725_v61, 0.0  ;;  %v6493_v5 = vmax.f32 %v5981_v55, 0.0  ;;  %v5726_v56 = vadd.f32 %v14979_v49, %v5207_v23  ;;  %v5982_v6 = vadd.f32 %v14979_v49, %v5463_v62 }
 0x305   : > { %v10887_v7 = vpack.c.bf16 %v6239_v63, %v6239_v63  ;;  %v11143_v8 = vpack.c.bf16 %v6495_v0, %v6495_v0  ;;  %v6240_v9 = vmax.f32 %v5728_v1, 0.0  ;;  %v6496_v10 = vmax.f32 %v5984_v2, 0.0  ;;  %v3880_v63 = vpop.f32.mrb[241].mxu0  ;;  %v4904_v0 = vpop.f32.mrb[241].mxu1 }
 0x306   : > { %v10885_v39 = vpack.c.bf16 %v6237_v4, %v6237_v4  ;;  %v11141_v12 = vpack.c.bf16 %v6493_v5, %v6493_v5  ;;  %v6238_v13 = vmax.f32 %v5726_v56, 0.0  ;;  %v6494_v14 = vmax.f32 %v5982_v6, 0.0  ;;  %v11682_v56 = vpop.f32.mrb[242].mxu0  ;;  %v11938_v6 = vpop.f32.mrb[242].mxu1 }
 0x307   : > { %8800 = vst.msk [vmem:[%s12797_s29 + $0x3a8] sm:$0xf] %vm8565_vm3, %v10887_v7  ;;  %9056 = vst.msk [vmem:[%s12797_s29 + $0x7a8] sm:$0xf] %vm8565_vm3, %v11143_v8  ;;  %v10888_v17 = vpack.c.bf16 %v6240_v9, %v6240_v9  ;;  %v11144_v18 = vpack.c.bf16 %v6496_v10, %v6496_v10  ;;  %v5212_v19 = vmul.f32 %v14962_v3, %v11677_v15 }
 0x308   : > { %v5468_v20 = vmul.f32 %v14962_v3, %v11933_v16  ;;  %8798 = vst.msk [vmem:[%s12797_s29 + $0x3a0] sm:$0xf] %vm8565_vm3, %v10885_v39  ;;  %9054 = vst.msk [vmem:[%s12797_s29 + $0x7a0] sm:$0xf] %vm8565_vm3, %v11141_v12  ;;  %v10886_v24 = vpack.c.bf16 %v6238_v13, %v6238_v13  ;;  %v11142_v25 = vpack.c.bf16 %v6494_v14, %v6494_v14  ;;  %v3883_v39 = vpop.f32.mrb[243].mxu0  ;;  %v4907_v12 = vpop.f32.mrb[243].mxu1 }
 0x309   : > { %v5210_v54 = vmul.f32 %v14962_v3, %v3864_v21  ;;  %v5466_v26 = vmul.f32 %v14962_v3, %v4888_v22  ;;  %8801 = vst.msk [vmem:[%s12797_s29 + $0x3ac] sm:$0xf] %vm8565_vm3, %v10888_v17  ;;  %9057 = vst.msk [vmem:[%s12797_s29 + $0x7ac] sm:$0xf] %vm8565_vm3, %v11144_v18  ;;  %v5731_v28 = vadd.f32 %v14979_v49, %v5212_v19 }
 0x30a   : > { %v5987_v59 = vadd.f32 %v14979_v49, %v5468_v20  ;;  %v5213_v29 = vmul.f32 %v14962_v3, %v11678_v40  ;;  %v5469_v30 = vmul.f32 %v14962_v3, %v11934_v27  ;;  %8799 = vst.msk [vmem:[%s12797_s29 + $0x3a4] sm:$0xf] %vm8565_vm3, %v10886_v24  ;;  %9055 = vst.msk [vmem:[%s12797_s29 + $0x7a4] sm:$0xf] %vm8565_vm3, %v11142_v25 }
 0x30b   : > { %v5729_v32 = vadd.f32 %v14979_v49, %v5210_v54  ;;  %v5985_v34 = vadd.f32 %v14979_v49, %v5466_v26  ;;  %v5211_v35 = vmul.f32 %v14962_v3, %v3867_v33  ;;  %v5467_v36 = vmul.f32 %v14962_v3, %v4891_v31  ;;  %v11685_v33 = vpop.f32.mrb[244].mxu0  ;;  %v11941_v31 = vpop.f32.mrb[244].mxu1 }
 0x30c   : > { %v6243_v37 = vmax.f32 %v5731_v28, 0.0  ;;  %v6499_v50 = vmax.f32 %v5987_v59, 0.0  ;;  %v5732_v38 = vadd.f32 %v14979_v49, %v5213_v29  ;;  %v5988_v41 = vadd.f32 %v14979_v49, %v5469_v30 }
 0x30d   : > { %v6241_v42 = vmax.f32 %v5729_v32, 0.0  ;;  %v6497_v11 = vmax.f32 %v5985_v34, 0.0  ;;  %v5730_v43 = vadd.f32 %v14979_v49, %v5211_v35  ;;  %v5986_v44 = vadd.f32 %v14979_v49, %v5467_v36 }
 0x30e   : > { %v10891_v45 = vpack.c.bf16 %v6243_v37, %v6243_v37  ;;  %v11147_v46 = vpack.c.bf16 %v6499_v50, %v6499_v50  ;;  %v6244_v47 = vmax.f32 %v5732_v38, 0.0  ;;  %v6500_v48 = vmax.f32 %v5988_v41, 0.0  ;;  %v3896_v37 = vpop.f32.mrb[245].mxu0  ;;  %v4920_v50 = vpop.f32.mrb[245].mxu1 }
 0x30f   : > { %v10889_v51 = vpack.c.bf16 %v6241_v42, %v6241_v42  ;;  %v11145_v52 = vpack.c.bf16 %v6497_v11, %v6497_v11  ;;  %v6242_v57 = vmax.f32 %v5730_v43, 0.0  ;;  %v6498_v53 = vmax.f32 %v5986_v44, 0.0  ;;  %v11686_v43 = vpop.f32.mrb[246].mxu0  ;;  %v11942_v44 = vpop.f32.mrb[246].mxu1 }
 0x310   : > { %8804 = vst.msk [vmem:[%s12797_s29 + $0x3b8] sm:$0xf] %vm8565_vm3, %v10891_v45  ;;  %9060 = vst.msk [vmem:[%s12797_s29 + $0x7b8] sm:$0xf] %vm8565_vm3, %v11147_v46  ;;  %v10892_v61 = vpack.c.bf16 %v6244_v47, %v6244_v47  ;;  %v11148_v55 = vpack.c.bf16 %v6500_v48, %v6500_v48  ;;  %v5216_v23 = vmul.f32 %v14962_v3, %v11681_v58 }
 0x311   : > { %v5472_v62 = vmul.f32 %v14962_v3, %v11937_v60  ;;  %8802 = vst.msk [vmem:[%s12797_s29 + $0x3b0] sm:$0xf] %vm8565_vm3, %v10889_v51  ;;  %9058 = vst.msk [vmem:[%s12797_s29 + $0x7b0] sm:$0xf] %vm8565_vm3, %v11145_v52  ;;  %v10890_v1 = vpack.c.bf16 %v6242_v57, %v6242_v57  ;;  %v11146_v2 = vpack.c.bf16 %v6498_v53, %v6498_v53  ;;  %v3899_v51 = vpop.f32.mrb[247].mxu0  ;;  %v4923_v52 = vpop.f32.mrb[247].mxu1 }
 0x312   : > { %v5214_v4 = vmul.f32 %v14962_v3, %v3880_v63  ;;  %v5470_v5 = vmul.f32 %v14962_v3, %v4904_v0  ;;  %8805 = vst.msk [vmem:[%s12797_s29 + $0x3bc] sm:$0xf] %vm8565_vm3, %v10892_v61  ;;  %9061 = vst.msk [vmem:[%s12797_s29 + $0x7bc] sm:$0xf] %vm8565_vm3, %v11148_v55  ;;  %v5735_v7 = vadd.f32 %v14979_v49, %v5216_v23 }
 0x313   : > { %v5991_v8 = vadd.f32 %v14979_v49, %v5472_v62  ;;  %v5217_v9 = vmul.f32 %v14962_v3, %v11682_v56  ;;  %v5473_v10 = vmul.f32 %v14962_v3, %v11938_v6  ;;  %8803 = vst.msk [vmem:[%s12797_s29 + $0x3b4] sm:$0xf] %vm8565_vm3, %v10890_v1  ;;  %9059 = vst.msk [vmem:[%s12797_s29 + $0x7b4] sm:$0xf] %vm8565_vm3, %v11146_v2 }
 0x314   : > { %v5733_v13 = vadd.f32 %v14979_v49, %v5214_v4  ;;  %v5989_v14 = vadd.f32 %v14979_v49, %v5470_v5  ;;  %v5215_v15 = vmul.f32 %v14962_v3, %v3883_v39  ;;  %v5471_v16 = vmul.f32 %v14962_v3, %v4907_v12  ;;  %v11689_v39 = vpop.f32.mrb[248].mxu0  ;;  %v11945_v12 = vpop.f32.mrb[248].mxu1 }
 0x315   : > { %v6247_v17 = vmax.f32 %v5735_v7, 0.0  ;;  %v6503_v18 = vmax.f32 %v5991_v8, 0.0  ;;  %v5736_v19 = vadd.f32 %v14979_v49, %v5217_v9  ;;  %v5992_v20 = vadd.f32 %v14979_v49, %v5473_v10 }
 0x316   : > { %v6245_v21 = vmax.f32 %v5733_v13, 0.0  ;;  %v6501_v22 = vmax.f32 %v5989_v14, 0.0  ;;  %v5734_v24 = vadd.f32 %v14979_v49, %v5215_v15  ;;  %v5990_v25 = vadd.f32 %v14979_v49, %v5471_v16 }
 0x317   : > { %v10895_v54 = vpack.c.bf16 %v6247_v17, %v6247_v17  ;;  %v11151_v26 = vpack.c.bf16 %v6503_v18, %v6503_v18  ;;  %v6248_v40 = vmax.f32 %v5736_v19, 0.0  ;;  %v6504_v27 = vmax.f32 %v5992_v20, 0.0  ;;  %v3912_v17 = vpop.f32.mrb[249].mxu0  ;;  %v4936_v18 = vpop.f32.mrb[249].mxu1 }
 0x318   : > { %v10893_v28 = vpack.c.bf16 %v6245_v21, %v6245_v21  ;;  %v11149_v59 = vpack.c.bf16 %v6501_v22, %v6501_v22  ;;  %v6246_v29 = vmax.f32 %v5734_v24, 0.0  ;;  %v6502_v30 = vmax.f32 %v5990_v25, 0.0  ;;  %v11690_v24 = vpop.f32.mrb[250].mxu0  ;;  %v11946_v25 = vpop.f32.mrb[250].mxu1 }
 0x319   : > { %8808 = vst.msk [vmem:[%s12797_s29 + $0x3c8] sm:$0xf] %vm8565_vm3, %v10895_v54  ;;  %9064 = vst.msk [vmem:[%s12797_s29 + $0x7c8] sm:$0xf] %vm8565_vm3, %v11151_v26  ;;  %v10896_v32 = vpack.c.bf16 %v6248_v40, %v6248_v40  ;;  %v11152_v34 = vpack.c.bf16 %v6504_v27, %v6504_v27  ;;  %v5220_v35 = vmul.f32 %v14962_v3, %v11685_v33 }
 0x31a   : > { %v5476_v36 = vmul.f32 %v14962_v3, %v11941_v31  ;;  %8806 = vst.msk [vmem:[%s12797_s29 + $0x3c0] sm:$0xf] %vm8565_vm3, %v10893_v28  ;;  %9062 = vst.msk [vmem:[%s12797_s29 + $0x7c0] sm:$0xf] %vm8565_vm3, %v11149_v59  ;;  %v10894_v38 = vpack.c.bf16 %v6246_v29, %v6246_v29  ;;  %v11150_v41 = vpack.c.bf16 %v6502_v30, %v6502_v30  ;;  %v3915_v28 = vpop.f32.mrb[251].mxu0  ;;  %v4939_v59 = vpop.f32.mrb[251].mxu1 }
 0x31b   : > { %v5218_v42 = vmul.f32 %v14962_v3, %v3896_v37  ;;  %v5474_v11 = vmul.f32 %v14962_v3, %v4920_v50  ;;  %8809 = vst.msk [vmem:[%s12797_s29 + $0x3cc] sm:$0xf] %vm8565_vm3, %v10896_v32  ;;  %9065 = vst.msk [vmem:[%s12797_s29 + $0x7cc] sm:$0xf] %vm8565_vm3, %v11152_v34  ;;  %v5739_v45 = vadd.f32 %v14979_v49, %v5220_v35 }
 0x31c   : > { %v5995_v46 = vadd.f32 %v14979_v49, %v5476_v36  ;;  %v5221_v47 = vmul.f32 %v14962_v3, %v11686_v43  ;;  %v5477_v48 = vmul.f32 %v14962_v3, %v11942_v44  ;;  %8807 = vst.msk [vmem:[%s12797_s29 + $0x3c4] sm:$0xf] %vm8565_vm3, %v10894_v38  ;;  %9063 = vst.msk [vmem:[%s12797_s29 + $0x7c4] sm:$0xf] %vm8565_vm3, %v11150_v41 }
 0x31d   : > { %v5737_v57 = vadd.f32 %v14979_v49, %v5218_v42  ;;  %v5993_v53 = vadd.f32 %v14979_v49, %v5474_v11  ;;  %v5219_v58 = vmul.f32 %v14962_v3, %v3899_v51  ;;  %v5475_v60 = vmul.f32 %v14962_v3, %v4923_v52  ;;  %v11693_v51 = vpop.f32.mrb[252].mxu0  ;;  %v11949_v52 = vpop.f32.mrb[252].mxu1 }
 0x31e   : > { %v6251_v61 = vmax.f32 %v5739_v45, 0.0  ;;  %v6507_v55 = vmax.f32 %v5995_v46, 0.0  ;;  %v5740_v23 = vadd.f32 %v14979_v49, %v5221_v47  ;;  %v5996_v62 = vadd.f32 %v14979_v49, %v5477_v48 }
 0x31f   : > { %v6249_v63 = vmax.f32 %v5737_v57, 0.0  ;;  %v6505_v0 = vmax.f32 %v5993_v53, 0.0  ;;  %v5738_v1 = vadd.f32 %v14979_v49, %v5219_v58  ;;  %v5994_v2 = vadd.f32 %v14979_v49, %v5475_v60 }
 0x320   : > { %v10899_v4 = vpack.c.bf16 %v6251_v61, %v6251_v61  ;;  %v11155_v5 = vpack.c.bf16 %v6507_v55, %v6507_v55  ;;  %v6252_v56 = vmax.f32 %v5740_v23, 0.0  ;;  %v6508_v6 = vmax.f32 %v5996_v62, 0.0  ;;  %v3928_v61 = vpop.f32.mrb[253].mxu0  ;;  %v4952_v55 = vpop.f32.mrb[253].mxu1 }
 0x321   : > { %v10897_v7 = vpack.c.bf16 %v6249_v63, %v6249_v63  ;;  %v11153_v8 = vpack.c.bf16 %v6505_v0, %v6505_v0  ;;  %v6250_v9 = vmax.f32 %v5738_v1, 0.0  ;;  %v6506_v10 = vmax.f32 %v5994_v2, 0.0  ;;  %v11694_v1 = vpop.f32.mrb[254].mxu0  ;;  %v11950_v2 = vpop.f32.mrb[254].mxu1 }
 0x322   : > { %8812 = vst.msk [vmem:[%s12797_s29 + $0x3d8] sm:$0xf] %vm8565_vm3, %v10899_v4  ;;  %9068 = vst.msk [vmem:[%s12797_s29 + $0x7d8] sm:$0xf] %vm8565_vm3, %v11155_v5  ;;  %v10900_v13 = vpack.c.bf16 %v6252_v56, %v6252_v56  ;;  %v11156_v14 = vpack.c.bf16 %v6508_v6, %v6508_v6  ;;  %v5224_v15 = vmul.f32 %v14962_v3, %v11689_v39 }
 0x323   : > { %v5480_v16 = vmul.f32 %v14962_v3, %v11945_v12  ;;  %8810 = vst.msk [vmem:[%s12797_s29 + $0x3d0] sm:$0xf] %vm8565_vm3, %v10897_v7  ;;  %9066 = vst.msk [vmem:[%s12797_s29 + $0x7d0] sm:$0xf] %vm8565_vm3, %v11153_v8  ;;  %v10898_v19 = vpack.c.bf16 %v6250_v9, %v6250_v9  ;;  %v11154_v20 = vpack.c.bf16 %v6506_v10, %v6506_v10  ;;  %v3931_v7 = vpop.f32.mrb[255].mxu0  ;;  %v4955_v8 = vpop.f32.mrb[255].mxu1 }
 0x324   : > { %v5222_v21 = vmul.f32 %v14962_v3, %v3912_v17  ;;  %v5478_v22 = vmul.f32 %v14962_v3, %v4936_v18  ;;  %8813 = vst.msk [vmem:[%s12797_s29 + $0x3dc] sm:$0xf] %vm8565_vm3, %v10900_v13  ;;  %9069 = vst.msk [vmem:[%s12797_s29 + $0x7dc] sm:$0xf] %vm8565_vm3, %v11156_v14  ;;  %v5743_v54 = vadd.f32 %v14979_v49, %v5224_v15 }
 0x325   : > { %v5999_v26 = vadd.f32 %v14979_v49, %v5480_v16  ;;  %v5225_v40 = vmul.f32 %v14962_v3, %v11690_v24  ;;  %v5481_v27 = vmul.f32 %v14962_v3, %v11946_v25  ;;  %8811 = vst.msk [vmem:[%s12797_s29 + $0x3d4] sm:$0xf] %vm8565_vm3, %v10898_v19  ;;  %9067 = vst.msk [vmem:[%s12797_s29 + $0x7d4] sm:$0xf] %vm8565_vm3, %v11154_v20 }
 0x326   : > { %v5741_v29 = vadd.f32 %v14979_v49, %v5222_v21  ;;  %v5997_v30 = vadd.f32 %v14979_v49, %v5478_v22  ;;  %v5223_v33 = vmul.f32 %v14962_v3, %v3915_v28  ;;  %v5479_v31 = vmul.f32 %v14962_v3, %v4939_v59 }
 0x327   : > { %v6255_v32 = vmax.f32 %v5743_v54, 0.0  ;;  %v6511_v34 = vmax.f32 %v5999_v26, 0.0  ;;  %v5744_v35 = vadd.f32 %v14979_v49, %v5225_v40  ;;  %v6000_v36 = vadd.f32 %v14979_v49, %v5481_v27 }
 0x328   : > { %v6253_v37 = vmax.f32 %v5741_v29, 0.0  ;;  %v6509_v50 = vmax.f32 %v5997_v30, 0.0  ;;  %v5742_v38 = vadd.f32 %v14979_v49, %v5223_v33  ;;  %v5998_v41 = vadd.f32 %v14979_v49, %v5479_v31 }
 0x329   : > { %v10903_v42 = vpack.c.bf16 %v6255_v32, %v6255_v32  ;;  %v11159_v11 = vpack.c.bf16 %v6511_v34, %v6511_v34  ;;  %v6256_v43 = vmax.f32 %v5744_v35, 0.0  ;;  %v6512_v44 = vmax.f32 %v6000_v36, 0.0 }
 0x32a   : > { %v10901_v45 = vpack.c.bf16 %v6253_v37, %v6253_v37  ;;  %v11157_v46 = vpack.c.bf16 %v6509_v50, %v6509_v50  ;;  %v6254_v47 = vmax.f32 %v5742_v38, 0.0  ;;  %v6510_v48 = vmax.f32 %v5998_v41, 0.0 }
 0x32b   : > { %8816 = vst.msk [vmem:[%s12797_s29 + $0x3e8] sm:$0xf] %vm8565_vm3, %v10903_v42  ;;  %9072 = vst.msk [vmem:[%s12797_s29 + $0x7e8] sm:$0xf] %vm8565_vm3, %v11159_v11  ;;  %v10904_v57 = vpack.c.bf16 %v6256_v43, %v6256_v43  ;;  %v11160_v53 = vpack.c.bf16 %v6512_v44, %v6512_v44  ;;  %v5228_v58 = vmul.f32 %v14962_v3, %v11693_v51 }
 0x32c   : > { %v5484_v60 = vmul.f32 %v14962_v3, %v11949_v52  ;;  %8814 = vst.msk [vmem:[%s12797_s29 + $0x3e0] sm:$0xf] %vm8565_vm3, %v10901_v45  ;;  %9070 = vst.msk [vmem:[%s12797_s29 + $0x7e0] sm:$0xf] %vm8565_vm3, %v11157_v46  ;;  %v10902_v23 = vpack.c.bf16 %v6254_v47, %v6254_v47  ;;  %v11158_v62 = vpack.c.bf16 %v6510_v48, %v6510_v48 }
 0x32d   : > { %v5226_v63 = vmul.f32 %v14962_v3, %v3928_v61  ;;  %v5482_v0 = vmul.f32 %v14962_v3, %v4952_v55  ;;  %8817 = vst.msk [vmem:[%s12797_s29 + $0x3ec] sm:$0xf] %vm8565_vm3, %v10904_v57  ;;  %9073 = vst.msk [vmem:[%s12797_s29 + $0x7ec] sm:$0xf] %vm8565_vm3, %v11160_v53  ;;  %v5747_v4 = vadd.f32 %v14979_v49, %v5228_v58 }
 0x32e   : > { %v6003_v5 = vadd.f32 %v14979_v49, %v5484_v60  ;;  %v5229_v56 = vmul.f32 %v14962_v3, %v11694_v1  ;;  %v5485_v6 = vmul.f32 %v14962_v3, %v11950_v2  ;;  %8815 = vst.msk [vmem:[%s12797_s29 + $0x3e4] sm:$0xf] %vm8565_vm3, %v10902_v23  ;;  %9071 = vst.msk [vmem:[%s12797_s29 + $0x7e4] sm:$0xf] %vm8565_vm3, %v11158_v62 }
 0x32f   : > { %v5745_v9 = vadd.f32 %v14979_v49, %v5226_v63  ;;  %v6001_v10 = vadd.f32 %v14979_v49, %v5482_v0  ;;  %v5227_v39 = vmul.f32 %v14962_v3, %v3931_v7  ;;  %v5483_v12 = vmul.f32 %v14962_v3, %v4955_v8 }
 0x330   : > { %v6259_v13 = vmax.f32 %v5747_v4, 0.0  ;;  %v6515_v14 = vmax.f32 %v6003_v5, 0.0  ;;  %v5748_v15 = vadd.f32 %v14979_v49, %v5229_v56  ;;  %v6004_v16 = vadd.f32 %v14979_v49, %v5485_v6 }
 0x331   : > { %v6257_v17 = vmax.f32 %v5745_v9, 0.0  ;;  %v6513_v18 = vmax.f32 %v6001_v10, 0.0  ;;  %v5746_v19 = vadd.f32 %v14979_v49, %v5227_v39  ;;  %v6002_v20 = vadd.f32 %v14979_v49, %v5483_v12  ;;  %9084 = sbr.rel (!%p12501_p3) target bundleno = 915 (0x393), region = 40 }
 0x332   : > { %v10907_v21 = vpack.c.bf16 %v6259_v13, %v6259_v13  ;;  %v11163_v22 = vpack.c.bf16 %v6515_v14, %v6515_v14  ;;  %v6260_v3 = vmax.f32 %v5748_v15, 0.0  ;;  %v6516_v24 = vmax.f32 %v6004_v16, 0.0 }
 0x333   : > { %v10905_v25 = vpack.c.bf16 %v6257_v17, %v6257_v17  ;;  %v11161_v54 = vpack.c.bf16 %v6513_v18, %v6513_v18  ;;  %v6258_v26 = vmax.f32 %v5746_v19, 0.0  ;;  %v6514_v40 = vmax.f32 %v6002_v20, 0.0 }
 0x334   : > { %8820 = vst.msk [vmem:[%s12797_s29 + $0x3f8] sm:$0xf] %vm8565_vm3, %v10907_v21  ;;  %9076 = vst.msk [vmem:[%s12797_s29 + $0x7f8] sm:$0xf] %vm8565_vm3, %v11163_v22  ;;  %v10908_v27 = vpack.c.bf16 %v6260_v3, %v6260_v3  ;;  %v11164_v28 = vpack.c.bf16 %v6516_v24, %v6516_v24 }
 0x335   : > { %8818 = vst.msk [vmem:[%s12797_s29 + $0x3f0] sm:$0xf] %vm8565_vm3, %v10905_v25  ;;  %9074 = vst.msk [vmem:[%s12797_s29 + $0x7f0] sm:$0xf] %vm8565_vm3, %v11161_v54  ;;  %v10906_v49 = vpack.c.bf16 %v6258_v26, %v6258_v26  ;;  %v11162_v59 = vpack.c.bf16 %v6514_v40, %v6514_v40 }
 0x336   : > { %8821 = vst.msk [vmem:[%s12797_s29 + $0x3fc] sm:$0xf] %vm8565_vm3, %v10908_v27  ;;  %9077 = vst.msk [vmem:[%s12797_s29 + $0x7fc] sm:$0xf] %vm8565_vm3, %v11164_v28 }
 0x337   : > { %8819 = vst.msk [vmem:[%s12797_s29 + $0x3f4] sm:$0xf] %vm8565_vm3, %v10906_v49  ;;  %9075 = vst.msk [vmem:[%s12797_s29 + $0x7f4] sm:$0xf] %vm8565_vm3, %v11162_v59 }
 0x338   : > { %s15393_s12 = smov (!%p9087_p9, %s9086_s12), 512 }
 0x339   : > { %s10638_s20 = sshll.u32 %s15393_s12, 6 }
 0x33a   : > { %p10641_p10 = scmp.eq.s32.totalorder %s10638_s20, 0 }
 0x33b   : > { %s15186_s26 = sshrl.u32 (!%p10641_p10), %s15393_s12, 6 }
 0x33c   : > { %9096 = sbr.rel (%p10641_p10) target bundleno = 915 (0x393), region = 44  ;;  %p10642_p11 = scmp.le.s32.totalorder (!%p10641_p10), %s15186_s26, 0 }
 0x343   : > { %9515 = sbr.rel (%p10642_p11) target bundleno = 894 (0x37e), region = 125  ;;  %s15383_s17 = smov (!%p10642_p11), %s15180_s24 }
 0x344   : > { %s15384_s23 = smov (!%p10642_p11), %s12797_s29  ;;  %s15195_s6 = smov (!%p10642_p11), 0  }
 0x345   : > { %s15197_s27 = smov (!%p10642_p11), 0  }
 0x34a LB: >> { %v9112_v29 = vld [vmem:[%s12417_s23] sm:$0xf]  ;;  %v9114_v30 = vld [vmem:[%s12417_s23 + $0x4] sm:$0xf]  ;;  %v9116_v33 = vld [vmem:[%s12417_s23 + $0x8] sm:$0xf]  ;;  %s12425_s27 = sphi %s15197_s27, %s9106_s27   ;;  %s12421_s6 = sphi %s15195_s6, %s15385_s6   ;;  %s12417_s23 = sphi %s15384_s23, %s9245_s23   ;;  %s12413_s17 = sphi %s15383_s17, %s9246_s17  }
 0x34b   : >> { %9113 = vst [vmem:[%s12413_s17] sm:$0xf] %v9112_v29  ;;  %9115 = vst [vmem:[%s12413_s17 + $0x4] sm:$0xf] %v9114_v30  ;;  %v9118_v31 = vld [vmem:[%s12417_s23 + $0xc] sm:$0xf]  ;;  %s9240_s15 = sadd.s32 1, %s12421_s6 }
 0x34c   : >> { %9117 = vst [vmem:[%s12413_s17 + $0x8] sm:$0xf] %v9116_v33  ;;  %v9120_v32 = vld [vmem:[%s12417_s23 + $0x10] sm:$0xf]  ;;  %v9122_v34 = vld [vmem:[%s12417_s23 + $0x14] sm:$0xf]  ;;  %p9241_p12 = scmp.ge.s32.totalorder %s9240_s15, %s15186_s26 }
 0x34d   : >> { %9119 = vst [vmem:[%s12413_s17 + $0xc] sm:$0xf] %v9118_v31  ;;  %9121 = vst [vmem:[%s12413_s17 + $0x10] sm:$0xf] %v9120_v32  ;;  %v9124_v35 = vld [vmem:[%s12417_s23 + $0x18] sm:$0xf] }
 0x34e   : >> { %9123 = vst [vmem:[%s12413_s17 + $0x14] sm:$0xf] %v9122_v34  ;;  %v9126_v36 = vld [vmem:[%s12417_s23 + $0x1c] sm:$0xf]  ;;  %v9128_v37 = vld [vmem:[%s12417_s23 + $0x20] sm:$0xf] }
 0x34f   : >> { %9125 = vst [vmem:[%s12413_s17 + $0x18] sm:$0xf] %v9124_v35  ;;  %9127 = vst [vmem:[%s12413_s17 + $0x1c] sm:$0xf] %v9126_v36  ;;  %v9130_v50 = vld [vmem:[%s12417_s23 + $0x24] sm:$0xf] }
 0x350   : >> { %9129 = vst [vmem:[%s12413_s17 + $0x20] sm:$0xf] %v9128_v37  ;;  %v9132_v38 = vld [vmem:[%s12417_s23 + $0x28] sm:$0xf]  ;;  %v9134_v41 = vld [vmem:[%s12417_s23 + $0x2c] sm:$0xf] }
 0x351   : >> { %9131 = vst [vmem:[%s12413_s17 + $0x24] sm:$0xf] %v9130_v50  ;;  %9133 = vst [vmem:[%s12413_s17 + $0x28] sm:$0xf] %v9132_v38  ;;  %v9136_v42 = vld [vmem:[%s12417_s23 + $0x30] sm:$0xf] }
 0x352   : >> { %9135 = vst [vmem:[%s12413_s17 + $0x2c] sm:$0xf] %v9134_v41  ;;  %v9138_v11 = vld [vmem:[%s12417_s23 + $0x34] sm:$0xf]  ;;  %v9140_v43 = vld [vmem:[%s12417_s23 + $0x38] sm:$0xf] }
 0x353   : >> { %9137 = vst [vmem:[%s12413_s17 + $0x30] sm:$0xf] %v9136_v42  ;;  %9139 = vst [vmem:[%s12413_s17 + $0x34] sm:$0xf] %v9138_v11  ;;  %v9142_v44 = vld [vmem:[%s12417_s23 + $0x3c] sm:$0xf] }
 0x354   : >> { %9141 = vst [vmem:[%s12413_s17 + $0x38] sm:$0xf] %v9140_v43  ;;  %v9144_v45 = vld [vmem:[%s12417_s23 + $0x40] sm:$0xf]  ;;  %v9146_v46 = vld [vmem:[%s12417_s23 + $0x44] sm:$0xf] }
 0x355   : >> { %9143 = vst [vmem:[%s12413_s17 + $0x3c] sm:$0xf] %v9142_v44  ;;  %9145 = vst [vmem:[%s12413_s17 + $0x40] sm:$0xf] %v9144_v45  ;;  %v9148_v47 = vld [vmem:[%s12417_s23 + $0x48] sm:$0xf] }
 0x356   : >> { %9147 = vst [vmem:[%s12413_s17 + $0x44] sm:$0xf] %v9146_v46  ;;  %v9150_v48 = vld [vmem:[%s12417_s23 + $0x4c] sm:$0xf]  ;;  %v9152_v51 = vld [vmem:[%s12417_s23 + $0x50] sm:$0xf] }
 0x357   : >> { %9149 = vst [vmem:[%s12413_s17 + $0x48] sm:$0xf] %v9148_v47  ;;  %9151 = vst [vmem:[%s12413_s17 + $0x4c] sm:$0xf] %v9150_v48  ;;  %v9154_v52 = vld [vmem:[%s12417_s23 + $0x54] sm:$0xf] }
 0x358   : >> { %9153 = vst [vmem:[%s12413_s17 + $0x50] sm:$0xf] %v9152_v51  ;;  %v9156_v57 = vld [vmem:[%s12417_s23 + $0x58] sm:$0xf]  ;;  %v9158_v53 = vld [vmem:[%s12417_s23 + $0x5c] sm:$0xf] }
 0x359   : >> { %9155 = vst [vmem:[%s12413_s17 + $0x54] sm:$0xf] %v9154_v52  ;;  %9157 = vst [vmem:[%s12413_s17 + $0x58] sm:$0xf] %v9156_v57  ;;  %v9160_v58 = vld [vmem:[%s12417_s23 + $0x60] sm:$0xf] }
 0x35a   : >> { %9159 = vst [vmem:[%s12413_s17 + $0x5c] sm:$0xf] %v9158_v53  ;;  %v9162_v60 = vld [vmem:[%s12417_s23 + $0x64] sm:$0xf]  ;;  %v9164_v61 = vld [vmem:[%s12417_s23 + $0x68] sm:$0xf] }
 0x35b   : >> { %9161 = vst [vmem:[%s12413_s17 + $0x60] sm:$0xf] %v9160_v58  ;;  %9163 = vst [vmem:[%s12413_s17 + $0x64] sm:$0xf] %v9162_v60  ;;  %v9166_v55 = vld [vmem:[%s12417_s23 + $0x6c] sm:$0xf] }
 0x35c   : >> { %9165 = vst [vmem:[%s12413_s17 + $0x68] sm:$0xf] %v9164_v61  ;;  %v9168_v23 = vld [vmem:[%s12417_s23 + $0x70] sm:$0xf]  ;;  %v9170_v62 = vld [vmem:[%s12417_s23 + $0x74] sm:$0xf] }
 0x35d   : >> { %9167 = vst [vmem:[%s12413_s17 + $0x6c] sm:$0xf] %v9166_v55  ;;  %9169 = vst [vmem:[%s12413_s17 + $0x70] sm:$0xf] %v9168_v23  ;;  %v9172_v63 = vld [vmem:[%s12417_s23 + $0x78] sm:$0xf] }
 0x35e   : >> { %9171 = vst [vmem:[%s12413_s17 + $0x74] sm:$0xf] %v9170_v62  ;;  %v9174_v0 = vld [vmem:[%s12417_s23 + $0x7c] sm:$0xf]  ;;  %v9176_v1 = vld [vmem:[%s12417_s23 + $0x80] sm:$0xf] }
 0x35f   : >> { %9173 = vst [vmem:[%s12413_s17 + $0x78] sm:$0xf] %v9172_v63  ;;  %9175 = vst [vmem:[%s12413_s17 + $0x7c] sm:$0xf] %v9174_v0  ;;  %v9178_v2 = vld [vmem:[%s12417_s23 + $0x84] sm:$0xf] }
 0x360   : >> { %9177 = vst [vmem:[%s12413_s17 + $0x80] sm:$0xf] %v9176_v1  ;;  %v9180_v4 = vld [vmem:[%s12417_s23 + $0x88] sm:$0xf]  ;;  %v9182_v5 = vld [vmem:[%s12417_s23 + $0x8c] sm:$0xf] }
 0x361   : >> { %9179 = vst [vmem:[%s12413_s17 + $0x84] sm:$0xf] %v9178_v2  ;;  %9181 = vst [vmem:[%s12413_s17 + $0x88] sm:$0xf] %v9180_v4  ;;  %v9184_v56 = vld [vmem:[%s12417_s23 + $0x90] sm:$0xf] }
 0x362   : >> { %9183 = vst [vmem:[%s12413_s17 + $0x8c] sm:$0xf] %v9182_v5  ;;  %v9186_v6 = vld [vmem:[%s12417_s23 + $0x94] sm:$0xf]  ;;  %v9188_v7 = vld [vmem:[%s12417_s23 + $0x98] sm:$0xf] }
 0x363   : >> { %9185 = vst [vmem:[%s12413_s17 + $0x90] sm:$0xf] %v9184_v56  ;;  %9187 = vst [vmem:[%s12413_s17 + $0x94] sm:$0xf] %v9186_v6  ;;  %v9190_v8 = vld [vmem:[%s12417_s23 + $0x9c] sm:$0xf] }
 0x364   : >> { %9189 = vst [vmem:[%s12413_s17 + $0x98] sm:$0xf] %v9188_v7  ;;  %v9192_v9 = vld [vmem:[%s12417_s23 + $0xa0] sm:$0xf]  ;;  %v9194_v10 = vld [vmem:[%s12417_s23 + $0xa4] sm:$0xf] }
 0x365   : >> { %9191 = vst [vmem:[%s12413_s17 + $0x9c] sm:$0xf] %v9190_v8  ;;  %9193 = vst [vmem:[%s12413_s17 + $0xa0] sm:$0xf] %v9192_v9  ;;  %v9196_v39 = vld [vmem:[%s12417_s23 + $0xa8] sm:$0xf] }
 0x366   : >> { %9195 = vst [vmem:[%s12413_s17 + $0xa4] sm:$0xf] %v9194_v10  ;;  %v9198_v12 = vld [vmem:[%s12417_s23 + $0xac] sm:$0xf]  ;;  %v9200_v13 = vld [vmem:[%s12417_s23 + $0xb0] sm:$0xf] }
 0x367   : >> { %9197 = vst [vmem:[%s12413_s17 + $0xa8] sm:$0xf] %v9196_v39  ;;  %9199 = vst [vmem:[%s12413_s17 + $0xac] sm:$0xf] %v9198_v12  ;;  %v9202_v14 = vld [vmem:[%s12417_s23 + $0xb4] sm:$0xf] }
 0x368   : >> { %9201 = vst [vmem:[%s12413_s17 + $0xb0] sm:$0xf] %v9200_v13  ;;  %v9204_v15 = vld [vmem:[%s12417_s23 + $0xb8] sm:$0xf]  ;;  %v9206_v16 = vld [vmem:[%s12417_s23 + $0xbc] sm:$0xf] }
 0x369   : >> { %9203 = vst [vmem:[%s12413_s17 + $0xb4] sm:$0xf] %v9202_v14  ;;  %9205 = vst [vmem:[%s12413_s17 + $0xb8] sm:$0xf] %v9204_v15  ;;  %v9208_v17 = vld [vmem:[%s12417_s23 + $0xc0] sm:$0xf] }
 0x36a   : >> { %9207 = vst [vmem:[%s12413_s17 + $0xbc] sm:$0xf] %v9206_v16  ;;  %v9210_v18 = vld [vmem:[%s12417_s23 + $0xc4] sm:$0xf]  ;;  %v9212_v19 = vld [vmem:[%s12417_s23 + $0xc8] sm:$0xf] }
 0x36b   : >> { %9209 = vst [vmem:[%s12413_s17 + $0xc0] sm:$0xf] %v9208_v17  ;;  %9211 = vst [vmem:[%s12413_s17 + $0xc4] sm:$0xf] %v9210_v18  ;;  %v9214_v20 = vld [vmem:[%s12417_s23 + $0xcc] sm:$0xf] }
 0x36c   : >> { %9213 = vst [vmem:[%s12413_s17 + $0xc8] sm:$0xf] %v9212_v19  ;;  %v9216_v21 = vld [vmem:[%s12417_s23 + $0xd0] sm:$0xf]  ;;  %v9218_v22 = vld [vmem:[%s12417_s23 + $0xd4] sm:$0xf] }
 0x36d   : >> { %9215 = vst [vmem:[%s12413_s17 + $0xcc] sm:$0xf] %v9214_v20  ;;  %9217 = vst [vmem:[%s12413_s17 + $0xd0] sm:$0xf] %v9216_v21  ;;  %v9220_v3 = vld [vmem:[%s12417_s23 + $0xd8] sm:$0xf] }
 0x36e   : >> { %9219 = vst [vmem:[%s12413_s17 + $0xd4] sm:$0xf] %v9218_v22  ;;  %v9222_v24 = vld [vmem:[%s12417_s23 + $0xdc] sm:$0xf]  ;;  %v9224_v25 = vld [vmem:[%s12417_s23 + $0xe0] sm:$0xf] }
 0x36f   : >> { %9221 = vst [vmem:[%s12413_s17 + $0xd8] sm:$0xf] %v9220_v3  ;;  %9223 = vst [vmem:[%s12413_s17 + $0xdc] sm:$0xf] %v9222_v24  ;;  %v9226_v54 = vld [vmem:[%s12417_s23 + $0xe4] sm:$0xf] }
 0x370   : >> { %9225 = vst [vmem:[%s12413_s17 + $0xe0] sm:$0xf] %v9224_v25  ;;  %v9228_v26 = vld [vmem:[%s12417_s23 + $0xe8] sm:$0xf]  ;;  %v9230_v40 = vld [vmem:[%s12417_s23 + $0xec] sm:$0xf] }
 0x371   : >> { %9227 = vst [vmem:[%s12413_s17 + $0xe4] sm:$0xf] %v9226_v54  ;;  %9229 = vst [vmem:[%s12413_s17 + $0xe8] sm:$0xf] %v9228_v26  ;;  %v9232_v27 = vld [vmem:[%s12417_s23 + $0xf0] sm:$0xf] }
 0x372   : >> { %9231 = vst [vmem:[%s12413_s17 + $0xec] sm:$0xf] %v9230_v40  ;;  %v9234_v28 = vld [vmem:[%s12417_s23 + $0xf4] sm:$0xf]  ;;  %v9236_v49 = vld [vmem:[%s12417_s23 + $0xf8] sm:$0xf] }
 0x373   : >> { %9233 = vst [vmem:[%s12413_s17 + $0xf0] sm:$0xf] %v9232_v27  ;;  %9235 = vst [vmem:[%s12413_s17 + $0xf4] sm:$0xf] %v9234_v28  ;;  %v9238_v59 = vld [vmem:[%s12417_s23 + $0xfc] sm:$0xf] }
 0x374   : >> { %9237 = vst [vmem:[%s12413_s17 + $0xf8] sm:$0xf] %v9236_v49  ;;  %9239 = vst [vmem:[%s12413_s17 + $0xfc] sm:$0xf] %v9238_v59  ;;  %s15395_s15 = smov (%p9241_p12, %s9240_s15), 0  ;;  %s9106_s27 = sadd.s32 1, %s12425_s27  }
 0x375   : >> { %s10643_s28 = sshll.u32 %s15395_s15, 8  ;;  %p9105_p13 = scmp.ge.s32.totalorder %s9106_s27, %s15186_s26 }
 0x376   : >> { %s9245_s23 = scalar_lea.vmem %s12797_s29, %s10643_s28 [#allocation2]   ;;  %s9246_s17 = scalar_lea.vmem %s15180_s24, %s10643_s28  }
 0x377   : >> { %s15385_s6 = smov %s15395_s15  ;;  %9108 = sbr.rel (!%p9105_p13) target bundleno = 842 (0x34a), region = 131 }
 0x37e PF: > { %s15354_s30 = sand.u32 63, %s15393_s12   ;;  %s11166_s5 = sshll.u32 %s15186_s26, 8 }
 0x37f   : > { %s9251_s7 = scalar_lea.vmem %s12797_s29, %s11166_s5 [#allocation2]   ;;  %s9253_s8 = scalar_lea.vmem %s15180_s24, %s11166_s5  }
 0x380   : > { %p10648_p0 = scmp.le.s32.totalorder %s15354_s30, 0 }
 0x381   : > { %s12427_s9 = smov (!%p10648_p0), %s9253_s8   ;;  %s12431_s10 = smov (!%p10648_p0), %s9251_s7  }
 0x382   : > { %9529 = sbr.rel (%p10648_p0) target bundleno = 915 (0x393), region = 136  ;;  %s12435_s11 = smov (!%p10648_p0), 0  }
 0x383   : > { %s12439_s13 = smov (!%p10648_p0), 0  }
 0x389 LB: >> { %v9263_v29 = vld [vmem:[%s12433_s10] sm:$0xf]  ;;  %s9265_s12 = sadd.s32 1, %s12437_s11  ;;  %s9257_s13 = sadd.s32 1, %s12441_s13   ;;  %s12441_s13 = sphi %s12439_s13, %s9257_s13   ;;  %s12437_s11 = sphi %s12435_s11, %s12436_s11   ;;  %s12433_s10 = sphi %s12431_s10, %s9270_s10   ;;  %s12429_s9 = sphi %s12427_s9, %s9271_s9  }
 0x38a   : >> { %9264 = vst [vmem:[%s12429_s9] sm:$0xf] %v9263_v29  ;;  %p9266_p1 = scmp.ge.s32.totalorder %s9265_s12, %s15354_s30  ;;  %p9256_p2 = scmp.ge.s32.totalorder %s9257_s13, %s15354_s30 }
 0x38c   : >> { %s15397_s12 = smov (%p9266_p1, %s9265_s12), 0  ;;  %9259 = sbr.rel (!%p9256_p2) target bundleno = 905 (0x389), region = 142 }
 0x38d   : >> { %s10649_s29 = sshll.u32 %s15397_s12, 2  ;;  %s12436_s11 = smov %s15397_s12  }
 0x38e   : >> { %s9270_s10 = scalar_lea.vmem %s9251_s7, %s10649_s29 [#allocation2]   ;;  %s9271_s9 = scalar_lea.vmem %s9253_s8, %s10649_s29  }
 0x393 PF: > { %s14_s19 = sadd.s32 1, %s12409_s19   ;;  %s15386_s15 = smov %s12397_s16 }
 0x394   : > { %p11_p3 = scmp.ge.s32.totalorder %s14_s19, 6   ;;  %s15387_s16 = smov %s12510_s25 }
 0x395   : > { %s15388_s17 = smov %s12405_s18  ;;  %s15389_s18 = smov %s15391_s21 }
 0x396   :  { %13 = sbr.rel (!%p11_p3) target bundleno = 3 (0x3), region = 153 }

</bundles_post_ra>
